<compile_context>
chip_gen: v7x
topology: tpu7x:2x2x1
jax: 0.10.0
libtpu: 0.0.40
codegen_flags: <defaults>
</compile_context>

<pallas_src>
import functools

import numpy as np
import jax
import jax.numpy as jnp
from jax.experimental import pallas as pl
from jax.experimental.pallas import tpu as pltpu


# --------------------------------------------------------------------------- #
# Kernel 1: fused conv1 + conv2 (+ bias + ReLU), single grid step.
# --------------------------------------------------------------------------- #
def fused_conv_kernel(p_ref, w1_ref, b1_ref, s_ref, w2_ref, b2_ref, o_ref):
    """p_ref:  (R, 9*Cin)   im2col patches of the raw input, R = N*H*W
       w1_ref: (9*Cin, 64)  conv1 weight, taps ordered (ki, kj, cin)
       b1_ref: (1, 64)
       s_ref:  (9, R, R)    constant 0/1 shift/selection matrix per 3x3 tap
       w2_ref: (9, 64, 128) conv2 weight, per tap
       b2_ref: (1, 128)
       o_ref:  (R, 128)     relu(conv2(relu(conv1(x)))), rows in (n, hw) order
    """
    # conv1: one im2col matmul over all batch rows.
    h1 = jnp.dot(p_ref[...], w1_ref[...], preferred_element_type=jnp.float32)
    h1 = jnp.maximum(h1 + b1_ref[...], 0.0)                        # (R, 64)

    # conv2: im2col never materialized — each tap is shift(h1) @ w2[tap], where the
    # (zero-padded) 2-D shift is an exact 0/1 selection matmul on the MXU.
    acc = jnp.zeros(o_ref.shape, jnp.float32)                      # (R, 128)
    for t in range(9):                                             # static unroll
        shifted = jnp.dot(s_ref[t], h1, preferred_element_type=jnp.float32)
        acc = acc + jnp.dot(shifted, w2_ref[t],
                            preferred_element_type=jnp.float32)
    o_ref[...] = jnp.maximum(acc + b2_ref[...], 0.0)


def fused_conv(patches, shift_mats, w1, b1, w2k, b2):
    R = patches.shape[0]
    cout = w2k.shape[-1]
    # No grid: whole (tiny) operands live in VMEM for the single invocation.
    return pl.pallas_call(
        fused_conv_kernel,
        out_shape=jax.ShapeDtypeStruct((R, cout), jnp.float32),
    )(patches, w1, b1, shift_mats, w2k, b2)


# --------------------------------------------------------------------------- #
# Kernel 2: fused FC1 (tiled over K) + FC2 epilogue.
# Grid = (nj, nk): j = "parallel" split of the 512 FC1 columns (2 halves, one per
# TensorCore on megacore parts), k = "arbitrary" walk over the K contraction.
# --------------------------------------------------------------------------- #
def fc_fused_kernel(x_ref, w1_ref, b1_ref, w2_ref, o_ref, acc_ref):
    """x_ref:  (N, tk)   f32 activation slice
       w1_ref: (tk, mj)  bf16 FC1 weight tile (upcast in-VMEM; HBM traffic is bf16)
       b1_ref: (1, mj)   FC1 bias half
       w2_ref: (mj, A)   FC2 weight half (contracts this half of f1)
       o_ref:  (1, N, A) partial FC2 output for this column half
       acc_ref:(N, mj)   f32 FC1 accumulator (persists across k)
    """
    k = pl.program_id(1)

    @pl.when(k == 0)
    def _():
        acc_ref[...] = jnp.zeros_like(acc_ref)

    acc_ref[...] += jnp.dot(x_ref[...], w1_ref[...].astype(jnp.float32),
                            preferred_element_type=jnp.float32)

    @pl.when(k == pl.num_programs(1) - 1)
    def _():
        f1 = jnp.maximum(acc_ref[...] + b1_ref[...], 0.0)          # (N, mj)
        o_ref[0] = jnp.dot(f1, w2_ref[...], preferred_element_type=jnp.float32)


def _pick_tk(K, max_tk=6400):
    """Largest K-tile that divides K, is a multiple of 128, and <= max_tk.

    max_tk=6400 keeps the double-buffered bf16 weight tile (2 x tk x 256 x 2B
    = 6.6 MB) comfortably inside scoped VMEM on all of v5e / v6e / v7x."""
    if K <= max_tk:
        return K
    best = 0
    for m in range(1, max_tk // 128 + 1):
        tk = 128 * m
        if K % tk == 0:
            best = tk
    # Fallback (K has no 128-multiple divisor <= max_tk): single block. Only hit for
    # exotic board sizes; may need a larger vmem_limit_bytes.
    return best if best > 0 else K


def fc_fused(flat, wf1, bf1, wf2):
    """flat: (N, K) f32, wf1: (K, 512) bf16 (rows in (hw, c) order), bf1: (1, 512),
    wf2: (512, A) f32.  Returns relu(flat @ wf1 + bf1) @ wf2  (bias of FC2 added by
    the caller)."""
    N, K = flat.shape
    mtot = wf1.shape[1]
    A = wf2.shape[1]
    nj = 2 if mtot % 2 == 0 else 1
    mj = mtot // nj
    tk = _pick_tk(K)
    nk = K // tk

    partials = pl.pallas_call(
        fc_fused_kernel,
        out_shape=jax.ShapeDtypeStruct((nj, N, A), jnp.float32),
        grid_spec=pltpu.PrefetchScalarGridSpec(
            num_scalar_prefetch=0,
            grid=(nj, nk),
            in_specs=[
                pl.BlockSpec((N, tk), lambda j, k: (0, k)),
                pl.BlockSpec((tk, mj), lambda j, k: (k, j)),
                pl.BlockSpec((1, mj), lambda j, k: (0, j)),
                pl.BlockSpec((mj, A), lambda j, k: (j, 0)),
            ],
            out_specs=pl.BlockSpec((1, N, A), lambda j, k: (j, 0, 0)),
            scratch_shapes=[pltpu.VMEM((N, mj), jnp.float32)],
        ),
        compiler_params=pltpu.CompilerParams(
            dimension_semantics=("parallel", "arbitrary"),
            vmem_limit_bytes=32 * 1024 * 1024),
    )(flat, wf1, bf1, wf2)
    # Sum the two column-half partials of FC2 (tiny (nj, N, A) add in XLA).
    return jnp.sum(partials, axis=0)


# --------------------------------------------------------------------------- #
# Glue (plain JAX / numpy constants)
# --------------------------------------------------------------------------- #
def im2col_3x3(x):
    """x: (N, H, W, C) -> (N*H*W, 9*C), 'same' padding, taps ordered (ki, kj, c)."""
    N, H, W, C = x.shape
    xp = jnp.pad(x, ((0, 0), (1, 1), (1, 1), (0, 0)))
    cols = [xp[:, ki:ki + H, kj:kj + W, :] for ki in range(3) for kj in range(3)]
    return jnp.concatenate(cols, axis=-1).reshape(N * H * W, 9 * C)


@functools.lru_cache(maxsize=None)
def _shift_matrices(N, H, W):
    """(9, R, R) 0/1 matrices: S[t] @ h selects the (di, dj)=(t//3-1, t%3-1) shifted
    neighbor of each flattened (n, i, j) row, with zero padding at image borders."""
    R = N * H * W
    r = np.arange(R)
    p = r % (H * W)
    row, col = p // W, p % W
    mats = np.zeros((9, R, R), np.float32)
    t = 0
    for di in (-1, 0, 1):
        for dj in (-1, 0, 1):
            valid = (row + di >= 0) & (row + di < H) & (col + dj >= 0) & (col + dj < W)
            src = r + di * W + dj
            mats[t, r[valid], src[valid]] = 1.0
            t += 1
    return jnp.asarray(mats)


def init_params(key, board_size=10, action_size=100, input_channels=1):
    """Weights in PyTorch-equivalent (im2col / NCHW-flatten) layout, all f32."""
    ks = jax.random.split(key, 8)

    def winit(k, shape, fan_in):
        return jax.random.normal(k, shape, jnp.float32) / jnp.sqrt(float(fan_in))

    conv_out = 128 * board_size * board_size
    return dict(
        w1=winit(ks[0], (9 * input_channels, 64), 9 * input_channels),
        b1=winit(ks[1], (64,), 64),
        w2=winit(ks[2], (9 * 64, 128), 9 * 64),
        b2=winit(ks[3], (128,), 128),
        wf1=winit(ks[4], (conv_out, 512), conv_out),   # K rows in (c, hw) order
        bf1=winit(ks[5], (512,), 512),
        wf2=winit(ks[6], (512, action_size), 512),
        bf2=winit(ks[7], (action_size,), 512),
    )


def prepare_params(params, board_size):
    """One-time re-layout for the kernels: per-tap conv2 weight, (hw, c)-permuted
    bf16 wf1 (folds the nn.Flatten transpose into the weight), 2-D biases."""
    HW = board_size * board_size
    C2 = 128
    wf1 = params["wf1"].reshape(C2, HW, -1).transpose(1, 0, 2).reshape(HW * C2, -1)
    return dict(
        w1=params["w1"],
        b1=params["b1"].reshape(1, -1),
        w2k=params["w2"].reshape(9, 64, 128),
        b2=params["b2"].reshape(1, -1),
        wf1k=wf1.astype(jnp.bfloat16),
        bf1=params["bf1"].reshape(1, -1),
        wf2=params["wf2"],
        bf2=params["bf2"],
    )


def dqn_forward(kparams, state, input_channels=1):
    # Replicate the PyTorch forward's shape handling.
    if state.ndim == 2:
        state = state[None, None]
    elif state.ndim == 3:
        state = state[None]
    if state.shape[1] != input_channels:
        if input_channels == 2 and state.shape[1] == 1:
            state = jnp.concatenate([state, jnp.zeros_like(state)], axis=1)
        else:
            raise ValueError(
                f"channel mismatch: got {state.shape[1]}, expected {input_channels}")
    x = state.astype(jnp.float32)
    N, _, H, W = x.shape

    x_nhwc = jnp.transpose(x, (0, 2, 3, 1))              # NCHW -> NHWC (tiny)
    patches = im2col_3x3(x_nhwc)                         # (N*HW, 9*Cin), tiny
    shift_mats = _shift_matrices(N, H, W)                # trace-time constant

    h2 = fused_conv(patches, shift_mats, kparams["w1"], kparams["b1"],
                    kparams["w2k"], kparams["b2"])       # (N*HW, 128)

    # Plain reshape; NCHW flatten ordering is already folded into wf1k's rows.
    flat = h2.reshape(N, H * W * 128)

    q = fc_fused(flat, kparams["wf1k"], kparams["bf1"], kparams["wf2"])
    return q + kparams["bf2"][None, :]


def reference_forward(params, state, input_channels=1):
    """Pure-JAX reference with PyTorch semantics (same bf16-quantized wf1)."""
    if state.ndim == 2:
        state = state[None, None]
    elif state.ndim == 3:
        state = state[None]
    if state.shape[1] != input_channels:
        if input_channels == 2 and state.shape[1] == 1:
            state = jnp.concatenate([state, jnp.zeros_like(state)], axis=1)
    x = jnp.transpose(state.astype(jnp.float32), (0, 2, 3, 1))
    N, H, W, _ = x.shape
    h1 = jnp.maximum(im2col_3x3(x) @ params["w1"] + params["b1"], 0.0)
    h1 = h1.reshape(N, H, W, 64)
    h2 = jnp.maximum(im2col_3x3(h1) @ params["w2"] + params["b2"], 0.0)
    h2 = h2.reshape(N, H * W, 128)
    # nn.Flatten on NCHW flattens in (C, H, W) order.
    flat = jnp.transpose(h2, (0, 2, 1)).reshape(N, 128 * H * W)
    wf1_q = params["wf1"].astype(jnp.bfloat16).astype(jnp.float32)
    f1 = jnp.maximum(flat @ wf1_q + params["bf1"], 0.0)
    return f1 @ params["wf2"] + params["bf2"]


# --------------------------------------------------------------------------- #
if __name__ == "__main__":
    board_size = 10
    action_size = 100
    input_channels = 1
    batch = 2

    key = jax.random.PRNGKey(0)
    pkey, xkey = jax.random.split(key)
    params = init_params(pkey, board_size, action_size, input_channels)
    kparams = prepare_params(params, board_size)
    state = jax.random.uniform(
        xkey, (batch, input_channels, board_size, board_size), jnp.float32)

    fwd = jax.jit(functools.partial(dqn_forward, input_channels=input_channels))
    out = jax.block_until_ready(fwd(kparams, state))
    assert out.shape == (batch, action_size), out.shape

    ref = jax.block_until_ready(
        reference_forward(params, state, input_channels=input_channels))
    max_err = float(jnp.max(jnp.abs(out - ref)))
    assert jnp.allclose(out, ref, atol=1e-2, rtol=1e-2), max_err

    print("KERNEL_OK")
</pallas_src>

<mosaic_0001>
module attributes {stable_mosaic.version = 11 : i64} {
  func.func @fused_conv_kernel(%arg0: memref<200x9xf32, #tpu.memory_space<vmem>>, %arg1: memref<9x64xf32, #tpu.memory_space<vmem>>, %arg2: memref<1x64xf32, #tpu.memory_space<vmem>>, %arg3: memref<9x200x200xf32, #tpu.memory_space<vmem>>, %arg4: memref<9x64x128xf32, #tpu.memory_space<vmem>>, %arg5: memref<1x128xf32, #tpu.memory_space<vmem>>, %arg6: memref<200x128xf32, #tpu.memory_space<vmem>>) attributes {dimension_semantics = [], scalar_prefetch = 0 : i64, scratch_operands = 0 : i64, tpu.core_type = #tpu.core_type<tc>} {
    %c0 = arith.constant 0 : index
    %c0_0 = arith.constant 0 : index
    %0 = vector.load %arg0[%c0, %c0_0] : memref<200x9xf32, #tpu.memory_space<vmem>>, vector<200x9xf32>
    %c0_1 = arith.constant 0 : index
    %c0_2 = arith.constant 0 : index
    %1 = vector.load %arg1[%c0_1, %c0_2] : memref<9x64xf32, #tpu.memory_space<vmem>>, vector<9x64xf32>
    %cst = arith.constant dense<0.000000e+00> : vector<200x64xf32>
    %2 = tpu.matmul %0, %1, %cst {dimension_numbers = #tpu.dot_dimension_numbers<[1], [0], [0], [1], [0, 0, 1, 1], [], []>} : vector<200x9xf32>, vector<9x64xf32>, vector<200x64xf32> -> vector<200x64xf32>
    %c0_3 = arith.constant 0 : index
    %c0_4 = arith.constant 0 : index
    %3 = vector.load %arg2[%c0_3, %c0_4] : memref<1x64xf32, #tpu.memory_space<vmem>>, vector<1x64xf32>
    %4 = vector.broadcast %3 : vector<1x64xf32> to vector<200x64xf32>
    %5 = arith.addf %2, %4 : vector<200x64xf32>
    %cst_5 = arith.constant 0.000000e+00 : f32
    %6 = vector.broadcast %cst_5 : f32 to vector<200x64xf32>
    %7 = arith.maximumf %5, %6 : vector<200x64xf32>
    %cst_6 = arith.constant 0.000000e+00 : f32
    %8 = vector.broadcast %cst_6 : f32 to vector<200x128xf32>
    %c0_7 = arith.constant 0 : index
    %c0_8 = arith.constant 0 : index
    %c0_9 = arith.constant 0 : index
    %9 = vector.load %arg3[%c0_7, %c0_8, %c0_9] : memref<9x200x200xf32, #tpu.memory_space<vmem>>, vector<1x200x200xf32>
    %10 = vector.shape_cast %9 : vector<1x200x200xf32> to vector<200x200xf32>
    %cst_10 = arith.constant dense<0.000000e+00> : vector<200x64xf32>
    %11 = tpu.matmul %10, %7, %cst_10 {dimension_numbers = #tpu.dot_dimension_numbers<[1], [0], [0], [1], [0, 0, 1, 1], [], []>} : vector<200x200xf32>, vector<200x64xf32>, vector<200x64xf32> -> vector<200x64xf32>
    %c0_11 = arith.constant 0 : index
    %c0_12 = arith.constant 0 : index
    %c0_13 = arith.constant 0 : index
    %12 = vector.load %arg4[%c0_11, %c0_12, %c0_13] : memref<9x64x128xf32, #tpu.memory_space<vmem>>, vector<1x64x128xf32>
    %13 = vector.shape_cast %12 : vector<1x64x128xf32> to vector<64x128xf32>
    %cst_14 = arith.constant dense<0.000000e+00> : vector<200x128xf32>
    %14 = tpu.matmul %11, %13, %cst_14 {dimension_numbers = #tpu.dot_dimension_numbers<[1], [0], [0], [1], [0, 0, 1, 1], [], []>} : vector<200x64xf32>, vector<64x128xf32>, vector<200x128xf32> -> vector<200x128xf32>
    %15 = arith.addf %8, %14 : vector<200x128xf32>
    %c1 = arith.constant 1 : index
    %c0_15 = arith.constant 0 : index
    %c0_16 = arith.constant 0 : index
    %16 = vector.load %arg3[%c1, %c0_15, %c0_16] : memref<9x200x200xf32, #tpu.memory_space<vmem>>, vector<1x200x200xf32>
    %17 = vector.shape_cast %16 : vector<1x200x200xf32> to vector<200x200xf32>
    %cst_17 = arith.constant dense<0.000000e+00> : vector<200x64xf32>
    %18 = tpu.matmul %17, %7, %cst_17 {dimension_numbers = #tpu.dot_dimension_numbers<[1], [0], [0], [1], [0, 0, 1, 1], [], []>} : vector<200x200xf32>, vector<200x64xf32>, vector<200x64xf32> -> vector<200x64xf32>
    %c1_18 = arith.constant 1 : index
    %c0_19 = arith.constant 0 : index
    %c0_20 = arith.constant 0 : index
    %19 = vector.load %arg4[%c1_18, %c0_19, %c0_20] : memref<9x64x128xf32, #tpu.memory_space<vmem>>, vector<1x64x128xf32>
    %20 = vector.shape_cast %19 : vector<1x64x128xf32> to vector<64x128xf32>
    %cst_21 = arith.constant dense<0.000000e+00> : vector<200x128xf32>
    %21 = tpu.matmul %18, %20, %cst_21 {dimension_numbers = #tpu.dot_dimension_numbers<[1], [0], [0], [1], [0, 0, 1, 1], [], []>} : vector<200x64xf32>, vector<64x128xf32>, vector<200x128xf32> -> vector<200x128xf32>
    %22 = arith.addf %15, %21 : vector<200x128xf32>
    %c2 = arith.constant 2 : index
    %c0_22 = arith.constant 0 : index
    %c0_23 = arith.constant 0 : index
    %23 = vector.load %arg3[%c2, %c0_22, %c0_23] : memref<9x200x200xf32, #tpu.memory_space<vmem>>, vector<1x200x200xf32>
    %24 = vector.shape_cast %23 : vector<1x200x200xf32> to vector<200x200xf32>
    %cst_24 = arith.constant dense<0.000000e+00> : vector<200x64xf32>
    %25 = tpu.matmul %24, %7, %cst_24 {dimension_numbers = #tpu.dot_dimension_numbers<[1], [0], [0], [1], [0, 0, 1, 1], [], []>} : vector<200x200xf32>, vector<200x64xf32>, vector<200x64xf32> -> vector<200x64xf32>
    %c2_25 = arith.constant 2 : index
    %c0_26 = arith.constant 0 : index
    %c0_27 = arith.constant 0 : index
    %26 = vector.load %arg4[%c2_25, %c0_26, %c0_27] : memref<9x64x128xf32, #tpu.memory_space<vmem>>, vector<1x64x128xf32>
    %27 = vector.shape_cast %26 : vector<1x64x128xf32> to vector<64x128xf32>
    %cst_28 = arith.constant dense<0.000000e+00> : vector<200x128xf32>
    %28 = tpu.matmul %25, %27, %cst_28 {dimension_numbers = #tpu.dot_dimension_numbers<[1], [0], [0], [1], [0, 0, 1, 1], [], []>} : vector<200x64xf32>, vector<64x128xf32>, vector<200x128xf32> -> vector<200x128xf32>
    %29 = arith.addf %22, %28 : vector<200x128xf32>
    %c3 = arith.constant 3 : index
    %c0_29 = arith.constant 0 : index
    %c0_30 = arith.constant 0 : index
    %30 = vector.load %arg3[%c3, %c0_29, %c0_30] : memref<9x200x200xf32, #tpu.memory_space<vmem>>, vector<1x200x200xf32>
    %31 = vector.shape_cast %30 : vector<1x200x200xf32> to vector<200x200xf32>
    %cst_31 = arith.constant dense<0.000000e+00> : vector<200x64xf32>
    %32 = tpu.matmul %31, %7, %cst_31 {dimension_numbers = #tpu.dot_dimension_numbers<[1], [0], [0], [1], [0, 0, 1, 1], [], []>} : vector<200x200xf32>, vector<200x64xf32>, vector<200x64xf32> -> vector<200x64xf32>
    %c3_32 = arith.constant 3 : index
    %c0_33 = arith.constant 0 : index
    %c0_34 = arith.constant 0 : index
    %33 = vector.load %arg4[%c3_32, %c0_33, %c0_34] : memref<9x64x128xf32, #tpu.memory_space<vmem>>, vector<1x64x128xf32>
    %34 = vector.shape_cast %33 : vector<1x64x128xf32> to vector<64x128xf32>
    %cst_35 = arith.constant dense<0.000000e+00> : vector<200x128xf32>
    %35 = tpu.matmul %32, %34, %cst_35 {dimension_numbers = #tpu.dot_dimension_numbers<[1], [0], [0], [1], [0, 0, 1, 1], [], []>} : vector<200x64xf32>, vector<64x128xf32>, vector<200x128xf32> -> vector<200x128xf32>
    %36 = arith.addf %29, %35 : vector<200x128xf32>
    %c4 = arith.constant 4 : index
    %c0_36 = arith.constant 0 : index
    %c0_37 = arith.constant 0 : index
    %37 = vector.load %arg3[%c4, %c0_36, %c0_37] : memref<9x200x200xf32, #tpu.memory_space<vmem>>, vector<1x200x200xf32>
    %38 = vector.shape_cast %37 : vector<1x200x200xf32> to vector<200x200xf32>
    %cst_38 = arith.constant dense<0.000000e+00> : vector<200x64xf32>
    %39 = tpu.matmul %38, %7, %cst_38 {dimension_numbers = #tpu.dot_dimension_numbers<[1], [0], [0], [1], [0, 0, 1, 1], [], []>} : vector<200x200xf32>, vector<200x64xf32>, vector<200x64xf32> -> vector<200x64xf32>
    %c4_39 = arith.constant 4 : index
    %c0_40 = arith.constant 0 : index
    %c0_41 = arith.constant 0 : index
    %40 = vector.load %arg4[%c4_39, %c0_40, %c0_41] : memref<9x64x128xf32, #tpu.memory_space<vmem>>, vector<1x64x128xf32>
    %41 = vector.shape_cast %40 : vector<1x64x128xf32> to vector<64x128xf32>
    %cst_42 = arith.constant dense<0.000000e+00> : vector<200x128xf32>
    %42 = tpu.matmul %39, %41, %cst_42 {dimension_numbers = #tpu.dot_dimension_numbers<[1], [0], [0], [1], [0, 0, 1, 1], [], []>} : vector<200x64xf32>, vector<64x128xf32>, vector<200x128xf32> -> vector<200x128xf32>
    %43 = arith.addf %36, %42 : vector<200x128xf32>
    %c5 = arith.constant 5 : index
    %c0_43 = arith.constant 0 : index
    %c0_44 = arith.constant 0 : index
    %44 = vector.load %arg3[%c5, %c0_43, %c0_44] : memref<9x200x200xf32, #tpu.memory_space<vmem>>, vector<1x200x200xf32>
    %45 = vector.shape_cast %44 : vector<1x200x200xf32> to vector<200x200xf32>
    %cst_45 = arith.constant dense<0.000000e+00> : vector<200x64xf32>
    %46 = tpu.matmul %45, %7, %cst_45 {dimension_numbers = #tpu.dot_dimension_numbers<[1], [0], [0], [1], [0, 0, 1, 1], [], []>} : vector<200x200xf32>, vector<200x64xf32>, vector<200x64xf32> -> vector<200x64xf32>
    %c5_46 = arith.constant 5 : index
    %c0_47 = arith.constant 0 : index
    %c0_48 = arith.constant 0 : index
    %47 = vector.load %arg4[%c5_46, %c0_47, %c0_48] : memref<9x64x128xf32, #tpu.memory_space<vmem>>, vector<1x64x128xf32>
    %48 = vector.shape_cast %47 : vector<1x64x128xf32> to vector<64x128xf32>
    %cst_49 = arith.constant dense<0.000000e+00> : vector<200x128xf32>
    %49 = tpu.matmul %46, %48, %cst_49 {dimension_numbers = #tpu.dot_dimension_numbers<[1], [0], [0], [1], [0, 0, 1, 1], [], []>} : vector<200x64xf32>, vector<64x128xf32>, vector<200x128xf32> -> vector<200x128xf32>
    %50 = arith.addf %43, %49 : vector<200x128xf32>
    %c6 = arith.constant 6 : index
    %c0_50 = arith.constant 0 : index
    %c0_51 = arith.constant 0 : index
    %51 = vector.load %arg3[%c6, %c0_50, %c0_51] : memref<9x200x200xf32, #tpu.memory_space<vmem>>, vector<1x200x200xf32>
    %52 = vector.shape_cast %51 : vector<1x200x200xf32> to vector<200x200xf32>
    %cst_52 = arith.constant dense<0.000000e+00> : vector<200x64xf32>
    %53 = tpu.matmul %52, %7, %cst_52 {dimension_numbers = #tpu.dot_dimension_numbers<[1], [0], [0], [1], [0, 0, 1, 1], [], []>} : vector<200x200xf32>, vector<200x64xf32>, vector<200x64xf32> -> vector<200x64xf32>
    %c6_53 = arith.constant 6 : index
    %c0_54 = arith.constant 0 : index
    %c0_55 = arith.constant 0 : index
    %54 = vector.load %arg4[%c6_53, %c0_54, %c0_55] : memref<9x64x128xf32, #tpu.memory_space<vmem>>, vector<1x64x128xf32>
    %55 = vector.shape_cast %54 : vector<1x64x128xf32> to vector<64x128xf32>
    %cst_56 = arith.constant dense<0.000000e+00> : vector<200x128xf32>
    %56 = tpu.matmul %53, %55, %cst_56 {dimension_numbers = #tpu.dot_dimension_numbers<[1], [0], [0], [1], [0, 0, 1, 1], [], []>} : vector<200x64xf32>, vector<64x128xf32>, vector<200x128xf32> -> vector<200x128xf32>
    %57 = arith.addf %50, %56 : vector<200x128xf32>
    %c7 = arith.constant 7 : index
    %c0_57 = arith.constant 0 : index
    %c0_58 = arith.constant 0 : index
    %58 = vector.load %arg3[%c7, %c0_57, %c0_58] : memref<9x200x200xf32, #tpu.memory_space<vmem>>, vector<1x200x200xf32>
    %59 = vector.shape_cast %58 : vector<1x200x200xf32> to vector<200x200xf32>
    %cst_59 = arith.constant dense<0.000000e+00> : vector<200x64xf32>
    %60 = tpu.matmul %59, %7, %cst_59 {dimension_numbers = #tpu.dot_dimension_numbers<[1], [0], [0], [1], [0, 0, 1, 1], [], []>} : vector<200x200xf32>, vector<200x64xf32>, vector<200x64xf32> -> vector<200x64xf32>
    %c7_60 = arith.constant 7 : index
    %c0_61 = arith.constant 0 : index
    %c0_62 = arith.constant 0 : index
    %61 = vector.load %arg4[%c7_60, %c0_61, %c0_62] : memref<9x64x128xf32, #tpu.memory_space<vmem>>, vector<1x64x128xf32>
    %62 = vector.shape_cast %61 : vector<1x64x128xf32> to vector<64x128xf32>
    %cst_63 = arith.constant dense<0.000000e+00> : vector<200x128xf32>
    %63 = tpu.matmul %60, %62, %cst_63 {dimension_numbers = #tpu.dot_dimension_numbers<[1], [0], [0], [1], [0, 0, 1, 1], [], []>} : vector<200x64xf32>, vector<64x128xf32>, vector<200x128xf32> -> vector<200x128xf32>
    %64 = arith.addf %57, %63 : vector<200x128xf32>
    %c8 = arith.constant 8 : index
    %c0_64 = arith.constant 0 : index
    %c0_65 = arith.constant 0 : index
    %65 = vector.load %arg3[%c8, %c0_64, %c0_65] : memref<9x200x200xf32, #tpu.memory_space<vmem>>, vector<1x200x200xf32>
    %66 = vector.shape_cast %65 : vector<1x200x200xf32> to vector<200x200xf32>
    %cst_66 = arith.constant dense<0.000000e+00> : vector<200x64xf32>
    %67 = tpu.matmul %66, %7, %cst_66 {dimension_numbers = #tpu.dot_dimension_numbers<[1], [0], [0], [1], [0, 0, 1, 1], [], []>} : vector<200x200xf32>, vector<200x64xf32>, vector<200x64xf32> -> vector<200x64xf32>
    %c8_67 = arith.constant 8 : index
    %c0_68 = arith.constant 0 : index
    %c0_69 = arith.constant 0 : index
    %68 = vector.load %arg4[%c8_67, %c0_68, %c0_69] : memref<9x64x128xf32, #tpu.memory_space<vmem>>, vector<1x64x128xf32>
    %69 = vector.shape_cast %68 : vector<1x64x128xf32> to vector<64x128xf32>
    %cst_70 = arith.constant dense<0.000000e+00> : vector<200x128xf32>
    %70 = tpu.matmul %67, %69, %cst_70 {dimension_numbers = #tpu.dot_dimension_numbers<[1], [0], [0], [1], [0, 0, 1, 1], [], []>} : vector<200x64xf32>, vector<64x128xf32>, vector<200x128xf32> -> vector<200x128xf32>
    %71 = arith.addf %64, %70 : vector<200x128xf32>
    %c0_71 = arith.constant 0 : index
    %c0_72 = arith.constant 0 : index
    %72 = vector.load %arg5[%c0_71, %c0_72] : memref<1x128xf32, #tpu.memory_space<vmem>>, vector<1x128xf32>
    %73 = vector.broadcast %72 : vector<1x128xf32> to vector<200x128xf32>
    %74 = arith.addf %71, %73 : vector<200x128xf32>
    %cst_73 = arith.constant 0.000000e+00 : f32
    %75 = vector.broadcast %cst_73 : f32 to vector<200x128xf32>
    %76 = arith.maximumf %74, %75 : vector<200x128xf32>
    %c0_74 = arith.constant 0 : index
    %c0_75 = arith.constant 0 : index
    %77 = vector.load %arg6[%c0_74, %c0_75] : memref<200x128xf32, #tpu.memory_space<vmem>>, vector<200x128xf32>
    tpu.vector_store %arg6[%c0_74, %c0_75], %76 {strides = array<i32>} : memref<200x128xf32, #tpu.memory_space<vmem>>, vector<200x128xf32>,
    return
  }
}

module attributes {stable_mosaic.version = 11 : i64} {
  func.func @fc_fused_kernel(%arg0: i32, %arg1: i32, %arg2: memref<2x6400xf32, #tpu.memory_space<vmem>>, %arg3: memref<6400x256xbf16, #tpu.memory_space<vmem>>, %arg4: memref<1x256xf32, #tpu.memory_space<vmem>>, %arg5: memref<256x100xf32, #tpu.memory_space<vmem>>, %arg6: memref<1x2x100xf32, #tpu.memory_space<vmem>>, %arg7: memref<2x256xf32, #tpu.memory_space<vmem>>) attributes {dimension_semantics = [#tpu.dimension_semantics<parallel>, #tpu.dimension_semantics<arbitrary>], iteration_bounds = array<i64: 2, 2>, scalar_prefetch = 0 : i64, scratch_operands = 1 : i64, tpu.core_type = #tpu.core_type<tc>, window_params = [{transform_indices = @transform_0, window_bounds = array<i64: 2, 6400>}, {transform_indices = @transform_1, window_bounds = array<i64: 6400, 256>}, {transform_indices = @transform_2, window_bounds = array<i64: 1, 256>}, {transform_indices = @transform_3, window_bounds = array<i64: 256, 100>}, {transform_indices = @transform_4, window_bounds = array<i64: 1, 2, 100>}]} {
    %c0_i32 = arith.constant 0 : i32
    %0 = arith.cmpi eq, %arg1, %c0_i32 : i32
    %1 = arith.extui %0 : i1 to i32
    %c0_i32_0 = arith.constant 0 : i32
    %2 = arith.cmpi ne, %1, %c0_i32_0 : i32
    scf.if %2 {
      %cst_9 = arith.constant 0.000000e+00 : f32
      %13 = vector.broadcast %cst_9 : f32 to vector<2x256xf32>
      %c0_10 = arith.constant 0 : index
      %c0_11 = arith.constant 0 : index
      %14 = vector.load %arg7[%c0_10, %c0_11] : memref<2x256xf32, #tpu.memory_space<vmem>>, vector<2x256xf32>
      tpu.vector_store %arg7[%c0_10, %c0_11], %13 {strides = array<i32>} : memref<2x256xf32, #tpu.memory_space<vmem>>, vector<2x256xf32>,
    } else {
    }
    %c0 = arith.constant 0 : index
    %c0_1 = arith.constant 0 : index
    %3 = vector.load %arg7[%c0, %c0_1] : memref<2x256xf32, #tpu.memory_space<vmem>>, vector<2x256xf32>
    %c0_2 = arith.constant 0 : index
    %c0_3 = arith.constant 0 : index
    %4 = vector.load %arg2[%c0_2, %c0_3] : memref<2x6400xf32, #tpu.memory_space<vmem>>, vector<2x6400xf32>
    %c0_4 = arith.constant 0 : index
    %c0_5 = arith.constant 0 : index
    %5 = vector.load %arg3[%c0_4, %c0_5] : memref<6400x256xbf16, #tpu.memory_space<vmem>>, vector<6400x256xbf16>
    %6 = arith.extf %5 : vector<6400x256xbf16> to vector<6400x256xf32>
    %cst = arith.constant dense<0.000000e+00> : vector<2x256xf32>
    %7 = tpu.matmul %4, %6, %cst {dimension_numbers = #tpu.dot_dimension_numbers<[1], [0], [0], [1], [0, 0, 1, 1], [], []>} : vector<2x6400xf32>, vector<6400x256xf32>, vector<2x256xf32> -> vector<2x256xf32>
    %8 = arith.addf %3, %7 : vector<2x256xf32>
    %c0_6 = arith.constant 0 : index
    %c0_7 = arith.constant 0 : index
    %9 = vector.load %arg7[%c0_6, %c0_7] : memref<2x256xf32, #tpu.memory_space<vmem>>, vector<2x256xf32>
    tpu.vector_store %arg7[%c0_6, %c0_7], %8 {strides = array<i32>} : memref<2x256xf32, #tpu.memory_space<vmem>>, vector<2x256xf32>,
    %c1_i32 = arith.constant 1 : i32
    %10 = arith.cmpi eq, %arg1, %c1_i32 : i32
    %11 = arith.extui %10 : i1 to i32
    %c0_i32_8 = arith.constant 0 : i32
    %12 = arith.cmpi ne, %11, %c0_i32_8 : i32
    scf.if %12 {
      %c0_9 = arith.constant 0 : index
      %c0_10 = arith.constant 0 : index
      %13 = vector.load %arg7[%c0_9, %c0_10] : memref<2x256xf32, #tpu.memory_space<vmem>>, vector<2x256xf32>
      %c0_11 = arith.constant 0 : index
      %c0_12 = arith.constant 0 : index
      %14 = vector.load %arg4[%c0_11, %c0_12] : memref<1x256xf32, #tpu.memory_space<vmem>>, vector<1x256xf32>
      %15 = vector.broadcast %14 : vector<1x256xf32> to vector<2x256xf32>
      %16 = arith.addf %13, %15 : vector<2x256xf32>
      %cst_13 = arith.constant 0.000000e+00 : f32
      %17 = vector.broadcast %cst_13 : f32 to vector<2x256xf32>
      %18 = arith.maximumf %16, %17 : vector<2x256xf32>
      %c0_14 = arith.constant 0 : index
      %c0_15 = arith.constant 0 : index
      %19 = vector.load %arg5[%c0_14, %c0_15] : memref<256x100xf32, #tpu.memory_space<vmem>>, vector<256x100xf32>
      %cst_16 = arith.constant dense<0.000000e+00> : vector<2x100xf32>
      %20 = tpu.matmul %18, %19, %cst_16 {dimension_numbers = #tpu.dot_dimension_numbers<[1], [0], [0], [1], [0, 0, 1, 1], [], []>} : vector<2x256xf32>, vector<256x100xf32>, vector<2x100xf32> -> vector<2x100xf32>
      %c0_17 = arith.constant 0 : index
      %c0_18 = arith.constant 0 : index
      %c0_19 = arith.constant 0 : index
      %21 = vector.load %arg6[%c0_17, %c0_18, %c0_19] : memref<1x2x100xf32, #tpu.memory_space<vmem>>, vector<1x2x100xf32>
      %22 = vector.shape_cast %21 : vector<1x2x100xf32> to vector<2x100xf32>
      %23 = vector.shape_cast %20 : vector<2x100xf32> to vector<1x2x100xf32>
      tpu.vector_store %arg6[%c0_17, %c0_18, %c0_19], %23 {strides = array<i32>} : memref<1x2x100xf32, #tpu.memory_space<vmem>>, vector<1x2x100xf32>,
    } else {
    }
    return
  }
  func.func @transform_0(%arg0: i32, %arg1: i32) -> (i32, i32) {
    %c0_i32 = arith.constant 0 : i32
    %c0_i32_0 = arith.constant 0 : i32
    return %c0_i32, %arg1 : i32, i32
  }
  func.func @transform_1(%arg0: i32, %arg1: i32) -> (i32, i32) {
    %c0_i32 = arith.constant 0 : i32
    return %arg1, %arg0 : i32, i32
  }
  func.func @transform_2(%arg0: i32, %arg1: i32) -> (i32, i32) {
    %c0_i32 = arith.constant 0 : i32
    %c0_i32_0 = arith.constant 0 : i32
    return %c0_i32, %arg0 : i32, i32
  }
  func.func @transform_3(%arg0: i32, %arg1: i32) -> (i32, i32) {
    %c0_i32 = arith.constant 0 : i32
    %c0_i32_0 = arith.constant 0 : i32
    return %arg0, %c0_i32 : i32, i32
  }
  func.func @transform_4(%arg0: i32, %arg1: i32) -> (i32, i32, i32) {
    %c0_i32 = arith.constant 0 : i32
    %c0_i32_0 = arith.constant 0 : i32
    %c0_i32_1 = arith.constant 0 : i32
    return %arg0, %c0_i32, %c0_i32_0 : i32, i32, i32
  }
}

</mosaic_0001>

<bundles_post_ra>
// kernel: dqn_forward.2
= control target key start
LH: loop header
LB: loop body
LE: loop exit
PB: predicated region body
PF: predicated region fallthrough
CT: control target
= control target key end

     0   :  { %11 = vsyncpa [#allocation3], 0  ;;  %s10370_s0 = inlined_call_operand.vmem [shape: f32[200,9], index: 0, kind: input, shape index: {}]   ;;  %s10371_s1 = inlined_call_operand.hbm [shape: f32[9,64], index: 1, kind: input, shape index: {}]   ;;  %s10372_s2 = inlined_call_operand.hbm [shape: f32[1,64], index: 2, kind: input, shape index: {}]   ;;  %s10373_s3 = inlined_call_operand.hbm [shape: f32[9,200,200], index: 3, kind: input, shape index: {}]   ;;  %s10374_s4 = inlined_call_operand.hbm [shape: f32[9,64,128], index: 4, kind: input, shape index: {}]   ;;  %s10375_s5 = inlined_call_operand.hbm [shape: f32[1,128], index: 5, kind: input, shape index: {}]   ;;  %s10376_s6 = inlined_call_operand.vmem [shape: f32[200,128], index: 6, kind: output, shape index: {}]  }
   0x1   :  { %12 = vsyncpa [#allocation5], 0 }
   0x2   :  { %13 = vsyncpa [#allocation8], 0  ;;  %s8257_s21 = smov [#allocation4]   ;;  %s8141_s25 = scalar_lea.hbm %s10372_s2, 16 }
   0x3   :  { %s34_s22 = sshll.u32 %s8257_s21, 4  ;;  %p8142_p0 = scmp.ne.s32.totalorder %s10372_s2, %s8141_s25  ;;  %s35_s22 = int_to_ptr.vmem [resolvable:$true] %s34_s22 }
   0x4   :  { %p8145_p1 = scmp.lt.u32.totalorder %s8141_s25, %s10372_s2 }
   0x6   :  { %p8147_p2 = pnand %p8145_p1, %p8142_p0 }
   0x8   :  { %8150 = shalt.err (!%p8147_p2)
}
   0x9   :  { %s8151_s30 = scalar_lea.vmem %s35_s22, 16  ;;  %s8155_s7 = scalar_lea.vmem %s35_s22, 32 }
   0xa   :  { %p8152_p3 = scmp.ne.s32.totalorder %s35_s22, %s8151_s30  ;;  %p8156_p4 = scmp.lt.s32.totalorder %s35_s22, %s35_s22 }
   0xb   :  { %p8157_p5 = scmp.lt.s32.totalorder %s8155_s7, %s8151_s30 }
   0xd   :  { %p8158_p6 = por %p8157_p5, %p8156_p4 }
   0xf   :  { %p8159_p7 = pnand %p8158_p6, %p8152_p3 }
  0x11   :  { %8162 = shalt.err (!%p8159_p7)
}
  0x12   :  { %37 = dma.hbm_to_vmem [thread:$0]  %s10372_s2, 16, %s35_s22, [#allocation5]  }
  0x13   :  { %s8258_s10 = smov [#allocation7]   ;;  %s8259_s12 = smov [#allocation2]  }
  0x14   :  { %s55_s11 = sshll.u32 %s8258_s10, 4  ;;  %s21_s13 = sshll.u32 %s8259_s12, 4  ;;  %s56_s11 = int_to_ptr.vmem [resolvable:$true] %s55_s11  ;;  %s22_s13 = int_to_ptr.vmem [resolvable:$true] %s21_s13 }
  0x15   :  { %s8163_s16 = scalar_lea.hbm %s10374_s4, 9216 }
  0x16   :  { %p8164_p8 = scmp.ne.s32.totalorder %s10374_s4, %s8163_s16  ;;  %p8167_p9 = scmp.lt.u32.totalorder %s8163_s16, %s10374_s4 }
  0x18   :  { %p8169_p10 = pnand %p8167_p9, %p8164_p8 }
  0x1a   :  { %8172 = shalt.err (!%p8169_p10)
}
  0x1b   :  { %s8173_s2 = scalar_lea.vmem %s56_s11, 9216  ;;  %p8178_p12 = scmp.lt.s32.totalorder %s56_s11, %s56_s11 }
  0x1c   :  { %p8174_p11 = scmp.ne.s32.totalorder %s56_s11, %s8173_s2  ;;  %p8179_p13 = scmp.lt.s32.totalorder %s8173_s2, %s8173_s2 }
  0x1e   :  { %p8180_p0 = por %p8179_p13, %p8178_p12 }
  0x20   :  { %p8181_p1 = pnand %p8180_p0, %p8174_p11 }
  0x22   :  { %8184 = shalt.err (!%p8181_p1)
}
  0x23   :  { %s8260_s21 = smov 128   ;;  %s8261_s22 = smov 8  }
  0x24   :  { %61 = dma.hbm_to_vmem [thread:$0]  %s10374_s4, 9216, %s56_s11, [#allocation8], %s8260_s21, %s8260_s21, %s8261_s22  }
  0x25   :  { %s8185_s27 = scalar_lea.hbm %s10371_s1, 256 }
  0x26   :  { %p8186_p2 = scmp.ne.s32.totalorder %s10371_s1, %s8185_s27  ;;  %p8189_p3 = scmp.lt.u32.totalorder %s8185_s27, %s10371_s1 }
  0x28   :  { %p8191_p4 = pnand %p8189_p3, %p8186_p2 }
  0x2a   :  { %8194 = shalt.err (!%p8191_p4)
}
  0x2b   :  { %s8195_s8 = scalar_lea.vmem %s22_s13, 256  ;;  %p8200_p6 = scmp.lt.s32.totalorder %s22_s13, %s22_s13 }
  0x2c   :  { %p8196_p5 = scmp.ne.s32.totalorder %s22_s13, %s8195_s8  ;;  %p8201_p7 = scmp.lt.s32.totalorder %s8195_s8, %s8195_s8 }
  0x2e   :  { %p8202_p8 = por %p8201_p7, %p8200_p6 }
  0x30   :  { %p8203_p9 = pnand %p8202_p8, %p8196_p5 }
  0x32   :  { %8206 = shalt.err (!%p8203_p9)
}
  0x33   :  { %27 = dma.hbm_to_vmem [thread:$0]  %s10371_s1, 256, %s22_s13, [#allocation3], %s8260_s21, %s8260_s21, %s8261_s22  }
  0x34   :  { %s8262_s10 = smov [#allocation6]   ;;  %s8207_s15 = scalar_lea.hbm %s10373_s3, 57600 }
  0x35   :  { %s43_s11 = sshll.u32 %s8262_s10, 4  ;;  %p8208_p10 = scmp.ne.s32.totalorder %s10373_s3, %s8207_s15  ;;  %s44_s11 = int_to_ptr.vmem [resolvable:$true] %s43_s11 }
  0x36   :  { %p8211_p11 = scmp.lt.u32.totalorder %s8207_s15, %s10373_s3 }
  0x38   :  { %p8213_p12 = pnand %p8211_p11, %p8208_p10 }
  0x3a   :  { %8216 = shalt.err (!%p8213_p12)
}
  0x3b   :  { %s8217_s20 = scalar_lea.vmem %s44_s11, 57600  ;;  %p8222_p0 = scmp.lt.s32.totalorder %s44_s11, %s44_s11 }
  0x3c   :  { %p8218_p13 = scmp.ne.s32.totalorder %s44_s11, %s8217_s20  ;;  %p8223_p1 = scmp.lt.s32.totalorder %s8217_s20, %s8217_s20 }
  0x3e   :  { %p8224_p2 = por %p8223_p1, %p8222_p0 }
  0x40   :  { %p8225_p3 = pnand %p8224_p2, %p8218_p13 }
  0x42   :  { %8228 = shalt.err (!%p8225_p3)
}
  0x43   :  { %s8263_s1 = smov 256   ;;  %s8264_s13 = smov 16  }
  0x44   :  { %49 = dma.hbm_to_vmem [thread:$0]  %s10373_s3, 57600, %s44_s11, [#allocation5], %s8263_s1, %s8263_s1, %s8264_s13  }
  0x45   :  { %s8265_s22 = smov [#allocation9]   ;;  %s8229_s26 = scalar_lea.hbm %s10375_s5, 16 }
  0x46   :  { %s68_s23 = sshll.u32 %s8265_s22, 4  ;;  %p8230_p4 = scmp.ne.s32.totalorder %s10375_s5, %s8229_s26  ;;  %s69_s23 = int_to_ptr.vmem [resolvable:$true] %s68_s23 }
  0x47   :  { %p8233_p5 = scmp.lt.u32.totalorder %s8229_s26, %s10375_s5 }
  0x49   :  { %p8235_p6 = pnand %p8233_p5, %p8230_p4 }
  0x4b   :  { %8238 = shalt.err (!%p8235_p6)
}
  0x4c   :  { %s8239_s7 = scalar_lea.vmem %s69_s23, 16  ;;  %s8243_s3 = scalar_lea.vmem %s69_s23, 32 }
  0x4d   :  { %p8240_p7 = scmp.ne.s32.totalorder %s69_s23, %s8239_s7  ;;  %p8244_p8 = scmp.lt.s32.totalorder %s69_s23, %s69_s23 }
  0x4e   :  { %p8245_p9 = scmp.lt.s32.totalorder %s8243_s3, %s8239_s7 }
  0x50   :  { %p8246_p10 = por %p8245_p9, %p8244_p8 }
  0x52   :  { %p8247_p11 = pnand %p8246_p10, %p8240_p7 }
  0x54   :  { %8250 = shalt.err (!%p8247_p11)
}
  0x55   :  { %71 = dma.hbm_to_vmem [thread:$0]  %s10375_s5, 16, %s69_s23, [#allocation8]  }
  0x56   :  { %8251 = dma.done.wait [#allocation3], 256  }
  0x57   :  { %8252 = vsyncadd [#allocation3], 4294967040 }
  0x58   :  { %8253 = dma.done.wait [#allocation5], 57616  }
  0x59   :  { %8254 = vsyncadd [#allocation5], 4294909680 }
  0x5a   :  { %8255 = dma.done.wait [#allocation8], 9232  }
  0x5b   :  { %8256 = vsyncadd [#allocation8], 4294958064  ;;  %v8266_v0 = vmov 0.0|0.0   ;;  %vm8267_vm0 = vmmov 0   ;;  %v8268_v1 = vmov 0.0   ;;  %vm197_vm1 = vcmask 1040384  }
  0x5c   :  { %7690 = vmatprep.subr.bf16.mxu0 %v8266_v0  ;;  %8126 = vmatprep.subr.bf16.mxu1 %v8266_v0  ;;  %v112_v2 = vld [vmem:[#allocation2] sm:$0xff]  ;;  %v113_v3 = vld [vmem:[#allocation2 + $0x8] sm:$0x1]  ;;  %vm8269_vm2 = vmmov 1   ;;  %vm121_vm4 = vcmask 72704   ;;  %v101_v8 = vld [vmem:[%s10370_s0 + $0x70] sm:$0xff] }
  0x5d   :  { %6796 = vmatprep.mubr.msk.f32.mxu0 %vm8267_vm0, %v8268_v1  ;;  %6835 = vmatprep.mubr.msk.f32.mxu1 %vm8267_vm0, %v8268_v1  ;;  %vm7692_vm3 = vmpackc.low %vm197_vm1, %vm8269_vm2  ;;  %v7691_v4 = vpack.c.bf16 %v113_v3, %v112_v2  ;;  %v87_v5 = vld [vmem:[%s10370_s0] sm:$0xff]  ;;  %v100_v6 = vld [vmem:[%s10370_s0 + $0x68] sm:$0xff]  ;;  %vm466_vm5 = vcmask 588800   ;;  %vm1065_vm6 = vcmask 523264  }
  0x5e   :  { %v88_v7 = vld [vmem:[%s10370_s0 + $0x8] sm:$0xff]  ;;  %v89_v9 = vld [vmem:[%s10370_s0 + $0x10] sm:$0xff]  ;;  %v102_v10 = vld [vmem:[%s10370_s0 + $0x78] sm:$0xff] }
  0x5f   :  { %7693 = vmatpush3.bf16.msk.msra.mxu0 %vm7692_vm3, %v7691_v4  ;;  %8127 = vmatpush3.bf16.msk.msra.mxu1 %vm7692_vm3, %v7691_v4  ;;  %v90_v11 = vld [vmem:[%s10370_s0 + $0x18] sm:$0xff]  ;;  %v103_v12 = vld [vmem:[%s10370_s0 + $0x80] sm:$0xff]  ;;  %v104_v14 = vld [vmem:[%s10370_s0 + $0x88] sm:$0xff] }
  0x60   :  { %7694 = vmatprep.subr.bf16.mxu1 %v8266_v0  ;;  %7730 = vmatprep.subr.bf16.mxu0 %v8266_v0  ;;  %v91_v13 = vld [vmem:[%s10370_s0 + $0x20] sm:$0xff]  ;;  %v92_v15 = vld [vmem:[%s10370_s0 + $0x28] sm:$0xff]  ;;  %v105_v16 = vld [vmem:[%s10370_s0 + $0x90] sm:$0xff] }
  0x61   :  { %v93_v17 = vld [vmem:[%s10370_s0 + $0x30] sm:$0xff]  ;;  %v106_v18 = vld [vmem:[%s10370_s0 + $0x98] sm:$0xff]  ;;  %v107_v20 = vld [vmem:[%s10370_s0 + $0xa0] sm:$0xff] }
  0x62   :  { %6797 = vmatmul.mubr.msk.f32.vlgmr.msra.gmra.mrb[0].mxu0 %vm121_vm4, %v87_v5  ;;  %6836 = vmatmul.mubr.msk.f32.vlgmr.msra.gmra.mrb[0].mxu1 %vm121_vm4, %v100_v6  ;;  %v94_v19 = vld [vmem:[%s10370_s0 + $0x38] sm:$0xff]  ;;  %v95_v21 = vld [vmem:[%s10370_s0 + $0x40] sm:$0xff]  ;;  %v108_v22 = vld [vmem:[%s10370_s0 + $0xa8] sm:$0xff] }
  0x63   :  { %6799 = vmatprep.mubr.msk.f32.mxu0 %vm8267_vm0, %v8268_v1  ;;  %6838 = vmatprep.mubr.msk.f32.mxu1 %vm8267_vm0, %v8268_v1  ;;  %v96_v23 = vld [vmem:[%s10370_s0 + $0x48] sm:$0xff]  ;;  %v109_v24 = vld [vmem:[%s10370_s0 + $0xb0] sm:$0xff]  ;;  %v110_v26 = vld [vmem:[%s10370_s0 + $0xb8] sm:$0xff] }
  0x64   :  { %v97_v25 = vld [vmem:[%s10370_s0 + $0x50] sm:$0xff]  ;;  %v98_v27 = vld [vmem:[%s10370_s0 + $0x58] sm:$0xff]  ;;  %v111_v28 = vld [vmem:[%s10370_s0 + $0xc0] sm:$0xff] }
  0x65   :  { %v99_v29 = vld [vmem:[%s10370_s0 + $0x60] sm:$0xff]  ;;  %v742_v30 = vld [vmem:[#allocation6 + $0x198] sm:$0xff] }
  0x66   :  { %6800 = vmatmul.mubr.msk.f32.gmra.mrb[2].mxu0 %vm121_vm4, %v88_v7  ;;  %6839 = vmatmul.mubr.msk.f32.gmra.mrb[2].mxu1 %vm121_vm4, %v101_v8  ;;  %v417_v31 = vld [vmem:[#allocation6 + $0x8] sm:$0xff]  ;;  %v8521_v32 = vld [vmem:[#allocation4] ss:$0 sm:$0xff] }
  0x67   :  { %6802 = vmatprep.mubr.msk.f32.mxu0 %vm8267_vm0, %v8268_v1  ;;  %6841 = vmatprep.mubr.msk.f32.mxu1 %vm8267_vm0, %v8268_v1 }
  0x6a   :  { %6803 = vmatmul.mubr.msk.f32.gmra.mrb[4].mxu0 %vm121_vm4, %v89_v9  ;;  %6842 = vmatmul.mubr.msk.f32.gmra.mrb[4].mxu1 %vm121_vm4, %v102_v10 }
  0x6b   :  { %6805 = vmatprep.mubr.msk.f32.mxu0 %vm8267_vm0, %v8268_v1  ;;  %6844 = vmatprep.mubr.msk.f32.mxu1 %vm8267_vm0, %v8268_v1 }
  0x6e   :  { %6806 = vmatmul.mubr.msk.f32.gmra.mrb[6].mxu0 %vm121_vm4, %v90_v11  ;;  %6845 = vmatmul.mubr.msk.f32.gmra.mrb[6].mxu1 %vm121_vm4, %v103_v12 }
  0x6f   :  { %6808 = vmatprep.mubr.msk.f32.mxu0 %vm8267_vm0, %v8268_v1  ;;  %6847 = vmatprep.mubr.msk.f32.mxu1 %vm8267_vm0, %v8268_v1 }
  0x72   :  { %6809 = vmatmul.mubr.msk.f32.gmra.mrb[8].mxu0 %vm121_vm4, %v91_v13  ;;  %6848 = vmatmul.mubr.msk.f32.gmra.mrb[8].mxu1 %vm121_vm4, %v104_v14 }
  0x73   :  { %6811 = vmatprep.mubr.msk.f32.mxu0 %vm8267_vm0, %v8268_v1  ;;  %6850 = vmatprep.mubr.msk.f32.mxu1 %vm8267_vm0, %v8268_v1 }
  0x76   :  { %6812 = vmatmul.mubr.msk.f32.gmra.mrb[10].mxu0 %vm121_vm4, %v92_v15  ;;  %6851 = vmatmul.mubr.msk.f32.gmra.mrb[10].mxu1 %vm121_vm4, %v105_v16 }
  0x77   :  { %6814 = vmatprep.mubr.msk.f32.mxu0 %vm8267_vm0, %v8268_v1  ;;  %6853 = vmatprep.mubr.msk.f32.mxu1 %vm8267_vm0, %v8268_v1 }
  0x7a   :  { %6815 = vmatmul.mubr.msk.f32.gmra.mrb[12].mxu0 %vm121_vm4, %v93_v17  ;;  %6854 = vmatmul.mubr.msk.f32.gmra.mrb[12].mxu1 %vm121_vm4, %v106_v18 }
  0x7b   :  { %6817 = vmatprep.mubr.msk.f32.mxu0 %vm8267_vm0, %v8268_v1  ;;  %6856 = vmatprep.mubr.msk.f32.mxu1 %vm8267_vm0, %v8268_v1 }
  0x7e   :  { %6818 = vmatmul.mubr.msk.f32.gmra.mrb[14].mxu0 %vm121_vm4, %v94_v19  ;;  %6857 = vmatmul.mubr.msk.f32.gmra.mrb[14].mxu1 %vm121_vm4, %v107_v20 }
  0x7f   :  { %6820 = vmatprep.mubr.msk.f32.mxu0 %vm8267_vm0, %v8268_v1  ;;  %6859 = vmatprep.mubr.msk.f32.mxu1 %vm8267_vm0, %v8268_v1 }
  0x82   :  { %6821 = vmatmul.mubr.msk.f32.gmra.mrb[16].mxu0 %vm121_vm4, %v95_v21  ;;  %6860 = vmatmul.mubr.msk.f32.gmra.mrb[16].mxu1 %vm121_vm4, %v108_v22 }
  0x83   :  { %6823 = vmatprep.mubr.msk.f32.mxu0 %vm8267_vm0, %v8268_v1  ;;  %6862 = vmatprep.mubr.msk.f32.mxu1 %vm8267_vm0, %v8268_v1 }
  0x86   :  { %6824 = vmatmul.mubr.msk.f32.gmra.mrb[18].mxu0 %vm121_vm4, %v96_v23  ;;  %6863 = vmatmul.mubr.msk.f32.gmra.mrb[18].mxu1 %vm121_vm4, %v109_v24 }
  0x87   :  { %6826 = vmatprep.mubr.msk.f32.mxu0 %vm8267_vm0, %v8268_v1  ;;  %6865 = vmatprep.mubr.msk.f32.mxu1 %vm8267_vm0, %v8268_v1 }
  0x8a   :  { %6827 = vmatmul.mubr.msk.f32.gmra.mrb[20].mxu0 %vm121_vm4, %v97_v25  ;;  %6866 = vmatmul.mubr.msk.f32.gmra.mrb[20].mxu1 %vm121_vm4, %v110_v26 }
  0x8b   :  { %6829 = vmatprep.mubr.msk.f32.mxu0 %vm8267_vm0, %v8268_v1  ;;  %6868 = vmatprep.mubr.msk.f32.mxu1 %vm8267_vm0, %v8268_v1 }
  0x8e   :  { %6830 = vmatmul.mubr.msk.f32.gmra.mrb[22].mxu0 %vm121_vm4, %v98_v27  ;;  %6869 = vmatmul.mubr.msk.f32.gmra.mrb[22].mxu1 %vm121_vm4, %v111_v28 }
  0x8f   :  { %6832 = vmatprep.mubr.msk.f32.mxu0 %vm8267_vm0, %v8268_v1  ;;  %6017 = vmatprep.mubr.msk.f32.mxu1 %vm466_vm5, %v417_v31 }
  0x92   :  { %6833 = vmatmul.mubr.msk.f32.gmra.mrb[24].mxu0 %vm121_vm4, %v99_v29 }
  0x93   :  { %6042 = vmatprep.mubr.msk.f32.mxu0 %vm466_vm5, %v742_v30 }
 0x135   :  { %v267_v33 = vpop.f32.mrb[0].mxu0  ;;  %v8523_v34 = vpop.f32.mrb[0].mxu1 }
 0x136   :  { %v6798_v35 = vpop.f32.mrb[1].mxu0  ;;  %v6837_v36 = vpop.f32.mrb[1].mxu1  ;;  %v268_v37 = vadd.f32 %v8521_v32, %v267_v33 }
 0x138   :  { %v391_v44 = vmax.f32 %v268_v37, 0.0 }
 0x139   :  { %v272_v38 = vpop.f32.mrb[2].mxu0  ;;  %v337_v39 = vpop.f32.mrb[2].mxu1 }
 0x13a   :  { %v273_v40 = vadd.f32 %v8521_v32, %v272_v38  ;;  %v6801_v41 = vpop.f32.mrb[3].mxu0  ;;  %v338_v42 = vadd.f32 %v8521_v32, %v337_v39  ;;  %v6840_v43 = vpop.f32.mrb[3].mxu1 }
 0x13c   :  { %v392_v45 = vmax.f32 %v273_v40, 0.0  ;;  %v405_v50 = vmax.f32 %v338_v42, 0.0 }
 0x13d   :  { %v277_v46 = vpop.f32.mrb[4].mxu0  ;;  %v342_v47 = vpop.f32.mrb[4].mxu1 }
 0x13e   :  { %v8528_v48 = vpack.c.bf16 %v392_v45, %v391_v44  ;;  %v6804_v49 = vpop.f32.mrb[5].mxu0  ;;  %v343_v51 = vadd.f32 %v8521_v32, %v342_v47  ;;  %v6843_v52 = vpop.f32.mrb[5].mxu1  ;;  %v278_v53 = vadd.f32 %v8521_v32, %v277_v46 }
 0x140   :  { %7696 = vmatpush1.bf16.msra.mxu1 %v8528_v48  ;;  %7732 = vmatpush1.bf16.msra.mxu0 %v8528_v48  ;;  %v406_v54 = vmax.f32 %v343_v51, 0.0  ;;  %v393_v62 = vmax.f32 %v278_v53, 0.0 }
 0x141   :  { %v282_v55 = vpop.f32.mrb[6].mxu0  ;;  %7697 = vmatprep.subr.bf16.mxu1 %v8266_v0  ;;  %7733 = vmatprep.subr.bf16.mxu0 %v8266_v0  ;;  %v347_v56 = vpop.f32.mrb[6].mxu1 }
 0x142   :  { %v283_v57 = vadd.f32 %v8521_v32, %v282_v55  ;;  %v6807_v58 = vpop.f32.mrb[7].mxu0  ;;  %v8537_v59 = vpack.c.bf16 %v406_v54, %v405_v50  ;;  %v348_v60 = vadd.f32 %v8521_v32, %v347_v56  ;;  %v6846_v61 = vpop.f32.mrb[7].mxu1 }
 0x144   :  { %v394_v63 = vmax.f32 %v283_v57, 0.0  ;;  %v407_v6 = vmax.f32 %v348_v60, 0.0 }
 0x145   :  { %v287_v2 = vpop.f32.mrb[8].mxu0  ;;  %v352_v3 = vpop.f32.mrb[8].mxu1 }
 0x146   :  { %v8540_v4 = vpack.c.bf16 %v394_v63, %v393_v62  ;;  %v6810_v5 = vpop.f32.mrb[9].mxu0  ;;  %v353_v7 = vadd.f32 %v8521_v32, %v352_v3  ;;  %v6849_v8 = vpop.f32.mrb[9].mxu1  ;;  %v288_v9 = vadd.f32 %v8521_v32, %v287_v2 }
 0x148   :  { %7699 = vmatpush1.bf16.msra.mxu1 %v8540_v4  ;;  %7735 = vmatpush1.bf16.msra.mxu0 %v8540_v4  ;;  %v408_v10 = vmax.f32 %v353_v7, 0.0  ;;  %v395_v18 = vmax.f32 %v288_v9, 0.0 }
 0x149   :  { %v292_v11 = vpop.f32.mrb[10].mxu0  ;;  %7700 = vmatprep.subr.bf16.mxu1 %v8266_v0  ;;  %7736 = vmatprep.subr.bf16.mxu0 %v8266_v0  ;;  %v357_v12 = vpop.f32.mrb[10].mxu1 }
 0x14a   :  { %v293_v13 = vadd.f32 %v8521_v32, %v292_v11  ;;  %v6813_v14 = vpop.f32.mrb[11].mxu0  ;;  %v8549_v15 = vpack.c.bf16 %v408_v10, %v407_v6  ;;  %v358_v16 = vadd.f32 %v8521_v32, %v357_v12  ;;  %v6852_v17 = vpop.f32.mrb[11].mxu1 }
 0x14c   :  { %v396_v19 = vmax.f32 %v293_v13, 0.0  ;;  %v409_v24 = vmax.f32 %v358_v16, 0.0  ;;  %v333_v16 = vadd.f32 %v8521_v32, %v8523_v34  ;;  %v1057_v34 = vld [vmem:[#allocation7 + $0x40] sm:$0xff] }
 0x14d   :  { %v297_v20 = vpop.f32.mrb[12].mxu0  ;;  %v362_v21 = vpop.f32.mrb[12].mxu1 }
 0x14e   :  { %v8552_v22 = vpack.c.bf16 %v396_v19, %v395_v18  ;;  %v6816_v23 = vpop.f32.mrb[13].mxu0  ;;  %v363_v25 = vadd.f32 %v8521_v32, %v362_v21  ;;  %v6855_v26 = vpop.f32.mrb[13].mxu1  ;;  %v298_v27 = vadd.f32 %v8521_v32, %v297_v20 }
 0x150   :  { %7702 = vmatpush1.bf16.msra.mxu1 %v8552_v22  ;;  %7738 = vmatpush1.bf16.msra.mxu0 %v8552_v22  ;;  %v410_v28 = vmax.f32 %v363_v25, 0.0  ;;  %v397_v38 = vmax.f32 %v298_v27, 0.0  ;;  %v1058_v27 = vld [vmem:[#allocation7 + $0x48] sm:$0xff] }
 0x151   :  { %v302_v29 = vpop.f32.mrb[14].mxu0  ;;  %7703 = vmatprep.subr.bf16.mxu1 %v8266_v0  ;;  %7739 = vmatprep.subr.bf16.mxu0 %v8266_v0  ;;  %v367_v30 = vpop.f32.mrb[14].mxu1 }
 0x152   :  { %v303_v31 = vadd.f32 %v8521_v32, %v302_v29  ;;  %v6819_v33 = vpop.f32.mrb[15].mxu0  ;;  %v8561_v35 = vpack.c.bf16 %v410_v28, %v409_v24  ;;  %v368_v36 = vadd.f32 %v8521_v32, %v367_v30  ;;  %v6858_v37 = vpop.f32.mrb[15].mxu1  ;;  %v404_v24 = vmax.f32 %v333_v16, 0.0  ;;  %v732_v28 = vld [vmem:[#allocation7] sm:$0xff]  ;;  %v733_v29 = vld [vmem:[#allocation7 + $0x8] sm:$0xff]  ;;  %v751_v16 = vld [vmem:[#allocation6 + $0x1e0] sm:$0xff] }
 0x153   :  { %v741_v30 = vld [vmem:[#allocation6 + $0x190] sm:$0xff]  ;;  %v744_v33 = vld [vmem:[#allocation6 + $0x1a8] sm:$0xff]  ;;  %v7767_v37 = vpack.c.bf16 %v1058_v27, %v1057_v34  ;;  %v755_v34 = vld [vmem:[#allocation6 + $0x200] sm:$0xff] }
 0x154   :  { %v398_v39 = vmax.f32 %v303_v31, 0.0  ;;  %v411_v44 = vmax.f32 %v368_v36, 0.0  ;;  %v416_v31 = vld [vmem:[#allocation6] sm:$0xff]  ;;  %v419_v36 = vld [vmem:[#allocation6 + $0x18] sm:$0xff]  ;;  %v430_v27 = vld [vmem:[#allocation6 + $0x70] sm:$0xff] }
 0x155   :  { %v307_v40 = vpop.f32.mrb[16].mxu0  ;;  %v372_v41 = vpop.f32.mrb[16].mxu1 }
 0x156   :  { %v8564_v42 = vpack.c.bf16 %v398_v39, %v397_v38  ;;  %v6822_v43 = vpop.f32.mrb[17].mxu0  ;;  %v373_v45 = vadd.f32 %v8521_v32, %v372_v41  ;;  %v6861_v46 = vpop.f32.mrb[17].mxu1  ;;  %v308_v47 = vadd.f32 %v8521_v32, %v307_v40  ;;  %v1059_v38 = vld [vmem:[#allocation7 + $0x50] sm:$0xff]  ;;  %v7779_v39 = vpack.c.bf16 %v733_v29, %v732_v28  ;;  %v1060_v40 = vld [vmem:[#allocation7 + $0x58] sm:$0xff]  ;;  %v758_v28 = vld [vmem:[#allocation6 + $0x218] sm:$0xff] }
 0x157   :  { %v734_v41 = vld [vmem:[#allocation7 + $0x10] sm:$0xff]  ;;  %v735_v43 = vld [vmem:[#allocation7 + $0x18] sm:$0xff]  ;;  %v746_v46 = vld [vmem:[#allocation6 + $0x1b8] sm:$0xff] }
 0x158   :  { %7705 = vmatpush1.bf16.msra.mxu1 %v8564_v42  ;;  %7741 = vmatpush1.bf16.msra.mxu0 %v8564_v42  ;;  %v412_v49 = vmax.f32 %v373_v45, 0.0  ;;  %v399_v57 = vmax.f32 %v308_v47, 0.0  ;;  %v418_v45 = vld [vmem:[#allocation6 + $0x10] sm:$0xff]  ;;  %v421_v47 = vld [vmem:[#allocation6 + $0x28] sm:$0xff] }
 0x159   :  { %v312_v50 = vpop.f32.mrb[18].mxu0  ;;  %7706 = vmatprep.subr.bf16.mxu1 %v8266_v0  ;;  %7742 = vmatprep.subr.bf16.mxu0 %v8266_v0  ;;  %v377_v51 = vpop.f32.mrb[18].mxu1  ;;  %v433_v29 = vld [vmem:[#allocation6 + $0x88] sm:$0xff] }
 0x15a   :  { %v313_v52 = vadd.f32 %v8521_v32, %v312_v50  ;;  %v6825_v53 = vpop.f32.mrb[19].mxu0  ;;  %v8573_v54 = vpack.c.bf16 %v412_v49, %v411_v44  ;;  %v378_v55 = vadd.f32 %v8521_v32, %v377_v51  ;;  %v6864_v56 = vpop.f32.mrb[19].mxu1  ;;  %v743_v44 = vld [vmem:[#allocation6 + $0x1a0] sm:$0xff]  ;;  %v7770_v49 = vpack.c.bf16 %v1060_v40, %v1059_v38  ;;  %v1061_v50 = vld [vmem:[#allocation7 + $0x60] sm:$0xff]  ;;  %v437_v40 = vld [vmem:[#allocation6 + $0xa8] sm:$0xff] }
 0x15b   :  { %v7782_v51 = vpack.c.bf16 %v735_v43, %v734_v41  ;;  %v736_v53 = vld [vmem:[#allocation7 + $0x20] sm:$0xff]  ;;  %v436_v43 = vld [vmem:[#allocation6 + $0xa0] sm:$0xff] }
 0x15c   :  { %v400_v58 = vmax.f32 %v313_v52, 0.0  ;;  %v413_v2 = vmax.f32 %v378_v55, 0.0  ;;  %v1062_v52 = vld [vmem:[#allocation7 + $0x68] sm:$0xff]  ;;  %v745_v56 = vld [vmem:[#allocation6 + $0x1b0] sm:$0xff] }
 0x15d   :  { %v317_v60 = vpop.f32.mrb[20].mxu0  ;;  %v382_v61 = vpop.f32.mrb[20].mxu1  ;;  %v737_v55 = vld [vmem:[#allocation7 + $0x28] sm:$0xff]  ;;  %v434_v38 = vld [vmem:[#allocation6 + $0x90] sm:$0xff] }
 0x15e   :  { %v8576_v62 = vpack.c.bf16 %v400_v58, %v399_v57  ;;  %v6828_v63 = vpop.f32.mrb[21].mxu0  ;;  %v383_v3 = vadd.f32 %v8521_v32, %v382_v61  ;;  %v6867_v5 = vpop.f32.mrb[21].mxu1  ;;  %v318_v6 = vadd.f32 %v8521_v32, %v317_v60  ;;  %v420_v57 = vld [vmem:[#allocation6 + $0x20] sm:$0xff]  ;;  %v748_v58 = vld [vmem:[#allocation6 + $0x1c8] sm:$0xff]  ;;  %v423_v60 = vld [vmem:[#allocation6 + $0x38] sm:$0xff]  ;;  %v7773_v61 = vpack.c.bf16 %v1062_v52, %v1061_v50 }
 0x15f   :  { %v7785_v63 = vpack.c.bf16 %v737_v55, %v736_v53  ;;  %v747_v5 = vld [vmem:[#allocation6 + $0x1c0] sm:$0xff]  ;;  %v761_v41 = vld [vmem:[#allocation6 + $0x230] sm:$0xff]  ;;  %v441_v50 = vld [vmem:[#allocation6 + $0xc8] sm:$0xff] }
 0x160   :  { %7708 = vmatpush1.bf16.msra.mxu1 %v8576_v62  ;;  %7744 = vmatpush1.bf16.msra.mxu0 %v8576_v62  ;;  %v414_v7 = vmax.f32 %v383_v3, 0.0  ;;  %v401_v17 = vmax.f32 %v318_v6, 0.0  ;;  %v1064_v3 = vld [vmem:[#allocation7 + $0x78] sm:$0xff]  ;;  %v422_v6 = vld [vmem:[#allocation6 + $0x30] sm:$0xff]  ;;  %v440_v52 = vld [vmem:[#allocation6 + $0xc0] sm:$0xff] }
 0x161   :  { %v322_v8 = vpop.f32.mrb[22].mxu0  ;;  %7709 = vmatprep.subr.bf16.mxu1 %v8266_v0  ;;  %7745 = vmatprep.subr.bf16.mxu0 %v8266_v0  ;;  %v387_v9 = vpop.f32.mrb[22].mxu1  ;;  %v768_v53 = vld [vmem:[#allocation6 + $0x268] sm:$0xff]  ;;  %v443_v55 = vld [vmem:[#allocation6 + $0xd8] sm:$0xff] }
 0x162   :  { %v323_v10 = vadd.f32 %v8521_v32, %v322_v8  ;;  %v6831_v11 = vpop.f32.mrb[23].mxu0  ;;  %v8585_v12 = vpack.c.bf16 %v414_v7, %v413_v2  ;;  %v388_v13 = vadd.f32 %v8521_v32, %v387_v9  ;;  %v6870_v14 = vpop.f32.mrb[23].mxu1  ;;  %v1063_v2 = vld [vmem:[#allocation7 + $0x70] sm:$0xff]  ;;  %v750_v7 = vld [vmem:[#allocation6 + $0x1d8] sm:$0xff]  ;;  %v425_v8 = vld [vmem:[#allocation6 + $0x48] sm:$0xff] }
 0x163   :  { %v7776_v9 = vpack.c.bf16 %v1064_v3, %v1063_v2  ;;  %v424_v11 = vld [vmem:[#allocation6 + $0x40] sm:$0xff]  ;;  %v427_v14 = vld [vmem:[#allocation6 + $0x58] sm:$0xff]  ;;  %v772_v2 = vld [vmem:[#allocation6 + $0x288] sm:$0xff] }
 0x164   :  { %v402_v18 = vmax.f32 %v323_v10, 0.0  ;;  %v749_v10 = vld [vmem:[#allocation6 + $0x1d0] sm:$0xff]  ;;  %v447_v3 = vld [vmem:[#allocation6 + $0xf8] sm:$0xff] }
 0x165   :  { %v327_v19 = vpop.f32.mrb[24].mxu0 }
 0x166   :  { %v8590_v20 = vpack.c.bf16 %v402_v18, %v401_v17  ;;  %v328_v21 = vadd.f32 %v8521_v32, %v327_v19  ;;  %v6834_v23 = vpop.f32.mrb[25].mxu0  ;;  %v8619_v32 = vmax.f32 %v388_v13, 0.0  ;;  %v752_v13 = vld [vmem:[#allocation6 + $0x1e8] sm:$0xff]  ;;  %v426_v17 = vld [vmem:[#allocation6 + $0x50] sm:$0xff]  ;;  %v754_v18 = vld [vmem:[#allocation6 + $0x1f8] sm:$0xff] }
 0x167   :  { %v429_v19 = vld [vmem:[#allocation6 + $0x68] sm:$0xff]  ;;  %v428_v23 = vld [vmem:[#allocation6 + $0x60] sm:$0xff] }
 0x168   :  { %v403_v25 = vmax.f32 %v328_v21, 0.0  ;;  %7711 = vmatpush1.bf16.msra.mxu1 %v8590_v20  ;;  %7747 = vmatpush1.bf16.msra.mxu0 %v8590_v20  ;;  %v753_v21 = vld [vmem:[#allocation6 + $0x1f0] sm:$0xff] }
 0x169   :  { %7712 = vmatprep.subr.bf16.mxu1 %v8266_v0  ;;  %7748 = vmatprep.subr.bf16.mxu0 %v8266_v0 }
 0x16a   :  { %v8597_v26 = vpack.c.bf16 %v404_v24, %v403_v25  ;;  %v756_v24 = vld [vmem:[#allocation6 + $0x208] sm:$0xff]  ;;  %v431_v25 = vld [vmem:[#allocation6 + $0x78] sm:$0xff] }
 0x16c   :  { %7714 = vmatpush1.bf16.msra.mxu1 %v8597_v26  ;;  %7750 = vmatpush1.bf16.msra.mxu0 %v8597_v26 }
 0x16d   :  { %7715 = vmatprep.subr.bf16.mxu1 %v8266_v0  ;;  %7751 = vmatprep.subr.bf16.mxu0 %v8266_v0 }
 0x170   :  { %7717 = vmatpush1.bf16.msra.mxu1 %v8537_v59  ;;  %7753 = vmatpush1.bf16.msra.mxu0 %v8537_v59 }
 0x171   :  { %7718 = vmatprep.subr.bf16.mxu1 %v8266_v0  ;;  %7754 = vmatprep.subr.bf16.mxu0 %v8266_v0 }
 0x174   :  { %7720 = vmatpush1.bf16.msra.mxu1 %v8549_v15  ;;  %7756 = vmatpush1.bf16.msra.mxu0 %v8549_v15 }
 0x175   :  { %7721 = vmatprep.subr.bf16.mxu1 %v8266_v0  ;;  %7757 = vmatprep.subr.bf16.mxu0 %v8266_v0 }
 0x178   :  { %7723 = vmatpush1.bf16.msra.mxu1 %v8561_v35  ;;  %7759 = vmatpush1.bf16.msra.mxu0 %v8561_v35 }
 0x179   :  { %7724 = vmatprep.subr.bf16.mxu1 %v8266_v0  ;;  %7760 = vmatprep.subr.bf16.mxu0 %v8266_v0 }
 0x17c   :  { %7726 = vmatpush1.bf16.msra.mxu1 %v8573_v54  ;;  %7762 = vmatpush1.bf16.msra.mxu0 %v8573_v54 }
 0x17d   :  { %7727 = vmatprep.subr.bf16.mxu1 %v8266_v0  ;;  %7763 = vmatprep.subr.bf16.mxu0 %v8266_v0 }
 0x180   :  { %7729 = vmatpush1.bf16.msra.mxu1 %v8585_v12  ;;  %7765 = vmatpush1.bf16.msra.mxu0 %v8585_v12 }
 0x181   :  { %590 = vmatprep.subr.mxu1 %v8268_v1  ;;  %914 = vmatprep.subr.mxu0 %v8268_v1 }
 0x184   :  { %591 = vmatpush1.msra.mxu1 %v8619_v32  ;;  %915 = vmatpush1.msra.mxu0 %v8619_v32 }
 0x185   :  { %931 = vmatmul.mubr.f32.vlgmr.msra.gmra.mrb[26].mxu0 %v741_v30  ;;  %607 = vmatmul.mubr.f32.vlgmr.msra.gmra.mrb[24].mxu1 %v416_v31  ;;  %v757_v30 = vld [vmem:[#allocation6 + $0x210] sm:$0xff]  ;;  %v432_v31 = vld [vmem:[#allocation6 + $0x80] sm:$0xff] }
 0x186   :  { %6043 = vmatprep.mubr.msk.f32.mxu0 %vm466_vm5, %v744_v33  ;;  %6018 = vmatprep.mubr.msk.f32.mxu1 %vm466_vm5, %v419_v36  ;;  %v760_v33 = vld [vmem:[#allocation6 + $0x228] sm:$0xff]  ;;  %v435_v36 = vld [vmem:[#allocation6 + $0x98] sm:$0xff] }
 0x187   :  { %7766 = vmatprep.subr.bf16.mxu1 %v8266_v0  ;;  %7778 = vmatprep.subr.bf16.mxu0 %v8266_v0 }
 0x188   :  { %7768 = vmatpush3.bf16.msra.mxu1 %v7767_v37  ;;  %7780 = vmatpush3.bf16.msra.mxu0 %v7779_v39  ;;  %v759_v37 = vld [vmem:[#allocation6 + $0x220] sm:$0xff]  ;;  %v762_v39 = vld [vmem:[#allocation6 + $0x238] sm:$0xff] }
 0x189   :  { %936 = vmatmul.mubr.f32.gmra.mrb[28].mxu0 %v743_v44  ;;  %612 = vmatmul.mubr.f32.gmra.mrb[26].mxu1 %v418_v45  ;;  %v764_v44 = vld [vmem:[#allocation6 + $0x248] sm:$0xff]  ;;  %v439_v45 = vld [vmem:[#allocation6 + $0xb8] sm:$0xff] }
 0x18a   :  { %6044 = vmatprep.mubr.msk.f32.mxu0 %vm466_vm5, %v746_v46  ;;  %6019 = vmatprep.mubr.msk.f32.mxu1 %vm466_vm5, %v421_v47  ;;  %v763_v46 = vld [vmem:[#allocation6 + $0x240] sm:$0xff]  ;;  %v438_v47 = vld [vmem:[#allocation6 + $0xb0] sm:$0xff] }
 0x18b   :  { %7769 = vmatprep.subr.bf16.mxu1 %v8266_v0  ;;  %7781 = vmatprep.subr.bf16.mxu0 %v8266_v0 }
 0x18c   :  { %7771 = vmatpush3.bf16.msra.mxu1 %v7770_v49  ;;  %7783 = vmatpush3.bf16.msra.mxu0 %v7782_v51  ;;  %v766_v49 = vld [vmem:[#allocation6 + $0x258] sm:$0xff]  ;;  %v765_v51 = vld [vmem:[#allocation6 + $0x250] sm:$0xff] }
 0x18d   :  { %941 = vmatmul.mubr.f32.gmra.mrb[30].mxu0 %v745_v56  ;;  %617 = vmatmul.mubr.f32.gmra.mrb[28].mxu1 %v420_v57  ;;  %v767_v56 = vld [vmem:[#allocation6 + $0x260] sm:$0xff]  ;;  %v442_v57 = vld [vmem:[#allocation6 + $0xd0] sm:$0xff] }
 0x18e   :  { %6045 = vmatprep.mubr.msk.f32.mxu0 %vm466_vm5, %v748_v58  ;;  %6020 = vmatprep.mubr.msk.f32.mxu1 %vm466_vm5, %v423_v60  ;;  %v770_v58 = vld [vmem:[#allocation6 + $0x278] sm:$0xff]  ;;  %v445_v60 = vld [vmem:[#allocation6 + $0xe8] sm:$0xff] }
 0x18f   :  { %7772 = vmatprep.subr.bf16.mxu1 %v8266_v0  ;;  %7784 = vmatprep.subr.bf16.mxu0 %v8266_v0 }
 0x190   :  { %7774 = vmatpush3.bf16.msra.mxu1 %v7773_v61  ;;  %7786 = vmatpush3.bf16.msra.mxu0 %v7785_v63  ;;  %v769_v61 = vld [vmem:[#allocation6 + $0x270] sm:$0xff]  ;;  %v444_v63 = vld [vmem:[#allocation6 + $0xe0] sm:$0xff] }
 0x191   :  { %946 = vmatmul.mubr.f32.gmra.mrb[32].mxu0 %v747_v5  ;;  %622 = vmatmul.mubr.f32.gmra.mrb[30].mxu1 %v422_v6  ;;  %v771_v5 = vld [vmem:[#allocation6 + $0x280] sm:$0xff]  ;;  %v446_v6 = vld [vmem:[#allocation6 + $0xf0] sm:$0xff] }
 0x192   :  { %6046 = vmatprep.mubr.msk.f32.mxu0 %vm466_vm5, %v750_v7  ;;  %6021 = vmatprep.mubr.msk.f32.mxu1 %vm466_vm5, %v425_v8  ;;  %v774_v7 = vld [vmem:[#allocation6 + $0x298] sm:$0xff]  ;;  %v449_v8 = vld [vmem:[#allocation6 + $0x108] sm:$0xff] }
 0x193   :  { %7775 = vmatprep.subr.bf16.mxu1 %v8266_v0  ;;  %7787 = vmatprep.subr.bf16.mxu0 %v8266_v0 }
 0x194   :  { %7777 = vmatpush3.bf16.msra.mxu1 %v7776_v9  ;;  %v773_v9 = vld [vmem:[#allocation6 + $0x290] sm:$0xff] }
 0x195   :  { %951 = vmatmul.mubr.f32.gmra.mrb[34].mxu0 %v749_v10  ;;  %627 = vmatmul.mubr.f32.gmra.mrb[32].mxu1 %v424_v11  ;;  %v448_v10 = vld [vmem:[#allocation6 + $0x100] sm:$0xff]  ;;  %v776_v11 = vld [vmem:[#allocation6 + $0x2a8] sm:$0xff] }
 0x196   :  { %6047 = vmatprep.mubr.msk.f32.mxu0 %vm466_vm5, %v752_v13  ;;  %6022 = vmatprep.mubr.msk.f32.mxu1 %vm466_vm5, %v427_v14  ;;  %v451_v13 = vld [vmem:[#allocation6 + $0x118] sm:$0xff]  ;;  %v775_v14 = vld [vmem:[#allocation6 + $0x2a0] sm:$0xff] }
 0x197   :  { %7790 = vmatprep.subr.bf16.mxu1 %v8266_v0 }
 0x199   :  { %956 = vmatmul.mubr.f32.gmra.mrb[36].mxu0 %v751_v16  ;;  %632 = vmatmul.mubr.f32.gmra.mrb[34].mxu1 %v426_v17  ;;  %v450_v16 = vld [vmem:[#allocation6 + $0x110] sm:$0xff]  ;;  %v778_v17 = vld [vmem:[#allocation6 + $0x2b8] sm:$0xff] }
 0x19a   :  { %6048 = vmatprep.mubr.msk.f32.mxu0 %vm466_vm5, %v754_v18  ;;  %6023 = vmatprep.mubr.msk.f32.mxu1 %vm466_vm5, %v429_v19  ;;  %v453_v18 = vld [vmem:[#allocation6 + $0x128] sm:$0xff]  ;;  %v777_v19 = vld [vmem:[#allocation6 + $0x2b0] sm:$0xff] }
 0x19d   :  { %961 = vmatmul.mubr.f32.gmra.mrb[38].mxu0 %v753_v21  ;;  %637 = vmatmul.mubr.f32.gmra.mrb[36].mxu1 %v428_v23  ;;  %v452_v21 = vld [vmem:[#allocation6 + $0x120] sm:$0xff]  ;;  %v780_v23 = vld [vmem:[#allocation6 + $0x2c8] sm:$0xff] }
 0x19e   :  { %6049 = vmatprep.mubr.msk.f32.mxu0 %vm466_vm5, %v756_v24  ;;  %6024 = vmatprep.mubr.msk.f32.mxu1 %vm466_vm5, %v431_v25  ;;  %v455_v24 = vld [vmem:[#allocation6 + $0x138] sm:$0xff]  ;;  %v779_v25 = vld [vmem:[#allocation6 + $0x2c0] sm:$0xff] }
 0x1a1   :  { %966 = vmatmul.mubr.f32.gmra.mrb[40].mxu0 %v755_v34  ;;  %642 = vmatmul.mubr.f32.gmra.mrb[38].mxu1 %v430_v27  ;;  %v454_v34 = vld [vmem:[#allocation6 + $0x130] sm:$0xff]  ;;  %v782_v27 = vld [vmem:[#allocation6 + $0x2d8] sm:$0xff] }
 0x1a2   :  { %6050 = vmatprep.mubr.msk.f32.mxu0 %vm466_vm5, %v758_v28  ;;  %6025 = vmatprep.mubr.msk.f32.mxu1 %vm466_vm5, %v433_v29  ;;  %v457_v28 = vld [vmem:[#allocation6 + $0x148] sm:$0xff]  ;;  %v781_v29 = vld [vmem:[#allocation6 + $0x2d0] sm:$0xff] }
 0x1a5   :  { %971 = vmatmul.mubr.f32.gmra.mrb[42].mxu0 %v757_v30  ;;  %647 = vmatmul.mubr.f32.gmra.mrb[40].mxu1 %v432_v31  ;;  %v456_v30 = vld [vmem:[#allocation6 + $0x140] sm:$0xff]  ;;  %v784_v31 = vld [vmem:[#allocation6 + $0x2e8] sm:$0xff] }
 0x1a6   :  { %6051 = vmatprep.mubr.msk.f32.mxu0 %vm466_vm5, %v760_v33  ;;  %6026 = vmatprep.mubr.msk.f32.mxu1 %vm466_vm5, %v435_v36  ;;  %v459_v33 = vld [vmem:[#allocation6 + $0x158] sm:$0xff]  ;;  %v738_v36 = vld [vmem:[#allocation7 + $0x30] sm:$0xff] }
 0x1a9   :  { %976 = vmatmul.mubr.f32.gmra.mrb[44].mxu0 %v759_v37  ;;  %652 = vmatmul.mubr.f32.gmra.mrb[42].mxu1 %v434_v38  ;;  %v739_v37 = vld [vmem:[#allocation7 + $0x38] sm:$0xff] }
 0x1aa   :  { %6052 = vmatprep.mubr.msk.f32.mxu0 %vm466_vm5, %v762_v39  ;;  %6027 = vmatprep.mubr.msk.f32.mxu1 %vm466_vm5, %v437_v40  ;;  %v7788_v38 = vpack.c.bf16 %v739_v37, %v738_v36  ;;  %v783_v39 = vld [vmem:[#allocation6 + $0x2e0] sm:$0xff]  ;;  %v458_v40 = vld [vmem:[#allocation6 + $0x150] sm:$0xff] }
 0x1ac   :  { %7789 = vmatpush3.bf16.msra.mxu0 %v7788_v38 }
 0x1ad   :  { %981 = vmatmul.mubr.f32.gmra.mrb[46].mxu0 %v761_v41  ;;  %657 = vmatmul.mubr.f32.gmra.mrb[44].mxu1 %v436_v43  ;;  %v786_v41 = vld [vmem:[#allocation6 + $0x2f8] sm:$0xff]  ;;  %v461_v43 = vld [vmem:[#allocation6 + $0x168] sm:$0xff] }
 0x1ae   :  { %6053 = vmatprep.mubr.msk.f32.mxu0 %vm466_vm5, %v764_v44  ;;  %6028 = vmatprep.mubr.msk.f32.mxu1 %vm466_vm5, %v439_v45  ;;  %v785_v44 = vld [vmem:[#allocation6 + $0x2f0] sm:$0xff]  ;;  %v460_v45 = vld [vmem:[#allocation6 + $0x160] sm:$0xff] }
 0x1af   :  { %7826 = vmatprep.subr.bf16.mxu0 %v8266_v0 }
 0x1b1   :  { %986 = vmatmul.mubr.f32.gmra.mrb[48].mxu0 %v763_v46  ;;  %662 = vmatmul.mubr.f32.gmra.mrb[46].mxu1 %v438_v47  ;;  %v788_v46 = vld [vmem:[#allocation6 + $0x308] sm:$0xff]  ;;  %v463_v47 = vld [vmem:[#allocation6 + $0x178] sm:$0xff] }
 0x1b2   :  { %6054 = vmatprep.mubr.msk.f32.mxu0 %vm466_vm5, %v766_v49  ;;  %6029 = vmatprep.mubr.msk.f32.mxu1 %vm466_vm5, %v441_v50  ;;  %v787_v49 = vld [vmem:[#allocation6 + $0x300] sm:$0xff]  ;;  %v462_v50 = vld [vmem:[#allocation6 + $0x170] sm:$0xff] }
 0x1b5   :  { %991 = vmatmul.mubr.f32.gmra.mrb[50].mxu0 %v765_v51  ;;  %667 = vmatmul.mubr.f32.gmra.mrb[48].mxu1 %v440_v52  ;;  %v790_v51 = vld [vmem:[#allocation6 + $0x318] sm:$0xff]  ;;  %v465_v52 = vld [vmem:[#allocation6 + $0x188] sm:$0xff] }
 0x1b6   :  { %6055 = vmatprep.mubr.msk.f32.mxu0 %vm466_vm5, %v768_v53  ;;  %6030 = vmatprep.mubr.msk.f32.mxu1 %vm466_vm5, %v443_v55  ;;  %v789_v53 = vld [vmem:[#allocation6 + $0x310] sm:$0xff]  ;;  %v464_v55 = vld [vmem:[#allocation6 + $0x180] sm:$0xff] }
 0x1b9   :  { %996 = vmatmul.mubr.f32.gmra.mrb[52].mxu0 %v767_v56  ;;  %672 = vmatmul.mubr.f32.gmra.mrb[50].mxu1 %v442_v57 }
 0x1ba   :  { %6056 = vmatprep.mubr.msk.f32.mxu0 %vm466_vm5, %v770_v58  ;;  %6031 = vmatprep.mubr.msk.f32.mxu1 %vm466_vm5, %v445_v60 }
 0x1bd   :  { %1001 = vmatmul.mubr.f32.gmra.mrb[54].mxu0 %v769_v61  ;;  %677 = vmatmul.mubr.f32.gmra.mrb[52].mxu1 %v444_v63 }
 0x1be   :  { %6057 = vmatprep.mubr.msk.f32.mxu0 %vm466_vm5, %v772_v2  ;;  %6032 = vmatprep.mubr.msk.f32.mxu1 %vm466_vm5, %v447_v3 }
 0x1c1   :  { %1006 = vmatmul.mubr.f32.gmra.mrb[56].mxu0 %v771_v5  ;;  %682 = vmatmul.mubr.f32.gmra.mrb[54].mxu1 %v446_v6 }
 0x1c2   :  { %6058 = vmatprep.mubr.msk.f32.mxu0 %vm466_vm5, %v774_v7  ;;  %6033 = vmatprep.mubr.msk.f32.mxu1 %vm466_vm5, %v449_v8 }
 0x1c5   :  { %1011 = vmatmul.mubr.f32.gmra.mrb[58].mxu0 %v773_v9  ;;  %687 = vmatmul.mubr.f32.gmra.mrb[56].mxu1 %v448_v10 }
 0x1c6   :  { %6059 = vmatprep.mubr.msk.f32.mxu0 %vm466_vm5, %v776_v11  ;;  %6034 = vmatprep.mubr.msk.f32.mxu1 %vm466_vm5, %v451_v13 }
 0x1c9   :  { %1016 = vmatmul.mubr.f32.gmra.mrb[60].mxu0 %v775_v14  ;;  %692 = vmatmul.mubr.f32.gmra.mrb[58].mxu1 %v450_v16 }
 0x1ca   :  { %6060 = vmatprep.mubr.msk.f32.mxu0 %vm466_vm5, %v778_v17  ;;  %6035 = vmatprep.mubr.msk.f32.mxu1 %vm466_vm5, %v453_v18 }
 0x1cd   :  { %1021 = vmatmul.mubr.f32.gmra.mrb[62].mxu0 %v777_v19  ;;  %697 = vmatmul.mubr.f32.gmra.mrb[60].mxu1 %v452_v21 }
 0x1ce   :  { %6061 = vmatprep.mubr.msk.f32.mxu0 %vm466_vm5, %v780_v23  ;;  %6036 = vmatprep.mubr.msk.f32.mxu1 %vm466_vm5, %v455_v24 }
 0x1d1   :  { %1026 = vmatmul.mubr.f32.gmra.mrb[64].mxu0 %v779_v25  ;;  %702 = vmatmul.mubr.f32.gmra.mrb[62].mxu1 %v454_v34 }
 0x1d2   :  { %6062 = vmatprep.mubr.msk.f32.mxu0 %vm466_vm5, %v782_v27  ;;  %6037 = vmatprep.mubr.msk.f32.mxu1 %vm466_vm5, %v457_v28 }
 0x1d5   :  { %1031 = vmatmul.mubr.f32.gmra.mrb[66].mxu0 %v781_v29  ;;  %707 = vmatmul.mubr.f32.gmra.mrb[64].mxu1 %v456_v30 }
 0x1d6   :  { %6063 = vmatprep.mubr.msk.f32.mxu0 %vm466_vm5, %v784_v31  ;;  %6038 = vmatprep.mubr.msk.f32.mxu1 %vm466_vm5, %v459_v33 }
 0x1d9   :  { %1036 = vmatmul.mubr.f32.gmra.mrb[68].mxu0 %v783_v39  ;;  %712 = vmatmul.mubr.f32.gmra.mrb[66].mxu1 %v458_v40 }
 0x1da   :  { %6064 = vmatprep.mubr.msk.f32.mxu0 %vm466_vm5, %v786_v41  ;;  %6039 = vmatprep.mubr.msk.f32.mxu1 %vm466_vm5, %v461_v43 }
 0x1dd   :  { %1041 = vmatmul.mubr.f32.gmra.mrb[70].mxu0 %v785_v44  ;;  %717 = vmatmul.mubr.f32.gmra.mrb[68].mxu1 %v460_v45 }
 0x1de   :  { %6065 = vmatprep.mubr.msk.f32.mxu0 %vm466_vm5, %v788_v46  ;;  %6040 = vmatprep.mubr.msk.f32.mxu1 %vm466_vm5, %v463_v47 }
 0x1e1   :  { %1046 = vmatmul.mubr.f32.gmra.mrb[72].mxu0 %v787_v49  ;;  %722 = vmatmul.mubr.f32.gmra.mrb[70].mxu1 %v462_v50 }
 0x1e2   :  { %6066 = vmatprep.mubr.msk.f32.mxu0 %vm466_vm5, %v790_v51  ;;  %6041 = vmatprep.mubr.msk.f32.mxu1 %vm466_vm5, %v465_v52 }
 0x1e5   :  { %1051 = vmatmul.mubr.f32.gmra.mrb[74].mxu0 %v789_v53  ;;  %727 = vmatmul.mubr.f32.gmra.mrb[72].mxu1 %v464_v55 }
 0x1e6   :  { %6887 = vmatprep.mubr.msk.f32.mxu1 %vm8267_vm0, %v8268_v1  ;;  %6978 = vmatprep.mubr.msk.f32.mxu0 %vm8267_vm0, %v8268_v1 }
 0x258   :  { %v932_v56 = vpop.f32.mrb[26].mxu0  ;;  %v608_v57 = vpop.f32.mrb[24].mxu1 }
 0x259   :  { %6888 = vmatmul.mubr.msk.f32.vlgmr.msra.gmra.mrb[74].mxu1 %vm1065_vm6, %v932_v56  ;;  %v934_v58 = vpop.f32.mrb[27].mxu0  ;;  %6979 = vmatmul.mubr.msk.f32.vlgmr.msra.gmra.mrb[76].mxu0 %vm1065_vm6, %v608_v57  ;;  %v610_v60 = vpop.f32.mrb[25].mxu1 }
 0x25a   :  { %7792 = vmatpush1.bf16.msra.mxu1 %v8528_v48  ;;  %6890 = vmatprep.mubr.msk.f32.mxu1 %vm8267_vm0, %v8268_v1 }
 0x25b   :  { %7793 = vmatprep.subr.bf16.mxu1 %v8266_v0  ;;  %6981 = vmatprep.mubr.msk.f32.mxu0 %vm8267_vm0, %v8268_v1 }
 0x25c   :  { %v937_v61 = vpop.f32.mrb[28].mxu0  ;;  %v613_v63 = vpop.f32.mrb[26].mxu1 }
 0x25d   :  { %6891 = vmatmul.mubr.msk.f32.gmra.mrb[76].mxu1 %vm1065_vm6, %v937_v61  ;;  %v939_v2 = vpop.f32.mrb[29].mxu0  ;;  %6982 = vmatmul.mubr.msk.f32.gmra.mrb[78].mxu0 %vm1065_vm6, %v613_v63  ;;  %v615_v3 = vpop.f32.mrb[27].mxu1 }
 0x25e   :  { %7795 = vmatpush1.bf16.msra.mxu1 %v8540_v4  ;;  %6893 = vmatprep.mubr.msk.f32.mxu1 %vm8267_vm0, %v8268_v1 }
 0x25f   :  { %7796 = vmatprep.subr.bf16.mxu1 %v8266_v0  ;;  %6984 = vmatprep.mubr.msk.f32.mxu0 %vm8267_vm0, %v8268_v1 }
 0x260   :  { %v942_v5 = vpop.f32.mrb[30].mxu0  ;;  %v618_v6 = vpop.f32.mrb[28].mxu1 }
 0x261   :  { %6894 = vmatmul.mubr.msk.f32.gmra.mrb[78].mxu1 %vm1065_vm6, %v942_v5  ;;  %v944_v7 = vpop.f32.mrb[31].mxu0  ;;  %6985 = vmatmul.mubr.msk.f32.gmra.mrb[80].mxu0 %vm1065_vm6, %v618_v6  ;;  %v620_v8 = vpop.f32.mrb[29].mxu1 }
 0x262   :  { %7798 = vmatpush1.bf16.msra.mxu1 %v8552_v22  ;;  %6896 = vmatprep.mubr.msk.f32.mxu1 %vm8267_vm0, %v8268_v1 }
 0x263   :  { %7799 = vmatprep.subr.bf16.mxu1 %v8266_v0  ;;  %6987 = vmatprep.mubr.msk.f32.mxu0 %vm8267_vm0, %v8268_v1 }
 0x264   :  { %v947_v9 = vpop.f32.mrb[32].mxu0  ;;  %v623_v10 = vpop.f32.mrb[30].mxu1 }
 0x265   :  { %6897 = vmatmul.mubr.msk.f32.gmra.mrb[80].mxu1 %vm1065_vm6, %v947_v9  ;;  %v949_v11 = vpop.f32.mrb[33].mxu0  ;;  %6988 = vmatmul.mubr.msk.f32.gmra.mrb[82].mxu0 %vm1065_vm6, %v623_v10  ;;  %v625_v13 = vpop.f32.mrb[31].mxu1 }
 0x266   :  { %7801 = vmatpush1.bf16.msra.mxu1 %v8564_v42  ;;  %6899 = vmatprep.mubr.msk.f32.mxu1 %vm8267_vm0, %v8268_v1 }
 0x267   :  { %7802 = vmatprep.subr.bf16.mxu1 %v8266_v0  ;;  %6990 = vmatprep.mubr.msk.f32.mxu0 %vm8267_vm0, %v8268_v1 }
 0x268   :  { %v952_v14 = vpop.f32.mrb[34].mxu0  ;;  %v628_v16 = vpop.f32.mrb[32].mxu1 }
 0x269   :  { %6900 = vmatmul.mubr.msk.f32.gmra.mrb[82].mxu1 %vm1065_vm6, %v952_v14  ;;  %v954_v17 = vpop.f32.mrb[35].mxu0  ;;  %6991 = vmatmul.mubr.msk.f32.gmra.mrb[84].mxu0 %vm1065_vm6, %v628_v16  ;;  %v630_v18 = vpop.f32.mrb[33].mxu1 }
 0x26a   :  { %7804 = vmatpush1.bf16.msra.mxu1 %v8576_v62  ;;  %6902 = vmatprep.mubr.msk.f32.mxu1 %vm8267_vm0, %v8268_v1 }
 0x26b   :  { %7805 = vmatprep.subr.bf16.mxu1 %v8266_v0  ;;  %6993 = vmatprep.mubr.msk.f32.mxu0 %vm8267_vm0, %v8268_v1 }
 0x26c   :  { %v957_v19 = vpop.f32.mrb[36].mxu0  ;;  %v633_v21 = vpop.f32.mrb[34].mxu1 }
 0x26d   :  { %6903 = vmatmul.mubr.msk.f32.gmra.mrb[84].mxu1 %vm1065_vm6, %v957_v19  ;;  %v959_v23 = vpop.f32.mrb[37].mxu0  ;;  %6994 = vmatmul.mubr.msk.f32.gmra.mrb[86].mxu0 %vm1065_vm6, %v633_v21  ;;  %v635_v24 = vpop.f32.mrb[35].mxu1 }
 0x26e   :  { %7807 = vmatpush1.bf16.msra.mxu1 %v8590_v20  ;;  %6905 = vmatprep.mubr.msk.f32.mxu1 %vm8267_vm0, %v8268_v1 }
 0x26f   :  { %7808 = vmatprep.subr.bf16.mxu1 %v8266_v0  ;;  %6996 = vmatprep.mubr.msk.f32.mxu0 %vm8267_vm0, %v8268_v1 }
 0x270   :  { %v962_v25 = vpop.f32.mrb[38].mxu0  ;;  %v638_v34 = vpop.f32.mrb[36].mxu1 }
 0x271   :  { %6906 = vmatmul.mubr.msk.f32.gmra.mrb[86].mxu1 %vm1065_vm6, %v962_v25  ;;  %v964_v27 = vpop.f32.mrb[39].mxu0  ;;  %6997 = vmatmul.mubr.msk.f32.gmra.mrb[88].mxu0 %vm1065_vm6, %v638_v34  ;;  %v640_v28 = vpop.f32.mrb[37].mxu1 }
 0x272   :  { %7810 = vmatpush1.bf16.msra.mxu1 %v8597_v26  ;;  %6908 = vmatprep.mubr.msk.f32.mxu1 %vm8267_vm0, %v8268_v1 }
 0x273   :  { %7811 = vmatprep.subr.bf16.mxu1 %v8266_v0  ;;  %6999 = vmatprep.mubr.msk.f32.mxu0 %vm8267_vm0, %v8268_v1 }
 0x274   :  { %v967_v29 = vpop.f32.mrb[40].mxu0  ;;  %v643_v30 = vpop.f32.mrb[38].mxu1 }
 0x275   :  { %6909 = vmatmul.mubr.msk.f32.gmra.mrb[88].mxu1 %vm1065_vm6, %v967_v29  ;;  %v969_v31 = vpop.f32.mrb[41].mxu0  ;;  %7000 = vmatmul.mubr.msk.f32.gmra.mrb[90].mxu0 %vm1065_vm6, %v643_v30  ;;  %v645_v33 = vpop.f32.mrb[39].mxu1 }
 0x276   :  { %7813 = vmatpush1.bf16.msra.mxu1 %v8537_v59  ;;  %6911 = vmatprep.mubr.msk.f32.mxu1 %vm8267_vm0, %v8268_v1 }
 0x277   :  { %7814 = vmatprep.subr.bf16.mxu1 %v8266_v0  ;;  %7002 = vmatprep.mubr.msk.f32.mxu0 %vm8267_vm0, %v8268_v1 }
 0x278   :  { %v972_v36 = vpop.f32.mrb[42].mxu0  ;;  %v648_v37 = vpop.f32.mrb[40].mxu1 }
 0x279   :  { %6912 = vmatmul.mubr.msk.f32.gmra.mrb[90].mxu1 %vm1065_vm6, %v972_v36  ;;  %v974_v38 = vpop.f32.mrb[43].mxu0  ;;  %7003 = vmatmul.mubr.msk.f32.gmra.mrb[92].mxu0 %vm1065_vm6, %v648_v37  ;;  %v650_v39 = vpop.f32.mrb[41].mxu1 }
 0x27a   :  { %7816 = vmatpush1.bf16.msra.mxu1 %v8549_v15  ;;  %6914 = vmatprep.mubr.msk.f32.mxu1 %vm8267_vm0, %v8268_v1 }
 0x27b   :  { %7817 = vmatprep.subr.bf16.mxu1 %v8266_v0  ;;  %7005 = vmatprep.mubr.msk.f32.mxu0 %vm8267_vm0, %v8268_v1 }
 0x27c   :  { %v977_v40 = vpop.f32.mrb[44].mxu0  ;;  %v653_v41 = vpop.f32.mrb[42].mxu1 }
 0x27d   :  { %6915 = vmatmul.mubr.msk.f32.gmra.mrb[92].mxu1 %vm1065_vm6, %v977_v40  ;;  %v979_v43 = vpop.f32.mrb[45].mxu0  ;;  %7006 = vmatmul.mubr.msk.f32.gmra.mrb[94].mxu0 %vm1065_vm6, %v653_v41  ;;  %v655_v44 = vpop.f32.mrb[43].mxu1 }
 0x27e   :  { %7819 = vmatpush1.bf16.msra.mxu1 %v8561_v35  ;;  %6917 = vmatprep.mubr.msk.f32.mxu1 %vm8267_vm0, %v8268_v1  ;;  %v1913_v44 = vld [vmem:[#allocation7 + $0x80] sm:$0xff] }
 0x27f   :  { %7820 = vmatprep.subr.bf16.mxu1 %v8266_v0  ;;  %7008 = vmatprep.mubr.msk.f32.mxu0 %vm8267_vm0, %v8268_v1 }
 0x280   :  { %v982_v45 = vpop.f32.mrb[46].mxu0  ;;  %v658_v46 = vpop.f32.mrb[44].mxu1 }
 0x281   :  { %6918 = vmatmul.mubr.msk.f32.gmra.mrb[94].mxu1 %vm1065_vm6, %v982_v45  ;;  %v984_v47 = vpop.f32.mrb[47].mxu0  ;;  %7009 = vmatmul.mubr.msk.f32.gmra.mrb[96].mxu0 %vm1065_vm6, %v658_v46  ;;  %v660_v49 = vpop.f32.mrb[45].mxu1  ;;  %v1914_v45 = vld [vmem:[#allocation7 + $0x88] sm:$0xff] }
 0x282   :  { %7822 = vmatpush1.bf16.msra.mxu1 %v8573_v54  ;;  %6920 = vmatprep.mubr.msk.f32.mxu1 %vm8267_vm0, %v8268_v1  ;;  %v7827_v46 = vpack.c.bf16 %v1914_v45, %v1913_v44  ;;  %v1626_v44 = vld [vmem:[#allocation6 + $0x408] sm:$0xff]  ;;  %v1625_v45 = vld [vmem:[#allocation6 + $0x400] sm:$0xff] }
 0x283   :  { %7823 = vmatprep.subr.bf16.mxu1 %v8266_v0  ;;  %7011 = vmatprep.mubr.msk.f32.mxu0 %vm8267_vm0, %v8268_v1 }
 0x284   :  { %v987_v50 = vpop.f32.mrb[48].mxu0  ;;  %v663_v51 = vpop.f32.mrb[46].mxu1  ;;  %7828 = vmatpush3.bf16.msra.mxu0 %v7827_v46  ;;  %v1628_v46 = vld [vmem:[#allocation6 + $0x418] sm:$0xff] }
 0x285   :  { %6921 = vmatmul.mubr.msk.f32.gmra.mrb[96].mxu1 %vm1065_vm6, %v987_v50  ;;  %v989_v52 = vpop.f32.mrb[49].mxu0  ;;  %7012 = vmatmul.mubr.msk.f32.gmra.mrb[98].mxu0 %vm1065_vm6, %v663_v51  ;;  %v665_v53 = vpop.f32.mrb[47].mxu1 }
 0x286   :  { %7825 = vmatpush1.bf16.msra.mxu1 %v8585_v12  ;;  %6923 = vmatprep.mubr.msk.f32.mxu1 %vm8267_vm0, %v8268_v1 }
 0x287   :  { %1770 = vmatprep.subr.mxu1 %v8268_v1  ;;  %7014 = vmatprep.mubr.msk.f32.mxu0 %vm8267_vm0, %v8268_v1 }
 0x288   :  { %v992_v55 = vpop.f32.mrb[50].mxu0  ;;  %v668_v56 = vpop.f32.mrb[48].mxu1  ;;  %7829 = vmatprep.subr.bf16.mxu0 %v8266_v0 }
 0x289   :  { %6924 = vmatmul.mubr.msk.f32.gmra.mrb[98].mxu1 %vm1065_vm6, %v992_v55  ;;  %v994_v57 = vpop.f32.mrb[51].mxu0  ;;  %7015 = vmatmul.mubr.msk.f32.gmra.mrb[100].mxu0 %vm1065_vm6, %v668_v56  ;;  %v670_v58 = vpop.f32.mrb[49].mxu1 }
 0x28a   :  { %1771 = vmatpush1.msra.mxu1 %v8619_v32  ;;  %6926 = vmatprep.mubr.msk.f32.mxu1 %vm8267_vm0, %v8268_v1  ;;  %v1598_v57 = vld [vmem:[#allocation6 + $0x328] sm:$0xff] }
 0x28b   :  { %7017 = vmatprep.mubr.msk.f32.mxu0 %vm8267_vm0, %v8268_v1  ;;  %7838 = vmatprep.subr.bf16.mxu1 %v8266_v0 }
 0x28c   :  { %v997_v60 = vpop.f32.mrb[52].mxu0  ;;  %v673_v61 = vpop.f32.mrb[50].mxu1 }
 0x28d   :  { %6927 = vmatmul.mubr.msk.f32.gmra.mrb[100].mxu1 %vm1065_vm6, %v997_v60  ;;  %v999_v63 = vpop.f32.mrb[53].mxu0  ;;  %7018 = vmatmul.mubr.msk.f32.gmra.mrb[102].mxu0 %vm1065_vm6, %v673_v61  ;;  %v675_v2 = vpop.f32.mrb[51].mxu1 }
 0x28e   :  { %6929 = vmatprep.mubr.msk.f32.mxu1 %vm8267_vm0, %v8268_v1  ;;  %7020 = vmatprep.mubr.msk.f32.mxu0 %vm8267_vm0, %v8268_v1  ;;  %v1597_v2 = vld [vmem:[#allocation6 + $0x320] sm:$0xff] }
 0x290   :  { %v1002_v3 = vpop.f32.mrb[54].mxu0  ;;  %v678_v5 = vpop.f32.mrb[52].mxu1 }
 0x291   :  { %6930 = vmatmul.mubr.msk.f32.gmra.mrb[102].mxu1 %vm1065_vm6, %v1002_v3  ;;  %v1004_v6 = vpop.f32.mrb[55].mxu0  ;;  %7021 = vmatmul.mubr.msk.f32.gmra.mrb[104].mxu0 %vm1065_vm6, %v678_v5  ;;  %v680_v7 = vpop.f32.mrb[53].mxu1  ;;  %v1600_v3 = vld [vmem:[#allocation6 + $0x338] sm:$0xff]  ;;  %v1599_v5 = vld [vmem:[#allocation6 + $0x330] sm:$0xff] }
 0x292   :  { %6932 = vmatprep.mubr.msk.f32.mxu1 %vm8267_vm0, %v8268_v1  ;;  %7023 = vmatprep.mubr.msk.f32.mxu0 %vm8267_vm0, %v8268_v1  ;;  %v1602_v6 = vld [vmem:[#allocation6 + $0x348] sm:$0xff]  ;;  %v1601_v7 = vld [vmem:[#allocation6 + $0x340] sm:$0xff] }
 0x294   :  { %v1007_v8 = vpop.f32.mrb[56].mxu0  ;;  %v683_v9 = vpop.f32.mrb[54].mxu1 }
 0x295   :  { %6933 = vmatmul.mubr.msk.f32.gmra.mrb[104].mxu1 %vm1065_vm6, %v1007_v8  ;;  %v1009_v10 = vpop.f32.mrb[57].mxu0  ;;  %7024 = vmatmul.mubr.msk.f32.gmra.mrb[106].mxu0 %vm1065_vm6, %v683_v9  ;;  %v685_v11 = vpop.f32.mrb[55].mxu1  ;;  %v1604_v8 = vld [vmem:[#allocation6 + $0x358] sm:$0xff]  ;;  %v1603_v9 = vld [vmem:[#allocation6 + $0x350] sm:$0xff] }
 0x296   :  { %6935 = vmatprep.mubr.msk.f32.mxu1 %vm8267_vm0, %v8268_v1  ;;  %7026 = vmatprep.mubr.msk.f32.mxu0 %vm8267_vm0, %v8268_v1  ;;  %v1606_v10 = vld [vmem:[#allocation6 + $0x368] sm:$0xff]  ;;  %v1915_v11 = vld [vmem:[#allocation7 + $0x90] sm:$0xff] }
 0x298   :  { %v1012_v13 = vpop.f32.mrb[58].mxu0  ;;  %v688_v14 = vpop.f32.mrb[56].mxu1 }
 0x299   :  { %6936 = vmatmul.mubr.msk.f32.gmra.mrb[106].mxu1 %vm1065_vm6, %v1012_v13  ;;  %v1014_v16 = vpop.f32.mrb[59].mxu0  ;;  %7027 = vmatmul.mubr.msk.f32.gmra.mrb[108].mxu0 %vm1065_vm6, %v688_v14  ;;  %v690_v17 = vpop.f32.mrb[57].mxu1  ;;  %v1916_v13 = vld [vmem:[#allocation7 + $0x98] sm:$0xff] }
 0x29a   :  { %6938 = vmatprep.mubr.msk.f32.mxu1 %vm8267_vm0, %v8268_v1  ;;  %7029 = vmatprep.mubr.msk.f32.mxu0 %vm8267_vm0, %v8268_v1  ;;  %v7830_v14 = vpack.c.bf16 %v1916_v13, %v1915_v11  ;;  %v1605_v16 = vld [vmem:[#allocation6 + $0x360] sm:$0xff]  ;;  %v1608_v17 = vld [vmem:[#allocation6 + $0x378] sm:$0xff] }
 0x29b   :  { %v1645_v11 = vld [vmem:[#allocation6 + $0x4a0] sm:$0xff]  ;;  %v2213_v13 = vld [vmem:[#allocation6 + $0x4b8] sm:$0xff] }
 0x29c   :  { %v1017_v18 = vpop.f32.mrb[60].mxu0  ;;  %v693_v19 = vpop.f32.mrb[58].mxu1  ;;  %7831 = vmatpush3.bf16.msra.mxu0 %v7830_v14  ;;  %v2212_v14 = vld [vmem:[#allocation6 + $0x4b0] sm:$0xff] }
 0x29d   :  { %6939 = vmatmul.mubr.msk.f32.gmra.mrb[108].mxu1 %vm1065_vm6, %v1017_v18  ;;  %v1019_v21 = vpop.f32.mrb[61].mxu0  ;;  %7030 = vmatmul.mubr.msk.f32.gmra.mrb[110].mxu0 %vm1065_vm6, %v693_v19  ;;  %v695_v23 = vpop.f32.mrb[59].mxu1  ;;  %v1607_v18 = vld [vmem:[#allocation6 + $0x370] sm:$0xff]  ;;  %v1610_v19 = vld [vmem:[#allocation6 + $0x388] sm:$0xff] }
 0x29e   :  { %6941 = vmatprep.mubr.msk.f32.mxu1 %vm8267_vm0, %v8268_v1  ;;  %7032 = vmatprep.mubr.msk.f32.mxu0 %vm8267_vm0, %v8268_v1  ;;  %v1609_v21 = vld [vmem:[#allocation6 + $0x380] sm:$0xff]  ;;  %v1612_v23 = vld [vmem:[#allocation6 + $0x398] sm:$0xff] }
 0x29f   :  { %7832 = vmatprep.subr.bf16.mxu0 %v8266_v0 }
 0x2a0   :  { %v1022_v24 = vpop.f32.mrb[62].mxu0  ;;  %v698_v25 = vpop.f32.mrb[60].mxu1 }
 0x2a1   :  { %6942 = vmatmul.mubr.msk.f32.gmra.mrb[110].mxu1 %vm1065_vm6, %v1022_v24  ;;  %v1024_v34 = vpop.f32.mrb[63].mxu0  ;;  %7033 = vmatmul.mubr.msk.f32.gmra.mrb[112].mxu0 %vm1065_vm6, %v698_v25  ;;  %v700_v27 = vpop.f32.mrb[61].mxu1  ;;  %v1611_v24 = vld [vmem:[#allocation6 + $0x390] sm:$0xff]  ;;  %v1614_v25 = vld [vmem:[#allocation6 + $0x3a8] sm:$0xff] }
 0x2a2   :  { %6944 = vmatprep.mubr.msk.f32.mxu1 %vm8267_vm0, %v8268_v1  ;;  %7035 = vmatprep.mubr.msk.f32.mxu0 %vm8267_vm0, %v8268_v1  ;;  %v1613_v34 = vld [vmem:[#allocation6 + $0x3a0] sm:$0xff]  ;;  %v1616_v27 = vld [vmem:[#allocation6 + $0x3b8] sm:$0xff] }
 0x2a4   :  { %v1027_v28 = vpop.f32.mrb[64].mxu0  ;;  %v703_v29 = vpop.f32.mrb[62].mxu1 }
 0x2a5   :  { %6945 = vmatmul.mubr.msk.f32.gmra.mrb[112].mxu1 %vm1065_vm6, %v1027_v28  ;;  %v1029_v30 = vpop.f32.mrb[65].mxu0  ;;  %7036 = vmatmul.mubr.msk.f32.gmra.mrb[114].mxu0 %vm1065_vm6, %v703_v29  ;;  %v705_v31 = vpop.f32.mrb[63].mxu1  ;;  %v1615_v28 = vld [vmem:[#allocation6 + $0x3b0] sm:$0xff]  ;;  %v1618_v29 = vld [vmem:[#allocation6 + $0x3c8] sm:$0xff] }
 0x2a6   :  { %6947 = vmatprep.mubr.msk.f32.mxu1 %vm8267_vm0, %v8268_v1  ;;  %7038 = vmatprep.mubr.msk.f32.mxu0 %vm8267_vm0, %v8268_v1  ;;  %v1917_v30 = vld [vmem:[#allocation7 + $0xa0] sm:$0xff]  ;;  %v1918_v31 = vld [vmem:[#allocation7 + $0xa8] sm:$0xff] }
 0x2a8   :  { %v1032_v33 = vpop.f32.mrb[66].mxu0  ;;  %v708_v36 = vpop.f32.mrb[64].mxu1 }
 0x2a9   :  { %6948 = vmatmul.mubr.msk.f32.gmra.mrb[114].mxu1 %vm1065_vm6, %v1032_v33  ;;  %v1034_v37 = vpop.f32.mrb[67].mxu0  ;;  %7039 = vmatmul.mubr.msk.f32.gmra.mrb[116].mxu0 %vm1065_vm6, %v708_v36  ;;  %v710_v38 = vpop.f32.mrb[65].mxu1  ;;  %v1617_v33 = vld [vmem:[#allocation6 + $0x3c0] sm:$0xff]  ;;  %v7833_v36 = vpack.c.bf16 %v1918_v31, %v1917_v30  ;;  %v2220_v30 = vld [vmem:[#allocation6 + $0x4f0] sm:$0xff]  ;;  %v2223_v31 = vld [vmem:[#allocation6 + $0x508] sm:$0xff] }
 0x2aa   :  { %6950 = vmatprep.mubr.msk.f32.mxu1 %vm8267_vm0, %v8268_v1  ;;  %7041 = vmatprep.mubr.msk.f32.mxu0 %vm8267_vm0, %v8268_v1  ;;  %v1620_v37 = vld [vmem:[#allocation6 + $0x3d8] sm:$0xff]  ;;  %v1619_v38 = vld [vmem:[#allocation6 + $0x3d0] sm:$0xff] }
 0x2ab   :  { %7834 = vmatpush3.bf16.msra.mxu0 %v7833_v36 }
 0x2ac   :  { %v1037_v39 = vpop.f32.mrb[68].mxu0  ;;  %v713_v40 = vpop.f32.mrb[66].mxu1  ;;  %7835 = vmatprep.subr.bf16.mxu0 %v8266_v0 }
 0x2ad   :  { %6951 = vmatmul.mubr.msk.f32.gmra.mrb[116].mxu1 %vm1065_vm6, %v1037_v39  ;;  %v1039_v41 = vpop.f32.mrb[69].mxu0  ;;  %7042 = vmatmul.mubr.msk.f32.gmra.mrb[118].mxu0 %vm1065_vm6, %v713_v40  ;;  %v715_v43 = vpop.f32.mrb[67].mxu1  ;;  %v1622_v39 = vld [vmem:[#allocation6 + $0x3e8] sm:$0xff]  ;;  %v1621_v40 = vld [vmem:[#allocation6 + $0x3e0] sm:$0xff] }
 0x2ae   :  { %6953 = vmatprep.mubr.msk.f32.mxu1 %vm8267_vm0, %v8268_v1  ;;  %7044 = vmatprep.mubr.msk.f32.mxu0 %vm8267_vm0, %v8268_v1  ;;  %v1624_v41 = vld [vmem:[#allocation6 + $0x3f8] sm:$0xff]  ;;  %v1623_v43 = vld [vmem:[#allocation6 + $0x3f0] sm:$0xff] }
 0x2b0   :  { %v1042_v47 = vpop.f32.mrb[70].mxu0  ;;  %v718_v49 = vpop.f32.mrb[68].mxu1 }
 0x2b1   :  { %6954 = vmatmul.mubr.msk.f32.gmra.mrb[118].mxu1 %vm1065_vm6, %v1042_v47  ;;  %v1044_v50 = vpop.f32.mrb[71].mxu0  ;;  %7045 = vmatmul.mubr.msk.f32.gmra.mrb[120].mxu0 %vm1065_vm6, %v718_v49  ;;  %v720_v51 = vpop.f32.mrb[69].mxu1  ;;  %v1627_v47 = vld [vmem:[#allocation6 + $0x410] sm:$0xff]  ;;  %v1630_v49 = vld [vmem:[#allocation6 + $0x428] sm:$0xff] }
 0x2b2   :  { %6956 = vmatprep.mubr.msk.f32.mxu1 %vm8267_vm0, %v8268_v1  ;;  %7047 = vmatprep.mubr.msk.f32.mxu0 %vm8267_vm0, %v8268_v1  ;;  %v1919_v50 = vld [vmem:[#allocation7 + $0xb0] sm:$0xff]  ;;  %v1920_v51 = vld [vmem:[#allocation7 + $0xb8] sm:$0xff] }
 0x2b4   :  { %v1047_v52 = vpop.f32.mrb[72].mxu0  ;;  %v723_v53 = vpop.f32.mrb[70].mxu1 }
 0x2b5   :  { %6957 = vmatmul.mubr.msk.f32.gmra.mrb[120].mxu1 %vm1065_vm6, %v1047_v52  ;;  %v1049_v55 = vpop.f32.mrb[73].mxu0  ;;  %7048 = vmatmul.mubr.msk.f32.gmra.mrb[122].mxu0 %vm1065_vm6, %v723_v53  ;;  %v725_v56 = vpop.f32.mrb[71].mxu1  ;;  %v1629_v52 = vld [vmem:[#allocation6 + $0x420] sm:$0xff]  ;;  %v7836_v53 = vpack.c.bf16 %v1920_v51, %v1919_v50  ;;  %v2227_v50 = vld [vmem:[#allocation6 + $0x528] sm:$0xff] }
 0x2b6   :  { %6959 = vmatprep.mubr.msk.f32.mxu1 %vm8267_vm0, %v8268_v1  ;;  %7050 = vmatprep.mubr.msk.f32.mxu0 %vm8267_vm0, %v8268_v1  ;;  %v1632_v55 = vld [vmem:[#allocation6 + $0x438] sm:$0xff]  ;;  %v1631_v56 = vld [vmem:[#allocation6 + $0x430] sm:$0xff] }
 0x2b7   :  { %7837 = vmatpush3.bf16.msra.mxu0 %v7836_v53 }
 0x2b8   :  { %v1052_v58 = vpop.f32.mrb[74].mxu0  ;;  %v728_v60 = vpop.f32.mrb[72].mxu1  ;;  %7874 = vmatprep.subr.bf16.mxu0 %v8266_v0 }
 0x2b9   :  { %6960 = vmatmul.mubr.msk.f32.gmra.mrb[122].mxu1 %vm1065_vm6, %v1052_v58  ;;  %v1054_v61 = vpop.f32.mrb[75].mxu0  ;;  %7051 = vmatmul.mubr.msk.f32.gmra.mrb[124].mxu0 %vm1065_vm6, %v728_v60  ;;  %v730_v63 = vpop.f32.mrb[73].mxu1  ;;  %v1633_v58 = vld [vmem:[#allocation6 + $0x440] sm:$0xff]  ;;  %v1636_v60 = vld [vmem:[#allocation6 + $0x458] sm:$0xff] }
 0x2ba   :  { %6117 = vmatprep.mubr.msk.f32.mxu1 %vm466_vm5, %v1598_v57  ;;  %7069 = vmatprep.mubr.msk.f32.mxu0 %vm8267_vm0, %v8268_v1  ;;  %v1634_v57 = vld [vmem:[#allocation6 + $0x448] sm:$0xff]  ;;  %v1635_v61 = vld [vmem:[#allocation6 + $0x450] sm:$0xff] }
 0x2bb   :  { %v1638_v63 = vld [vmem:[#allocation6 + $0x468] sm:$0xff] }
 0x2bd   :  { %1787 = vmatmul.mubr.f32.vlgmr.msra.gmra.mrb[124].mxu1 %v1597_v2  ;;  %v1637_v2 = vld [vmem:[#allocation6 + $0x460] sm:$0xff] }
 0x2be   :  { %7840 = vmatpush1.bf16.msra.mxu1 %v8528_v48  ;;  %6118 = vmatprep.mubr.msk.f32.mxu1 %vm466_vm5, %v1600_v3  ;;  %v1640_v3 = vld [vmem:[#allocation6 + $0x478] sm:$0xff] }
 0x2bf   :  { %7841 = vmatprep.subr.bf16.mxu1 %v8266_v0 }
 0x2c1   :  { %1792 = vmatmul.mubr.f32.gmra.mrb[126].mxu1 %v1599_v5  ;;  %v1639_v5 = vld [vmem:[#allocation6 + $0x470] sm:$0xff] }
 0x2c2   :  { %7843 = vmatpush1.bf16.msra.mxu1 %v8540_v4  ;;  %6119 = vmatprep.mubr.msk.f32.mxu1 %vm466_vm5, %v1602_v6  ;;  %v1642_v6 = vld [vmem:[#allocation6 + $0x488] sm:$0xff] }
 0x2c3   :  { %7844 = vmatprep.subr.bf16.mxu1 %v8266_v0 }
 0x2c5   :  { %1797 = vmatmul.mubr.f32.gmra.mrb[128].mxu1 %v1601_v7  ;;  %v1641_v7 = vld [vmem:[#allocation6 + $0x480] sm:$0xff] }
 0x2c6   :  { %7846 = vmatpush1.bf16.msra.mxu1 %v8552_v22  ;;  %6120 = vmatprep.mubr.msk.f32.mxu1 %vm466_vm5, %v1604_v8  ;;  %v1644_v8 = vld [vmem:[#allocation6 + $0x498] sm:$0xff] }
 0x2c7   :  { %7847 = vmatprep.subr.bf16.mxu1 %v8266_v0 }
 0x2c9   :  { %1802 = vmatmul.mubr.f32.gmra.mrb[130].mxu1 %v1603_v9  ;;  %v1643_v9 = vld [vmem:[#allocation6 + $0x490] sm:$0xff] }
 0x2ca   :  { %7849 = vmatpush1.bf16.msra.mxu1 %v8564_v42  ;;  %6121 = vmatprep.mubr.msk.f32.mxu1 %vm466_vm5, %v1606_v10  ;;  %v1646_v10 = vld [vmem:[#allocation6 + $0x4a8] sm:$0xff] }
 0x2cb   :  { %7850 = vmatprep.subr.bf16.mxu1 %v8266_v0 }
 0x2cd   :  { %1807 = vmatmul.mubr.f32.gmra.mrb[132].mxu1 %v1605_v16  ;;  %v2215_v16 = vld [vmem:[#allocation6 + $0x4c8] sm:$0xff] }
 0x2ce   :  { %7852 = vmatpush1.bf16.msra.mxu1 %v8576_v62  ;;  %6122 = vmatprep.mubr.msk.f32.mxu1 %vm466_vm5, %v1608_v17  ;;  %v2214_v17 = vld [vmem:[#allocation6 + $0x4c0] sm:$0xff] }
 0x2cf   :  { %7853 = vmatprep.subr.bf16.mxu1 %v8266_v0 }
 0x2d1   :  { %1812 = vmatmul.mubr.f32.gmra.mrb[134].mxu1 %v1607_v18  ;;  %v2217_v18 = vld [vmem:[#allocation6 + $0x4d8] sm:$0xff] }
 0x2d2   :  { %7855 = vmatpush1.bf16.msra.mxu1 %v8590_v20  ;;  %6123 = vmatprep.mubr.msk.f32.mxu1 %vm466_vm5, %v1610_v19  ;;  %v2216_v19 = vld [vmem:[#allocation6 + $0x4d0] sm:$0xff] }
 0x2d3   :  { %7856 = vmatprep.subr.bf16.mxu1 %v8266_v0 }
 0x2d5   :  { %1817 = vmatmul.mubr.f32.gmra.mrb[136].mxu1 %v1609_v21  ;;  %v2219_v21 = vld [vmem:[#allocation6 + $0x4e8] sm:$0xff] }
 0x2d6   :  { %7858 = vmatpush1.bf16.msra.mxu1 %v8597_v26  ;;  %6124 = vmatprep.mubr.msk.f32.mxu1 %vm466_vm5, %v1612_v23  ;;  %v2218_v23 = vld [vmem:[#allocation6 + $0x4e0] sm:$0xff] }
 0x2d7   :  { %7859 = vmatprep.subr.bf16.mxu1 %v8266_v0 }
 0x2d9   :  { %1822 = vmatmul.mubr.f32.gmra.mrb[138].mxu1 %v1611_v24  ;;  %v2221_v24 = vld [vmem:[#allocation6 + $0x4f8] sm:$0xff] }
 0x2da   :  { %7861 = vmatpush1.bf16.msra.mxu1 %v8537_v59  ;;  %6125 = vmatprep.mubr.msk.f32.mxu1 %vm466_vm5, %v1614_v25 }
 0x2db   :  { %7862 = vmatprep.subr.bf16.mxu1 %v8266_v0 }
 0x2dd   :  { %1827 = vmatmul.mubr.f32.gmra.mrb[140].mxu1 %v1613_v34 }
 0x2de   :  { %7864 = vmatpush1.bf16.msra.mxu1 %v8549_v15  ;;  %6126 = vmatprep.mubr.msk.f32.mxu1 %vm466_vm5, %v1616_v27 }
 0x2df   :  { %7865 = vmatprep.subr.bf16.mxu1 %v8266_v0 }
 0x2e1   :  { %1832 = vmatmul.mubr.f32.gmra.mrb[142].mxu1 %v1615_v28 }
 0x2e2   :  { %7867 = vmatpush1.bf16.msra.mxu1 %v8561_v35  ;;  %6127 = vmatprep.mubr.msk.f32.mxu1 %vm466_vm5, %v1618_v29 }
 0x2e3   :  { %7868 = vmatprep.subr.bf16.mxu1 %v8266_v0 }
 0x2e5   :  { %1837 = vmatmul.mubr.f32.gmra.mrb[144].mxu1 %v1617_v33 }
 0x2e6   :  { %7870 = vmatpush1.bf16.msra.mxu1 %v8573_v54  ;;  %6128 = vmatprep.mubr.msk.f32.mxu1 %vm466_vm5, %v1620_v37 }
 0x2e7   :  { %7871 = vmatprep.subr.bf16.mxu1 %v8266_v0 }
 0x2e9   :  { %1842 = vmatmul.mubr.f32.gmra.mrb[146].mxu1 %v1619_v38 }
 0x2ea   :  { %7873 = vmatpush1.bf16.msra.mxu1 %v8585_v12  ;;  %6129 = vmatprep.mubr.msk.f32.mxu1 %vm466_vm5, %v1622_v39 }
 0x2eb   :  { %2385 = vmatprep.subr.mxu1 %v8268_v1 }
 0x2ed   :  { %1847 = vmatmul.mubr.f32.gmra.mrb[148].mxu1 %v1621_v40  ;;  %v2222_v40 = vld [vmem:[#allocation6 + $0x500] sm:$0xff] }
 0x2ee   :  { %2386 = vmatpush1.msra.mxu1 %v8619_v32  ;;  %6130 = vmatprep.mubr.msk.f32.mxu1 %vm466_vm5, %v1624_v41  ;;  %v2225_v41 = vld [vmem:[#allocation6 + $0x518] sm:$0xff] }
 0x2ef   :  { %7886 = vmatprep.subr.bf16.mxu1 %v8266_v0 }
 0x2f1   :  { %1852 = vmatmul.mubr.f32.gmra.mrb[150].mxu1 %v1623_v43 }
 0x2f2   :  { %6131 = vmatprep.mubr.msk.f32.mxu1 %vm466_vm5, %v1626_v44 }
 0x2f5   :  { %1857 = vmatmul.mubr.f32.gmra.mrb[152].mxu1 %v1625_v45 }
 0x2f6   :  { %6132 = vmatprep.mubr.msk.f32.mxu1 %vm466_vm5, %v1628_v46 }
 0x2f9   :  { %1862 = vmatmul.mubr.f32.gmra.mrb[154].mxu1 %v1627_v47 }
 0x2fa   :  { %6133 = vmatprep.mubr.msk.f32.mxu1 %vm466_vm5, %v1630_v49  ;;  %v2224_v49 = vld [vmem:[#allocation6 + $0x510] sm:$0xff] }
 0x2fd   :  { %1867 = vmatmul.mubr.f32.gmra.mrb[156].mxu1 %v1629_v52 }
 0x2fe   :  { %6134 = vmatprep.mubr.msk.f32.mxu1 %vm466_vm5, %v1632_v55 }
 0x301   :  { %1872 = vmatmul.mubr.f32.gmra.mrb[158].mxu1 %v1631_v56 }
 0x302   :  { %6135 = vmatprep.mubr.msk.f32.mxu1 %vm466_vm5, %v1634_v57  ;;  %v2226_v57 = vld [vmem:[#allocation6 + $0x520] sm:$0xff] }
 0x305   :  { %1877 = vmatmul.mubr.f32.gmra.mrb[160].mxu1 %v1633_v58  ;;  %v2229_v58 = vld [vmem:[#allocation6 + $0x538] sm:$0xff] }
 0x306   :  { %6136 = vmatprep.mubr.msk.f32.mxu1 %vm466_vm5, %v1636_v60 }
 0x309   :  { %1882 = vmatmul.mubr.f32.gmra.mrb[162].mxu1 %v1635_v61 }
 0x30a   :  { %6137 = vmatprep.mubr.msk.f32.mxu1 %vm466_vm5, %v1638_v63 }
 0x30d   :  { %1887 = vmatmul.mubr.f32.gmra.mrb[164].mxu1 %v1637_v2 }
 0x30e   :  { %6138 = vmatprep.mubr.msk.f32.mxu1 %vm466_vm5, %v1640_v3 }
 0x311   :  { %1892 = vmatmul.mubr.f32.gmra.mrb[166].mxu1 %v1639_v5  ;;  %v2228_v5 = vld [vmem:[#allocation6 + $0x530] sm:$0xff] }
 0x312   :  { %6139 = vmatprep.mubr.msk.f32.mxu1 %vm466_vm5, %v1642_v6  ;;  %v2231_v6 = vld [vmem:[#allocation6 + $0x548] sm:$0xff] }
 0x315   :  { %1897 = vmatmul.mubr.f32.gmra.mrb[168].mxu1 %v1641_v7 }
 0x316   :  { %6140 = vmatprep.mubr.msk.f32.mxu1 %vm466_vm5, %v1644_v8 }
 0x319   :  { %1902 = vmatmul.mubr.f32.gmra.mrb[170].mxu1 %v1643_v9 }
 0x31a   :  { %6141 = vmatprep.mubr.msk.f32.mxu1 %vm466_vm5, %v1646_v10 }
 0x31d   :  { %1907 = vmatmul.mubr.f32.gmra.mrb[172].mxu1 %v1645_v11 }
 0x31e   :  { %6167 = vmatprep.mubr.msk.f32.mxu1 %vm466_vm5, %v2213_v13  ;;  %v2230_v13 = vld [vmem:[#allocation6 + $0x540] sm:$0xff] }
 0x321   :  { %2402 = vmatmul.mubr.f32.vlgmr.msra.gmra.mrb[174].mxu1 %v2212_v14  ;;  %v2233_v14 = vld [vmem:[#allocation6 + $0x558] sm:$0xff] }
 0x322   :  { %7888 = vmatpush1.bf16.msra.mxu1 %v8528_v48  ;;  %6168 = vmatprep.mubr.msk.f32.mxu1 %vm466_vm5, %v2215_v16 }
 0x323   :  { %7889 = vmatprep.subr.bf16.mxu1 %v8266_v0 }
 0x325   :  { %2407 = vmatmul.mubr.f32.gmra.mrb[176].mxu1 %v2214_v17 }
 0x326   :  { %7891 = vmatpush1.bf16.msra.mxu1 %v8540_v4  ;;  %6169 = vmatprep.mubr.msk.f32.mxu1 %vm466_vm5, %v2217_v18 }
 0x327   :  { %7892 = vmatprep.subr.bf16.mxu1 %v8266_v0 }
 0x329   :  { %2412 = vmatmul.mubr.f32.gmra.mrb[178].mxu1 %v2216_v19 }
 0x32a   :  { %7894 = vmatpush1.bf16.msra.mxu1 %v8552_v22  ;;  %6170 = vmatprep.mubr.msk.f32.mxu1 %vm466_vm5, %v2219_v21 }
 0x32b   :  { %7895 = vmatprep.subr.bf16.mxu1 %v8266_v0 }
 0x32c   :  { %v1207_v25 = vpop.f32.mrb[74].mxu1  ;;  %v1472_v34 = vpop.f32.mrb[76].mxu0 }
 0x32d   :  { %2417 = vmatmul.mubr.f32.gmra.mrb[180].mxu1 %v2218_v23  ;;  %v6889_v27 = vpop.f32.mrb[75].mxu1  ;;  %v8928_v28 = vadd.f32 %v1472_v34, %v1207_v25  ;;  %v6980_v29 = vpop.f32.mrb[77].mxu0  ;;  %v2232_v23 = vld [vmem:[#allocation6 + $0x550] sm:$0xff] }
 0x32e   :  { %7897 = vmatpush1.bf16.msra.mxu1 %v8564_v42  ;;  %6171 = vmatprep.mubr.msk.f32.mxu1 %vm466_vm5, %v2221_v24  ;;  %v2235_v24 = vld [vmem:[#allocation6 + $0x568] sm:$0xff] }
 0x32f   :  { %7898 = vmatprep.subr.bf16.mxu1 %v8266_v0 }
 0x330   :  { %v1212_v33 = vpop.f32.mrb[76].mxu1  ;;  %v1477_v36 = vpop.f32.mrb[78].mxu0 }
 0x331   :  { %2422 = vmatmul.mubr.f32.gmra.mrb[182].mxu1 %v2220_v30  ;;  %v6892_v37 = vpop.f32.mrb[77].mxu1  ;;  %v8933_v38 = vadd.f32 %v1477_v36, %v1212_v33  ;;  %v6983_v39 = vpop.f32.mrb[79].mxu0  ;;  %v2237_v33 = vld [vmem:[#allocation6 + $0x578] sm:$0xff] }
 0x332   :  { %7900 = vmatpush1.bf16.msra.mxu1 %v8576_v62  ;;  %6172 = vmatprep.mubr.msk.f32.mxu1 %vm466_vm5, %v2223_v31  ;;  %v2234_v31 = vld [vmem:[#allocation6 + $0x560] sm:$0xff] }
 0x333   :  { %7901 = vmatprep.subr.bf16.mxu1 %v8266_v0 }
 0x334   :  { %v1217_v43 = vpop.f32.mrb[78].mxu1  ;;  %v1482_v44 = vpop.f32.mrb[80].mxu0 }
 0x335   :  { %2427 = vmatmul.mubr.f32.gmra.mrb[184].mxu1 %v2222_v40  ;;  %v6895_v45 = vpop.f32.mrb[79].mxu1  ;;  %v8938_v46 = vadd.f32 %v1482_v44, %v1217_v43  ;;  %v6986_v47 = vpop.f32.mrb[81].mxu0  ;;  %v2236_v43 = vld [vmem:[#allocation6 + $0x570] sm:$0xff]  ;;  %v2239_v44 = vld [vmem:[#allocation6 + $0x588] sm:$0xff] }
 0x336   :  { %7903 = vmatpush1.bf16.msra.mxu1 %v8590_v20  ;;  %6173 = vmatprep.mubr.msk.f32.mxu1 %vm466_vm5, %v2225_v41 }
 0x337   :  { %7904 = vmatprep.subr.bf16.mxu1 %v8266_v0 }
 0x338   :  { %v1222_v51 = vpop.f32.mrb[80].mxu1  ;;  %v1487_v52 = vpop.f32.mrb[82].mxu0 }
 0x339   :  { %2432 = vmatmul.mubr.f32.gmra.mrb[186].mxu1 %v2224_v49  ;;  %v6898_v53 = vpop.f32.mrb[81].mxu1  ;;  %v8943_v55 = vadd.f32 %v1487_v52, %v1222_v51  ;;  %v6989_v56 = vpop.f32.mrb[83].mxu0  ;;  %v2238_v52 = vld [vmem:[#allocation6 + $0x580] sm:$0xff] }
 0x33a   :  { %7906 = vmatpush1.bf16.msra.mxu1 %v8597_v26  ;;  %6174 = vmatprep.mubr.msk.f32.mxu1 %vm466_vm5, %v2227_v50  ;;  %v2241_v53 = vld [vmem:[#allocation6 + $0x598] sm:$0xff] }
 0x33b   :  { %7907 = vmatprep.subr.bf16.mxu1 %v8266_v0 }
 0x33c   :  { %v1227_v60 = vpop.f32.mrb[82].mxu1  ;;  %v1492_v61 = vpop.f32.mrb[84].mxu0 }
 0x33d   :  { %2437 = vmatmul.mubr.f32.gmra.mrb[188].mxu1 %v2226_v57  ;;  %v6901_v63 = vpop.f32.mrb[83].mxu1  ;;  %v8948_v2 = vadd.f32 %v1492_v61, %v1227_v60  ;;  %v6992_v3 = vpop.f32.mrb[85].mxu0 }
 0x33e   :  { %7909 = vmatpush1.bf16.msra.mxu1 %v8537_v59  ;;  %6175 = vmatprep.mubr.msk.f32.mxu1 %vm466_vm5, %v2229_v58  ;;  %v2240_v63 = vld [vmem:[#allocation6 + $0x590] sm:$0xff]  ;;  %v2243_v3 = vld [vmem:[#allocation6 + $0x5a8] sm:$0xff] }
 0x33f   :  { %7910 = vmatprep.subr.bf16.mxu1 %v8266_v0 }
 0x340   :  { %v1232_v7 = vpop.f32.mrb[84].mxu1  ;;  %v1497_v8 = vpop.f32.mrb[86].mxu0 }
 0x341   :  { %2442 = vmatmul.mubr.f32.gmra.mrb[190].mxu1 %v2228_v5  ;;  %v6904_v9 = vpop.f32.mrb[85].mxu1  ;;  %v8953_v10 = vadd.f32 %v1497_v8, %v1232_v7  ;;  %v6995_v11 = vpop.f32.mrb[87].mxu0 }
 0x342   :  { %7912 = vmatpush1.bf16.msra.mxu1 %v8549_v15  ;;  %6176 = vmatprep.mubr.msk.f32.mxu1 %vm466_vm5, %v2231_v6  ;;  %v2242_v11 = vld [vmem:[#allocation6 + $0x5a0] sm:$0xff] }
 0x343   :  { %7913 = vmatprep.subr.bf16.mxu1 %v8266_v0 }
 0x344   :  { %v1237_v16 = vpop.f32.mrb[86].mxu1  ;;  %v1502_v17 = vpop.f32.mrb[88].mxu0 }
 0x345   :  { %2447 = vmatmul.mubr.f32.gmra.mrb[192].mxu1 %v2230_v13  ;;  %v6907_v18 = vpop.f32.mrb[87].mxu1  ;;  %v8958_v19 = vadd.f32 %v1502_v17, %v1237_v16  ;;  %v6998_v21 = vpop.f32.mrb[89].mxu0  ;;  %v2245_v13 = vld [vmem:[#allocation6 + $0x5b8] sm:$0xff] }
 0x346   :  { %7915 = vmatpush1.bf16.msra.mxu1 %v8561_v35  ;;  %6177 = vmatprep.mubr.msk.f32.mxu1 %vm466_vm5, %v2233_v14 }
 0x347   :  { %7916 = vmatprep.subr.bf16.mxu1 %v8266_v0 }
 0x348   :  { %v1242_v25 = vpop.f32.mrb[88].mxu1  ;;  %v1507_v34 = vpop.f32.mrb[90].mxu0 }
 0x349   :  { %2452 = vmatmul.mubr.f32.gmra.mrb[194].mxu1 %v2232_v23  ;;  %v6910_v27 = vpop.f32.mrb[89].mxu1  ;;  %v8963_v29 = vadd.f32 %v1507_v34, %v1242_v25  ;;  %v7001_v30 = vpop.f32.mrb[91].mxu0  ;;  %v2244_v23 = vld [vmem:[#allocation6 + $0x5b0] sm:$0xff] }
 0x34a   :  { %7918 = vmatpush1.bf16.msra.mxu1 %v8573_v54  ;;  %6178 = vmatprep.mubr.msk.f32.mxu1 %vm466_vm5, %v2235_v24  ;;  %v2247_v24 = vld [vmem:[#allocation6 + $0x5c8] sm:$0xff] }
 0x34b   :  { %7919 = vmatprep.subr.bf16.mxu1 %v8266_v0 }
 0x34c   :  { %v1247_v36 = vpop.f32.mrb[90].mxu1  ;;  %v1512_v37 = vpop.f32.mrb[92].mxu0 }
 0x34d   :  { %2457 = vmatmul.mubr.f32.gmra.mrb[196].mxu1 %v2234_v31  ;;  %v6913_v39 = vpop.f32.mrb[91].mxu1  ;;  %v8968_v40 = vadd.f32 %v1512_v37, %v1247_v36  ;;  %v7004_v41 = vpop.f32.mrb[93].mxu0  ;;  %v2249_v36 = vld [vmem:[#allocation6 + $0x5d8] sm:$0xff] }
 0x34e   :  { %7921 = vmatpush1.bf16.msra.mxu1 %v8585_v12  ;;  %6179 = vmatprep.mubr.msk.f32.mxu1 %vm466_vm5, %v2237_v33  ;;  %v2246_v33 = vld [vmem:[#allocation6 + $0x5c0] sm:$0xff] }
 0x34f   :  { %3000 = vmatprep.subr.mxu1 %v8268_v1 }
 0x350   :  { %v1252_v45 = vpop.f32.mrb[92].mxu1  ;;  %v1517_v47 = vpop.f32.mrb[94].mxu0 }
 0x351   :  { %2462 = vmatmul.mubr.f32.gmra.mrb[198].mxu1 %v2236_v43  ;;  %v6916_v49 = vpop.f32.mrb[93].mxu1  ;;  %v8973_v50 = vadd.f32 %v1517_v47, %v1252_v45  ;;  %v7007_v51 = vpop.f32.mrb[95].mxu0  ;;  %v2248_v45 = vld [vmem:[#allocation6 + $0x5d0] sm:$0xff]  ;;  %v2251_v47 = vld [vmem:[#allocation6 + $0x5e8] sm:$0xff] }
 0x352   :  { %3001 = vmatpush1.msra.mxu1 %v8619_v32  ;;  %6180 = vmatprep.mubr.msk.f32.mxu1 %vm466_vm5, %v2239_v44 }
 0x353   :  { %7934 = vmatprep.subr.bf16.mxu1 %v8266_v0 }
 0x354   :  { %v1257_v56 = vpop.f32.mrb[94].mxu1  ;;  %v1522_v57 = vpop.f32.mrb[96].mxu0 }
 0x355   :  { %2467 = vmatmul.mubr.f32.gmra.mrb[200].mxu1 %v2238_v52  ;;  %v6919_v58 = vpop.f32.mrb[95].mxu1  ;;  %v8978_v60 = vadd.f32 %v1522_v57, %v1257_v56  ;;  %v7010_v61 = vpop.f32.mrb[97].mxu0  ;;  %v2250_v57 = vld [vmem:[#allocation6 + $0x5e0] sm:$0xff] }
 0x356   :  { %6181 = vmatprep.mubr.msk.f32.mxu1 %vm466_vm5, %v2241_v53  ;;  %v2253_v58 = vld [vmem:[#allocation6 + $0x5f8] sm:$0xff] }
 0x358   :  { %v1262_v5 = vpop.f32.mrb[96].mxu1  ;;  %v1527_v6 = vpop.f32.mrb[98].mxu0 }
 0x359   :  { %2472 = vmatmul.mubr.f32.gmra.mrb[202].mxu1 %v2240_v63  ;;  %v6922_v7 = vpop.f32.mrb[97].mxu1  ;;  %v8981_v8 = vadd.f32 %v1527_v6, %v1262_v5  ;;  %v7013_v9 = vpop.f32.mrb[99].mxu0 }
 0x35a   :  { %6182 = vmatprep.mubr.msk.f32.mxu1 %vm466_vm5, %v2243_v3  ;;  %v2252_v7 = vld [vmem:[#allocation6 + $0x5f0] sm:$0xff]  ;;  %v2255_v9 = vld [vmem:[#allocation6 + $0x608] sm:$0xff] }
 0x35c   :  { %v1267_v14 = vpop.f32.mrb[98].mxu1  ;;  %v1532_v16 = vpop.f32.mrb[100].mxu0 }
 0x35d   :  { %2477 = vmatmul.mubr.f32.gmra.mrb[204].mxu1 %v2242_v11  ;;  %v6925_v17 = vpop.f32.mrb[99].mxu1  ;;  %v8984_v18 = vadd.f32 %v1532_v16, %v1267_v14  ;;  %v7016_v21 = vpop.f32.mrb[101].mxu0 }
 0x35e   :  { %6183 = vmatprep.mubr.msk.f32.mxu1 %vm466_vm5, %v2245_v13  ;;  %v2254_v21 = vld [vmem:[#allocation6 + $0x600] sm:$0xff] }
 0x360   :  { %v1272_v25 = vpop.f32.mrb[100].mxu1  ;;  %v1537_v34 = vpop.f32.mrb[102].mxu0 }
 0x361   :  { %2482 = vmatmul.mubr.f32.gmra.mrb[206].mxu1 %v2244_v23  ;;  %v6928_v27 = vpop.f32.mrb[101].mxu1  ;;  %v8987_v30 = vadd.f32 %v1537_v34, %v1272_v25  ;;  %v7019_v31 = vpop.f32.mrb[103].mxu0  ;;  %v2257_v23 = vld [vmem:[#allocation6 + $0x618] sm:$0xff] }
 0x362   :  { %6184 = vmatprep.mubr.msk.f32.mxu1 %vm466_vm5, %v2247_v24 }
 0x364   :  { %v1277_v37 = vpop.f32.mrb[102].mxu1  ;;  %v1542_v39 = vpop.f32.mrb[104].mxu0 }
 0x365   :  { %2487 = vmatmul.mubr.f32.gmra.mrb[208].mxu1 %v2246_v33  ;;  %v6931_v41 = vpop.f32.mrb[103].mxu1  ;;  %v8990_v43 = vadd.f32 %v1542_v39, %v1277_v37  ;;  %v7022_v44 = vpop.f32.mrb[105].mxu0  ;;  %v2256_v33 = vld [vmem:[#allocation6 + $0x610] sm:$0xff] }
 0x366   :  { %6185 = vmatprep.mubr.msk.f32.mxu1 %vm466_vm5, %v2249_v36  ;;  %v2259_v36 = vld [vmem:[#allocation6 + $0x628] sm:$0xff] }
 0x368   :  { %v1282_v49 = vpop.f32.mrb[104].mxu1  ;;  %v1547_v51 = vpop.f32.mrb[106].mxu0 }
 0x369   :  { %2492 = vmatmul.mubr.f32.gmra.mrb[210].mxu1 %v2248_v45  ;;  %v6934_v52 = vpop.f32.mrb[105].mxu1  ;;  %v8993_v53 = vadd.f32 %v1547_v51, %v1282_v49  ;;  %v7025_v56 = vpop.f32.mrb[107].mxu0  ;;  %v2261_v49 = vld [vmem:[#allocation6 + $0x638] sm:$0xff] }
 0x36a   :  { %6186 = vmatprep.mubr.msk.f32.mxu1 %vm466_vm5, %v2251_v47  ;;  %v2258_v47 = vld [vmem:[#allocation6 + $0x620] sm:$0xff] }
 0x36c   :  { %v1287_v61 = vpop.f32.mrb[106].mxu1  ;;  %v1552_v63 = vpop.f32.mrb[108].mxu0 }
 0x36d   :  { %2497 = vmatmul.mubr.f32.gmra.mrb[212].mxu1 %v2250_v57  ;;  %v6937_v3 = vpop.f32.mrb[107].mxu1  ;;  %v8996_v5 = vadd.f32 %v1552_v63, %v1287_v61  ;;  %v7028_v6 = vpop.f32.mrb[109].mxu0  ;;  %v2260_v61 = vld [vmem:[#allocation6 + $0x630] sm:$0xff]  ;;  %v2828_v63 = vld [vmem:[#allocation6 + $0x648] sm:$0xff] }
 0x36e   :  { %6187 = vmatprep.mubr.msk.f32.mxu1 %vm466_vm5, %v2253_v58 }
 0x370   :  { %v1292_v11 = vpop.f32.mrb[108].mxu1  ;;  %v1557_v13 = vpop.f32.mrb[110].mxu0 }
 0x371   :  { %2502 = vmatmul.mubr.f32.gmra.mrb[214].mxu1 %v2252_v7  ;;  %v6940_v14 = vpop.f32.mrb[109].mxu1  ;;  %v8999_v16 = vadd.f32 %v1557_v13, %v1292_v11  ;;  %v7031_v17 = vpop.f32.mrb[111].mxu0  ;;  %v2827_v13 = vld [vmem:[#allocation6 + $0x640] sm:$0xff] }
 0x372   :  { %6188 = vmatprep.mubr.msk.f32.mxu1 %vm466_vm5, %v2255_v9  ;;  %v2830_v14 = vld [vmem:[#allocation6 + $0x658] sm:$0xff] }
 0x374   :  { %v1297_v24 = vpop.f32.mrb[110].mxu1  ;;  %v1562_v25 = vpop.f32.mrb[112].mxu0 }
 0x375   :  { %2507 = vmatmul.mubr.f32.gmra.mrb[216].mxu1 %v2254_v21  ;;  %v6943_v34 = vpop.f32.mrb[111].mxu1  ;;  %v9002_v27 = vadd.f32 %v1562_v25, %v1297_v24  ;;  %v7034_v31 = vpop.f32.mrb[113].mxu0 }
 0x376   :  { %6189 = vmatprep.mubr.msk.f32.mxu1 %vm466_vm5, %v2257_v23  ;;  %v2829_v34 = vld [vmem:[#allocation6 + $0x650] sm:$0xff]  ;;  %v2832_v31 = vld [vmem:[#allocation6 + $0x668] sm:$0xff] }
 0x378   :  { %v1302_v37 = vpop.f32.mrb[112].mxu1  ;;  %v1567_v39 = vpop.f32.mrb[114].mxu0 }
 0x379   :  { %2512 = vmatmul.mubr.f32.gmra.mrb[218].mxu1 %v2256_v33  ;;  %v6946_v41 = vpop.f32.mrb[113].mxu1  ;;  %v9005_v44 = vadd.f32 %v1567_v39, %v1302_v37  ;;  %v7037_v45 = vpop.f32.mrb[115].mxu0 }
 0x37a   :  { %6190 = vmatprep.mubr.msk.f32.mxu1 %vm466_vm5, %v2259_v36  ;;  %v2831_v45 = vld [vmem:[#allocation6 + $0x660] sm:$0xff] }
 0x37c   :  { %v1307_v51 = vpop.f32.mrb[114].mxu1  ;;  %v1572_v52 = vpop.f32.mrb[116].mxu0 }
 0x37d   :  { %2517 = vmatmul.mubr.f32.gmra.mrb[220].mxu1 %v2258_v47  ;;  %v6949_v56 = vpop.f32.mrb[115].mxu1  ;;  %v9008_v57 = vadd.f32 %v1572_v52, %v1307_v51  ;;  %v7040_v58 = vpop.f32.mrb[117].mxu0  ;;  %v2834_v47 = vld [vmem:[#allocation6 + $0x678] sm:$0xff]  ;;  %v2528_v52 = vld [vmem:[#allocation7 + $0xc0] sm:$0xff] }
 0x37e   :  { %6191 = vmatprep.mubr.msk.f32.mxu1 %vm466_vm5, %v2261_v49  ;;  %v2529_v56 = vld [vmem:[#allocation7 + $0xc8] sm:$0xff] }
 0x380   :  { %v1312_v3 = vpop.f32.mrb[116].mxu1  ;;  %v1577_v6 = vpop.f32.mrb[118].mxu0 }
 0x381   :  { %2522 = vmatmul.mubr.f32.gmra.mrb[222].mxu1 %v2260_v61  ;;  %v6952_v7 = vpop.f32.mrb[117].mxu1  ;;  %v9011_v9 = vadd.f32 %v1577_v6, %v1312_v3  ;;  %v7043_v11 = vpop.f32.mrb[119].mxu0  ;;  %v2833_v3 = vld [vmem:[#allocation6 + $0x670] sm:$0xff]  ;;  %v7875_v6 = vpack.c.bf16 %v2529_v56, %v2528_v52  ;;  %v2842_v52 = vld [vmem:[#allocation6 + $0x6b8] sm:$0xff] }
 0x382   :  { %6217 = vmatprep.mubr.msk.f32.mxu1 %vm466_vm5, %v2828_v63  ;;  %v2836_v11 = vld [vmem:[#allocation6 + $0x688] sm:$0xff] }
 0x384   :  { %v1317_v17 = vpop.f32.mrb[118].mxu1  ;;  %v1582_v21 = vpop.f32.mrb[120].mxu0 }
 0x385   :  { %3017 = vmatmul.mubr.f32.vlgmr.msra.gmra.mrb[224].mxu1 %v2827_v13  ;;  %v6955_v23 = vpop.f32.mrb[119].mxu1  ;;  %v9014_v24 = vadd.f32 %v1582_v21, %v1317_v17  ;;  %v7046_v25 = vpop.f32.mrb[121].mxu0  ;;  %v2531_v17 = vld [vmem:[#allocation7 + $0xd8] sm:$0xff]  ;;  %v2835_v21 = vld [vmem:[#allocation6 + $0x680] sm:$0xff] }
 0x386   :  { %7936 = vmatpush1.bf16.msra.mxu1 %v8528_v48  ;;  %6218 = vmatprep.mubr.msk.f32.mxu1 %vm466_vm5, %v2830_v14  ;;  %v2530_v14 = vld [vmem:[#allocation7 + $0xd0] sm:$0xff]  ;;  %v2838_v25 = vld [vmem:[#allocation6 + $0x698] sm:$0xff] }
 0x387   :  { %7937 = vmatprep.subr.bf16.mxu1 %v8266_v0 }
 0x388   :  { %v1322_v33 = vpop.f32.mrb[120].mxu1  ;;  %v1587_v36 = vpop.f32.mrb[122].mxu0 }
 0x389   :  { %3022 = vmatmul.mubr.f32.gmra.mrb[226].mxu1 %v2829_v34  ;;  %v6958_v37 = vpop.f32.mrb[121].mxu1  ;;  %v9019_v39 = vadd.f32 %v1587_v36, %v1322_v33  ;;  %v7049_v41 = vpop.f32.mrb[123].mxu0  ;;  %v7878_v34 = vpack.c.bf16 %v2531_v17, %v2530_v14  ;;  %v2837_v33 = vld [vmem:[#allocation6 + $0x690] sm:$0xff]  ;;  %v2843_v14 = vld [vmem:[#allocation6 + $0x6c0] sm:$0xff] }
 0x38a   :  { %7939 = vmatpush1.bf16.msra.mxu1 %v8540_v4  ;;  %6219 = vmatprep.mubr.msk.f32.mxu1 %vm466_vm5, %v2832_v31  ;;  %v2840_v37 = vld [vmem:[#allocation6 + $0x6a8] sm:$0xff] }
 0x38b   :  { %7940 = vmatprep.subr.bf16.mxu1 %v8266_v0 }
 0x38c   :  { %v1327_v49 = vpop.f32.mrb[122].mxu1  ;;  %v1592_v51 = vpop.f32.mrb[124].mxu0 }
 0x38d   :  { %3027 = vmatmul.mubr.f32.gmra.mrb[228].mxu1 %v2831_v45  ;;  %v6961_v58 = vpop.f32.mrb[123].mxu1  ;;  %v9024_v61 = vadd.f32 %v1592_v51, %v1327_v49  ;;  %v7052_v63 = vpop.f32.mrb[125].mxu0  ;;  %v2532_v45 = vld [vmem:[#allocation7 + $0xe0] sm:$0xff]  ;;  %v2839_v49 = vld [vmem:[#allocation6 + $0x6a0] sm:$0xff] }
 0x38e   :  { %7942 = vmatpush1.bf16.msra.mxu1 %v8552_v22  ;;  %6220 = vmatprep.mubr.msk.f32.mxu1 %vm466_vm5, %v2834_v47  ;;  %v2533_v47 = vld [vmem:[#allocation7 + $0xe8] sm:$0xff]  ;;  %v2841_v63 = vld [vmem:[#allocation6 + $0x6b0] sm:$0xff] }
 0x38f   :  { %7943 = vmatprep.subr.bf16.mxu1 %v8266_v0  ;;  %v7881_v56 = vpack.c.bf16 %v2533_v47, %v2532_v45  ;;  %v2850_v45 = vld [vmem:[#allocation6 + $0x6f8] sm:$0xff] }
 0x390   :  { %v1788_v7 = vpop.f32.mrb[124].mxu1 }
 0x391   :  { %7070 = vmatmul.mubr.msk.f32.vlgmr.msra.gmra.mrb[126].mxu0 %vm1065_vm6, %v1788_v7  ;;  %3032 = vmatmul.mubr.f32.gmra.mrb[230].mxu1 %v2833_v3  ;;  %v1790_v13 = vpop.f32.mrb[125].mxu1 }
 0x392   :  { %7945 = vmatpush1.bf16.msra.mxu1 %v8564_v42  ;;  %7072 = vmatprep.mubr.msk.f32.mxu0 %vm8267_vm0, %v8268_v1  ;;  %v2535_v13 = vld [vmem:[#allocation7 + $0xf8] sm:$0xff] }
 0x393   :  { %7876 = vmatpush3.bf16.msra.mxu0 %v7875_v6  ;;  %6221 = vmatprep.mubr.msk.f32.mxu1 %vm466_vm5, %v2836_v11  ;;  %v2844_v6 = vld [vmem:[#allocation6 + $0x6c8] sm:$0xff]  ;;  %v2534_v11 = vld [vmem:[#allocation7 + $0xf0] sm:$0xff] }
 0x394   :  { %v1793_v23 = vpop.f32.mrb[126].mxu1  ;;  %7946 = vmatprep.subr.bf16.mxu1 %v8266_v0  ;;  %7877 = vmatprep.subr.bf16.mxu0 %v8266_v0 }
 0x395   :  { %7073 = vmatmul.mubr.msk.f32.gmra.mrb[128].mxu0 %vm1065_vm6, %v1793_v23  ;;  %3037 = vmatmul.mubr.f32.gmra.mrb[232].mxu1 %v2835_v21  ;;  %v1795_v31 = vpop.f32.mrb[127].mxu1  ;;  %v2846_v21 = vld [vmem:[#allocation6 + $0x6d8] sm:$0xff]  ;;  %v7884_v23 = vpack.c.bf16 %v2535_v13, %v2534_v11  ;;  %v2856_v11 = vld [vmem:[#allocation6 + $0x728] sm:$0xff] }
 0x396   :  { %7948 = vmatpush1.bf16.msra.mxu1 %v8576_v62  ;;  %7075 = vmatprep.mubr.msk.f32.mxu0 %vm8267_vm0, %v8268_v1 }
 0x397   :  { %6222 = vmatprep.mubr.msk.f32.mxu1 %vm466_vm5, %v2838_v25  ;;  %7949 = vmatprep.subr.bf16.mxu1 %v8266_v0 }
 0x398   :  { %v1798_v36 = vpop.f32.mrb[128].mxu1  ;;  %7879 = vmatpush3.bf16.msra.mxu0 %v7878_v34  ;;  %v2845_v34 = vld [vmem:[#allocation6 + $0x6d0] sm:$0xff] }
 0x399   :  { %7076 = vmatmul.mubr.msk.f32.gmra.mrb[130].mxu0 %vm1065_vm6, %v1798_v36  ;;  %3042 = vmatmul.mubr.f32.gmra.mrb[234].mxu1 %v2837_v33  ;;  %v1800_v41 = vpop.f32.mrb[129].mxu1  ;;  %v2848_v33 = vld [vmem:[#allocation6 + $0x6e8] sm:$0xff] }
 0x39a   :  { %7951 = vmatpush1.bf16.msra.mxu1 %v8590_v20  ;;  %7078 = vmatprep.mubr.msk.f32.mxu0 %vm8267_vm0, %v8268_v1 }
 0x39b   :  { %6223 = vmatprep.mubr.msk.f32.mxu1 %vm466_vm5, %v2840_v37  ;;  %7952 = vmatprep.subr.bf16.mxu1 %v8266_v0  ;;  %v2847_v37 = vld [vmem:[#allocation6 + $0x6e0] sm:$0xff] }
 0x39c   :  { %v1803_v51 = vpop.f32.mrb[130].mxu1  ;;  %7880 = vmatprep.subr.bf16.mxu0 %v8266_v0 }
 0x39d   :  { %7079 = vmatmul.mubr.msk.f32.gmra.mrb[132].mxu0 %vm1065_vm6, %v1803_v51  ;;  %3047 = vmatmul.mubr.f32.gmra.mrb[236].mxu1 %v2839_v49  ;;  %v1805_v58 = vpop.f32.mrb[131].mxu1  ;;  %v2849_v49 = vld [vmem:[#allocation6 + $0x6f0] sm:$0xff] }
 0x39e   :  { %7954 = vmatpush1.bf16.msra.mxu1 %v8597_v26  ;;  %7081 = vmatprep.mubr.msk.f32.mxu0 %vm8267_vm0, %v8268_v1  ;;  %v2851_v58 = vld [vmem:[#allocation6 + $0x700] sm:$0xff] }
 0x39f   :  { %6224 = vmatprep.mubr.msk.f32.mxu1 %vm466_vm5, %v2842_v52  ;;  %7955 = vmatprep.subr.bf16.mxu1 %v8266_v0  ;;  %v2852_v52 = vld [vmem:[#allocation6 + $0x708] sm:$0xff] }
 0x3a0   :  { %v1808_v3 = vpop.f32.mrb[132].mxu1  ;;  %7882 = vmatpush3.bf16.msra.mxu0 %v7881_v56 }
 0x3a1   :  { %7082 = vmatmul.mubr.msk.f32.gmra.mrb[134].mxu0 %vm1065_vm6, %v1808_v3  ;;  %3052 = vmatmul.mubr.f32.gmra.mrb[238].mxu1 %v2841_v63  ;;  %v1810_v7 = vpop.f32.mrb[133].mxu1  ;;  %v2854_v3 = vld [vmem:[#allocation6 + $0x718] sm:$0xff] }
 0x3a2   :  { %7957 = vmatpush1.bf16.msra.mxu1 %v8537_v59  ;;  %7084 = vmatprep.mubr.msk.f32.mxu0 %vm8267_vm0, %v8268_v1  ;;  %v2853_v7 = vld [vmem:[#allocation6 + $0x710] sm:$0xff] }
 0x3a3   :  { %6225 = vmatprep.mubr.msk.f32.mxu1 %vm466_vm5, %v2844_v6  ;;  %7958 = vmatprep.subr.bf16.mxu1 %v8266_v0 }
 0x3a4   :  { %v1813_v17 = vpop.f32.mrb[134].mxu1  ;;  %7883 = vmatprep.subr.bf16.mxu0 %v8266_v0 }
 0x3a5   :  { %7085 = vmatmul.mubr.msk.f32.gmra.mrb[136].mxu0 %vm1065_vm6, %v1813_v17  ;;  %3057 = vmatmul.mubr.f32.gmra.mrb[240].mxu1 %v2843_v14  ;;  %v1815_v25 = vpop.f32.mrb[135].mxu1  ;;  %v2855_v17 = vld [vmem:[#allocation6 + $0x720] sm:$0xff] }
 0x3a6   :  { %7960 = vmatpush1.bf16.msra.mxu1 %v8549_v15  ;;  %7087 = vmatprep.mubr.msk.f32.mxu0 %vm8267_vm0, %v8268_v1 }
 0x3a7   :  { %6226 = vmatprep.mubr.msk.f32.mxu1 %vm466_vm5, %v2846_v21  ;;  %7961 = vmatprep.subr.bf16.mxu1 %v8266_v0  ;;  %v2858_v21 = vld [vmem:[#allocation6 + $0x738] sm:$0xff] }
 0x3a8   :  { %v1818_v31 = vpop.f32.mrb[136].mxu1  ;;  %7885 = vmatpush3.bf16.msra.mxu0 %v7884_v23 }
 0x3a9   :  { %7088 = vmatmul.mubr.msk.f32.gmra.mrb[138].mxu0 %vm1065_vm6, %v1818_v31  ;;  %3062 = vmatmul.mubr.f32.gmra.mrb[242].mxu1 %v2845_v34  ;;  %v1820_v36 = vpop.f32.mrb[137].mxu1  ;;  %v2857_v34 = vld [vmem:[#allocation6 + $0x730] sm:$0xff]  ;;  %v2860_v31 = vld [vmem:[#allocation6 + $0x748] sm:$0xff] }
 0x3aa   :  { %7963 = vmatpush1.bf16.msra.mxu1 %v8561_v35  ;;  %7090 = vmatprep.mubr.msk.f32.mxu0 %vm8267_vm0, %v8268_v1 }
 0x3ab   :  { %6227 = vmatprep.mubr.msk.f32.mxu1 %vm466_vm5, %v2848_v33  ;;  %7964 = vmatprep.subr.bf16.mxu1 %v8266_v0 }
 0x3ac   :  { %v1823_v41 = vpop.f32.mrb[138].mxu1  ;;  %7922 = vmatprep.subr.bf16.mxu0 %v8266_v0 }
 0x3ad   :  { %7091 = vmatmul.mubr.msk.f32.gmra.mrb[140].mxu0 %vm1065_vm6, %v1823_v41  ;;  %3067 = vmatmul.mubr.f32.gmra.mrb[244].mxu1 %v2847_v37  ;;  %v1825_v47 = vpop.f32.mrb[139].mxu1  ;;  %v2859_v37 = vld [vmem:[#allocation6 + $0x740] sm:$0xff]  ;;  %v2862_v41 = vld [vmem:[#allocation6 + $0x758] sm:$0xff] }
 0x3ae   :  { %7966 = vmatpush1.bf16.msra.mxu1 %v8573_v54  ;;  %7093 = vmatprep.mubr.msk.f32.mxu0 %vm8267_vm0, %v8268_v1 }
 0x3af   :  { %6228 = vmatprep.mubr.msk.f32.mxu1 %vm466_vm5, %v2850_v45  ;;  %7967 = vmatprep.subr.bf16.mxu1 %v8266_v0 }
 0x3b0   :  { %v1828_v51 = vpop.f32.mrb[140].mxu1 }
 0x3b1   :  { %7094 = vmatmul.mubr.msk.f32.gmra.mrb[142].mxu0 %vm1065_vm6, %v1828_v51  ;;  %3072 = vmatmul.mubr.f32.gmra.mrb[246].mxu1 %v2849_v49  ;;  %v1830_v56 = vpop.f32.mrb[141].mxu1  ;;  %v2861_v49 = vld [vmem:[#allocation6 + $0x750] sm:$0xff]  ;;  %v2864_v51 = vld [vmem:[#allocation6 + $0x768] sm:$0xff] }
 0x3b2   :  { %7969 = vmatpush1.bf16.msra.mxu1 %v8585_v12  ;;  %7096 = vmatprep.mubr.msk.f32.mxu0 %vm8267_vm0, %v8268_v1 }
 0x3b3   :  { %6229 = vmatprep.mubr.msk.f32.mxu1 %vm466_vm5, %v2852_v52  ;;  %3615 = vmatprep.subr.mxu1 %v8268_v1 }
 0x3b4   :  { %v1833_v63 = vpop.f32.mrb[142].mxu1 }
 0x3b5   :  { %7097 = vmatmul.mubr.msk.f32.gmra.mrb[144].mxu0 %vm1065_vm6, %v1833_v63  ;;  %3077 = vmatmul.mubr.f32.gmra.mrb[248].mxu1 %v2851_v58  ;;  %v1835_v6 = vpop.f32.mrb[143].mxu1  ;;  %v2863_v58 = vld [vmem:[#allocation6 + $0x760] sm:$0xff]  ;;  %v2866_v63 = vld [vmem:[#allocation6 + $0x778] sm:$0xff] }
 0x3b6   :  { %3616 = vmatpush1.msra.mxu1 %v8619_v32  ;;  %7099 = vmatprep.mubr.msk.f32.mxu0 %vm8267_vm0, %v8268_v1 }
 0x3b7   :  { %6230 = vmatprep.mubr.msk.f32.mxu1 %vm466_vm5, %v2854_v3  ;;  %7982 = vmatprep.subr.bf16.mxu1 %v8266_v0 }
 0x3b8   :  { %v1838_v13 = vpop.f32.mrb[144].mxu1 }
 0x3b9   :  { %7100 = vmatmul.mubr.msk.f32.gmra.mrb[146].mxu0 %vm1065_vm6, %v1838_v13  ;;  %3082 = vmatmul.mubr.f32.gmra.mrb[250].mxu1 %v2853_v7  ;;  %v1840_v14 = vpop.f32.mrb[145].mxu1  ;;  %v2865_v7 = vld [vmem:[#allocation6 + $0x770] sm:$0xff] }
 0x3ba   :  { %7102 = vmatprep.mubr.msk.f32.mxu0 %vm8267_vm0, %v8268_v1  ;;  %6231 = vmatprep.mubr.msk.f32.mxu1 %vm466_vm5, %v2856_v11  ;;  %v2868_v11 = vld [vmem:[#allocation6 + $0x788] sm:$0xff] }
 0x3bc   :  { %v1843_v23 = vpop.f32.mrb[146].mxu1 }
 0x3bd   :  { %7103 = vmatmul.mubr.msk.f32.gmra.mrb[148].mxu0 %vm1065_vm6, %v1843_v23  ;;  %3087 = vmatmul.mubr.f32.gmra.mrb[252].mxu1 %v2855_v17  ;;  %v1845_v25 = vpop.f32.mrb[147].mxu1  ;;  %v2867_v17 = vld [vmem:[#allocation6 + $0x780] sm:$0xff] }
 0x3be   :  { %7105 = vmatprep.mubr.msk.f32.mxu0 %vm8267_vm0, %v8268_v1  ;;  %6232 = vmatprep.mubr.msk.f32.mxu1 %vm466_vm5, %v2858_v21  ;;  %v2870_v21 = vld [vmem:[#allocation6 + $0x798] sm:$0xff] }
 0x3c0   :  { %v1848_v33 = vpop.f32.mrb[148].mxu1 }
 0x3c1   :  { %7106 = vmatmul.mubr.msk.f32.gmra.mrb[150].mxu0 %vm1065_vm6, %v1848_v33  ;;  %3092 = vmatmul.mubr.f32.gmra.mrb[254].mxu1 %v2857_v34  ;;  %v1850_v36 = vpop.f32.mrb[149].mxu1  ;;  %v2869_v34 = vld [vmem:[#allocation6 + $0x790] sm:$0xff] }
 0x3c2   :  { %7108 = vmatprep.mubr.msk.f32.mxu0 %vm8267_vm0, %v8268_v1  ;;  %6233 = vmatprep.mubr.msk.f32.mxu1 %vm466_vm5, %v2860_v31  ;;  %v2872_v31 = vld [vmem:[#allocation6 + $0x7a8] sm:$0xff] }
 0x3c4   :  { %v1853_v45 = vpop.f32.mrb[150].mxu1 }
 0x3c5   :  { %7109 = vmatmul.mubr.msk.f32.gmra.mrb[152].mxu0 %vm1065_vm6, %v1853_v45  ;;  %3097 = vmatmul.mubr.f32.gmra.mrb[0].mxu1 %v2859_v37  ;;  %v1855_v47 = vpop.f32.mrb[151].mxu1  ;;  %v2871_v37 = vld [vmem:[#allocation6 + $0x7a0] sm:$0xff] }
 0x3c6   :  { %7111 = vmatprep.mubr.msk.f32.mxu0 %vm8267_vm0, %v8268_v1  ;;  %6234 = vmatprep.mubr.msk.f32.mxu1 %vm466_vm5, %v2862_v41  ;;  %v2874_v41 = vld [vmem:[#allocation6 + $0x7b8] sm:$0xff] }
 0x3c8   :  { %v1858_v52 = vpop.f32.mrb[152].mxu1 }
 0x3c9   :  { %7112 = vmatmul.mubr.msk.f32.gmra.mrb[154].mxu0 %vm1065_vm6, %v1858_v52  ;;  %3102 = vmatmul.mubr.f32.gmra.mrb[2].mxu1 %v2861_v49  ;;  %v1860_v56 = vpop.f32.mrb[153].mxu1  ;;  %v2873_v49 = vld [vmem:[#allocation6 + $0x7b0] sm:$0xff] }
 0x3ca   :  { %7114 = vmatprep.mubr.msk.f32.mxu0 %vm8267_vm0, %v8268_v1  ;;  %6235 = vmatprep.mubr.msk.f32.mxu1 %vm466_vm5, %v2864_v51  ;;  %v2876_v51 = vld [vmem:[#allocation6 + $0x7c8] sm:$0xff] }
 0x3cc   :  { %v1863_v3 = vpop.f32.mrb[154].mxu1 }
 0x3cd   :  { %7115 = vmatmul.mubr.msk.f32.gmra.mrb[156].mxu0 %vm1065_vm6, %v1863_v3  ;;  %3107 = vmatmul.mubr.f32.gmra.mrb[4].mxu1 %v2863_v58  ;;  %v1865_v6 = vpop.f32.mrb[155].mxu1  ;;  %v2875_v58 = vld [vmem:[#allocation6 + $0x7c0] sm:$0xff] }
 0x3ce   :  { %7117 = vmatprep.mubr.msk.f32.mxu0 %vm8267_vm0, %v8268_v1  ;;  %6236 = vmatprep.mubr.msk.f32.mxu1 %vm466_vm5, %v2866_v63  ;;  %v3443_v63 = vld [vmem:[#allocation6 + $0x7d8] sm:$0xff] }
 0x3d0   :  { %v1868_v13 = vpop.f32.mrb[156].mxu1 }
 0x3d1   :  { %7118 = vmatmul.mubr.msk.f32.gmra.mrb[158].mxu0 %vm1065_vm6, %v1868_v13  ;;  %3112 = vmatmul.mubr.f32.gmra.mrb[6].mxu1 %v2865_v7  ;;  %v1870_v14 = vpop.f32.mrb[157].mxu1  ;;  %v3442_v7 = vld [vmem:[#allocation6 + $0x7d0] sm:$0xff]  ;;  %v3445_v13 = vld [vmem:[#allocation6 + $0x7e8] sm:$0xff] }
 0x3d2   :  { %7120 = vmatprep.mubr.msk.f32.mxu0 %vm8267_vm0, %v8268_v1  ;;  %6237 = vmatprep.mubr.msk.f32.mxu1 %vm466_vm5, %v2868_v11 }
 0x3d4   :  { %v1873_v23 = vpop.f32.mrb[158].mxu1 }
 0x3d5   :  { %7121 = vmatmul.mubr.msk.f32.gmra.mrb[160].mxu0 %vm1065_vm6, %v1873_v23  ;;  %3117 = vmatmul.mubr.f32.gmra.mrb[8].mxu1 %v2867_v17  ;;  %v1875_v25 = vpop.f32.mrb[159].mxu1  ;;  %v3444_v17 = vld [vmem:[#allocation6 + $0x7e0] sm:$0xff]  ;;  %v3447_v23 = vld [vmem:[#allocation6 + $0x7f8] sm:$0xff] }
 0x3d6   :  { %7123 = vmatprep.mubr.msk.f32.mxu0 %vm8267_vm0, %v8268_v1  ;;  %6238 = vmatprep.mubr.msk.f32.mxu1 %vm466_vm5, %v2870_v21 }
 0x3d8   :  { %v1878_v33 = vpop.f32.mrb[160].mxu1 }
 0x3d9   :  { %7124 = vmatmul.mubr.msk.f32.gmra.mrb[162].mxu0 %vm1065_vm6, %v1878_v33  ;;  %3122 = vmatmul.mubr.f32.gmra.mrb[10].mxu1 %v2869_v34  ;;  %v1880_v36 = vpop.f32.mrb[161].mxu1  ;;  %v3446_v34 = vld [vmem:[#allocation6 + $0x7f0] sm:$0xff]  ;;  %v3449_v33 = vld [vmem:[#allocation6 + $0x808] sm:$0xff] }
 0x3da   :  { %7126 = vmatprep.mubr.msk.f32.mxu0 %vm8267_vm0, %v8268_v1  ;;  %6239 = vmatprep.mubr.msk.f32.mxu1 %vm466_vm5, %v2872_v31  ;;  %v3143_v36 = vld [vmem:[#allocation7 + $0x100] sm:$0xff] }
 0x3dc   :  { %v1883_v45 = vpop.f32.mrb[162].mxu1 }
 0x3dd   :  { %7127 = vmatmul.mubr.msk.f32.gmra.mrb[164].mxu0 %vm1065_vm6, %v1883_v45  ;;  %3127 = vmatmul.mubr.f32.gmra.mrb[12].mxu1 %v2871_v37  ;;  %v1885_v47 = vpop.f32.mrb[163].mxu1  ;;  %v3144_v37 = vld [vmem:[#allocation7 + $0x108] sm:$0xff]  ;;  %v3448_v45 = vld [vmem:[#allocation6 + $0x800] sm:$0xff] }
 0x3de   :  { %7129 = vmatprep.mubr.msk.f32.mxu0 %vm8267_vm0, %v8268_v1  ;;  %6240 = vmatprep.mubr.msk.f32.mxu1 %vm466_vm5, %v2874_v41  ;;  %v7923_v47 = vpack.c.bf16 %v3144_v37, %v3143_v36 }
 0x3e0   :  { %v1888_v52 = vpop.f32.mrb[164].mxu1 }
 0x3e1   :  { %7130 = vmatmul.mubr.msk.f32.gmra.mrb[166].mxu0 %vm1065_vm6, %v1888_v52  ;;  %3132 = vmatmul.mubr.f32.gmra.mrb[14].mxu1 %v2873_v49  ;;  %v1890_v56 = vpop.f32.mrb[165].mxu1 }
 0x3e2   :  { %7132 = vmatprep.mubr.msk.f32.mxu0 %vm8267_vm0, %v8268_v1  ;;  %6241 = vmatprep.mubr.msk.f32.mxu1 %vm466_vm5, %v2876_v51  ;;  %v3451_v51 = vld [vmem:[#allocation6 + $0x818] sm:$0xff]  ;;  %v3145_v56 = vld [vmem:[#allocation7 + $0x110] sm:$0xff] }
 0x3e4   :  { %v1893_v3 = vpop.f32.mrb[166].mxu1 }
 0x3e5   :  { %7133 = vmatmul.mubr.msk.f32.gmra.mrb[168].mxu0 %vm1065_vm6, %v1893_v3  ;;  %3137 = vmatmul.mubr.f32.gmra.mrb[16].mxu1 %v2875_v58  ;;  %v1895_v6 = vpop.f32.mrb[167].mxu1  ;;  %v3146_v58 = vld [vmem:[#allocation7 + $0x118] sm:$0xff] }
 0x3e6   :  { %7135 = vmatprep.mubr.msk.f32.mxu0 %vm8267_vm0, %v8268_v1  ;;  %6267 = vmatprep.mubr.msk.f32.mxu1 %vm466_vm5, %v3443_v63  ;;  %v3450_v63 = vld [vmem:[#allocation6 + $0x810] sm:$0xff]  ;;  %v3453_v6 = vld [vmem:[#allocation6 + $0x828] sm:$0xff] }
 0x3e8   :  { %v1898_v11 = vpop.f32.mrb[168].mxu1 }
 0x3e9   :  { %7136 = vmatmul.mubr.msk.f32.gmra.mrb[170].mxu0 %vm1065_vm6, %v1898_v11  ;;  %3632 = vmatmul.mubr.f32.vlgmr.msra.gmra.mrb[18].mxu1 %v3442_v7  ;;  %v1900_v14 = vpop.f32.mrb[169].mxu1  ;;  %v7926_v7 = vpack.c.bf16 %v3146_v58, %v3145_v56  ;;  %v3458_v56 = vld [vmem:[#allocation6 + $0x850] sm:$0xff] }
 0x3ea   :  { %7984 = vmatpush1.bf16.msra.mxu1 %v8528_v48  ;;  %7138 = vmatprep.mubr.msk.f32.mxu0 %vm8267_vm0, %v8268_v1 }
 0x3eb   :  { %6268 = vmatprep.mubr.msk.f32.mxu1 %vm466_vm5, %v3445_v13  ;;  %7985 = vmatprep.subr.bf16.mxu1 %v8266_v0  ;;  %v3452_v13 = vld [vmem:[#allocation6 + $0x820] sm:$0xff] }
 0x3ec   :  { %v1903_v21 = vpop.f32.mrb[170].mxu1 }
 0x3ed   :  { %7139 = vmatmul.mubr.msk.f32.gmra.mrb[172].mxu0 %vm1065_vm6, %v1903_v21  ;;  %3637 = vmatmul.mubr.f32.gmra.mrb[20].mxu1 %v3444_v17  ;;  %v1905_v25 = vpop.f32.mrb[171].mxu1  ;;  %v3455_v17 = vld [vmem:[#allocation6 + $0x838] sm:$0xff] }
 0x3ee   :  { %7987 = vmatpush1.bf16.msra.mxu1 %v8540_v4  ;;  %7141 = vmatprep.mubr.msk.f32.mxu0 %vm8267_vm0, %v8268_v1  ;;  %v3148_v25 = vld [vmem:[#allocation7 + $0x128] sm:$0xff] }
 0x3ef   :  { %6269 = vmatprep.mubr.msk.f32.mxu1 %vm466_vm5, %v3447_v23  ;;  %7988 = vmatprep.subr.bf16.mxu1 %v8266_v0  ;;  %v3147_v23 = vld [vmem:[#allocation7 + $0x120] sm:$0xff] }
 0x3f0   :  { %v1908_v31 = vpop.f32.mrb[172].mxu1  ;;  %v7929_v36 = vpack.c.bf16 %v3148_v25, %v3147_v23  ;;  %v3465_v23 = vld [vmem:[#allocation6 + $0x888] sm:$0xff] }
 0x3f1   :  { %7142 = vmatmul.mubr.msk.f32.gmra.mrb[174].mxu0 %vm1065_vm6, %v1908_v31  ;;  %3642 = vmatmul.mubr.f32.gmra.mrb[22].mxu1 %v3446_v34  ;;  %v1910_v41 = vpop.f32.mrb[173].mxu1  ;;  %v3454_v34 = vld [vmem:[#allocation6 + $0x830] sm:$0xff] }
 0x3f2   :  { %7990 = vmatpush1.bf16.msra.mxu1 %v8552_v22  ;;  %7160 = vmatprep.mubr.msk.f32.mxu0 %vm8267_vm0, %v8268_v1  ;;  %v3456_v41 = vld [vmem:[#allocation6 + $0x840] sm:$0xff] }
 0x3f3   :  { %6270 = vmatprep.mubr.msk.f32.mxu1 %vm466_vm5, %v3449_v33  ;;  %7991 = vmatprep.subr.bf16.mxu1 %v8266_v0  ;;  %v3457_v33 = vld [vmem:[#allocation6 + $0x848] sm:$0xff] }
 0x3f4   :  { %v2403_v49 = vpop.f32.mrb[174].mxu1 }
 0x3f5   :  { %7161 = vmatmul.mubr.msk.f32.vlgmr.msra.gmra.mrb[176].mxu0 %vm1065_vm6, %v2403_v49  ;;  %3647 = vmatmul.mubr.f32.gmra.mrb[24].mxu1 %v3448_v45  ;;  %v2405_v52 = vpop.f32.mrb[175].mxu1 }
 0x3f6   :  { %7993 = vmatpush1.bf16.msra.mxu1 %v8564_v42  ;;  %7163 = vmatprep.mubr.msk.f32.mxu0 %vm8267_vm0, %v8268_v1  ;;  %v3150_v52 = vld [vmem:[#allocation7 + $0x138] sm:$0xff] }
 0x3f7   :  { %7924 = vmatpush3.bf16.msra.mxu0 %v7923_v47  ;;  %6271 = vmatprep.mubr.msk.f32.mxu1 %vm466_vm5, %v3451_v51  ;;  %v3459_v47 = vld [vmem:[#allocation6 + $0x858] sm:$0xff]  ;;  %v3149_v51 = vld [vmem:[#allocation7 + $0x130] sm:$0xff] }
 0x3f8   :  { %v2408_v3 = vpop.f32.mrb[176].mxu1  ;;  %7994 = vmatprep.subr.bf16.mxu1 %v8266_v0  ;;  %7925 = vmatprep.subr.bf16.mxu0 %v8266_v0 }
 0x3f9   :  { %7164 = vmatmul.mubr.msk.f32.gmra.mrb[178].mxu0 %vm1065_vm6, %v2408_v3  ;;  %3652 = vmatmul.mubr.f32.gmra.mrb[26].mxu1 %v3450_v63  ;;  %v2410_v11 = vpop.f32.mrb[177].mxu1  ;;  %v3461_v63 = vld [vmem:[#allocation6 + $0x868] sm:$0xff]  ;;  %v7932_v3 = vpack.c.bf16 %v3150_v52, %v3149_v51  ;;  %v3471_v51 = vld [vmem:[#allocation6 + $0x8b8] sm:$0xff] }
 0x3fa   :  { %7996 = vmatpush1.bf16.msra.mxu1 %v8576_v62  ;;  %7166 = vmatprep.mubr.msk.f32.mxu0 %vm8267_vm0, %v8268_v1 }
 0x3fb   :  { %6272 = vmatprep.mubr.msk.f32.mxu1 %vm466_vm5, %v3453_v6  ;;  %7997 = vmatprep.subr.bf16.mxu1 %v8266_v0 }
 0x3fc   :  { %v2413_v14 = vpop.f32.mrb[178].mxu1  ;;  %7927 = vmatpush3.bf16.msra.mxu0 %v7926_v7  ;;  %v3460_v7 = vld [vmem:[#allocation6 + $0x860] sm:$0xff] }
 0x3fd   :  { %7167 = vmatmul.mubr.msk.f32.gmra.mrb[180].mxu0 %vm1065_vm6, %v2413_v14  ;;  %3657 = vmatmul.mubr.f32.gmra.mrb[28].mxu1 %v3452_v13  ;;  %v2415_v21 = vpop.f32.mrb[179].mxu1  ;;  %v3463_v13 = vld [vmem:[#allocation6 + $0x878] sm:$0xff] }
 0x3fe   :  { %7999 = vmatpush1.bf16.msra.mxu1 %v8590_v20  ;;  %7169 = vmatprep.mubr.msk.f32.mxu0 %vm8267_vm0, %v8268_v1 }
 0x3ff   :  { %6273 = vmatprep.mubr.msk.f32.mxu1 %vm466_vm5, %v3455_v17  ;;  %8000 = vmatprep.subr.bf16.mxu1 %v8266_v0  ;;  %v3462_v17 = vld [vmem:[#allocation6 + $0x870] sm:$0xff] }
 0x400   :  { %v2418_v31 = vpop.f32.mrb[180].mxu1  ;;  %7928 = vmatprep.subr.bf16.mxu0 %v8266_v0 }
 0x401   :  { %7170 = vmatmul.mubr.msk.f32.gmra.mrb[182].mxu0 %vm1065_vm6, %v2418_v31  ;;  %3662 = vmatmul.mubr.f32.gmra.mrb[30].mxu1 %v3454_v34  ;;  %v2420_v37 = vpop.f32.mrb[181].mxu1  ;;  %v3464_v34 = vld [vmem:[#allocation6 + $0x880] sm:$0xff] }
 0x402   :  { %8002 = vmatpush1.bf16.msra.mxu1 %v8597_v26  ;;  %7172 = vmatprep.mubr.msk.f32.mxu0 %vm8267_vm0, %v8268_v1  ;;  %v3466_v37 = vld [vmem:[#allocation6 + $0x890] sm:$0xff] }
 0x403   :  { %6274 = vmatprep.mubr.msk.f32.mxu1 %vm466_vm5, %v3457_v33  ;;  %8003 = vmatprep.subr.bf16.mxu1 %v8266_v0  ;;  %v3467_v33 = vld [vmem:[#allocation6 + $0x898] sm:$0xff] }
 0x404   :  { %v2423_v45 = vpop.f32.mrb[182].mxu1  ;;  %7930 = vmatpush3.bf16.msra.mxu0 %v7929_v36 }
 0x405   :  { %7173 = vmatmul.mubr.msk.f32.gmra.mrb[184].mxu0 %vm1065_vm6, %v2423_v45  ;;  %3667 = vmatmul.mubr.f32.gmra.mrb[32].mxu1 %v3456_v41  ;;  %v2425_v49 = vpop.f32.mrb[183].mxu1  ;;  %v3469_v45 = vld [vmem:[#allocation6 + $0x8a8] sm:$0xff] }
 0x406   :  { %8005 = vmatpush1.bf16.msra.mxu1 %v8537_v59  ;;  %7175 = vmatprep.mubr.msk.f32.mxu0 %vm8267_vm0, %v8268_v1  ;;  %v3468_v49 = vld [vmem:[#allocation6 + $0x8a0] sm:$0xff] }
 0x407   :  { %6275 = vmatprep.mubr.msk.f32.mxu1 %vm466_vm5, %v3459_v47  ;;  %8006 = vmatprep.subr.bf16.mxu1 %v8266_v0 }
 0x408   :  { %v2428_v58 = vpop.f32.mrb[184].mxu1  ;;  %7931 = vmatprep.subr.bf16.mxu0 %v8266_v0 }
 0x409   :  { %7176 = vmatmul.mubr.msk.f32.gmra.mrb[186].mxu0 %vm1065_vm6, %v2428_v58  ;;  %3672 = vmatmul.mubr.f32.gmra.mrb[34].mxu1 %v3458_v56  ;;  %v2430_v6 = vpop.f32.mrb[185].mxu1  ;;  %v3470_v58 = vld [vmem:[#allocation6 + $0x8b0] sm:$0xff] }
 0x40a   :  { %8008 = vmatpush1.bf16.msra.mxu1 %v8549_v15  ;;  %7178 = vmatprep.mubr.msk.f32.mxu0 %vm8267_vm0, %v8268_v1 }
 0x40b   :  { %6276 = vmatprep.mubr.msk.f32.mxu1 %vm466_vm5, %v3461_v63  ;;  %8009 = vmatprep.subr.bf16.mxu1 %v8266_v0  ;;  %v3473_v63 = vld [vmem:[#allocation6 + $0x8c8] sm:$0xff] }
 0x40c   :  { %v2433_v11 = vpop.f32.mrb[186].mxu1  ;;  %7933 = vmatpush3.bf16.msra.mxu0 %v7932_v3 }
 0x40d   :  { %7179 = vmatmul.mubr.msk.f32.gmra.mrb[188].mxu0 %vm1065_vm6, %v2433_v11  ;;  %3677 = vmatmul.mubr.f32.gmra.mrb[36].mxu1 %v3460_v7  ;;  %v2435_v14 = vpop.f32.mrb[187].mxu1  ;;  %v3472_v7 = vld [vmem:[#allocation6 + $0x8c0] sm:$0xff]  ;;  %v3475_v11 = vld [vmem:[#allocation6 + $0x8d8] sm:$0xff] }
 0x40e   :  { %8011 = vmatpush1.bf16.msra.mxu1 %v8561_v35  ;;  %7181 = vmatprep.mubr.msk.f32.mxu0 %vm8267_vm0, %v8268_v1 }
 0x40f   :  { %6277 = vmatprep.mubr.msk.f32.mxu1 %vm466_vm5, %v3463_v13  ;;  %8012 = vmatprep.subr.bf16.mxu1 %v8266_v0 }
 0x410   :  { %v2438_v21 = vpop.f32.mrb[188].mxu1  ;;  %7970 = vmatprep.subr.bf16.mxu0 %v8266_v0 }
 0x411   :  { %7182 = vmatmul.mubr.msk.f32.gmra.mrb[190].mxu0 %vm1065_vm6, %v2438_v21  ;;  %3682 = vmatmul.mubr.f32.gmra.mrb[38].mxu1 %v3462_v17  ;;  %v2440_v25 = vpop.f32.mrb[189].mxu1  ;;  %v3474_v17 = vld [vmem:[#allocation6 + $0x8d0] sm:$0xff]  ;;  %v3477_v21 = vld [vmem:[#allocation6 + $0x8e8] sm:$0xff] }
 0x412   :  { %8014 = vmatpush1.bf16.msra.mxu1 %v8573_v54  ;;  %7184 = vmatprep.mubr.msk.f32.mxu0 %vm8267_vm0, %v8268_v1 }
 0x413   :  { %6278 = vmatprep.mubr.msk.f32.mxu1 %vm466_vm5, %v3465_v23  ;;  %8015 = vmatprep.subr.bf16.mxu1 %v8266_v0 }
 0x414   :  { %v2443_v31 = vpop.f32.mrb[190].mxu1 }
 0x415   :  { %7185 = vmatmul.mubr.msk.f32.gmra.mrb[192].mxu0 %vm1065_vm6, %v2443_v31  ;;  %3687 = vmatmul.mubr.f32.gmra.mrb[40].mxu1 %v3464_v34  ;;  %v2445_v36 = vpop.f32.mrb[191].mxu1  ;;  %v3476_v34 = vld [vmem:[#allocation6 + $0x8e0] sm:$0xff]  ;;  %v3479_v31 = vld [vmem:[#allocation6 + $0x8f8] sm:$0xff] }
 0x416   :  { %8017 = vmatpush1.bf16.msra.mxu1 %v8585_v12  ;;  %7187 = vmatprep.mubr.msk.f32.mxu0 %vm8267_vm0, %v8268_v1 }
 0x417   :  { %6279 = vmatprep.mubr.msk.f32.mxu1 %vm466_vm5, %v3467_v33  ;;  %4230 = vmatprep.subr.mxu1 %v8268_v1 }
 0x418   :  { %v2448_v41 = vpop.f32.mrb[192].mxu1 }
 0x419   :  { %7188 = vmatmul.mubr.msk.f32.gmra.mrb[194].mxu0 %vm1065_vm6, %v2448_v41  ;;  %3692 = vmatmul.mubr.f32.gmra.mrb[42].mxu1 %v3466_v37  ;;  %v2450_v47 = vpop.f32.mrb[193].mxu1  ;;  %v3478_v37 = vld [vmem:[#allocation6 + $0x8f0] sm:$0xff]  ;;  %v3481_v41 = vld [vmem:[#allocation6 + $0x908] sm:$0xff] }
 0x41a   :  { %4231 = vmatpush1.msra.mxu1 %v8619_v32  ;;  %7190 = vmatprep.mubr.msk.f32.mxu0 %vm8267_vm0, %v8268_v1 }
 0x41b   :  { %6280 = vmatprep.mubr.msk.f32.mxu1 %vm466_vm5, %v3469_v45  ;;  %8030 = vmatprep.subr.bf16.mxu1 %v8266_v0 }
 0x41c   :  { %v2453_v52 = vpop.f32.mrb[194].mxu1 }
 0x41d   :  { %7191 = vmatmul.mubr.msk.f32.gmra.mrb[196].mxu0 %vm1065_vm6, %v2453_v52  ;;  %3697 = vmatmul.mubr.f32.gmra.mrb[44].mxu1 %v3468_v49  ;;  %v2455_v56 = vpop.f32.mrb[195].mxu1  ;;  %v3480_v49 = vld [vmem:[#allocation6 + $0x900] sm:$0xff] }
 0x41e   :  { %7193 = vmatprep.mubr.msk.f32.mxu0 %vm8267_vm0, %v8268_v1  ;;  %6281 = vmatprep.mubr.msk.f32.mxu1 %vm466_vm5, %v3471_v51  ;;  %v3483_v51 = vld [vmem:[#allocation6 + $0x918] sm:$0xff] }
 0x420   :  { %v2458_v3 = vpop.f32.mrb[196].mxu1 }
 0x421   :  { %7194 = vmatmul.mubr.msk.f32.gmra.mrb[198].mxu0 %vm1065_vm6, %v2458_v3  ;;  %3702 = vmatmul.mubr.f32.gmra.mrb[46].mxu1 %v3470_v58  ;;  %v2460_v6 = vpop.f32.mrb[197].mxu1  ;;  %v3482_v58 = vld [vmem:[#allocation6 + $0x910] sm:$0xff] }
 0x422   :  { %7196 = vmatprep.mubr.msk.f32.mxu0 %vm8267_vm0, %v8268_v1  ;;  %6282 = vmatprep.mubr.msk.f32.mxu1 %vm466_vm5, %v3473_v63  ;;  %v3485_v63 = vld [vmem:[#allocation6 + $0x928] sm:$0xff] }
 0x424   :  { %v2463_v13 = vpop.f32.mrb[198].mxu1 }
 0x425   :  { %7197 = vmatmul.mubr.msk.f32.gmra.mrb[200].mxu0 %vm1065_vm6, %v2463_v13  ;;  %3707 = vmatmul.mubr.f32.gmra.mrb[48].mxu1 %v3472_v7  ;;  %v2465_v14 = vpop.f32.mrb[199].mxu1  ;;  %v3484_v7 = vld [vmem:[#allocation6 + $0x920] sm:$0xff] }
 0x426   :  { %7199 = vmatprep.mubr.msk.f32.mxu0 %vm8267_vm0, %v8268_v1  ;;  %6283 = vmatprep.mubr.msk.f32.mxu1 %vm466_vm5, %v3475_v11  ;;  %v3487_v11 = vld [vmem:[#allocation6 + $0x938] sm:$0xff] }
 0x428   :  { %v2468_v23 = vpop.f32.mrb[200].mxu1 }
 0x429   :  { %7200 = vmatmul.mubr.msk.f32.gmra.mrb[202].mxu0 %vm1065_vm6, %v2468_v23  ;;  %3712 = vmatmul.mubr.f32.gmra.mrb[50].mxu1 %v3474_v17  ;;  %v2470_v25 = vpop.f32.mrb[201].mxu1  ;;  %v3486_v17 = vld [vmem:[#allocation6 + $0x930] sm:$0xff] }
 0x42a   :  { %7202 = vmatprep.mubr.msk.f32.mxu0 %vm8267_vm0, %v8268_v1  ;;  %6284 = vmatprep.mubr.msk.f32.mxu1 %vm466_vm5, %v3477_v21  ;;  %v3489_v21 = vld [vmem:[#allocation6 + $0x948] sm:$0xff] }
 0x42c   :  { %v2473_v33 = vpop.f32.mrb[202].mxu1 }
 0x42d   :  { %7203 = vmatmul.mubr.msk.f32.gmra.mrb[204].mxu0 %vm1065_vm6, %v2473_v33  ;;  %3717 = vmatmul.mubr.f32.gmra.mrb[52].mxu1 %v3476_v34  ;;  %v2475_v36 = vpop.f32.mrb[203].mxu1  ;;  %v3488_v34 = vld [vmem:[#allocation6 + $0x940] sm:$0xff] }
 0x42e   :  { %7205 = vmatprep.mubr.msk.f32.mxu0 %vm8267_vm0, %v8268_v1  ;;  %6285 = vmatprep.mubr.msk.f32.mxu1 %vm466_vm5, %v3479_v31  ;;  %v3491_v31 = vld [vmem:[#allocation6 + $0x958] sm:$0xff] }
 0x430   :  { %v2478_v45 = vpop.f32.mrb[204].mxu1 }
 0x431   :  { %7206 = vmatmul.mubr.msk.f32.gmra.mrb[206].mxu0 %vm1065_vm6, %v2478_v45  ;;  %3722 = vmatmul.mubr.f32.gmra.mrb[54].mxu1 %v3478_v37  ;;  %v2480_v47 = vpop.f32.mrb[205].mxu1  ;;  %v3490_v37 = vld [vmem:[#allocation6 + $0x950] sm:$0xff] }
 0x432   :  { %7208 = vmatprep.mubr.msk.f32.mxu0 %vm8267_vm0, %v8268_v1  ;;  %6286 = vmatprep.mubr.msk.f32.mxu1 %vm466_vm5, %v3481_v41  ;;  %v4058_v41 = vld [vmem:[#allocation6 + $0x968] sm:$0xff] }
 0x434   :  { %v2483_v52 = vpop.f32.mrb[206].mxu1 }
 0x435   :  { %7209 = vmatmul.mubr.msk.f32.gmra.mrb[208].mxu0 %vm1065_vm6, %v2483_v52  ;;  %3727 = vmatmul.mubr.f32.gmra.mrb[56].mxu1 %v3480_v49  ;;  %v2485_v56 = vpop.f32.mrb[207].mxu1  ;;  %v4057_v49 = vld [vmem:[#allocation6 + $0x960] sm:$0xff]  ;;  %v4060_v52 = vld [vmem:[#allocation6 + $0x978] sm:$0xff] }
 0x436   :  { %7211 = vmatprep.mubr.msk.f32.mxu0 %vm8267_vm0, %v8268_v1  ;;  %6287 = vmatprep.mubr.msk.f32.mxu1 %vm466_vm5, %v3483_v51 }
 0x438   :  { %v2488_v3 = vpop.f32.mrb[208].mxu1 }
 0x439   :  { %7212 = vmatmul.mubr.msk.f32.gmra.mrb[210].mxu0 %vm1065_vm6, %v2488_v3  ;;  %3732 = vmatmul.mubr.f32.gmra.mrb[58].mxu1 %v3482_v58  ;;  %v2490_v6 = vpop.f32.mrb[209].mxu1  ;;  %v4059_v58 = vld [vmem:[#allocation6 + $0x970] sm:$0xff]  ;;  %v4062_v3 = vld [vmem:[#allocation6 + $0x988] sm:$0xff] }
 0x43a   :  { %7214 = vmatprep.mubr.msk.f32.mxu0 %vm8267_vm0, %v8268_v1  ;;  %6288 = vmatprep.mubr.msk.f32.mxu1 %vm466_vm5, %v3485_v63 }
 0x43c   :  { %v2493_v13 = vpop.f32.mrb[210].mxu1 }
 0x43d   :  { %7215 = vmatmul.mubr.msk.f32.gmra.mrb[212].mxu0 %vm1065_vm6, %v2493_v13  ;;  %3737 = vmatmul.mubr.f32.gmra.mrb[60].mxu1 %v3484_v7  ;;  %v2495_v14 = vpop.f32.mrb[211].mxu1  ;;  %v4061_v7 = vld [vmem:[#allocation6 + $0x980] sm:$0xff]  ;;  %v4064_v13 = vld [vmem:[#allocation6 + $0x998] sm:$0xff] }
 0x43e   :  { %7217 = vmatprep.mubr.msk.f32.mxu0 %vm8267_vm0, %v8268_v1  ;;  %6289 = vmatprep.mubr.msk.f32.mxu1 %vm466_vm5, %v3487_v11  ;;  %v3758_v14 = vld [vmem:[#allocation7 + $0x140] sm:$0xff] }
 0x440   :  { %v2498_v23 = vpop.f32.mrb[212].mxu1 }
 0x441   :  { %7218 = vmatmul.mubr.msk.f32.gmra.mrb[214].mxu0 %vm1065_vm6, %v2498_v23  ;;  %3742 = vmatmul.mubr.f32.gmra.mrb[62].mxu1 %v3486_v17  ;;  %v2500_v25 = vpop.f32.mrb[213].mxu1  ;;  %v3759_v17 = vld [vmem:[#allocation7 + $0x148] sm:$0xff]  ;;  %v4063_v23 = vld [vmem:[#allocation6 + $0x990] sm:$0xff] }
 0x442   :  { %7220 = vmatprep.mubr.msk.f32.mxu0 %vm8267_vm0, %v8268_v1  ;;  %6290 = vmatprep.mubr.msk.f32.mxu1 %vm466_vm5, %v3489_v21  ;;  %v7971_v25 = vpack.c.bf16 %v3759_v17, %v3758_v14  ;;  %v4072_v14 = vld [vmem:[#allocation6 + $0x9d8] sm:$0xff] }
 0x444   :  { %v2503_v33 = vpop.f32.mrb[214].mxu1 }
 0x445   :  { %7221 = vmatmul.mubr.msk.f32.gmra.mrb[216].mxu0 %vm1065_vm6, %v2503_v33  ;;  %3747 = vmatmul.mubr.f32.gmra.mrb[64].mxu1 %v3488_v34  ;;  %v2505_v36 = vpop.f32.mrb[215].mxu1 }
 0x446   :  { %7223 = vmatprep.mubr.msk.f32.mxu0 %vm8267_vm0, %v8268_v1  ;;  %6291 = vmatprep.mubr.msk.f32.mxu1 %vm466_vm5, %v3491_v31  ;;  %v4066_v31 = vld [vmem:[#allocation6 + $0x9a8] sm:$0xff]  ;;  %v3760_v36 = vld [vmem:[#allocation7 + $0x150] sm:$0xff] }
 0x448   :  { %v2508_v45 = vpop.f32.mrb[216].mxu1 }
 0x449   :  { %7224 = vmatmul.mubr.msk.f32.gmra.mrb[218].mxu0 %vm1065_vm6, %v2508_v45  ;;  %3752 = vmatmul.mubr.f32.gmra.mrb[66].mxu1 %v3490_v37  ;;  %v2510_v47 = vpop.f32.mrb[217].mxu1  ;;  %v3761_v37 = vld [vmem:[#allocation7 + $0x158] sm:$0xff] }
 0x44a   :  { %7226 = vmatprep.mubr.msk.f32.mxu0 %vm8267_vm0, %v8268_v1  ;;  %6317 = vmatprep.mubr.msk.f32.mxu1 %vm466_vm5, %v4058_v41  ;;  %v4065_v41 = vld [vmem:[#allocation6 + $0x9a0] sm:$0xff]  ;;  %v4068_v47 = vld [vmem:[#allocation6 + $0x9b8] sm:$0xff] }
 0x44c   :  { %v2513_v51 = vpop.f32.mrb[218].mxu1 }
 0x44d   :  { %7227 = vmatmul.mubr.msk.f32.gmra.mrb[220].mxu0 %vm1065_vm6, %v2513_v51  ;;  %4247 = vmatmul.mubr.f32.vlgmr.msra.gmra.mrb[68].mxu1 %v4057_v49  ;;  %v2515_v56 = vpop.f32.mrb[219].mxu1  ;;  %v7974_v49 = vpack.c.bf16 %v3761_v37, %v3760_v36  ;;  %v4074_v36 = vld [vmem:[#allocation6 + $0x9e8] sm:$0xff] }
 0x44e   :  { %8032 = vmatpush1.bf16.msra.mxu1 %v8528_v48  ;;  %7229 = vmatprep.mubr.msk.f32.mxu0 %vm8267_vm0, %v8268_v1 }
 0x44f   :  { %6318 = vmatprep.mubr.msk.f32.mxu1 %vm466_vm5, %v4060_v52  ;;  %8033 = vmatprep.subr.bf16.mxu1 %v8266_v0  ;;  %v4067_v52 = vld [vmem:[#allocation6 + $0x9b0] sm:$0xff] }
 0x450   :  { %v2518_v63 = vpop.f32.mrb[220].mxu1 }
 0x451   :  { %7230 = vmatmul.mubr.msk.f32.gmra.mrb[222].mxu0 %vm1065_vm6, %v2518_v63  ;;  %4252 = vmatmul.mubr.f32.gmra.mrb[70].mxu1 %v4059_v58  ;;  %v2520_v6 = vpop.f32.mrb[221].mxu1  ;;  %v4070_v58 = vld [vmem:[#allocation6 + $0x9c8] sm:$0xff] }
 0x452   :  { %8035 = vmatpush1.bf16.msra.mxu1 %v8540_v4  ;;  %7232 = vmatprep.mubr.msk.f32.mxu0 %vm8267_vm0, %v8268_v1  ;;  %v3763_v6 = vld [vmem:[#allocation7 + $0x168] sm:$0xff] }
 0x453   :  { %6319 = vmatprep.mubr.msk.f32.mxu1 %vm466_vm5, %v4062_v3  ;;  %8036 = vmatprep.subr.bf16.mxu1 %v8266_v0  ;;  %v3762_v3 = vld [vmem:[#allocation7 + $0x160] sm:$0xff] }
 0x454   :  { %v2523_v11 = vpop.f32.mrb[222].mxu1  ;;  %v7977_v17 = vpack.c.bf16 %v3763_v6, %v3762_v3  ;;  %v4075_v6 = vld [vmem:[#allocation6 + $0x9f0] sm:$0xff] }
 0x455   :  { %7233 = vmatmul.mubr.msk.f32.gmra.mrb[224].mxu0 %vm1065_vm6, %v2523_v11  ;;  %4257 = vmatmul.mubr.f32.gmra.mrb[72].mxu1 %v4061_v7  ;;  %v2525_v21 = vpop.f32.mrb[223].mxu1  ;;  %v4069_v7 = vld [vmem:[#allocation6 + $0x9c0] sm:$0xff] }
 0x456   :  { %8038 = vmatpush1.bf16.msra.mxu1 %v8552_v22  ;;  %7251 = vmatprep.mubr.msk.f32.mxu0 %vm8267_vm0, %v8268_v1 }
 0x457   :  { %6320 = vmatprep.mubr.msk.f32.mxu1 %vm466_vm5, %v4064_v13  ;;  %8039 = vmatprep.subr.bf16.mxu1 %v8266_v0 }
 0x458   :  { %v3018_v34 = vpop.f32.mrb[224].mxu1 }
 0x459   :  { %7252 = vmatmul.mubr.msk.f32.vlgmr.msra.gmra.mrb[226].mxu0 %vm1065_vm6, %v3018_v34  ;;  %4262 = vmatmul.mubr.f32.gmra.mrb[74].mxu1 %v4063_v23  ;;  %v3020_v33 = vpop.f32.mrb[225].mxu1  ;;  %v4071_v34 = vld [vmem:[#allocation6 + $0x9d0] sm:$0xff] }
 0x45a   :  { %8041 = vmatpush1.bf16.msra.mxu1 %v8564_v42  ;;  %7254 = vmatprep.mubr.msk.f32.mxu0 %vm8267_vm0, %v8268_v1 }
 0x45b   :  { %7972 = vmatpush3.bf16.msra.mxu0 %v7971_v25  ;;  %6321 = vmatprep.mubr.msk.f32.mxu1 %vm466_vm5, %v4066_v31 }
 0x45c   :  { %v3023_v45 = vpop.f32.mrb[226].mxu1  ;;  %8042 = vmatprep.subr.bf16.mxu1 %v8266_v0  ;;  %7973 = vmatprep.subr.bf16.mxu0 %v8266_v0 }
 0x45d   :  { %7255 = vmatmul.mubr.msk.f32.gmra.mrb[228].mxu0 %vm1065_vm6, %v3023_v45  ;;  %4267 = vmatmul.mubr.f32.gmra.mrb[76].mxu1 %v4065_v41  ;;  %v3025_v51 = vpop.f32.mrb[227].mxu1  ;;  %v3764_v45 = vld [vmem:[#allocation7 + $0x170] sm:$0xff] }
 0x45e   :  { %8044 = vmatpush1.bf16.msra.mxu1 %v8576_v62  ;;  %7257 = vmatprep.mubr.msk.f32.mxu0 %vm8267_vm0, %v8268_v1 }
 0x45f   :  { %6322 = vmatprep.mubr.msk.f32.mxu1 %vm466_vm5, %v4068_v47  ;;  %8045 = vmatprep.subr.bf16.mxu1 %v8266_v0  ;;  %v3765_v47 = vld [vmem:[#allocation7 + $0x178] sm:$0xff] }
 0x460   :  { %v3028_v56 = vpop.f32.mrb[228].mxu1  ;;  %7975 = vmatpush3.bf16.msra.mxu0 %v7974_v49  ;;  %v4073_v49 = vld [vmem:[#allocation6 + $0x9e0] sm:$0xff] }
 0x461   :  { %7258 = vmatmul.mubr.msk.f32.gmra.mrb[230].mxu0 %vm1065_vm6, %v3028_v56  ;;  %4272 = vmatmul.mubr.f32.gmra.mrb[78].mxu1 %v4067_v52  ;;  %v3030_v63 = vpop.f32.mrb[229].mxu1  ;;  %v4076_v52 = vld [vmem:[#allocation6 + $0x9f8] sm:$0xff]  ;;  %v7980_v56 = vpack.c.bf16 %v3765_v47, %v3764_v45  ;;  %v4082_v47 = vld [vmem:[#allocation6 + $0xa28] sm:$0xff] }
 0x462   :  { %8047 = vmatpush1.bf16.msra.mxu1 %v8590_v20  ;;  %7260 = vmatprep.mubr.msk.f32.mxu0 %vm8267_vm0, %v8268_v1 }
 0x463   :  { %6323 = vmatprep.mubr.msk.f32.mxu1 %vm466_vm5, %v4070_v58  ;;  %8048 = vmatprep.subr.bf16.mxu1 %v8266_v0 }
 0x464   :  { %v2062_v11 = vpop.f32.mrb[126].mxu0  ;;  %v3033_v13 = vpop.f32.mrb[230].mxu1  ;;  %7976 = vmatprep.subr.bf16.mxu0 %v8266_v0 }
 0x465   :  { %v9310_v21 = vadd.f32 %v2062_v11, %v8928_v28  ;;  %7261 = vmatmul.mubr.msk.f32.gmra.mrb[232].mxu0 %vm1065_vm6, %v3033_v13  ;;  %4277 = vmatmul.mubr.f32.gmra.mrb[80].mxu1 %v4069_v7  ;;  %v7071_v23 = vpop.f32.mrb[127].mxu0  ;;  %v3035_v25 = vpop.f32.mrb[231].mxu1  ;;  %v4078_v13 = vld [vmem:[#allocation6 + $0xa08] sm:$0xff] }
 0x466   :  { %8050 = vmatpush1.bf16.msra.mxu1 %v8597_v26  ;;  %7263 = vmatprep.mubr.msk.f32.mxu0 %vm8267_vm0, %v8268_v1  ;;  %v4077_v23 = vld [vmem:[#allocation6 + $0xa00] sm:$0xff] }
 0x467   :  { %6324 = vmatprep.mubr.msk.f32.mxu1 %vm466_vm5, %v4072_v14  ;;  %8051 = vmatprep.subr.bf16.mxu1 %v8266_v0 }
 0x468   :  { %v2067_v31 = vpop.f32.mrb[128].mxu0  ;;  %v3038_v33 = vpop.f32.mrb[232].mxu1  ;;  %7978 = vmatpush3.bf16.msra.mxu0 %v7977_v17 }
 0x469   :  { %v9319_v28 = vadd.f32 %v2067_v31, %v8933_v38  ;;  %7264 = vmatmul.mubr.msk.f32.gmra.mrb[234].mxu0 %vm1065_vm6, %v3038_v33  ;;  %4282 = vmatmul.mubr.f32.gmra.mrb[82].mxu1 %v4071_v34  ;;  %v7074_v37 = vpop.f32.mrb[129].mxu0  ;;  %v3040_v41 = vpop.f32.mrb[233].mxu1  ;;  %v4080_v31 = vld [vmem:[#allocation6 + $0xa18] sm:$0xff] }
 0x46a   :  { %8053 = vmatpush1.bf16.msra.mxu1 %v8537_v59  ;;  %7266 = vmatprep.mubr.msk.f32.mxu0 %vm8267_vm0, %v8268_v1  ;;  %v4079_v37 = vld [vmem:[#allocation6 + $0xa10] sm:$0xff] }
 0x46b   :  { %6325 = vmatprep.mubr.msk.f32.mxu1 %vm466_vm5, %v4074_v36  ;;  %8054 = vmatprep.subr.bf16.mxu1 %v8266_v0 }
 0x46c   :  { %v2072_v51 = vpop.f32.mrb[130].mxu0  ;;  %v3043_v38 = vpop.f32.mrb[234].mxu1  ;;  %7979 = vmatprep.subr.bf16.mxu0 %v8266_v0 }
 0x46d   :  { %v9329_v58 = vadd.f32 %v2072_v51, %v8938_v46  ;;  %7267 = vmatmul.mubr.msk.f32.gmra.mrb[236].mxu0 %vm1065_vm6, %v3043_v38  ;;  %4287 = vmatmul.mubr.f32.gmra.mrb[84].mxu1 %v4073_v49  ;;  %v7077_v63 = vpop.f32.mrb[131].mxu0  ;;  %v3045_v3 = vpop.f32.mrb[235].mxu1  ;;  %v4081_v38 = vld [vmem:[#allocation6 + $0xa20] sm:$0xff] }
 0x46e   :  { %8056 = vmatpush1.bf16.msra.mxu1 %v8549_v15  ;;  %7269 = vmatprep.mubr.msk.f32.mxu0 %vm8267_vm0, %v8268_v1  ;;  %v4084_v63 = vld [vmem:[#allocation6 + $0xa38] sm:$0xff] }
 0x46f   :  { %6326 = vmatprep.mubr.msk.f32.mxu1 %vm466_vm5, %v4076_v52  ;;  %8057 = vmatprep.subr.bf16.mxu1 %v8266_v0 }
 0x470   :  { %v2077_v7 = vpop.f32.mrb[132].mxu0  ;;  %v3048_v11 = vpop.f32.mrb[236].mxu1  ;;  %7981 = vmatpush3.bf16.msra.mxu0 %v7980_v56 }
 0x471   :  { %v9338_v46 = vadd.f32 %v2077_v7, %v8943_v55  ;;  %7270 = vmatmul.mubr.msk.f32.gmra.mrb[238].mxu0 %vm1065_vm6, %v3048_v11  ;;  %4292 = vmatmul.mubr.f32.gmra.mrb[86].mxu1 %v4075_v6  ;;  %v7080_v14 = vpop.f32.mrb[133].mxu0  ;;  %v3050_v17 = vpop.f32.mrb[237].mxu1  ;;  %v4083_v7 = vld [vmem:[#allocation6 + $0xa30] sm:$0xff]  ;;  %v4086_v11 = vld [vmem:[#allocation6 + $0xa48] sm:$0xff] }
 0x472   :  { %8059 = vmatpush1.bf16.msra.mxu1 %v8561_v35  ;;  %7272 = vmatprep.mubr.msk.f32.mxu0 %vm8267_vm0, %v8268_v1 }
 0x473   :  { %6327 = vmatprep.mubr.msk.f32.mxu1 %vm466_vm5, %v4078_v13  ;;  %8060 = vmatprep.subr.bf16.mxu1 %v8266_v0 }
 0x474   :  { %v2082_v25 = vpop.f32.mrb[134].mxu0  ;;  %v3053_v34 = vpop.f32.mrb[238].mxu1  ;;  %8018 = vmatprep.subr.bf16.mxu0 %v8266_v0 }
 0x475   :  { %v9348_v55 = vadd.f32 %v2082_v25, %v8948_v2  ;;  %7273 = vmatmul.mubr.msk.f32.gmra.mrb[240].mxu0 %vm1065_vm6, %v3053_v34  ;;  %4297 = vmatmul.mubr.f32.gmra.mrb[88].mxu1 %v4077_v23  ;;  %v7083_v33 = vpop.f32.mrb[135].mxu0  ;;  %v3055_v36 = vpop.f32.mrb[239].mxu1  ;;  %v4085_v25 = vld [vmem:[#allocation6 + $0xa40] sm:$0xff]  ;;  %v4088_v34 = vld [vmem:[#allocation6 + $0xa58] sm:$0xff] }
 0x476   :  { %8062 = vmatpush1.bf16.msra.mxu1 %v8573_v54  ;;  %7275 = vmatprep.mubr.msk.f32.mxu0 %vm8267_vm0, %v8268_v1 }
 0x477   :  { %6328 = vmatprep.mubr.msk.f32.mxu1 %vm466_vm5, %v4080_v31  ;;  %8063 = vmatprep.subr.bf16.mxu1 %v8266_v0 }
 0x478   :  { %v2087_v41 = vpop.f32.mrb[136].mxu0  ;;  %v3058_v45 = vpop.f32.mrb[240].mxu1 }
 0x479   :  { %v9357_v2 = vadd.f32 %v2087_v41, %v8953_v10  ;;  %7276 = vmatmul.mubr.msk.f32.gmra.mrb[242].mxu0 %vm1065_vm6, %v3058_v45  ;;  %4302 = vmatmul.mubr.f32.gmra.mrb[90].mxu1 %v4079_v37  ;;  %v7086_v49 = vpop.f32.mrb[137].mxu0  ;;  %v3060_v51 = vpop.f32.mrb[241].mxu1  ;;  %v4087_v41 = vld [vmem:[#allocation6 + $0xa50] sm:$0xff]  ;;  %v4090_v45 = vld [vmem:[#allocation6 + $0xa68] sm:$0xff] }
 0x47a   :  { %8065 = vmatpush1.bf16.msra.mxu1 %v8585_v12  ;;  %7278 = vmatprep.mubr.msk.f32.mxu0 %vm8267_vm0, %v8268_v1 }
 0x47b   :  { %6329 = vmatprep.mubr.msk.f32.mxu1 %vm466_vm5, %v4082_v47  ;;  %4845 = vmatprep.subr.mxu1 %v8268_v1 }
 0x47c   :  { %v2092_v52 = vpop.f32.mrb[138].mxu0  ;;  %v3063_v56 = vpop.f32.mrb[242].mxu1 }
 0x47d   :  { %v9366_v10 = vadd.f32 %v2092_v52, %v8958_v19  ;;  %7279 = vmatmul.mubr.msk.f32.gmra.mrb[244].mxu0 %vm1065_vm6, %v3063_v56  ;;  %4307 = vmatmul.mubr.f32.gmra.mrb[92].mxu1 %v4081_v38  ;;  %v7089_v3 = vpop.f32.mrb[139].mxu0  ;;  %v3065_v6 = vpop.f32.mrb[243].mxu1  ;;  %v4089_v52 = vld [vmem:[#allocation6 + $0xa60] sm:$0xff]  ;;  %v4092_v56 = vld [vmem:[#allocation6 + $0xa78] sm:$0xff] }
 0x47e   :  { %4846 = vmatpush1.msra.mxu1 %v8619_v32  ;;  %7281 = vmatprep.mubr.msk.f32.mxu0 %vm8267_vm0, %v8268_v1 }
 0x47f   :  { %6330 = vmatprep.mubr.msk.f32.mxu1 %vm466_vm5, %v4084_v63  ;;  %8078 = vmatprep.subr.bf16.mxu1 %v8266_v0 }
 0x480   :  { %v2097_v13 = vpop.f32.mrb[140].mxu0  ;;  %v3068_v14 = vpop.f32.mrb[244].mxu1 }
 0x481   :  { %v9375_v19 = vadd.f32 %v2097_v13, %v8963_v29  ;;  %7282 = vmatmul.mubr.msk.f32.gmra.mrb[246].mxu0 %vm1065_vm6, %v3068_v14  ;;  %4312 = vmatmul.mubr.f32.gmra.mrb[94].mxu1 %v4083_v7  ;;  %v7092_v17 = vpop.f32.mrb[141].mxu0  ;;  %v3070_v23 = vpop.f32.mrb[245].mxu1  ;;  %v4094_v13 = vld [vmem:[#allocation6 + $0xa88] sm:$0xff] }
 0x482   :  { %7284 = vmatprep.mubr.msk.f32.mxu0 %vm8267_vm0, %v8268_v1  ;;  %6331 = vmatprep.mubr.msk.f32.mxu1 %vm466_vm5, %v4086_v11  ;;  %v4091_v11 = vld [vmem:[#allocation6 + $0xa70] sm:$0xff] }
 0x484   :  { %v2102_v31 = vpop.f32.mrb[142].mxu0  ;;  %v3073_v33 = vpop.f32.mrb[246].mxu1 }
 0x485   :  { %v9382_v36 = vadd.f32 %v2102_v31, %v8968_v40  ;;  %7285 = vmatmul.mubr.msk.f32.gmra.mrb[248].mxu0 %vm1065_vm6, %v3073_v33  ;;  %4317 = vmatmul.mubr.f32.gmra.mrb[96].mxu1 %v4085_v25  ;;  %v7095_v29 = vpop.f32.mrb[143].mxu0  ;;  %v3075_v37 = vpop.f32.mrb[247].mxu1  ;;  %v4096_v31 = vld [vmem:[#allocation6 + $0xa98] sm:$0xff] }
 0x486   :  { %7287 = vmatprep.mubr.msk.f32.mxu0 %vm8267_vm0, %v8268_v1  ;;  %6332 = vmatprep.mubr.msk.f32.mxu1 %vm466_vm5, %v4088_v34  ;;  %v4093_v34 = vld [vmem:[#allocation6 + $0xa80] sm:$0xff] }
 0x488   :  { %v2107_v47 = vpop.f32.mrb[144].mxu0  ;;  %v3078_v49 = vpop.f32.mrb[248].mxu1 }
 0x489   :  { %v9389_v51 = vadd.f32 %v2107_v47, %v8973_v50  ;;  %7288 = vmatmul.mubr.msk.f32.gmra.mrb[250].mxu0 %vm1065_vm6, %v3078_v49  ;;  %4322 = vmatmul.mubr.f32.gmra.mrb[98].mxu1 %v4087_v41  ;;  %v7098_v40 = vpop.f32.mrb[145].mxu0  ;;  %v3080_v38 = vpop.f32.mrb[249].mxu1  ;;  %v4098_v47 = vld [vmem:[#allocation6 + $0xaa8] sm:$0xff] }
 0x48a   :  { %7290 = vmatprep.mubr.msk.f32.mxu0 %vm8267_vm0, %v8268_v1  ;;  %6333 = vmatprep.mubr.msk.f32.mxu1 %vm466_vm5, %v4090_v45  ;;  %v4095_v45 = vld [vmem:[#allocation6 + $0xa90] sm:$0xff] }
 0x48c   :  { %v2112_v63 = vpop.f32.mrb[146].mxu0  ;;  %v3083_v3 = vpop.f32.mrb[250].mxu1 }
 0x48d   :  { %v9396_v6 = vadd.f32 %v2112_v63, %v8978_v60  ;;  %7291 = vmatmul.mubr.msk.f32.gmra.mrb[252].mxu0 %vm1065_vm6, %v3083_v3  ;;  %4327 = vmatmul.mubr.f32.gmra.mrb[100].mxu1 %v4089_v52  ;;  %v7101_v50 = vpop.f32.mrb[147].mxu0  ;;  %v3085_v7 = vpop.f32.mrb[251].mxu1  ;;  %v4100_v63 = vld [vmem:[#allocation6 + $0xab8] sm:$0xff] }
 0x48e   :  { %7293 = vmatprep.mubr.msk.f32.mxu0 %vm8267_vm0, %v8268_v1  ;;  %6334 = vmatprep.mubr.msk.f32.mxu1 %vm466_vm5, %v4092_v56  ;;  %v4097_v56 = vld [vmem:[#allocation6 + $0xaa0] sm:$0xff] }
 0x490   :  { %v2117_v14 = vpop.f32.mrb[148].mxu0  ;;  %v3088_v17 = vpop.f32.mrb[252].mxu1 }
 0x491   :  { %v9403_v23 = vadd.f32 %v2117_v14, %v8981_v8  ;;  %7294 = vmatmul.mubr.msk.f32.gmra.mrb[254].mxu0 %vm1065_vm6, %v3088_v17  ;;  %4332 = vmatmul.mubr.f32.gmra.mrb[102].mxu1 %v4091_v11  ;;  %v7104_v60 = vpop.f32.mrb[149].mxu0  ;;  %v3090_v25 = vpop.f32.mrb[253].mxu1  ;;  %v4102_v14 = vld [vmem:[#allocation6 + $0xac8] sm:$0xff] }
 0x492   :  { %7296 = vmatprep.mubr.msk.f32.mxu0 %vm8267_vm0, %v8268_v1  ;;  %6335 = vmatprep.mubr.msk.f32.mxu1 %vm466_vm5, %v4094_v13  ;;  %v4099_v13 = vld [vmem:[#allocation6 + $0xab0] sm:$0xff] }
 0x494   :  { %v2122_v33 = vpop.f32.mrb[150].mxu0  ;;  %v3093_v29 = vpop.f32.mrb[254].mxu1 }
 0x495   :  { %v9410_v37 = vadd.f32 %v2122_v33, %v8984_v18  ;;  %7297 = vmatmul.mubr.msk.f32.gmra.mrb[0].mxu0 %vm1065_vm6, %v3093_v29  ;;  %4337 = vmatmul.mubr.f32.gmra.mrb[104].mxu1 %v4093_v34  ;;  %v7107_v8 = vpop.f32.mrb[151].mxu0  ;;  %v3095_v41 = vpop.f32.mrb[255].mxu1  ;;  %v4104_v33 = vld [vmem:[#allocation6 + $0xad8] sm:$0xff] }
 0x496   :  { %7299 = vmatprep.mubr.msk.f32.mxu0 %vm8267_vm0, %v8268_v1  ;;  %6336 = vmatprep.mubr.msk.f32.mxu1 %vm466_vm5, %v4096_v31  ;;  %v4101_v31 = vld [vmem:[#allocation6 + $0xac0] sm:$0xff] }
 0x498   :  { %v2127_v49 = vpop.f32.mrb[152].mxu0  ;;  %v3098_v40 = vpop.f32.mrb[0].mxu1 }
 0x499   :  { %v9417_v38 = vadd.f32 %v2127_v49, %v8987_v30  ;;  %7300 = vmatmul.mubr.msk.f32.gmra.mrb[2].mxu0 %vm1065_vm6, %v3098_v40  ;;  %4342 = vmatmul.mubr.f32.gmra.mrb[106].mxu1 %v4095_v45  ;;  %v7110_v18 = vpop.f32.mrb[153].mxu0  ;;  %v3100_v52 = vpop.f32.mrb[1].mxu1  ;;  %v4106_v49 = vld [vmem:[#allocation6 + $0xae8] sm:$0xff] }
 0x49a   :  { %7302 = vmatprep.mubr.msk.f32.mxu0 %vm8267_vm0, %v8268_v1  ;;  %6337 = vmatprep.mubr.msk.f32.mxu1 %vm466_vm5, %v4098_v47  ;;  %v4103_v47 = vld [vmem:[#allocation6 + $0xad0] sm:$0xff] }
 0x49c   :  { %v2132_v3 = vpop.f32.mrb[154].mxu0  ;;  %v3103_v50 = vpop.f32.mrb[2].mxu1 }
 0x49d   :  { %v9424_v7 = vadd.f32 %v2132_v3, %v8990_v43  ;;  %7303 = vmatmul.mubr.msk.f32.gmra.mrb[4].mxu0 %vm1065_vm6, %v3103_v50  ;;  %4347 = vmatmul.mubr.f32.gmra.mrb[108].mxu1 %v4097_v56  ;;  %v7113_v30 = vpop.f32.mrb[155].mxu0  ;;  %v3105_v11 = vpop.f32.mrb[3].mxu1  ;;  %v4673_v3 = vld [vmem:[#allocation6 + $0xaf8] sm:$0xff] }
 0x49e   :  { %7305 = vmatprep.mubr.msk.f32.mxu0 %vm8267_vm0, %v8268_v1  ;;  %6338 = vmatprep.mubr.msk.f32.mxu1 %vm466_vm5, %v4100_v63  ;;  %v4105_v63 = vld [vmem:[#allocation6 + $0xae0] sm:$0xff] }
 0x4a0   :  { %v2137_v17 = vpop.f32.mrb[156].mxu0  ;;  %v3108_v60 = vpop.f32.mrb[4].mxu1 }
 0x4a1   :  { %v9431_v25 = vadd.f32 %v2137_v17, %v8993_v53  ;;  %7306 = vmatmul.mubr.msk.f32.gmra.mrb[6].mxu0 %vm1065_vm6, %v3108_v60  ;;  %4352 = vmatmul.mubr.f32.gmra.mrb[110].mxu1 %v4099_v13  ;;  %v7116_v43 = vpop.f32.mrb[157].mxu0  ;;  %v3110_v34 = vpop.f32.mrb[5].mxu1 }
 0x4a2   :  { %7308 = vmatprep.mubr.msk.f32.mxu0 %vm8267_vm0, %v8268_v1  ;;  %6339 = vmatprep.mubr.msk.f32.mxu1 %vm466_vm5, %v4102_v14  ;;  %v4672_v14 = vld [vmem:[#allocation6 + $0xaf0] sm:$0xff]  ;;  %v4675_v43 = vld [vmem:[#allocation6 + $0xb08] sm:$0xff] }
 0x4a4   :  { %v2142_v29 = vpop.f32.mrb[158].mxu0  ;;  %v3113_v8 = vpop.f32.mrb[6].mxu1 }
 0x4a5   :  { %v9438_v41 = vadd.f32 %v2142_v29, %v8996_v5  ;;  %7309 = vmatmul.mubr.msk.f32.gmra.mrb[8].mxu0 %vm1065_vm6, %v3113_v8  ;;  %4357 = vmatmul.mubr.f32.gmra.mrb[112].mxu1 %v4101_v31  ;;  %v7119_v53 = vpop.f32.mrb[159].mxu0  ;;  %v3115_v45 = vpop.f32.mrb[7].mxu1 }
 0x4a6   :  { %7311 = vmatprep.mubr.msk.f32.mxu0 %vm8267_vm0, %v8268_v1  ;;  %6340 = vmatprep.mubr.msk.f32.mxu1 %vm466_vm5, %v4104_v33  ;;  %v4674_v33 = vld [vmem:[#allocation6 + $0xb00] sm:$0xff]  ;;  %v4677_v53 = vld [vmem:[#allocation6 + $0xb18] sm:$0xff] }
 0x4a8   :  { %v2147_v40 = vpop.f32.mrb[160].mxu0  ;;  %v3118_v18 = vpop.f32.mrb[8].mxu1 }
 0x4a9   :  { %v9445_v52 = vadd.f32 %v2147_v40, %v8999_v16  ;;  %7312 = vmatmul.mubr.msk.f32.gmra.mrb[10].mxu0 %vm1065_vm6, %v3118_v18  ;;  %4362 = vmatmul.mubr.f32.gmra.mrb[114].mxu1 %v4103_v47  ;;  %v7122_v5 = vpop.f32.mrb[161].mxu0  ;;  %v3120_v56 = vpop.f32.mrb[9].mxu1  ;;  %v4679_v18 = vld [vmem:[#allocation6 + $0xb28] sm:$0xff] }
 0x4aa   :  { %7314 = vmatprep.mubr.msk.f32.mxu0 %vm8267_vm0, %v8268_v1  ;;  %6341 = vmatprep.mubr.msk.f32.mxu1 %vm466_vm5, %v4106_v49  ;;  %v4374_v5 = vld [vmem:[#allocation7 + $0x188] sm:$0xff] }
 0x4ac   :  { %v2152_v50 = vpop.f32.mrb[162].mxu0  ;;  %v3123_v30 = vpop.f32.mrb[10].mxu1 }
 0x4ad   :  { %v9452_v11 = vadd.f32 %v2152_v50, %v9002_v27  ;;  %7315 = vmatmul.mubr.msk.f32.gmra.mrb[12].mxu0 %vm1065_vm6, %v3123_v30  ;;  %4367 = vmatmul.mubr.f32.gmra.mrb[116].mxu1 %v4105_v63  ;;  %v7125_v16 = vpop.f32.mrb[163].mxu0  ;;  %v3125_v13 = vpop.f32.mrb[11].mxu1 }
 0x4ae   :  { %7317 = vmatprep.mubr.msk.f32.mxu0 %vm8267_vm0, %v8268_v1  ;;  %6367 = vmatprep.mubr.msk.f32.mxu1 %vm466_vm5, %v4673_v3  ;;  %v4678_v3 = vld [vmem:[#allocation6 + $0xb20] sm:$0xff] }
 0x4b0   :  { %v2157_v17 = vpop.f32.mrb[164].mxu0  ;;  %v3128_v60 = vpop.f32.mrb[12].mxu1 }
 0x4b1   :  { %v9459_v34 = vadd.f32 %v2157_v17, %v9005_v44  ;;  %7318 = vmatmul.mubr.msk.f32.gmra.mrb[14].mxu0 %vm1065_vm6, %v3128_v60  ;;  %4862 = vmatmul.mubr.f32.vlgmr.msra.gmra.mrb[118].mxu1 %v4672_v14  ;;  %v7128_v27 = vpop.f32.mrb[165].mxu0  ;;  %v3130_v31 = vpop.f32.mrb[13].mxu1  ;;  %v4375_v17 = vld [vmem:[#allocation7 + $0x190] sm:$0xff]  ;;  %v4376_v60 = vld [vmem:[#allocation7 + $0x198] sm:$0xff] }
 0x4b2   :  { %8080 = vmatpush1.bf16.msra.mxu1 %v8528_v48  ;;  %7320 = vmatprep.mubr.msk.f32.mxu0 %vm8267_vm0, %v8268_v1  ;;  %v4676_v48 = vld [vmem:[#allocation6 + $0xb10] sm:$0xff] }
 0x4b3   :  { %6368 = vmatprep.mubr.msk.f32.mxu1 %vm466_vm5, %v4675_v43  ;;  %8081 = vmatprep.subr.bf16.mxu1 %v8266_v0  ;;  %v4680_v43 = vld [vmem:[#allocation6 + $0xb30] sm:$0xff] }
 0x4b4   :  { %v2162_v29 = vpop.f32.mrb[166].mxu0  ;;  %v3133_v8 = vpop.f32.mrb[14].mxu1 }
 0x4b5   :  { %v9468_v44 = vadd.f32 %v2162_v29, %v9008_v57  ;;  %7321 = vmatmul.mubr.msk.f32.gmra.mrb[16].mxu0 %vm1065_vm6, %v3133_v8  ;;  %4867 = vmatmul.mubr.f32.gmra.mrb[120].mxu1 %v4674_v33  ;;  %v7131_v45 = vpop.f32.mrb[167].mxu0  ;;  %v3135_v47 = vpop.f32.mrb[15].mxu1  ;;  %v4373_v57 = vld [vmem:[#allocation7 + $0x180] sm:$0xff]  ;;  %v4683_v33 = vld [vmem:[#allocation6 + $0xb48] sm:$0xff]  ;;  %v8022_v29 = vpack.c.bf16 %v4376_v60, %v4375_v17  ;;  %v4379_v17 = vld [vmem:[#allocation7 + $0x1b0] sm:$0xff] }
 0x4b6   :  { %8083 = vmatpush1.bf16.msra.mxu1 %v8540_v4  ;;  %7323 = vmatprep.mubr.msk.f32.mxu0 %vm8267_vm0, %v8268_v1  ;;  %v8019_v50 = vpack.c.bf16 %v4374_v5, %v4373_v57  ;;  %v4684_v57 = vld [vmem:[#allocation6 + $0xb50] sm:$0xff]  ;;  %v4380_v60 = vld [vmem:[#allocation7 + $0x1b8] sm:$0xff] }
 0x4b7   :  { %6369 = vmatprep.mubr.msk.f32.mxu1 %vm466_vm5, %v4677_v53  ;;  %8084 = vmatprep.subr.bf16.mxu1 %v8266_v0  ;;  %v4682_v53 = vld [vmem:[#allocation6 + $0xb40] sm:$0xff] }
 0x4b8   :  { %v2167_v49 = vpop.f32.mrb[168].mxu0  ;;  %v3138_v40 = vpop.f32.mrb[16].mxu1 }
 0x4b9   :  { %v9477_v56 = vadd.f32 %v2167_v49, %v9011_v9  ;;  %7324 = vmatmul.mubr.msk.f32.gmra.mrb[18].mxu0 %vm1065_vm6, %v3138_v40  ;;  %4872 = vmatmul.mubr.f32.gmra.mrb[122].mxu1 %v4676_v48  ;;  %v7134_v4 = vpop.f32.mrb[169].mxu0  ;;  %v3140_v63 = vpop.f32.mrb[17].mxu1  ;;  %v4681_v9 = vld [vmem:[#allocation6 + $0xb38] sm:$0xff]  ;;  %v4377_v40 = vld [vmem:[#allocation7 + $0x1a0] sm:$0xff] }
 0x4ba   :  { %8086 = vmatpush1.bf16.msra.mxu1 %v8552_v22  ;;  %7342 = vmatprep.mubr.msk.f32.mxu0 %vm8267_vm0, %v8268_v1  ;;  %v4685_v48 = vld [vmem:[#allocation6 + $0xb58] sm:$0xff]  ;;  %v4687_v63 = vld [vmem:[#allocation6 + $0xb68] sm:$0xff] }
 0x4bb   :  { %6370 = vmatprep.mubr.msk.f32.mxu1 %vm466_vm5, %v4679_v18  ;;  %8087 = vmatprep.subr.bf16.mxu1 %v8266_v0  ;;  %v4378_v18 = vld [vmem:[#allocation7 + $0x1a8] sm:$0xff] }
 0x4bc   :  { %v2172_v30 = vpop.f32.mrb[170].mxu0  ;;  %v3633_v16 = vpop.f32.mrb[18].mxu1 }
 0x4bd   :  { %7343 = vmatmul.mubr.msk.f32.vlgmr.msra.gmra.mrb[20].mxu0 %vm1065_vm6, %v3633_v16  ;;  %4877 = vmatmul.mubr.f32.gmra.mrb[124].mxu1 %v4678_v3  ;;  %v7137_v13 = vpop.f32.mrb[171].mxu0  ;;  %v3635_v14 = vpop.f32.mrb[19].mxu1  ;;  %v9487_v22 = vadd.f32 %v2172_v30, %v9014_v24  ;;  %v8025_v3 = vpack.c.bf16 %v4378_v18, %v4377_v40  ;;  %v4686_v30 = vld [vmem:[#allocation6 + $0xb60] sm:$0xff]  ;;  %v4695_v18 = vld [vmem:[#allocation6 + $0xba8] sm:$0xff] }
 0x4be   :  { %8089 = vmatpush1.bf16.msra.mxu1 %v8564_v42  ;;  %7345 = vmatprep.mubr.msk.f32.mxu0 %vm8267_vm0, %v8268_v1  ;;  %v4689_v13 = vld [vmem:[#allocation6 + $0xb78] sm:$0xff] }
 0x4bf   :  { %8020 = vmatpush3.bf16.msra.mxu0 %v8019_v50  ;;  %6371 = vmatprep.mubr.msk.f32.mxu1 %vm466_vm5, %v4681_v9 }
 0x4c0   :  { %v2177_v27 = vpop.f32.mrb[172].mxu0  ;;  %v3638_v31 = vpop.f32.mrb[20].mxu1  ;;  %8090 = vmatprep.subr.bf16.mxu1 %v8266_v0  ;;  %8021 = vmatprep.subr.bf16.mxu0 %v8266_v0 }
 0x4c1   :  { %7346 = vmatmul.mubr.msk.f32.gmra.mrb[22].mxu0 %vm1065_vm6, %v3638_v31  ;;  %4882 = vmatmul.mubr.f32.gmra.mrb[126].mxu1 %v4680_v43  ;;  %v7140_v24 = vpop.f32.mrb[173].mxu0  ;;  %v3640_v42 = vpop.f32.mrb[21].mxu1  ;;  %v9497_v8 = vadd.f32 %v2177_v27, %v9019_v39  ;;  %v4688_v43 = vld [vmem:[#allocation6 + $0xb70] sm:$0xff] }
 0x4c2   :  { %8092 = vmatpush1.bf16.msra.mxu1 %v8576_v62  ;;  %7348 = vmatprep.mubr.msk.f32.mxu0 %vm8267_vm0, %v8268_v1  ;;  %v4690_v42 = vld [vmem:[#allocation6 + $0xb80] sm:$0xff] }
 0x4c3   :  { %6372 = vmatprep.mubr.msk.f32.mxu1 %vm466_vm5, %v4683_v33  ;;  %8093 = vmatprep.subr.bf16.mxu1 %v8266_v0  ;;  %v4691_v33 = vld [vmem:[#allocation6 + $0xb88] sm:$0xff] }
 0x4c4   :  { %v2182_v45 = vpop.f32.mrb[174].mxu0  ;;  %v3643_v47 = vpop.f32.mrb[22].mxu1  ;;  %8023 = vmatpush3.bf16.msra.mxu0 %v8022_v29  ;;  %v8028_v29 = vpack.c.bf16 %v4380_v60, %v4379_v17 }
 0x4c5   :  { %7349 = vmatmul.mubr.msk.f32.gmra.mrb[24].mxu0 %vm1065_vm6, %v3643_v47  ;;  %4887 = vmatmul.mubr.f32.gmra.mrb[128].mxu1 %v4682_v53  ;;  %v7143_v49 = vpop.f32.mrb[175].mxu0  ;;  %v3645_v39 = vpop.f32.mrb[23].mxu1  ;;  %v9506_v62 = vadd.f32 %v2182_v45, %v9024_v61  ;;  %v4693_v47 = vld [vmem:[#allocation6 + $0xb98] sm:$0xff] }
 0x4c6   :  { %8095 = vmatpush1.bf16.msra.mxu1 %v8590_v20  ;;  %7351 = vmatprep.mubr.msk.f32.mxu0 %vm8267_vm0, %v8268_v1 }
 0x4c7   :  { %6373 = vmatprep.mubr.msk.f32.mxu1 %vm466_vm5, %v4685_v48  ;;  %8096 = vmatprep.subr.bf16.mxu1 %v8266_v0 }
 0x4c8   :  { %v2677_v5 = vpop.f32.mrb[176].mxu0  ;;  %v3648_v4 = vpop.f32.mrb[24].mxu1  ;;  %8024 = vmatprep.subr.bf16.mxu0 %v8266_v0 }
 0x4c9   :  { %7352 = vmatmul.mubr.msk.f32.gmra.mrb[26].mxu0 %vm1065_vm6, %v3648_v4  ;;  %4892 = vmatmul.mubr.f32.gmra.mrb[130].mxu1 %v4684_v57  ;;  %v7162_v61 = vpop.f32.mrb[177].mxu0  ;;  %v3650_v50 = vpop.f32.mrb[25].mxu1  ;;  %v9516_v20 = vadd.f32 %v2677_v5, %v9310_v21  ;;  %v4694_v5 = vld [vmem:[#allocation6 + $0xba0] sm:$0xff] }
 0x4ca   :  { %8098 = vmatpush1.bf16.msra.mxu1 %v8597_v26  ;;  %7354 = vmatprep.mubr.msk.f32.mxu0 %vm8267_vm0, %v8268_v1 }
 0x4cb   :  { %6374 = vmatprep.mubr.msk.f32.mxu1 %vm466_vm5, %v4687_v63  ;;  %8099 = vmatprep.subr.bf16.mxu1 %v8266_v0 }
 0x4cc   :  { %v2682_v16 = vpop.f32.mrb[178].mxu0  ;;  %v3653_v9 = vpop.f32.mrb[26].mxu1  ;;  %8026 = vmatpush3.bf16.msra.mxu0 %v8025_v3  ;;  %v4697_v3 = vld [vmem:[#allocation6 + $0xbb8] sm:$0xff] }
 0x4cd   :  { %7355 = vmatmul.mubr.msk.f32.gmra.mrb[28].mxu0 %vm1065_vm6, %v3653_v9  ;;  %4897 = vmatmul.mubr.f32.gmra.mrb[132].mxu1 %v4686_v30  ;;  %v7165_v14 = vpop.f32.mrb[179].mxu0  ;;  %v3655_v21 = vpop.f32.mrb[27].mxu1  ;;  %v9525_v26 = vadd.f32 %v2682_v16, %v9319_v28  ;;  %v4699_v9 = vld [vmem:[#allocation6 + $0xbc8] sm:$0xff] }
 0x4ce   :  { %8101 = vmatpush1.bf16.msra.mxu1 %v8537_v59  ;;  %7357 = vmatprep.mubr.msk.f32.mxu0 %vm8267_vm0, %v8268_v1  ;;  %v4701_v21 = vld [vmem:[#allocation6 + $0xbd8] sm:$0xff] }
 0x4cf   :  { %6375 = vmatprep.mubr.msk.f32.mxu1 %vm466_vm5, %v4689_v13  ;;  %8102 = vmatprep.subr.bf16.mxu1 %v8266_v0 }
 0x4d0   :  { %v2687_v27 = vpop.f32.mrb[180].mxu0  ;;  %v3658_v31 = vpop.f32.mrb[28].mxu1  ;;  %8027 = vmatprep.subr.bf16.mxu0 %v8266_v0 }
 0x4d1   :  { %7358 = vmatmul.mubr.msk.f32.gmra.mrb[30].mxu0 %vm1065_vm6, %v3658_v31  ;;  %4902 = vmatmul.mubr.f32.gmra.mrb[134].mxu1 %v4688_v43  ;;  %v7168_v28 = vpop.f32.mrb[181].mxu0  ;;  %v3660_v24 = vpop.f32.mrb[29].mxu1  ;;  %v9535_v59 = vadd.f32 %v2687_v27, %v9329_v58 }
 0x4d2   :  { %8104 = vmatpush1.bf16.msra.mxu1 %v8549_v15  ;;  %7360 = vmatprep.mubr.msk.f32.mxu0 %vm8267_vm0, %v8268_v1  ;;  %v4692_v15 = vld [vmem:[#allocation6 + $0xb90] sm:$0xff] }
 0x4d3   :  { %6376 = vmatprep.mubr.msk.f32.mxu1 %vm466_vm5, %v4691_v33  ;;  %8105 = vmatprep.subr.bf16.mxu1 %v8266_v0 }
 0x4d4   :  { %v2692_v53 = vpop.f32.mrb[182].mxu0  ;;  %v3663_v45 = vpop.f32.mrb[30].mxu1  ;;  %8029 = vmatpush3.bf16.msra.mxu0 %v8028_v29 }
 0x4d5   :  { %7361 = vmatmul.mubr.msk.f32.gmra.mrb[32].mxu0 %vm1065_vm6, %v3663_v45  ;;  %4907 = vmatmul.mubr.f32.gmra.mrb[136].mxu1 %v4690_v42  ;;  %v7171_v48 = vpop.f32.mrb[183].mxu0  ;;  %v3665_v58 = vpop.f32.mrb[31].mxu1  ;;  %v9544_v49 = vadd.f32 %v2692_v53, %v9338_v46  ;;  %v4705_v53 = vld [vmem:[#allocation6 + $0xbf8] sm:$0xff] }
 0x4d6   :  { %8107 = vmatpush1.bf16.msra.mxu1 %v8561_v35  ;;  %7363 = vmatprep.mubr.msk.f32.mxu0 %vm8267_vm0, %v8268_v1 }
 0x4d7   :  { %6377 = vmatprep.mubr.msk.f32.mxu1 %vm466_vm5, %v4693_v47  ;;  %8108 = vmatprep.subr.bf16.mxu1 %v8266_v0 }
 0x4d8   :  { %v2697_v39 = vpop.f32.mrb[184].mxu0  ;;  %v3668_v40 = vpop.f32.mrb[32].mxu1  ;;  %8066 = vmatprep.subr.bf16.mxu0 %v8266_v0 }
 0x4d9   :  { %7364 = vmatmul.mubr.msk.f32.gmra.mrb[34].mxu0 %vm1065_vm6, %v3668_v40  ;;  %4912 = vmatmul.mubr.f32.gmra.mrb[138].mxu1 %v4692_v15  ;;  %v7174_v46 = vpop.f32.mrb[185].mxu0  ;;  %v3670_v57 = vpop.f32.mrb[33].mxu1  ;;  %v9554_v35 = vadd.f32 %v2697_v39, %v9348_v55  ;;  %v4707_v39 = vld [vmem:[#allocation6 + $0xc08] sm:$0xff] }
 0x4da   :  { %8110 = vmatpush1.bf16.msra.mxu1 %v8573_v54  ;;  %7366 = vmatprep.mubr.msk.f32.mxu0 %vm8267_vm0, %v8268_v1  ;;  %v4696_v54 = vld [vmem:[#allocation6 + $0xbb0] sm:$0xff] }
 0x4db   :  { %6378 = vmatprep.mubr.msk.f32.mxu1 %vm466_vm5, %v4695_v18  ;;  %8111 = vmatprep.subr.bf16.mxu1 %v8266_v0 }
 0x4dc   :  { %v2702_v4 = vpop.f32.mrb[186].mxu0  ;;  %v3673_v63 = vpop.f32.mrb[34].mxu1 }
 0x4dd   :  { %7367 = vmatmul.mubr.msk.f32.gmra.mrb[36].mxu0 %vm1065_vm6, %v3673_v63  ;;  %4917 = vmatmul.mubr.f32.gmra.mrb[140].mxu1 %v4694_v5  ;;  %v7177_v61 = vpop.f32.mrb[187].mxu0  ;;  %v3675_v50 = vpop.f32.mrb[35].mxu1  ;;  %v9563_v55 = vadd.f32 %v2702_v4, %v9357_v2  ;;  %v4709_v4 = vld [vmem:[#allocation6 + $0xc18] sm:$0xff] }
 0x4de   :  { %8113 = vmatpush1.bf16.msra.mxu1 %v8585_v12  ;;  %7369 = vmatprep.mubr.msk.f32.mxu0 %vm8267_vm0, %v8268_v1  ;;  %v4698_v12 = vld [vmem:[#allocation6 + $0xbc0] sm:$0xff] }
 0x4df   :  { %6379 = vmatprep.mubr.msk.f32.mxu1 %vm466_vm5, %v4697_v3  ;;  %5460 = vmatprep.subr.mxu1 %v8268_v1 }
 0x4e0   :  { %v2707_v30 = vpop.f32.mrb[188].mxu0  ;;  %v3678_v16 = vpop.f32.mrb[36].mxu1 }
 0x4e1   :  { %7370 = vmatmul.mubr.msk.f32.gmra.mrb[38].mxu0 %vm1065_vm6, %v3678_v16  ;;  %4922 = vmatmul.mubr.f32.gmra.mrb[142].mxu1 %v4696_v54  ;;  %v7180_v13 = vpop.f32.mrb[189].mxu0  ;;  %v3680_v14 = vpop.f32.mrb[37].mxu1  ;;  %v9572_v2 = vadd.f32 %v2707_v30, %v9366_v10  ;;  %v4703_v10 = vld [vmem:[#allocation6 + $0xbe8] sm:$0xff] }
 0x4e2   :  { %5461 = vmatpush1.msra.mxu1 %v8619_v32  ;;  %7372 = vmatprep.mubr.msk.f32.mxu0 %vm8267_vm0, %v8268_v1  ;;  %v4700_v32 = vld [vmem:[#allocation6 + $0xbd0] sm:$0xff]  ;;  %v4711_v30 = vld [vmem:[#allocation6 + $0xc28] sm:$0xff] }
 0x4e3   :  { %6380 = vmatprep.mubr.msk.f32.mxu1 %vm466_vm5, %v4699_v9 }
 0x4e4   :  { %v2712_v17 = vpop.f32.mrb[190].mxu0  ;;  %v3683_v60 = vpop.f32.mrb[38].mxu1 }
 0x4e5   :  { %7373 = vmatmul.mubr.msk.f32.gmra.mrb[40].mxu0 %vm1065_vm6, %v3683_v60  ;;  %4927 = vmatmul.mubr.f32.gmra.mrb[144].mxu1 %v4698_v12  ;;  %v7183_v43 = vpop.f32.mrb[191].mxu0  ;;  %v3685_v27 = vpop.f32.mrb[39].mxu1  ;;  %v9580_v31 = vadd.f32 %v2712_v17, %v9375_v19  ;;  %v4702_v19 = vld [vmem:[#allocation6 + $0xbe0] sm:$0xff] }
 0x4e6   :  { %7375 = vmatprep.mubr.msk.f32.mxu0 %vm8267_vm0, %v8268_v1  ;;  %6381 = vmatprep.mubr.msk.f32.mxu1 %vm466_vm5, %v4701_v21  ;;  %v4713_v21 = vld [vmem:[#allocation6 + $0xc38] sm:$0xff] }
 0x4e8   :  { %v2717_v33 = vpop.f32.mrb[192].mxu0  ;;  %v3688_v29 = vpop.f32.mrb[40].mxu1 }
 0x4e9   :  { %7376 = vmatmul.mubr.msk.f32.gmra.mrb[42].mxu0 %vm1065_vm6, %v3688_v29  ;;  %4932 = vmatmul.mubr.f32.gmra.mrb[146].mxu1 %v4700_v32  ;;  %v7186_v28 = vpop.f32.mrb[193].mxu0  ;;  %v3690_v24 = vpop.f32.mrb[41].mxu1  ;;  %v9587_v42 = vadd.f32 %v2717_v33, %v9382_v36  ;;  %v4704_v36 = vld [vmem:[#allocation6 + $0xbf0] sm:$0xff] }
 0x4ea   :  { %7378 = vmatprep.mubr.msk.f32.mxu0 %vm8267_vm0, %v8268_v1  ;;  %6382 = vmatprep.mubr.msk.f32.mxu1 %vm466_vm5, %v4703_v10  ;;  %v4715_v10 = vld [vmem:[#allocation6 + $0xc48] sm:$0xff] }
 0x4ec   :  { %v2722_v45 = vpop.f32.mrb[194].mxu0  ;;  %v3693_v47 = vpop.f32.mrb[42].mxu1 }
 0x4ed   :  { %7379 = vmatmul.mubr.msk.f32.gmra.mrb[44].mxu0 %vm1065_vm6, %v3693_v47  ;;  %4937 = vmatmul.mubr.f32.gmra.mrb[148].mxu1 %v4702_v19  ;;  %v7189_v48 = vpop.f32.mrb[195].mxu0  ;;  %v3695_v58 = vpop.f32.mrb[43].mxu1  ;;  %v9594_v15 = vadd.f32 %v2722_v45, %v9389_v51  ;;  %v4706_v51 = vld [vmem:[#allocation6 + $0xc00] sm:$0xff] }
 0x4ee   :  { %7381 = vmatprep.mubr.msk.f32.mxu0 %vm8267_vm0, %v8268_v1  ;;  %6383 = vmatprep.mubr.msk.f32.mxu1 %vm466_vm5, %v4705_v53  ;;  %v4717_v53 = vld [vmem:[#allocation6 + $0xc58] sm:$0xff] }
 0x4f0   :  { %v2727_v40 = vpop.f32.mrb[196].mxu0  ;;  %v3698_v18 = vpop.f32.mrb[44].mxu1 }
 0x4f1   :  { %7382 = vmatmul.mubr.msk.f32.gmra.mrb[46].mxu0 %vm1065_vm6, %v3698_v18  ;;  %4942 = vmatmul.mubr.f32.gmra.mrb[150].mxu1 %v4704_v36  ;;  %v7192_v46 = vpop.f32.mrb[197].mxu0  ;;  %v3700_v57 = vpop.f32.mrb[45].mxu1  ;;  %v9601_v5 = vadd.f32 %v2727_v40, %v9396_v6  ;;  %v4708_v6 = vld [vmem:[#allocation6 + $0xc10] sm:$0xff] }
 0x4f2   :  { %7384 = vmatprep.mubr.msk.f32.mxu0 %vm8267_vm0, %v8268_v1  ;;  %6384 = vmatprep.mubr.msk.f32.mxu1 %vm466_vm5, %v4707_v39  ;;  %v4719_v39 = vld [vmem:[#allocation6 + $0xc68] sm:$0xff] }
 0x4f4   :  { %v2732_v63 = vpop.f32.mrb[198].mxu0  ;;  %v3703_v3 = vpop.f32.mrb[46].mxu1 }
 0x4f5   :  { %7385 = vmatmul.mubr.msk.f32.gmra.mrb[48].mxu0 %vm1065_vm6, %v3703_v3  ;;  %4947 = vmatmul.mubr.f32.gmra.mrb[152].mxu1 %v4706_v51  ;;  %v7195_v61 = vpop.f32.mrb[199].mxu0  ;;  %v3705_v50 = vpop.f32.mrb[47].mxu1  ;;  %v9608_v54 = vadd.f32 %v2732_v63, %v9403_v23  ;;  %v4710_v23 = vld [vmem:[#allocation6 + $0xc20] sm:$0xff] }
 0x4f6   :  { %7387 = vmatprep.mubr.msk.f32.mxu0 %vm8267_vm0, %v8268_v1  ;;  %6385 = vmatprep.mubr.msk.f32.mxu1 %vm466_vm5, %v4709_v4  ;;  %v4721_v4 = vld [vmem:[#allocation6 + $0xc78] sm:$0xff] }
 0x4f8   :  { %v2737_v16 = vpop.f32.mrb[200].mxu0  ;;  %v3708_v9 = vpop.f32.mrb[48].mxu1 }
 0x4f9   :  { %7388 = vmatmul.mubr.msk.f32.gmra.mrb[50].mxu0 %vm1065_vm6, %v3708_v9  ;;  %4952 = vmatmul.mubr.f32.gmra.mrb[154].mxu1 %v4708_v6  ;;  %v7198_v13 = vpop.f32.mrb[201].mxu0  ;;  %v3710_v14 = vpop.f32.mrb[49].mxu1  ;;  %v9615_v12 = vadd.f32 %v2737_v16, %v9410_v37  ;;  %v4712_v37 = vld [vmem:[#allocation6 + $0xc30] sm:$0xff] }
 0x4fa   :  { %7390 = vmatprep.mubr.msk.f32.mxu0 %vm8267_vm0, %v8268_v1  ;;  %6386 = vmatprep.mubr.msk.f32.mxu1 %vm466_vm5, %v4711_v30  ;;  %v5288_v30 = vld [vmem:[#allocation6 + $0xc88] sm:$0xff] }
 0x4fc   :  { %v2742_v17 = vpop.f32.mrb[202].mxu0  ;;  %v3713_v60 = vpop.f32.mrb[50].mxu1 }
 0x4fd   :  { %7391 = vmatmul.mubr.msk.f32.gmra.mrb[52].mxu0 %vm1065_vm6, %v3713_v60  ;;  %4957 = vmatmul.mubr.f32.gmra.mrb[156].mxu1 %v4710_v23  ;;  %v7201_v43 = vpop.f32.mrb[203].mxu0  ;;  %v3715_v27 = vpop.f32.mrb[51].mxu1  ;;  %v9622_v32 = vadd.f32 %v2742_v17, %v9417_v38  ;;  %v4714_v38 = vld [vmem:[#allocation6 + $0xc40] sm:$0xff] }
 0x4fe   :  { %7393 = vmatprep.mubr.msk.f32.mxu0 %vm8267_vm0, %v8268_v1  ;;  %6387 = vmatprep.mubr.msk.f32.mxu1 %vm466_vm5, %v4713_v21  ;;  %v5290_v21 = vld [vmem:[#allocation6 + $0xc98] sm:$0xff] }
 0x500   :  { %v2747_v33 = vpop.f32.mrb[204].mxu0  ;;  %v3718_v29 = vpop.f32.mrb[52].mxu1 }
 0x501   :  { %7394 = vmatmul.mubr.msk.f32.gmra.mrb[54].mxu0 %vm1065_vm6, %v3718_v29  ;;  %4962 = vmatmul.mubr.f32.gmra.mrb[158].mxu1 %v4712_v37  ;;  %v7204_v28 = vpop.f32.mrb[205].mxu0  ;;  %v3720_v24 = vpop.f32.mrb[53].mxu1  ;;  %v9629_v19 = vadd.f32 %v2747_v33, %v9424_v7  ;;  %v4716_v7 = vld [vmem:[#allocation6 + $0xc50] sm:$0xff] }
 0x502   :  { %7396 = vmatprep.mubr.msk.f32.mxu0 %vm8267_vm0, %v8268_v1  ;;  %6388 = vmatprep.mubr.msk.f32.mxu1 %vm466_vm5, %v4715_v10  ;;  %v5292_v10 = vld [vmem:[#allocation6 + $0xca8] sm:$0xff] }
 0x504   :  { %v2752_v45 = vpop.f32.mrb[206].mxu0  ;;  %v3723_v47 = vpop.f32.mrb[54].mxu1 }
 0x505   :  { %7397 = vmatmul.mubr.msk.f32.gmra.mrb[56].mxu0 %vm1065_vm6, %v3723_v47  ;;  %4967 = vmatmul.mubr.f32.gmra.mrb[160].mxu1 %v4714_v38  ;;  %v7207_v48 = vpop.f32.mrb[207].mxu0  ;;  %v3725_v58 = vpop.f32.mrb[55].mxu1  ;;  %v9636_v36 = vadd.f32 %v2752_v45, %v9431_v25  ;;  %v4718_v25 = vld [vmem:[#allocation6 + $0xc60] sm:$0xff]  ;;  %v4988_v45 = vld [vmem:[#allocation7 + $0x1c0] sm:$0xff]  ;;  %v4989_v47 = vld [vmem:[#allocation7 + $0x1c8] sm:$0xff] }
 0x506   :  { %7399 = vmatprep.mubr.msk.f32.mxu0 %vm8267_vm0, %v8268_v1  ;;  %6389 = vmatprep.mubr.msk.f32.mxu1 %vm466_vm5, %v4717_v53  ;;  %v5294_v53 = vld [vmem:[#allocation6 + $0xcb8] sm:$0xff] }
 0x508   :  { %v2757_v40 = vpop.f32.mrb[208].mxu0  ;;  %v3728_v18 = vpop.f32.mrb[56].mxu1 }
 0x509   :  { %7400 = vmatmul.mubr.msk.f32.gmra.mrb[58].mxu0 %vm1065_vm6, %v3728_v18  ;;  %4972 = vmatmul.mubr.f32.gmra.mrb[162].mxu1 %v4716_v7  ;;  %v7210_v46 = vpop.f32.mrb[209].mxu0  ;;  %v3730_v57 = vpop.f32.mrb[57].mxu1  ;;  %v9643_v51 = vadd.f32 %v2757_v40, %v9438_v41  ;;  %v4720_v41 = vld [vmem:[#allocation6 + $0xc70] sm:$0xff]  ;;  %v8067_v18 = vpack.c.bf16 %v4989_v47, %v4988_v45 }
 0x50a   :  { %7402 = vmatprep.mubr.msk.f32.mxu0 %vm8267_vm0, %v8268_v1  ;;  %6390 = vmatprep.mubr.msk.f32.mxu1 %vm466_vm5, %v4719_v39 }
 0x50c   :  { %v2762_v63 = vpop.f32.mrb[210].mxu0  ;;  %v3733_v3 = vpop.f32.mrb[58].mxu1 }
 0x50d   :  { %7403 = vmatmul.mubr.msk.f32.gmra.mrb[60].mxu0 %vm1065_vm6, %v3733_v3  ;;  %4977 = vmatmul.mubr.f32.gmra.mrb[164].mxu1 %v4718_v25  ;;  %v7213_v61 = vpop.f32.mrb[211].mxu0  ;;  %v3735_v50 = vpop.f32.mrb[59].mxu1  ;;  %v9650_v6 = vadd.f32 %v2762_v63, %v9445_v52  ;;  %v5287_v52 = vld [vmem:[#allocation6 + $0xc80] sm:$0xff]  ;;  %v5296_v25 = vld [vmem:[#allocation6 + $0xcc8] sm:$0xff] }
 0x50e   :  { %7405 = vmatprep.mubr.msk.f32.mxu0 %vm8267_vm0, %v8268_v1  ;;  %6391 = vmatprep.mubr.msk.f32.mxu1 %vm466_vm5, %v4721_v4  ;;  %v4990_v4 = vld [vmem:[#allocation7 + $0x1d0] sm:$0xff]  ;;  %v4991_v63 = vld [vmem:[#allocation7 + $0x1d8] sm:$0xff] }
 0x50f   :  { %v5295_v50 = vld [vmem:[#allocation6 + $0xcc0] sm:$0xff] }
 0x510   :  { %v2767_v16 = vpop.f32.mrb[212].mxu0  ;;  %v3738_v9 = vpop.f32.mrb[60].mxu1 }
 0x511   :  { %7406 = vmatmul.mubr.msk.f32.gmra.mrb[62].mxu0 %vm1065_vm6, %v3738_v9  ;;  %4982 = vmatmul.mubr.f32.gmra.mrb[166].mxu1 %v4720_v41  ;;  %v7216_v13 = vpop.f32.mrb[213].mxu0  ;;  %v3740_v14 = vpop.f32.mrb[61].mxu1  ;;  %v9657_v23 = vadd.f32 %v2767_v16, %v9452_v11  ;;  %v5289_v11 = vld [vmem:[#allocation6 + $0xc90] sm:$0xff]  ;;  %v5298_v41 = vld [vmem:[#allocation6 + $0xcd8] sm:$0xff] }
 0x512   :  { %7408 = vmatprep.mubr.msk.f32.mxu0 %vm8267_vm0, %v8268_v1  ;;  %6417 = vmatprep.mubr.msk.f32.mxu1 %vm466_vm5, %v5288_v30  ;;  %v8070_v30 = vpack.c.bf16 %v4991_v63, %v4990_v4  ;;  %v4993_v13 = vld [vmem:[#allocation7 + $0x1e8] sm:$0xff] }
 0x513   :  { %v5306_v4 = vld [vmem:[#allocation6 + $0xd18] sm:$0xff] }
 0x514   :  { %v2772_v17 = vpop.f32.mrb[214].mxu0  ;;  %v3743_v60 = vpop.f32.mrb[62].mxu1 }
 0x515   :  { %7409 = vmatmul.mubr.msk.f32.gmra.mrb[64].mxu0 %vm1065_vm6, %v3743_v60  ;;  %5477 = vmatmul.mubr.f32.vlgmr.msra.gmra.mrb[168].mxu1 %v5287_v52  ;;  %v7219_v43 = vpop.f32.mrb[215].mxu0  ;;  %v3745_v27 = vpop.f32.mrb[63].mxu1  ;;  %v9664_v37 = vadd.f32 %v2772_v17, %v9459_v34  ;;  %v5291_v34 = vld [vmem:[#allocation6 + $0xca0] sm:$0xff]  ;;  %v5297_v17 = vld [vmem:[#allocation6 + $0xcd0] sm:$0xff]  ;;  %v5300_v60 = vld [vmem:[#allocation6 + $0xce8] sm:$0xff] }
 0x516   :  { %7411 = vmatprep.mubr.msk.f32.mxu0 %vm8267_vm0, %v8268_v1  ;;  %6418 = vmatprep.mubr.msk.f32.mxu1 %vm466_vm5, %v5290_v21 }
 0x518   :  { %v2777_v33 = vpop.f32.mrb[216].mxu0  ;;  %v3748_v29 = vpop.f32.mrb[64].mxu1 }
 0x519   :  { %7412 = vmatmul.mubr.msk.f32.gmra.mrb[66].mxu0 %vm1065_vm6, %v3748_v29  ;;  %5482 = vmatmul.mubr.f32.gmra.mrb[170].mxu1 %v5289_v11  ;;  %v7222_v28 = vpop.f32.mrb[217].mxu0  ;;  %v3750_v24 = vpop.f32.mrb[65].mxu1  ;;  %v9671_v38 = vadd.f32 %v2777_v33, %v9468_v44  ;;  %v5293_v44 = vld [vmem:[#allocation6 + $0xcb0] sm:$0xff] }
 0x51a   :  { %7414 = vmatprep.mubr.msk.f32.mxu0 %vm8267_vm0, %v8268_v1  ;;  %6419 = vmatprep.mubr.msk.f32.mxu1 %vm466_vm5, %v5292_v10  ;;  %v4995_v10 = vld [vmem:[#allocation7 + $0x1f8] sm:$0xff]  ;;  %v5299_v24 = vld [vmem:[#allocation6 + $0xce0] sm:$0xff] }
 0x51c   :  { %v2782_v48 = vpop.f32.mrb[218].mxu0  ;;  %v3753_v58 = vpop.f32.mrb[66].mxu1 }
 0x51d   :  { %7415 = vmatmul.mubr.msk.f32.gmra.mrb[68].mxu0 %vm1065_vm6, %v3753_v58  ;;  %5487 = vmatmul.mubr.f32.gmra.mrb[172].mxu1 %v5291_v34  ;;  %v7225_v7 = vpop.f32.mrb[219].mxu0  ;;  %v3755_v39 = vpop.f32.mrb[67].mxu1  ;;  %v9678_v40 = vadd.f32 %v2782_v48, %v9477_v56  ;;  %v5302_v34 = vld [vmem:[#allocation6 + $0xcf8] sm:$0xff] }
 0x51e   :  { %7433 = vmatprep.mubr.msk.f32.mxu0 %vm8267_vm0, %v8268_v1  ;;  %6420 = vmatprep.mubr.msk.f32.mxu1 %vm466_vm5, %v5294_v53  ;;  %v5301_v7 = vld [vmem:[#allocation6 + $0xcf0] sm:$0xff]  ;;  %v5304_v39 = vld [vmem:[#allocation6 + $0xd08] sm:$0xff] }
 0x520   :  { %v2787_v46 = vpop.f32.mrb[220].mxu0  ;;  %v4248_v57 = vpop.f32.mrb[68].mxu1 }
 0x521   :  { %v9684_v3 = vadd.f32 %v2787_v46, %v9487_v22  ;;  %7434 = vmatmul.mubr.msk.f32.vlgmr.msra.gmra.mrb[70].mxu0 %vm1065_vm6, %v4248_v57  ;;  %5492 = vmatmul.mubr.f32.gmra.mrb[174].mxu1 %v5293_v44  ;;  %v7228_v56 = vpop.f32.mrb[221].mxu0  ;;  %v4250_v61 = vpop.f32.mrb[69].mxu1  ;;  %v4992_v22 = vld [vmem:[#allocation7 + $0x1e0] sm:$0xff] }
 0x522   :  { %7436 = vmatprep.mubr.msk.f32.mxu0 %vm8267_vm0, %v8268_v1  ;;  %8068 = vmatpush3.bf16.msra.mxu0 %v8067_v18  ;;  %v8073_v43 = vpack.c.bf16 %v4993_v13, %v4992_v22 }
 0x523   :  { %6421 = vmatprep.mubr.msk.f32.mxu1 %vm466_vm5, %v5296_v25  ;;  %8069 = vmatprep.subr.bf16.mxu0 %v8266_v0  ;;  %v5303_v25 = vld [vmem:[#allocation6 + $0xd00] sm:$0xff] }
 0x524   :  { %v2792_v16 = vpop.f32.mrb[222].mxu0  ;;  %v4253_v9 = vpop.f32.mrb[70].mxu1 }
 0x525   :  { %v9692_v14 = vadd.f32 %v2792_v16, %v9497_v8  ;;  %7437 = vmatmul.mubr.msk.f32.gmra.mrb[72].mxu0 %vm1065_vm6, %v4253_v9  ;;  %5497 = vmatmul.mubr.f32.gmra.mrb[176].mxu1 %v5295_v50  ;;  %v7231_v52 = vpop.f32.mrb[223].mxu0  ;;  %v4255_v21 = vpop.f32.mrb[71].mxu1  ;;  %v4994_v8 = vld [vmem:[#allocation7 + $0x1f0] sm:$0xff] }
 0x526   :  { %7439 = vmatprep.mubr.msk.f32.mxu0 %vm8267_vm0, %v8268_v1  ;;  %6422 = vmatprep.mubr.msk.f32.mxu1 %vm466_vm5, %v5298_v41  ;;  %v8076_v53 = vpack.c.bf16 %v4995_v10, %v4994_v8  ;;  %v5305_v41 = vld [vmem:[#allocation6 + $0xd10] sm:$0xff]  ;;  %v5307_v52 = vld [vmem:[#allocation6 + $0xd20] sm:$0xff]  ;;  %v5310_v21 = vld [vmem:[#allocation6 + $0xd38] sm:$0xff] }
 0x527   :  { %8071 = vmatpush3.bf16.msra.mxu0 %v8070_v30  ;;  %v5308_v30 = vld [vmem:[#allocation6 + $0xd28] sm:$0xff] }
 0x528   :  { %v2797_v27 = vpop.f32.mrb[224].mxu0  ;;  %v4258_v11 = vpop.f32.mrb[72].mxu1  ;;  %8072 = vmatprep.subr.bf16.mxu0 %v8266_v0  ;;  %v5312_v8 = vld [vmem:[#allocation6 + $0xd48] sm:$0xff] }
 0x529   :  { %v9700_v33 = vadd.f32 %v2797_v27, %v9506_v62  ;;  %7440 = vmatmul.mubr.msk.f32.gmra.mrb[74].mxu0 %vm1065_vm6, %v4258_v11  ;;  %5502 = vmatmul.mubr.f32.gmra.mrb[178].mxu1 %v5297_v17  ;;  %v7234_v29 = vpop.f32.mrb[225].mxu0  ;;  %v4260_v28 = vpop.f32.mrb[73].mxu1  ;;  %v5309_v11 = vld [vmem:[#allocation6 + $0xd30] sm:$0xff] }
 0x52a   :  { %7442 = vmatprep.mubr.msk.f32.mxu0 %vm8267_vm0, %v8268_v1  ;;  %6423 = vmatprep.mubr.msk.f32.mxu1 %vm466_vm5, %v5300_v60 }
 0x52b   :  { %8074 = vmatpush3.bf16.msra.mxu0 %v8073_v43 }
 0x52c   :  { %v3292_v45 = vpop.f32.mrb[226].mxu0  ;;  %v4263_v47 = vpop.f32.mrb[74].mxu1  ;;  %8075 = vmatprep.subr.bf16.mxu0 %v8266_v0 }
 0x52d   :  { %v9708_v62 = vadd.f32 %v3292_v45, %v9516_v20  ;;  %7443 = vmatmul.mubr.msk.f32.gmra.mrb[76].mxu0 %vm1065_vm6, %v4263_v47  ;;  %5507 = vmatmul.mubr.f32.gmra.mrb[180].mxu1 %v5299_v24  ;;  %v7253_v48 = vpop.f32.mrb[227].mxu0  ;;  %v4265_v58 = vpop.f32.mrb[75].mxu1 }
 0x52e   :  { %7445 = vmatprep.mubr.msk.f32.mxu0 %vm8267_vm0, %v8268_v1  ;;  %6424 = vmatprep.mubr.msk.f32.mxu1 %vm466_vm5, %v5302_v34  ;;  %v5311_v34 = vld [vmem:[#allocation6 + $0xd40] sm:$0xff] }
 0x52f   :  { %8077 = vmatpush3.bf16.msra.mxu0 %v8076_v53  ;;  %v5314_v53 = vld [vmem:[#allocation6 + $0xd58] sm:$0xff] }
 0x530   :  { %v3297_v44 = vpop.f32.mrb[228].mxu0  ;;  %v4268_v18 = vpop.f32.mrb[76].mxu1  ;;  %8114 = vmatprep.subr.bf16.mxu0 %v8266_v0 }
 0x531   :  { %v9716_v20 = vadd.f32 %v3297_v44, %v9525_v26  ;;  %7446 = vmatmul.mubr.msk.f32.gmra.mrb[78].mxu0 %vm1065_vm6, %v4268_v18  ;;  %5512 = vmatmul.mubr.f32.gmra.mrb[182].mxu1 %v5301_v7  ;;  %v7256_v46 = vpop.f32.mrb[229].mxu0  ;;  %v4270_v57 = vpop.f32.mrb[77].mxu1  ;;  %v5313_v7 = vld [vmem:[#allocation6 + $0xd50] sm:$0xff] }
 0x532   :  { %7448 = vmatprep.mubr.msk.f32.mxu0 %vm8267_vm0, %v8268_v1  ;;  %6425 = vmatprep.mubr.msk.f32.mxu1 %vm466_vm5, %v5304_v39  ;;  %v5316_v39 = vld [vmem:[#allocation6 + $0xd68] sm:$0xff] }
 0x534   :  { %v3302_v63 = vpop.f32.mrb[230].mxu0  ;;  %v4273_v56 = vpop.f32.mrb[78].mxu1 }
 0x535   :  { %v9723_v61 = vadd.f32 %v3302_v63, %v9535_v59  ;;  %7449 = vmatmul.mubr.msk.f32.gmra.mrb[80].mxu0 %vm1065_vm6, %v4273_v56  ;;  %5517 = vmatmul.mubr.f32.gmra.mrb[184].mxu1 %v5303_v25  ;;  %v7259_v26 = vpop.f32.mrb[231].mxu0  ;;  %v4275_v50 = vpop.f32.mrb[79].mxu1  ;;  %v5315_v25 = vld [vmem:[#allocation6 + $0xd60] sm:$0xff] }
 0x536   :  { %7451 = vmatprep.mubr.msk.f32.mxu0 %vm8267_vm0, %v8268_v1  ;;  %6426 = vmatprep.mubr.msk.f32.mxu1 %vm466_vm5, %v5306_v4  ;;  %v5318_v4 = vld [vmem:[#allocation6 + $0xd78] sm:$0xff] }
 0x538   :  { %v3307_v16 = vpop.f32.mrb[232].mxu0  ;;  %v4278_v9 = vpop.f32.mrb[80].mxu1 }
 0x539   :  { %v9730_v22 = vadd.f32 %v3307_v16, %v9544_v49  ;;  %7452 = vmatmul.mubr.msk.f32.gmra.mrb[82].mxu0 %vm1065_vm6, %v4278_v9  ;;  %5522 = vmatmul.mubr.f32.gmra.mrb[186].mxu1 %v5305_v41  ;;  %v7262_v59 = vpop.f32.mrb[233].mxu0  ;;  %v4280_v13 = vpop.f32.mrb[81].mxu1  ;;  %v5317_v41 = vld [vmem:[#allocation6 + $0xd70] sm:$0xff] }
 0x53a   :  { %7454 = vmatprep.mubr.msk.f32.mxu0 %vm8267_vm0, %v8268_v1  ;;  %6427 = vmatprep.mubr.msk.f32.mxu1 %vm466_vm5, %v5308_v30  ;;  %v5320_v30 = vld [vmem:[#allocation6 + $0xd88] sm:$0xff] }
 0x53c   :  { %v3312_v17 = vpop.f32.mrb[234].mxu0  ;;  %v4283_v60 = vpop.f32.mrb[82].mxu1 }
 0x53d   :  { %v9737_v43 = vadd.f32 %v3312_v17, %v9554_v35  ;;  %7455 = vmatmul.mubr.msk.f32.gmra.mrb[84].mxu0 %vm1065_vm6, %v4283_v60  ;;  %5527 = vmatmul.mubr.f32.gmra.mrb[188].mxu1 %v5307_v52  ;;  %v7265_v49 = vpop.f32.mrb[235].mxu0  ;;  %v4285_v27 = vpop.f32.mrb[83].mxu1  ;;  %v5319_v52 = vld [vmem:[#allocation6 + $0xd80] sm:$0xff] }
 0x53e   :  { %7457 = vmatprep.mubr.msk.f32.mxu0 %vm8267_vm0, %v8268_v1  ;;  %6428 = vmatprep.mubr.msk.f32.mxu1 %vm466_vm5, %v5310_v21  ;;  %v5322_v21 = vld [vmem:[#allocation6 + $0xd98] sm:$0xff] }
 0x540   :  { %v3317_v10 = vpop.f32.mrb[236].mxu0  ;;  %v4288_v29 = vpop.f32.mrb[84].mxu1 }
 0x541   :  { %v9744_v28 = vadd.f32 %v3317_v10, %v9563_v55  ;;  %7458 = vmatmul.mubr.msk.f32.gmra.mrb[86].mxu0 %vm1065_vm6, %v4288_v29  ;;  %5532 = vmatmul.mubr.f32.gmra.mrb[190].mxu1 %v5309_v11  ;;  %v7268_v35 = vpop.f32.mrb[237].mxu0  ;;  %v4290_v24 = vpop.f32.mrb[85].mxu1  ;;  %v5321_v11 = vld [vmem:[#allocation6 + $0xd90] sm:$0xff] }
 0x542   :  { %7460 = vmatprep.mubr.msk.f32.mxu0 %vm8267_vm0, %v8268_v1  ;;  %6429 = vmatprep.mubr.msk.f32.mxu1 %vm466_vm5, %v5312_v8  ;;  %v5324_v8 = vld [vmem:[#allocation6 + $0xda8] sm:$0xff] }
 0x544   :  { %v3322_v45 = vpop.f32.mrb[238].mxu0  ;;  %v4293_v47 = vpop.f32.mrb[86].mxu1 }
 0x545   :  { %v9751_v48 = vadd.f32 %v3322_v45, %v9572_v2  ;;  %7461 = vmatmul.mubr.msk.f32.gmra.mrb[88].mxu0 %vm1065_vm6, %v4293_v47  ;;  %5537 = vmatmul.mubr.f32.gmra.mrb[192].mxu1 %v5311_v34  ;;  %v7271_v55 = vpop.f32.mrb[239].mxu0  ;;  %v4295_v58 = vpop.f32.mrb[87].mxu1  ;;  %v5323_v34 = vld [vmem:[#allocation6 + $0xda0] sm:$0xff] }
 0x546   :  { %7463 = vmatprep.mubr.msk.f32.mxu0 %vm8267_vm0, %v8268_v1  ;;  %6430 = vmatprep.mubr.msk.f32.mxu1 %vm466_vm5, %v5314_v53  ;;  %v5326_v53 = vld [vmem:[#allocation6 + $0xdb8] sm:$0xff] }
 0x548   :  { %v3327_v44 = vpop.f32.mrb[240].mxu0  ;;  %v4298_v18 = vpop.f32.mrb[88].mxu1 }
 0x549   :  { %v9758_v46 = vadd.f32 %v3327_v44, %v9580_v31  ;;  %7464 = vmatmul.mubr.msk.f32.gmra.mrb[90].mxu0 %vm1065_vm6, %v4298_v18  ;;  %5542 = vmatmul.mubr.f32.gmra.mrb[194].mxu1 %v5313_v7  ;;  %v7274_v2 = vpop.f32.mrb[241].mxu0  ;;  %v4300_v57 = vpop.f32.mrb[89].mxu1  ;;  %v5325_v7 = vld [vmem:[#allocation6 + $0xdb0] sm:$0xff] }
 0x54a   :  { %7466 = vmatprep.mubr.msk.f32.mxu0 %vm8267_vm0, %v8268_v1  ;;  %6431 = vmatprep.mubr.msk.f32.mxu1 %vm466_vm5, %v5316_v39  ;;  %v5328_v39 = vld [vmem:[#allocation6 + $0xdc8] sm:$0xff] }
 0x54c   :  { %v3332_v63 = vpop.f32.mrb[242].mxu0  ;;  %v4303_v56 = vpop.f32.mrb[90].mxu1 }
 0x54d   :  { %v9765_v26 = vadd.f32 %v3332_v63, %v9587_v42  ;;  %7467 = vmatmul.mubr.msk.f32.gmra.mrb[92].mxu0 %vm1065_vm6, %v4303_v56  ;;  %5547 = vmatmul.mubr.f32.gmra.mrb[196].mxu1 %v5315_v25  ;;  %v7277_v31 = vpop.f32.mrb[243].mxu0  ;;  %v4305_v50 = vpop.f32.mrb[91].mxu1  ;;  %v5327_v25 = vld [vmem:[#allocation6 + $0xdc0] sm:$0xff] }
 0x54e   :  { %7469 = vmatprep.mubr.msk.f32.mxu0 %vm8267_vm0, %v8268_v1  ;;  %6432 = vmatprep.mubr.msk.f32.mxu1 %vm466_vm5, %v5318_v4  ;;  %v5330_v4 = vld [vmem:[#allocation6 + $0xdd8] sm:$0xff] }
 0x550   :  { %v3337_v16 = vpop.f32.mrb[244].mxu0  ;;  %v4308_v9 = vpop.f32.mrb[92].mxu1 }
 0x551   :  { %v9772_v59 = vadd.f32 %v3337_v16, %v9594_v15  ;;  %7470 = vmatmul.mubr.msk.f32.gmra.mrb[94].mxu0 %vm1065_vm6, %v4308_v9  ;;  %5552 = vmatmul.mubr.f32.gmra.mrb[198].mxu1 %v5317_v41  ;;  %v7280_v42 = vpop.f32.mrb[245].mxu0  ;;  %v4310_v13 = vpop.f32.mrb[93].mxu1  ;;  %v5329_v41 = vld [vmem:[#allocation6 + $0xdd0] sm:$0xff] }
 0x552   :  { %7472 = vmatprep.mubr.msk.f32.mxu0 %vm8267_vm0, %v8268_v1  ;;  %6433 = vmatprep.mubr.msk.f32.mxu1 %vm466_vm5, %v5320_v30  ;;  %v5332_v30 = vld [vmem:[#allocation6 + $0xde8] sm:$0xff] }
 0x554   :  { %v3342_v17 = vpop.f32.mrb[246].mxu0  ;;  %v4313_v60 = vpop.f32.mrb[94].mxu1 }
 0x555   :  { %v9779_v49 = vadd.f32 %v3342_v17, %v9601_v5  ;;  %7473 = vmatmul.mubr.msk.f32.gmra.mrb[96].mxu0 %vm1065_vm6, %v4313_v60  ;;  %5557 = vmatmul.mubr.f32.gmra.mrb[200].mxu1 %v5319_v52  ;;  %v7283_v15 = vpop.f32.mrb[247].mxu0  ;;  %v4315_v27 = vpop.f32.mrb[95].mxu1  ;;  %v5331_v52 = vld [vmem:[#allocation6 + $0xde0] sm:$0xff] }
 0x556   :  { %7475 = vmatprep.mubr.msk.f32.mxu0 %vm8267_vm0, %v8268_v1  ;;  %6434 = vmatprep.mubr.msk.f32.mxu1 %vm466_vm5, %v5322_v21  ;;  %v5334_v21 = vld [vmem:[#allocation6 + $0xdf8] sm:$0xff] }
 0x558   :  { %v3347_v10 = vpop.f32.mrb[248].mxu0  ;;  %v4318_v29 = vpop.f32.mrb[96].mxu1 }
 0x559   :  { %v9786_v35 = vadd.f32 %v3347_v10, %v9608_v54  ;;  %7476 = vmatmul.mubr.msk.f32.gmra.mrb[98].mxu0 %vm1065_vm6, %v4318_v29  ;;  %5562 = vmatmul.mubr.f32.gmra.mrb[202].mxu1 %v5321_v11  ;;  %v7286_v5 = vpop.f32.mrb[249].mxu0  ;;  %v4320_v24 = vpop.f32.mrb[97].mxu1  ;;  %v5333_v11 = vld [vmem:[#allocation6 + $0xdf0] sm:$0xff] }
 0x55a   :  { %7478 = vmatprep.mubr.msk.f32.mxu0 %vm8267_vm0, %v8268_v1  ;;  %6435 = vmatprep.mubr.msk.f32.mxu1 %vm466_vm5, %v5324_v8  ;;  %v5336_v8 = vld [vmem:[#allocation6 + $0xe08] sm:$0xff] }
 0x55c   :  { %v3352_v45 = vpop.f32.mrb[250].mxu0  ;;  %v4323_v47 = vpop.f32.mrb[98].mxu1 }
 0x55d   :  { %v9793_v55 = vadd.f32 %v3352_v45, %v9615_v12  ;;  %7479 = vmatmul.mubr.msk.f32.gmra.mrb[100].mxu0 %vm1065_vm6, %v4323_v47  ;;  %5567 = vmatmul.mubr.f32.gmra.mrb[204].mxu1 %v5323_v34  ;;  %v7289_v54 = vpop.f32.mrb[251].mxu0  ;;  %v4325_v58 = vpop.f32.mrb[99].mxu1  ;;  %v5335_v34 = vld [vmem:[#allocation6 + $0xe00] sm:$0xff] }
 0x55e   :  { %7481 = vmatprep.mubr.msk.f32.mxu0 %vm8267_vm0, %v8268_v1  ;;  %6436 = vmatprep.mubr.msk.f32.mxu1 %vm466_vm5, %v5326_v53 }
 0x560   :  { %v3357_v44 = vpop.f32.mrb[252].mxu0  ;;  %v4328_v18 = vpop.f32.mrb[100].mxu1 }
 0x561   :  { %v9800_v2 = vadd.f32 %v3357_v44, %v9622_v32  ;;  %7482 = vmatmul.mubr.msk.f32.gmra.mrb[102].mxu0 %vm1065_vm6, %v4328_v18  ;;  %5572 = vmatmul.mubr.f32.gmra.mrb[206].mxu1 %v5325_v7  ;;  %v7292_v12 = vpop.f32.mrb[253].mxu0  ;;  %v4330_v57 = vpop.f32.mrb[101].mxu1 }
 0x562   :  { %7484 = vmatprep.mubr.msk.f32.mxu0 %vm8267_vm0, %v8268_v1  ;;  %6437 = vmatprep.mubr.msk.f32.mxu1 %vm466_vm5, %v5328_v39 }
 0x564   :  { %v3362_v63 = vpop.f32.mrb[254].mxu0  ;;  %v4333_v56 = vpop.f32.mrb[102].mxu1 }
 0x565   :  { %v9807_v31 = vadd.f32 %v3362_v63, %v9629_v19  ;;  %7485 = vmatmul.mubr.msk.f32.gmra.mrb[104].mxu0 %vm1065_vm6, %v4333_v56  ;;  %5577 = vmatmul.mubr.f32.gmra.mrb[208].mxu1 %v5327_v25  ;;  %v7295_v32 = vpop.f32.mrb[255].mxu0  ;;  %v4335_v50 = vpop.f32.mrb[103].mxu1  ;;  %v5604_v63 = vld [vmem:[#allocation7 + $0x208] sm:$0xff] }
 0x566   :  { %7487 = vmatprep.mubr.msk.f32.mxu0 %vm8267_vm0, %v8268_v1  ;;  %6438 = vmatprep.mubr.msk.f32.mxu1 %vm466_vm5, %v5330_v4 }
 0x568   :  { %v3367_v16 = vpop.f32.mrb[0].mxu0  ;;  %v4338_v9 = vpop.f32.mrb[104].mxu1 }
 0x569   :  { %v9814_v42 = vadd.f32 %v3367_v16, %v9636_v36  ;;  %7488 = vmatmul.mubr.msk.f32.gmra.mrb[106].mxu0 %vm1065_vm6, %v4338_v9  ;;  %5582 = vmatmul.mubr.f32.gmra.mrb[210].mxu1 %v5329_v41  ;;  %v7298_v19 = vpop.f32.mrb[1].mxu0  ;;  %v4340_v13 = vpop.f32.mrb[105].mxu1  ;;  %v5605_v16 = vld [vmem:[#allocation7 + $0x210] sm:$0xff]  ;;  %v5606_v9 = vld [vmem:[#allocation7 + $0x218] sm:$0xff] }
 0x56a   :  { %7490 = vmatprep.mubr.msk.f32.mxu0 %vm8267_vm0, %v8268_v1  ;;  %6439 = vmatprep.mubr.msk.f32.mxu1 %vm466_vm5, %v5332_v30 }
 0x56c   :  { %v3372_v17 = vpop.f32.mrb[2].mxu0  ;;  %v4343_v60 = vpop.f32.mrb[106].mxu1 }
 0x56d   :  { %v9821_v15 = vadd.f32 %v3372_v17, %v9643_v51  ;;  %7491 = vmatmul.mubr.msk.f32.gmra.mrb[108].mxu0 %vm1065_vm6, %v4343_v60  ;;  %5587 = vmatmul.mubr.f32.gmra.mrb[212].mxu1 %v5331_v52  ;;  %v7301_v36 = vpop.f32.mrb[3].mxu0  ;;  %v4345_v27 = vpop.f32.mrb[107].mxu1  ;;  %v8118_v17 = vpack.c.bf16 %v5606_v9, %v5605_v16  ;;  %v5607_v60 = vld [vmem:[#allocation7 + $0x220] sm:$0xff] }
 0x56e   :  { %7493 = vmatprep.mubr.msk.f32.mxu0 %vm8267_vm0, %v8268_v1  ;;  %6440 = vmatprep.mubr.msk.f32.mxu1 %vm466_vm5, %v5334_v21  ;;  %v5608_v36 = vld [vmem:[#allocation7 + $0x228] sm:$0xff] }
 0x570   :  { %v3377_v10 = vpop.f32.mrb[4].mxu0  ;;  %v4348_v29 = vpop.f32.mrb[108].mxu1 }
 0x571   :  { %v9828_v5 = vadd.f32 %v3377_v10, %v9650_v6  ;;  %7494 = vmatmul.mubr.msk.f32.gmra.mrb[110].mxu0 %vm1065_vm6, %v4348_v29  ;;  %5592 = vmatmul.mubr.f32.gmra.mrb[214].mxu1 %v5333_v11  ;;  %v7304_v51 = vpop.f32.mrb[5].mxu0  ;;  %v4350_v24 = vpop.f32.mrb[109].mxu1  ;;  %v8121_v29 = vpack.c.bf16 %v5608_v36, %v5607_v60 }
 0x572   :  { %7496 = vmatprep.mubr.msk.f32.mxu0 %vm8267_vm0, %v8268_v1  ;;  %6441 = vmatprep.mubr.msk.f32.mxu1 %vm466_vm5, %v5336_v8  ;;  %v5609_v51 = vld [vmem:[#allocation7 + $0x230] sm:$0xff]  ;;  %v5610_v24 = vld [vmem:[#allocation7 + $0x238] sm:$0xff] }
 0x574   :  { %v3382_v53 = vpop.f32.mrb[6].mxu0  ;;  %v4353_v45 = vpop.f32.mrb[110].mxu1 }
 0x575   :  { %v9835_v47 = vadd.f32 %v3382_v53, %v9657_v23  ;;  %7497 = vmatmul.mubr.msk.f32.gmra.mrb[112].mxu0 %vm1065_vm6, %v4353_v45  ;;  %5597 = vmatmul.mubr.f32.gmra.mrb[216].mxu1 %v5335_v34  ;;  %v7307_v6 = vpop.f32.mrb[7].mxu0  ;;  %v4355_v54 = vpop.f32.mrb[111].mxu1 }
 0x576   :  { %7499 = vmatprep.mubr.msk.f32.mxu0 %vm8267_vm0, %v8268_v1  ;;  %v8124_v54 = vpack.c.bf16 %v5610_v24, %v5609_v51 }
 0x578   :  { %v3387_v58 = vpop.f32.mrb[8].mxu0  ;;  %v4358_v7 = vpop.f32.mrb[112].mxu1 }
 0x579   :  { %v9841_v39 = vadd.f32 %v3387_v58, %v9664_v37  ;;  %7500 = vmatmul.mubr.msk.f32.gmra.mrb[114].mxu0 %vm1065_vm6, %v4358_v7  ;;  %v7310_v44 = vpop.f32.mrb[9].mxu0  ;;  %v4360_v18 = vpop.f32.mrb[113].mxu1  ;;  %v5603_v37 = vld [vmem:[#allocation7 + $0x200] sm:$0xff] }
 0x57a   :  { %7502 = vmatprep.mubr.msk.f32.mxu0 %vm8267_vm0, %v8268_v1 }
 0x57c   :  { %v3392_v23 = vpop.f32.mrb[10].mxu0  ;;  %v4363_v12 = vpop.f32.mrb[114].mxu1 }
 0x57d   :  { %v9847_v57 = vadd.f32 %v3392_v23, %v9671_v38  ;;  %7503 = vmatmul.mubr.msk.f32.gmra.mrb[116].mxu0 %vm1065_vm6, %v4363_v12  ;;  %v7313_v25 = vpop.f32.mrb[11].mxu0  ;;  %v4365_v4 = vpop.f32.mrb[115].mxu1  ;;  %v8115_v38 = vpack.c.bf16 %v5604_v63, %v5603_v37 }
 0x57e   :  { %7505 = vmatprep.mubr.msk.f32.mxu0 %vm8267_vm0, %v8268_v1 }
 0x580   :  { %v3397_v56 = vpop.f32.mrb[12].mxu0  ;;  %v4368_v32 = vpop.f32.mrb[116].mxu1 }
 0x581   :  { %v9853_v50 = vadd.f32 %v3397_v56, %v9678_v40  ;;  %7506 = vmatmul.mubr.msk.f32.gmra.mrb[118].mxu0 %vm1065_vm6, %v4368_v32  ;;  %v7316_v41 = vpop.f32.mrb[13].mxu0  ;;  %v4370_v30 = vpop.f32.mrb[117].mxu1 }
 0x582   :  { %7524 = vmatprep.mubr.msk.f32.mxu0 %vm8267_vm0, %v8268_v1 }
 0x584   :  { %v3402_v19 = vpop.f32.mrb[14].mxu0  ;;  %v4863_v13 = vpop.f32.mrb[118].mxu1 }
 0x585   :  { %v9859_v52 = vadd.f32 %v3402_v19, %v9684_v3  ;;  %7525 = vmatmul.mubr.msk.f32.vlgmr.msra.gmra.mrb[120].mxu0 %vm1065_vm6, %v4863_v13  ;;  %v7319_v21 = vpop.f32.mrb[15].mxu0  ;;  %v4865_v40 = vpop.f32.mrb[119].mxu1 }
 0x586   :  { %7527 = vmatprep.mubr.msk.f32.mxu0 %vm8267_vm0, %v8268_v1  ;;  %8116 = vmatpush3.bf16.msra.mxu0 %v8115_v38 }
 0x587   :  { %8117 = vmatprep.subr.bf16.mxu0 %v8266_v0 }
 0x588   :  { %v3407_v27 = vpop.f32.mrb[16].mxu0  ;;  %v4868_v11 = vpop.f32.mrb[120].mxu1 }
 0x589   :  { %v9866_v8 = vadd.f32 %v3407_v27, %v9692_v14  ;;  %7528 = vmatmul.mubr.msk.f32.gmra.mrb[122].mxu0 %vm1065_vm6, %v4868_v11  ;;  %v7322_v3 = vpop.f32.mrb[17].mxu0  ;;  %v4870_v10 = vpop.f32.mrb[121].mxu1 }
 0x58a   :  { %7530 = vmatprep.mubr.msk.f32.mxu0 %vm8267_vm0, %v8268_v1  ;;  %8119 = vmatpush3.bf16.msra.mxu0 %v8118_v17 }
 0x58b   :  { %8120 = vmatprep.subr.bf16.mxu0 %v8266_v0 }
 0x58c   :  { %v3412_v34 = vpop.f32.mrb[18].mxu0  ;;  %v4873_v53 = vpop.f32.mrb[122].mxu1 }
 0x58d   :  { %v9873_v45 = vadd.f32 %v3412_v34, %v9700_v33  ;;  %7531 = vmatmul.mubr.msk.f32.gmra.mrb[124].mxu0 %vm1065_vm6, %v4873_v53  ;;  %v7325_v14 = vpop.f32.mrb[19].mxu0  ;;  %v4875_v6 = vpop.f32.mrb[123].mxu1 }
 0x58e   :  { %7533 = vmatprep.mubr.msk.f32.mxu0 %vm8267_vm0, %v8268_v1  ;;  %8122 = vmatpush3.bf16.msra.mxu0 %v8121_v29 }
 0x58f   :  { %8123 = vmatprep.subr.bf16.mxu0 %v8266_v0 }
 0x590   :  { %v3907_v58 = vpop.f32.mrb[20].mxu0  ;;  %v4878_v7 = vpop.f32.mrb[124].mxu1 }
 0x591   :  { %v9880_v44 = vadd.f32 %v3907_v58, %v9708_v62  ;;  %7534 = vmatmul.mubr.msk.f32.gmra.mrb[126].mxu0 %vm1065_vm6, %v4878_v7  ;;  %v7344_v33 = vpop.f32.mrb[21].mxu0  ;;  %v4880_v18 = vpop.f32.mrb[125].mxu1 }
 0x592   :  { %7536 = vmatprep.mubr.msk.f32.mxu0 %vm8267_vm0, %v8268_v1  ;;  %8125 = vmatpush3.bf16.msra.mxu0 %v8124_v54 }
 0x594   :  { %v3912_v23 = vpop.f32.mrb[22].mxu0  ;;  %v4883_v12 = vpop.f32.mrb[126].mxu1 }
 0x595   :  { %v9886_v25 = vadd.f32 %v3912_v23, %v9716_v20  ;;  %7537 = vmatmul.mubr.msk.f32.gmra.mrb[128].mxu0 %vm1065_vm6, %v4883_v12  ;;  %v7347_v0 = vpop.f32.mrb[23].mxu0  ;;  %v4885_v4 = vpop.f32.mrb[127].mxu1 }
 0x596   :  { %7539 = vmatprep.mubr.msk.f32.mxu0 %vm8267_vm0, %v8268_v1 }
 0x598   :  { %v3917_v62 = vpop.f32.mrb[24].mxu0  ;;  %v4888_v37 = vpop.f32.mrb[128].mxu1 }
 0x599   :  { %v9892_v63 = vadd.f32 %v3917_v62, %v9723_v61  ;;  %7540 = vmatmul.mubr.msk.f32.gmra.mrb[130].mxu0 %vm1065_vm6, %v4888_v37  ;;  %v7350_v56 = vpop.f32.mrb[25].mxu0  ;;  %v4890_v32 = vpop.f32.mrb[129].mxu1 }
 0x59a   :  { %7542 = vmatprep.mubr.msk.f32.mxu0 %vm8267_vm0, %v8268_v1 }
 0x59c   :  { %v3922_v20 = vpop.f32.mrb[26].mxu0  ;;  %v4893_v41 = vpop.f32.mrb[130].mxu1 }
 0x59d   :  { %v9898_v30 = vadd.f32 %v3922_v20, %v9730_v22  ;;  %7543 = vmatmul.mubr.msk.f32.gmra.mrb[132].mxu0 %vm1065_vm6, %v4893_v41  ;;  %v7353_v38 = vpop.f32.mrb[27].mxu0  ;;  %v4895_v16 = vpop.f32.mrb[131].mxu1 }
 0x59e   :  { %7545 = vmatprep.mubr.msk.f32.mxu0 %vm8267_vm0, %v8268_v1 }
 0x5a0   :  { %v3927_v61 = vpop.f32.mrb[28].mxu0  ;;  %v4898_v9 = vpop.f32.mrb[132].mxu1 }
 0x5a1   :  { %v9904_v19 = vadd.f32 %v3927_v61, %v9737_v43  ;;  %7546 = vmatmul.mubr.msk.f32.gmra.mrb[134].mxu0 %vm1065_vm6, %v4898_v9  ;;  %v7356_v13 = vpop.f32.mrb[29].mxu0  ;;  %v4900_v21 = vpop.f32.mrb[133].mxu1 }
 0x5a2   :  { %7548 = vmatprep.mubr.msk.f32.mxu0 %vm8267_vm0, %v8268_v1 }
 0x5a4   :  { %v3932_v22 = vpop.f32.mrb[30].mxu0  ;;  %v4903_v40 = vpop.f32.mrb[134].mxu1 }
 0x5a5   :  { %v9910_v17 = vadd.f32 %v3932_v22, %v9744_v28  ;;  %7549 = vmatmul.mubr.msk.f32.gmra.mrb[136].mxu0 %vm1065_vm6, %v4903_v40  ;;  %v7359_v60 = vpop.f32.mrb[31].mxu0  ;;  %v4905_v36 = vpop.f32.mrb[135].mxu1 }
 0x5a6   :  { %7551 = vmatprep.mubr.msk.f32.mxu0 %vm8267_vm0, %v8268_v1 }
 0x5a8   :  { %v3937_v43 = vpop.f32.mrb[32].mxu0  ;;  %v4908_v27 = vpop.f32.mrb[136].mxu1 }
 0x5a9   :  { %v9916_v11 = vadd.f32 %v3937_v43, %v9751_v48  ;;  %7552 = vmatmul.mubr.msk.f32.gmra.mrb[138].mxu0 %vm1065_vm6, %v4908_v27  ;;  %v7362_v3 = vpop.f32.mrb[33].mxu0  ;;  %v4910_v10 = vpop.f32.mrb[137].mxu1 }
 0x5aa   :  { %7554 = vmatprep.mubr.msk.f32.mxu0 %vm8267_vm0, %v8268_v1 }
 0x5ac   :  { %v3942_v28 = vpop.f32.mrb[34].mxu0  ;;  %v4913_v29 = vpop.f32.mrb[138].mxu1 }
 0x5ad   :  { %v9922_v51 = vadd.f32 %v3942_v28, %v9758_v46  ;;  %7555 = vmatmul.mubr.msk.f32.gmra.mrb[140].mxu0 %vm1065_vm6, %v4913_v29  ;;  %v7365_v24 = vpop.f32.mrb[35].mxu0  ;;  %v4915_v34 = vpop.f32.mrb[139].mxu1 }
 0x5ae   :  { %7557 = vmatprep.mubr.msk.f32.mxu0 %vm8267_vm0, %v8268_v1 }
 0x5b0   :  { %v3947_v48 = vpop.f32.mrb[36].mxu0  ;;  %v4918_v53 = vpop.f32.mrb[140].mxu1 }
 0x5b1   :  { %v9928_v14 = vadd.f32 %v3947_v48, %v9765_v26  ;;  %7558 = vmatmul.mubr.msk.f32.gmra.mrb[142].mxu0 %vm1065_vm6, %v4918_v53  ;;  %v7368_v6 = vpop.f32.mrb[37].mxu0  ;;  %v4920_v54 = vpop.f32.mrb[141].mxu1 }
 0x5b2   :  { %7560 = vmatprep.mubr.msk.f32.mxu0 %vm8267_vm0, %v8268_v1 }
 0x5b4   :  { %v3952_v46 = vpop.f32.mrb[38].mxu0  ;;  %v4923_v58 = vpop.f32.mrb[142].mxu1 }
 0x5b5   :  { %v9934_v7 = vadd.f32 %v3952_v46, %v9772_v59  ;;  %7561 = vmatmul.mubr.msk.f32.gmra.mrb[144].mxu0 %vm1065_vm6, %v4923_v58  ;;  %v7371_v33 = vpop.f32.mrb[39].mxu0  ;;  %v4925_v18 = vpop.f32.mrb[143].mxu1 }
 0x5b6   :  { %7563 = vmatprep.mubr.msk.f32.mxu0 %vm8267_vm0, %v8268_v1 }
 0x5b8   :  { %v3957_v26 = vpop.f32.mrb[40].mxu0  ;;  %v4928_v23 = vpop.f32.mrb[144].mxu1 }
 0x5b9   :  { %v9940_v12 = vadd.f32 %v3957_v26, %v9779_v49  ;;  %7564 = vmatmul.mubr.msk.f32.gmra.mrb[146].mxu0 %vm1065_vm6, %v4928_v23  ;;  %v7374_v0 = vpop.f32.mrb[41].mxu0  ;;  %v4930_v4 = vpop.f32.mrb[145].mxu1 }
 0x5ba   :  { %7566 = vmatprep.mubr.msk.f32.mxu0 %vm8267_vm0, %v8268_v1 }
 0x5bc   :  { %v3962_v59 = vpop.f32.mrb[42].mxu0  ;;  %v4933_v62 = vpop.f32.mrb[146].mxu1 }
 0x5bd   :  { %v9946_v37 = vadd.f32 %v3962_v59, %v9786_v35  ;;  %7567 = vmatmul.mubr.msk.f32.gmra.mrb[148].mxu0 %vm1065_vm6, %v4933_v62  ;;  %v7377_v56 = vpop.f32.mrb[43].mxu0  ;;  %v4935_v32 = vpop.f32.mrb[147].mxu1 }
 0x5be   :  { %7569 = vmatprep.mubr.msk.f32.mxu0 %vm8267_vm0, %v8268_v1 }
 0x5c0   :  { %v3967_v49 = vpop.f32.mrb[44].mxu0  ;;  %v4938_v20 = vpop.f32.mrb[148].mxu1 }
 0x5c1   :  { %v9952_v41 = vadd.f32 %v3967_v49, %v9793_v55  ;;  %7570 = vmatmul.mubr.msk.f32.gmra.mrb[150].mxu0 %vm1065_vm6, %v4938_v20  ;;  %v7380_v38 = vpop.f32.mrb[45].mxu0  ;;  %v4940_v16 = vpop.f32.mrb[149].mxu1 }
 0x5c2   :  { %7572 = vmatprep.mubr.msk.f32.mxu0 %vm8267_vm0, %v8268_v1 }
 0x5c4   :  { %v3972_v35 = vpop.f32.mrb[46].mxu0  ;;  %v4943_v61 = vpop.f32.mrb[150].mxu1 }
 0x5c5   :  { %v9958_v9 = vadd.f32 %v3972_v35, %v9800_v2  ;;  %7573 = vmatmul.mubr.msk.f32.gmra.mrb[152].mxu0 %vm1065_vm6, %v4943_v61  ;;  %v7383_v13 = vpop.f32.mrb[47].mxu0  ;;  %v4945_v21 = vpop.f32.mrb[151].mxu1 }
 0x5c6   :  { %7575 = vmatprep.mubr.msk.f32.mxu0 %vm8267_vm0, %v8268_v1 }
 0x5c8   :  { %v3977_v55 = vpop.f32.mrb[48].mxu0  ;;  %v4948_v22 = vpop.f32.mrb[152].mxu1 }
 0x5c9   :  { %v9964_v40 = vadd.f32 %v3977_v55, %v9807_v31  ;;  %7576 = vmatmul.mubr.msk.f32.gmra.mrb[154].mxu0 %vm1065_vm6, %v4948_v22  ;;  %v7386_v60 = vpop.f32.mrb[49].mxu0  ;;  %v4950_v36 = vpop.f32.mrb[153].mxu1 }
 0x5ca   :  { %7578 = vmatprep.mubr.msk.f32.mxu0 %vm8267_vm0, %v8268_v1 }
 0x5cc   :  { %v3982_v2 = vpop.f32.mrb[50].mxu0  ;;  %v4953_v43 = vpop.f32.mrb[154].mxu1 }
 0x5cd   :  { %v9970_v27 = vadd.f32 %v3982_v2, %v9814_v42  ;;  %7579 = vmatmul.mubr.msk.f32.gmra.mrb[156].mxu0 %vm1065_vm6, %v4953_v43  ;;  %v7389_v3 = vpop.f32.mrb[51].mxu0  ;;  %v4955_v10 = vpop.f32.mrb[155].mxu1 }
 0x5ce   :  { %7581 = vmatprep.mubr.msk.f32.mxu0 %vm8267_vm0, %v8268_v1 }
 0x5d0   :  { %v3987_v31 = vpop.f32.mrb[52].mxu0  ;;  %v4958_v28 = vpop.f32.mrb[156].mxu1 }
 0x5d1   :  { %v9976_v29 = vadd.f32 %v3987_v31, %v9821_v15  ;;  %7582 = vmatmul.mubr.msk.f32.gmra.mrb[158].mxu0 %vm1065_vm6, %v4958_v28  ;;  %v7392_v24 = vpop.f32.mrb[53].mxu0  ;;  %v4960_v34 = vpop.f32.mrb[157].mxu1 }
 0x5d2   :  { %7584 = vmatprep.mubr.msk.f32.mxu0 %vm8267_vm0, %v8268_v1 }
 0x5d4   :  { %v3992_v42 = vpop.f32.mrb[54].mxu0  ;;  %v4963_v48 = vpop.f32.mrb[158].mxu1 }
 0x5d5   :  { %v9982_v53 = vadd.f32 %v3992_v42, %v9828_v5  ;;  %7585 = vmatmul.mubr.msk.f32.gmra.mrb[160].mxu0 %vm1065_vm6, %v4963_v48  ;;  %v7395_v6 = vpop.f32.mrb[55].mxu0  ;;  %v4965_v54 = vpop.f32.mrb[159].mxu1 }
 0x5d6   :  { %7587 = vmatprep.mubr.msk.f32.mxu0 %vm8267_vm0, %v8268_v1 }
 0x5d8   :  { %v3997_v15 = vpop.f32.mrb[56].mxu0  ;;  %v4968_v46 = vpop.f32.mrb[160].mxu1 }
 0x5d9   :  { %v9988_v58 = vadd.f32 %v3997_v15, %v9835_v47  ;;  %7588 = vmatmul.mubr.msk.f32.gmra.mrb[162].mxu0 %vm1065_vm6, %v4968_v46  ;;  %v7398_v33 = vpop.f32.mrb[57].mxu0  ;;  %v4970_v18 = vpop.f32.mrb[161].mxu1 }
 0x5da   :  { %7590 = vmatprep.mubr.msk.f32.mxu0 %vm8267_vm0, %v8268_v1 }
 0x5dc   :  { %v4002_v5 = vpop.f32.mrb[58].mxu0  ;;  %v4973_v26 = vpop.f32.mrb[162].mxu1 }
 0x5dd   :  { %v9994_v23 = vadd.f32 %v4002_v5, %v9841_v39  ;;  %7591 = vmatmul.mubr.msk.f32.gmra.mrb[164].mxu0 %vm1065_vm6, %v4973_v26  ;;  %v7401_v0 = vpop.f32.mrb[59].mxu0  ;;  %v4975_v4 = vpop.f32.mrb[163].mxu1 }
 0x5de   :  { %7593 = vmatprep.mubr.msk.f32.mxu0 %vm8267_vm0, %v8268_v1 }
 0x5e0   :  { %v4007_v47 = vpop.f32.mrb[60].mxu0  ;;  %v4978_v59 = vpop.f32.mrb[164].mxu1 }
 0x5e1   :  { %v10000_v62 = vadd.f32 %v4007_v47, %v9847_v57  ;;  %7594 = vmatmul.mubr.msk.f32.gmra.mrb[166].mxu0 %vm1065_vm6, %v4978_v59  ;;  %v7404_v56 = vpop.f32.mrb[61].mxu0  ;;  %v4980_v32 = vpop.f32.mrb[165].mxu1 }
 0x5e2   :  { %7596 = vmatprep.mubr.msk.f32.mxu0 %vm8267_vm0, %v8268_v1 }
 0x5e4   :  { %v4012_v39 = vpop.f32.mrb[62].mxu0  ;;  %v4983_v49 = vpop.f32.mrb[166].mxu1 }
 0x5e5   :  { %v10006_v20 = vadd.f32 %v4012_v39, %v9853_v50  ;;  %7597 = vmatmul.mubr.msk.f32.gmra.mrb[168].mxu0 %vm1065_vm6, %v4983_v49  ;;  %v7407_v38 = vpop.f32.mrb[63].mxu0  ;;  %v4985_v16 = vpop.f32.mrb[167].mxu1 }
 0x5e6   :  { %7615 = vmatprep.mubr.msk.f32.mxu0 %vm8267_vm0, %v8268_v1 }
 0x5e8   :  { %v4017_v57 = vpop.f32.mrb[64].mxu0  ;;  %v5478_v35 = vpop.f32.mrb[168].mxu1 }
 0x5e9   :  { %v10012_v61 = vadd.f32 %v4017_v57, %v9859_v52  ;;  %7616 = vmatmul.mubr.msk.f32.vlgmr.msra.gmra.mrb[170].mxu0 %vm1065_vm6, %v5478_v35  ;;  %v7410_v13 = vpop.f32.mrb[65].mxu0  ;;  %v5480_v21 = vpop.f32.mrb[169].mxu1 }
 0x5ea   :  { %7618 = vmatprep.mubr.msk.f32.mxu0 %vm8267_vm0, %v8268_v1 }
 0x5ec   :  { %v4022_v50 = vpop.f32.mrb[66].mxu0  ;;  %v5483_v55 = vpop.f32.mrb[170].mxu1 }
 0x5ed   :  { %v10018_v22 = vadd.f32 %v4022_v50, %v9866_v8  ;;  %7619 = vmatmul.mubr.msk.f32.gmra.mrb[172].mxu0 %vm1065_vm6, %v5483_v55  ;;  %v7413_v60 = vpop.f32.mrb[67].mxu0  ;;  %v5485_v36 = vpop.f32.mrb[171].mxu1 }
 0x5ee   :  { %7621 = vmatprep.mubr.msk.f32.mxu0 %vm8267_vm0, %v8268_v1 }
 0x5f0   :  { %v4027_v52 = vpop.f32.mrb[68].mxu0  ;;  %v5488_v2 = vpop.f32.mrb[172].mxu1 }
 0x5f1   :  { %v10024_v43 = vadd.f32 %v4027_v52, %v9873_v45  ;;  %7622 = vmatmul.mubr.msk.f32.gmra.mrb[174].mxu0 %vm1065_vm6, %v5488_v2  ;;  %v7416_v3 = vpop.f32.mrb[69].mxu0  ;;  %v5490_v10 = vpop.f32.mrb[173].mxu1 }
 0x5f2   :  { %7624 = vmatprep.mubr.msk.f32.mxu0 %vm8267_vm0, %v8268_v1 }
 0x5f4   :  { %v4522_v8 = vpop.f32.mrb[70].mxu0  ;;  %v5493_v31 = vpop.f32.mrb[174].mxu1 }
 0x5f5   :  { %v10030_v28 = vadd.f32 %v4522_v8, %v9880_v44  ;;  %7625 = vmatmul.mubr.msk.f32.gmra.mrb[176].mxu0 %vm1065_vm6, %v5493_v31  ;;  %v7435_v24 = vpop.f32.mrb[71].mxu0  ;;  %v5495_v34 = vpop.f32.mrb[175].mxu1 }
 0x5f6   :  { %7627 = vmatprep.mubr.msk.f32.mxu0 %vm8267_vm0, %v8268_v1 }
 0x5f8   :  { %v4527_v45 = vpop.f32.mrb[72].mxu0  ;;  %v5498_v42 = vpop.f32.mrb[176].mxu1 }
 0x5f9   :  { %v10036_v48 = vadd.f32 %v4527_v45, %v9886_v25  ;;  %7628 = vmatmul.mubr.msk.f32.gmra.mrb[178].mxu0 %vm1065_vm6, %v5498_v42  ;;  %v7438_v6 = vpop.f32.mrb[73].mxu0  ;;  %v5500_v54 = vpop.f32.mrb[177].mxu1 }
 0x5fa   :  { %7630 = vmatprep.mubr.msk.f32.mxu0 %vm8267_vm0, %v8268_v1 }
 0x5fc   :  { %v4532_v44 = vpop.f32.mrb[74].mxu0  ;;  %v5503_v15 = vpop.f32.mrb[178].mxu1 }
 0x5fd   :  { %v10042_v46 = vadd.f32 %v4532_v44, %v9892_v63  ;;  %7631 = vmatmul.mubr.msk.f32.gmra.mrb[180].mxu0 %vm1065_vm6, %v5503_v15  ;;  %v7441_v33 = vpop.f32.mrb[75].mxu0  ;;  %v5505_v18 = vpop.f32.mrb[179].mxu1 }
 0x5fe   :  { %7633 = vmatprep.mubr.msk.f32.mxu0 %vm8267_vm0, %v8268_v1 }
 0x600   :  { %v4537_v25 = vpop.f32.mrb[76].mxu0  ;;  %v5508_v5 = vpop.f32.mrb[180].mxu1 }
 0x601   :  { %v10048_v26 = vadd.f32 %v4537_v25, %v9898_v30  ;;  %7634 = vmatmul.mubr.msk.f32.gmra.mrb[182].mxu0 %vm1065_vm6, %v5508_v5  ;;  %v7444_v0 = vpop.f32.mrb[77].mxu0  ;;  %v5510_v4 = vpop.f32.mrb[181].mxu1 }
 0x602   :  { %7636 = vmatprep.mubr.msk.f32.mxu0 %vm8267_vm0, %v8268_v1 }
 0x604   :  { %v4542_v63 = vpop.f32.mrb[78].mxu0  ;;  %v5513_v47 = vpop.f32.mrb[182].mxu1 }
 0x605   :  { %v10054_v59 = vadd.f32 %v4542_v63, %v9904_v19  ;;  %7637 = vmatmul.mubr.msk.f32.gmra.mrb[184].mxu0 %vm1065_vm6, %v5513_v47  ;;  %v7447_v56 = vpop.f32.mrb[79].mxu0  ;;  %v5515_v32 = vpop.f32.mrb[183].mxu1 }
 0x606   :  { %7639 = vmatprep.mubr.msk.f32.mxu0 %vm8267_vm0, %v8268_v1 }
 0x608   :  { %v4547_v30 = vpop.f32.mrb[80].mxu0  ;;  %v5518_v39 = vpop.f32.mrb[184].mxu1 }
 0x609   :  { %v10060_v49 = vadd.f32 %v4547_v30, %v9910_v17  ;;  %7640 = vmatmul.mubr.msk.f32.gmra.mrb[186].mxu0 %vm1065_vm6, %v5518_v39  ;;  %v7450_v38 = vpop.f32.mrb[81].mxu0  ;;  %v5520_v16 = vpop.f32.mrb[185].mxu1 }
 0x60a   :  { %7642 = vmatprep.mubr.msk.f32.mxu0 %vm8267_vm0, %v8268_v1 }
 0x60c   :  { %v4552_v19 = vpop.f32.mrb[82].mxu0  ;;  %v5523_v57 = vpop.f32.mrb[186].mxu1 }
 0x60d   :  { %v10066_v35 = vadd.f32 %v4552_v19, %v9916_v11  ;;  %7643 = vmatmul.mubr.msk.f32.gmra.mrb[188].mxu0 %vm1065_vm6, %v5523_v57  ;;  %v7453_v13 = vpop.f32.mrb[83].mxu0  ;;  %v5525_v21 = vpop.f32.mrb[187].mxu1 }
 0x60e   :  { %7645 = vmatprep.mubr.msk.f32.mxu0 %vm8267_vm0, %v8268_v1 }
 0x610   :  { %v4557_v17 = vpop.f32.mrb[84].mxu0  ;;  %v5528_v50 = vpop.f32.mrb[188].mxu1 }
 0x611   :  { %v10072_v55 = vadd.f32 %v4557_v17, %v9922_v51  ;;  %7646 = vmatmul.mubr.msk.f32.gmra.mrb[190].mxu0 %vm1065_vm6, %v5528_v50  ;;  %v7456_v60 = vpop.f32.mrb[85].mxu0  ;;  %v5530_v36 = vpop.f32.mrb[189].mxu1 }
 0x612   :  { %7648 = vmatprep.mubr.msk.f32.mxu0 %vm8267_vm0, %v8268_v1 }
 0x614   :  { %v4562_v11 = vpop.f32.mrb[86].mxu0  ;;  %v5533_v52 = vpop.f32.mrb[190].mxu1 }
 0x615   :  { %v10078_v2 = vadd.f32 %v4562_v11, %v9928_v14  ;;  %7649 = vmatmul.mubr.msk.f32.gmra.mrb[192].mxu0 %vm1065_vm6, %v5533_v52  ;;  %v7459_v3 = vpop.f32.mrb[87].mxu0  ;;  %v5535_v10 = vpop.f32.mrb[191].mxu1 }
 0x616   :  { %7651 = vmatprep.mubr.msk.f32.mxu0 %vm8267_vm0, %v8268_v1 }
 0x618   :  { %v4567_v51 = vpop.f32.mrb[88].mxu0  ;;  %v5538_v8 = vpop.f32.mrb[192].mxu1 }
 0x619   :  { %v10084_v31 = vadd.f32 %v4567_v51, %v9934_v7  ;;  %7652 = vmatmul.mubr.msk.f32.gmra.mrb[194].mxu0 %vm1065_vm6, %v5538_v8  ;;  %v7462_v24 = vpop.f32.mrb[89].mxu0  ;;  %v5540_v34 = vpop.f32.mrb[193].mxu1 }
 0x61a   :  { %7654 = vmatprep.mubr.msk.f32.mxu0 %vm8267_vm0, %v8268_v1 }
 0x61c   :  { %v4572_v14 = vpop.f32.mrb[90].mxu0  ;;  %v5543_v45 = vpop.f32.mrb[194].mxu1 }
 0x61d   :  { %v10090_v42 = vadd.f32 %v4572_v14, %v9940_v12  ;;  %7655 = vmatmul.mubr.msk.f32.gmra.mrb[196].mxu0 %vm1065_vm6, %v5543_v45  ;;  %v7465_v6 = vpop.f32.mrb[91].mxu0  ;;  %v5545_v54 = vpop.f32.mrb[195].mxu1 }
 0x61e   :  { %7657 = vmatprep.mubr.msk.f32.mxu0 %vm8267_vm0, %v8268_v1 }
 0x620   :  { %v4577_v7 = vpop.f32.mrb[92].mxu0  ;;  %v5548_v44 = vpop.f32.mrb[196].mxu1 }
 0x621   :  { %v10096_v15 = vadd.f32 %v4577_v7, %v9946_v37  ;;  %7658 = vmatmul.mubr.msk.f32.gmra.mrb[198].mxu0 %vm1065_vm6, %v5548_v44  ;;  %v7468_v33 = vpop.f32.mrb[93].mxu0  ;;  %v5550_v18 = vpop.f32.mrb[197].mxu1 }
 0x622   :  { %7660 = vmatprep.mubr.msk.f32.mxu0 %vm8267_vm0, %v8268_v1 }
 0x624   :  { %v4582_v12 = vpop.f32.mrb[94].mxu0  ;;  %v5553_v25 = vpop.f32.mrb[198].mxu1 }
 0x625   :  { %v10102_v5 = vadd.f32 %v4582_v12, %v9952_v41  ;;  %7661 = vmatmul.mubr.msk.f32.gmra.mrb[200].mxu0 %vm1065_vm6, %v5553_v25  ;;  %v7471_v0 = vpop.f32.mrb[95].mxu0  ;;  %v5555_v4 = vpop.f32.mrb[199].mxu1 }
 0x626   :  { %7663 = vmatprep.mubr.msk.f32.mxu0 %vm8267_vm0, %v8268_v1 }
 0x628   :  { %v4587_v37 = vpop.f32.mrb[96].mxu0  ;;  %v5558_v63 = vpop.f32.mrb[200].mxu1 }
 0x629   :  { %v10108_v47 = vadd.f32 %v4587_v37, %v9958_v9  ;;  %7664 = vmatmul.mubr.msk.f32.gmra.mrb[202].mxu0 %vm1065_vm6, %v5558_v63  ;;  %v7474_v56 = vpop.f32.mrb[97].mxu0  ;;  %v5560_v32 = vpop.f32.mrb[201].mxu1 }
 0x62a   :  { %7666 = vmatprep.mubr.msk.f32.mxu0 %vm8267_vm0, %v8268_v1 }
 0x62c   :  { %v4592_v41 = vpop.f32.mrb[98].mxu0  ;;  %v5563_v30 = vpop.f32.mrb[202].mxu1 }
 0x62d   :  { %v10114_v39 = vadd.f32 %v4592_v41, %v9964_v40  ;;  %7667 = vmatmul.mubr.msk.f32.gmra.mrb[204].mxu0 %vm1065_vm6, %v5563_v30  ;;  %v7477_v38 = vpop.f32.mrb[99].mxu0  ;;  %v5565_v16 = vpop.f32.mrb[203].mxu1 }
 0x62e   :  { %7669 = vmatprep.mubr.msk.f32.mxu0 %vm8267_vm0, %v8268_v1 }
 0x630   :  { %v4597_v9 = vpop.f32.mrb[100].mxu0  ;;  %v5568_v19 = vpop.f32.mrb[204].mxu1 }
 0x631   :  { %v10120_v57 = vadd.f32 %v4597_v9, %v9970_v27  ;;  %7670 = vmatmul.mubr.msk.f32.gmra.mrb[206].mxu0 %vm1065_vm6, %v5568_v19  ;;  %v7480_v13 = vpop.f32.mrb[101].mxu0  ;;  %v5570_v21 = vpop.f32.mrb[205].mxu1 }
 0x632   :  { %7672 = vmatprep.mubr.msk.f32.mxu0 %vm8267_vm0, %v8268_v1 }
 0x634   :  { %v4602_v40 = vpop.f32.mrb[102].mxu0  ;;  %v5573_v17 = vpop.f32.mrb[206].mxu1 }
 0x635   :  { %v10126_v50 = vadd.f32 %v4602_v40, %v9976_v29  ;;  %7673 = vmatmul.mubr.msk.f32.gmra.mrb[208].mxu0 %vm1065_vm6, %v5573_v17  ;;  %v7483_v60 = vpop.f32.mrb[103].mxu0  ;;  %v5575_v36 = vpop.f32.mrb[207].mxu1 }
 0x636   :  { %7675 = vmatprep.mubr.msk.f32.mxu0 %vm8267_vm0, %v8268_v1 }
 0x638   :  { %v4607_v27 = vpop.f32.mrb[104].mxu0  ;;  %v5578_v11 = vpop.f32.mrb[208].mxu1 }
 0x639   :  { %v10132_v52 = vadd.f32 %v4607_v27, %v9982_v53  ;;  %7676 = vmatmul.mubr.msk.f32.gmra.mrb[210].mxu0 %vm1065_vm6, %v5578_v11  ;;  %v7486_v3 = vpop.f32.mrb[105].mxu0  ;;  %v5580_v10 = vpop.f32.mrb[209].mxu1 }
 0x63a   :  { %7678 = vmatprep.mubr.msk.f32.mxu0 %vm8267_vm0, %v8268_v1 }
 0x63c   :  { %v4612_v29 = vpop.f32.mrb[106].mxu0  ;;  %v5583_v51 = vpop.f32.mrb[210].mxu1 }
 0x63d   :  { %v10138_v8 = vadd.f32 %v4612_v29, %v9988_v58  ;;  %7679 = vmatmul.mubr.msk.f32.gmra.mrb[212].mxu0 %vm1065_vm6, %v5583_v51  ;;  %v7489_v24 = vpop.f32.mrb[107].mxu0  ;;  %v5585_v34 = vpop.f32.mrb[211].mxu1 }
 0x63e   :  { %7681 = vmatprep.mubr.msk.f32.mxu0 %vm8267_vm0, %v8268_v1 }
 0x640   :  { %v4617_v53 = vpop.f32.mrb[108].mxu0  ;;  %v5588_v14 = vpop.f32.mrb[212].mxu1 }
 0x641   :  { %v10144_v45 = vadd.f32 %v4617_v53, %v9994_v23  ;;  %7682 = vmatmul.mubr.msk.f32.gmra.mrb[214].mxu0 %vm1065_vm6, %v5588_v14  ;;  %v7492_v6 = vpop.f32.mrb[109].mxu0  ;;  %v5590_v54 = vpop.f32.mrb[213].mxu1 }
 0x642   :  { %7684 = vmatprep.mubr.msk.f32.mxu0 %vm8267_vm0, %v8268_v1 }
 0x644   :  { %v4622_v58 = vpop.f32.mrb[110].mxu0  ;;  %v5593_v7 = vpop.f32.mrb[214].mxu1 }
 0x645   :  { %v10150_v44 = vadd.f32 %v4622_v58, %v10000_v62  ;;  %7685 = vmatmul.mubr.msk.f32.gmra.mrb[216].mxu0 %vm1065_vm6, %v5593_v7  ;;  %v7495_v33 = vpop.f32.mrb[111].mxu0  ;;  %v5595_v18 = vpop.f32.mrb[215].mxu1 }
 0x646   :  { %7687 = vmatprep.mubr.msk.f32.mxu0 %vm8267_vm0, %v8268_v1 }
 0x648   :  { %v4627_v23 = vpop.f32.mrb[112].mxu0  ;;  %v5598_v12 = vpop.f32.mrb[216].mxu1 }
 0x649   :  { %v10156_v25 = vadd.f32 %v4627_v23, %v10006_v20  ;;  %7688 = vmatmul.mubr.msk.f32.gmra.mrb[218].mxu0 %vm1065_vm6, %v5598_v12  ;;  %v7498_v0 = vpop.f32.mrb[113].mxu0  ;;  %v5600_v4 = vpop.f32.mrb[217].mxu1 }
 0x64c   :  { %v4632_v37 = vpop.f32.mrb[114].mxu0 }
 0x64d   :  { %v10160_v62 = vadd.f32 %v4632_v37, %v10012_v61  ;;  %v7501_v63 = vpop.f32.mrb[115].mxu0 }
 0x650   :  { %v4637_v56 = vpop.f32.mrb[116].mxu0 }
 0x651   :  { %v10163_v32 = vadd.f32 %v4637_v56, %v10018_v22  ;;  %v7504_v41 = vpop.f32.mrb[117].mxu0 }
 0x654   :  { %v4642_v1 = vpop.f32.mrb[118].mxu0 }
 0x655   :  { %v10166_v30 = vadd.f32 %v4642_v1, %v10024_v43  ;;  %v7507_v20 = vpop.f32.mrb[119].mxu0 }
 0x658   :  { %v5137_v38 = vpop.f32.mrb[120].mxu0 }
 0x659   :  { %v10169_v16 = vadd.f32 %v5137_v38, %v10030_v28  ;;  %v7526_v9 = vpop.f32.mrb[121].mxu0 }
 0x65c   :  { %v5142_v19 = vpop.f32.mrb[122].mxu0 }
 0x65d   :  { %v10172_v61 = vadd.f32 %v5142_v19, %v10036_v48  ;;  %v7529_v13 = vpop.f32.mrb[123].mxu0 }
 0x660   :  { %v5147_v21 = vpop.f32.mrb[124].mxu0 }
 0x661   :  { %v10175_v22 = vadd.f32 %v5147_v21, %v10042_v46  ;;  %v7532_v40 = vpop.f32.mrb[125].mxu0 }
 0x664   :  { %v5152_v17 = vpop.f32.mrb[126].mxu0 }
 0x665   :  { %v10178_v43 = vadd.f32 %v5152_v17, %v10048_v26  ;;  %v7535_v60 = vpop.f32.mrb[127].mxu0 }
 0x668   :  { %v5157_v36 = vpop.f32.mrb[128].mxu0 }
 0x669   :  { %v10181_v28 = vadd.f32 %v5157_v36, %v10054_v59  ;;  %v7538_v27 = vpop.f32.mrb[129].mxu0 }
 0x66c   :  { %v5162_v11 = vpop.f32.mrb[130].mxu0 }
 0x66d   :  { %v10184_v48 = vadd.f32 %v5162_v11, %v10060_v49  ;;  %v7541_v3 = vpop.f32.mrb[131].mxu0 }
 0x670   :  { %v5167_v10 = vpop.f32.mrb[132].mxu0 }
 0x671   :  { %v10187_v46 = vadd.f32 %v5167_v10, %v10066_v35  ;;  %v7544_v29 = vpop.f32.mrb[133].mxu0 }
 0x674   :  { %v5172_v51 = vpop.f32.mrb[134].mxu0 }
 0x675   :  { %v10190_v26 = vadd.f32 %v5172_v51, %v10072_v55  ;;  %v7547_v24 = vpop.f32.mrb[135].mxu0 }
 0x678   :  { %v5177_v34 = vpop.f32.mrb[136].mxu0 }
 0x679   :  { %v10193_v59 = vadd.f32 %v5177_v34, %v10078_v2  ;;  %v7550_v53 = vpop.f32.mrb[137].mxu0  ;;  %v10243_v34 = vld [vmem:[#allocation9] ss:$0 sm:$0xff] }
 0x67c   :  { %v5182_v14 = vpop.f32.mrb[138].mxu0 }
 0x67d   :  { %v10196_v49 = vadd.f32 %v5182_v14, %v10084_v31  ;;  %v7553_v6 = vpop.f32.mrb[139].mxu0 }
 0x680   :  { %v5187_v54 = vpop.f32.mrb[140].mxu0 }
 0x681   :  { %v10199_v35 = vadd.f32 %v5187_v54, %v10090_v42  ;;  %v7556_v58 = vpop.f32.mrb[141].mxu0 }
 0x684   :  { %v5192_v7 = vpop.f32.mrb[142].mxu0 }
 0x685   :  { %v10202_v55 = vadd.f32 %v5192_v7, %v10096_v15  ;;  %v7559_v33 = vpop.f32.mrb[143].mxu0 }
 0x688   :  { %v5197_v18 = vpop.f32.mrb[144].mxu0 }
 0x689   :  { %v10205_v2 = vadd.f32 %v5197_v18, %v10102_v5  ;;  %v7562_v23 = vpop.f32.mrb[145].mxu0 }
 0x68c   :  { %v5202_v12 = vpop.f32.mrb[146].mxu0 }
 0x68d   :  { %v10208_v31 = vadd.f32 %v5202_v12, %v10108_v47  ;;  %v7565_v0 = vpop.f32.mrb[147].mxu0 }
 0x690   :  { %v5207_v4 = vpop.f32.mrb[148].mxu0 }
 0x691   :  { %v10211_v42 = vadd.f32 %v5207_v4, %v10114_v39  ;;  %v7568_v37 = vpop.f32.mrb[149].mxu0 }
 0x694   :  { %v5212_v63 = vpop.f32.mrb[150].mxu0 }
 0x695   :  { %v10214_v15 = vadd.f32 %v5212_v63, %v10120_v57  ;;  %v7571_v56 = vpop.f32.mrb[151].mxu0 }
 0x698   :  { %v5217_v41 = vpop.f32.mrb[152].mxu0 }
 0x699   :  { %v10217_v5 = vadd.f32 %v5217_v41, %v10126_v50  ;;  %v7574_v1 = vpop.f32.mrb[153].mxu0 }
 0x69c   :  { %v5222_v20 = vpop.f32.mrb[154].mxu0 }
 0x69d   :  { %v10220_v47 = vadd.f32 %v5222_v20, %v10132_v52  ;;  %v7577_v38 = vpop.f32.mrb[155].mxu0 }
 0x6a0   :  { %v5227_v9 = vpop.f32.mrb[156].mxu0 }
 0x6a1   :  { %v10223_v39 = vadd.f32 %v5227_v9, %v10138_v8  ;;  %v7580_v19 = vpop.f32.mrb[157].mxu0 }
 0x6a4   :  { %v5232_v13 = vpop.f32.mrb[158].mxu0 }
 0x6a5   :  { %v10226_v57 = vadd.f32 %v5232_v13, %v10144_v45  ;;  %v7583_v21 = vpop.f32.mrb[159].mxu0 }
 0x6a8   :  { %v5237_v40 = vpop.f32.mrb[160].mxu0 }
 0x6a9   :  { %v10229_v50 = vadd.f32 %v5237_v40, %v10150_v44  ;;  %v7586_v17 = vpop.f32.mrb[161].mxu0 }
 0x6ac   :  { %v5242_v60 = vpop.f32.mrb[162].mxu0 }
 0x6ad   :  { %v10232_v52 = vadd.f32 %v5242_v60, %v10156_v25  ;;  %v7589_v36 = vpop.f32.mrb[163].mxu0 }
 0x6b0   :  { %v5247_v27 = vpop.f32.mrb[164].mxu0 }
 0x6b1   :  { %v10235_v8 = vadd.f32 %v5247_v27, %v10160_v62  ;;  %v7592_v11 = vpop.f32.mrb[165].mxu0 }
 0x6b4   :  { %v5252_v3 = vpop.f32.mrb[166].mxu0 }
 0x6b5   :  { %v10238_v45 = vadd.f32 %v5252_v3, %v10163_v32  ;;  %v7595_v10 = vpop.f32.mrb[167].mxu0 }
 0x6b8   :  { %v5257_v29 = vpop.f32.mrb[168].mxu0 }
 0x6b9   :  { %v10241_v44 = vadd.f32 %v5257_v29, %v10166_v30  ;;  %v7598_v51 = vpop.f32.mrb[169].mxu0 }
 0x6bc   :  { %v5752_v24 = vpop.f32.mrb[170].mxu0 }
 0x6bd   :  { %v5876_v25 = vadd.f32 %v5752_v24, %v10169_v16  ;;  %v7617_v53 = vpop.f32.mrb[171].mxu0 }
 0x6bf   :  { %v5908_v62 = vadd.f32 %v10243_v34, %v5876_v25 }
 0x6c0   :  { %v5757_v14 = vpop.f32.mrb[172].mxu0 }
 0x6c1   :  { %v5933_v6 = vmax.f32 %v5908_v62, 0.0  ;;  %v5877_v54 = vadd.f32 %v5757_v14, %v10172_v61  ;;  %v7620_v32 = vpop.f32.mrb[173].mxu0 }
 0x6c3   :  { %5958 = vst [vmem:[%s10376_s6] sm:$0xff] %v5933_v6  ;;  %v5909_v30 = vadd.f32 %v10243_v34, %v5877_v54 }
 0x6c4   :  { %v5762_v58 = vpop.f32.mrb[174].mxu0 }
 0x6c5   :  { %v5934_v7 = vmax.f32 %v5909_v30, 0.0  ;;  %v5878_v33 = vadd.f32 %v5762_v58, %v10175_v22  ;;  %v7623_v18 = vpop.f32.mrb[175].mxu0 }
 0x6c7   :  { %5959 = vst [vmem:[%s10376_s6 + $0x8] sm:$0xff] %v5934_v7  ;;  %v5910_v16 = vadd.f32 %v10243_v34, %v5878_v33 }
 0x6c8   :  { %v5767_v23 = vpop.f32.mrb[176].mxu0 }
 0x6c9   :  { %v5935_v61 = vmax.f32 %v5910_v16, 0.0  ;;  %v5879_v12 = vadd.f32 %v5767_v23, %v10178_v43  ;;  %v7626_v0 = vpop.f32.mrb[177].mxu0 }
 0x6cb   :  { %5960 = vst [vmem:[%s10376_s6 + $0x10] sm:$0xff] %v5935_v61  ;;  %v5911_v4 = vadd.f32 %v10243_v34, %v5879_v12 }
 0x6cc   :  { %v5772_v37 = vpop.f32.mrb[178].mxu0 }
 0x6cd   :  { %v5936_v22 = vmax.f32 %v5911_v4, 0.0  ;;  %v5880_v63 = vadd.f32 %v5772_v37, %v10181_v28  ;;  %v7629_v56 = vpop.f32.mrb[179].mxu0 }
 0x6cf   :  { %5961 = vst [vmem:[%s10376_s6 + $0x18] sm:$0xff] %v5936_v22  ;;  %v5912_v41 = vadd.f32 %v10243_v34, %v5880_v63 }
 0x6d0   :  { %v5777_v1 = vpop.f32.mrb[180].mxu0 }
 0x6d1   :  { %v5937_v43 = vmax.f32 %v5912_v41, 0.0  ;;  %v5881_v20 = vadd.f32 %v5777_v1, %v10184_v48  ;;  %v7632_v38 = vpop.f32.mrb[181].mxu0 }
 0x6d3   :  { %5962 = vst [vmem:[%s10376_s6 + $0x20] sm:$0xff] %v5937_v43  ;;  %v5913_v9 = vadd.f32 %v10243_v34, %v5881_v20 }
 0x6d4   :  { %v5782_v19 = vpop.f32.mrb[182].mxu0 }
 0x6d5   :  { %v5938_v28 = vmax.f32 %v5913_v9, 0.0  ;;  %v5882_v13 = vadd.f32 %v5782_v19, %v10187_v46  ;;  %v7635_v21 = vpop.f32.mrb[183].mxu0 }
 0x6d7   :  { %5963 = vst [vmem:[%s10376_s6 + $0x28] sm:$0xff] %v5938_v28  ;;  %v5914_v40 = vadd.f32 %v10243_v34, %v5882_v13 }
 0x6d8   :  { %v5787_v17 = vpop.f32.mrb[184].mxu0 }
 0x6d9   :  { %v5939_v48 = vmax.f32 %v5914_v40, 0.0  ;;  %v5883_v60 = vadd.f32 %v5787_v17, %v10190_v26  ;;  %v7638_v36 = vpop.f32.mrb[185].mxu0 }
 0x6db   :  { %5964 = vst [vmem:[%s10376_s6 + $0x30] sm:$0xff] %v5939_v48  ;;  %v5915_v27 = vadd.f32 %v10243_v34, %v5883_v60 }
 0x6dc   :  { %v5792_v11 = vpop.f32.mrb[186].mxu0 }
 0x6dd   :  { %v5940_v46 = vmax.f32 %v5915_v27, 0.0  ;;  %v5884_v3 = vadd.f32 %v5792_v11, %v10193_v59  ;;  %v7641_v10 = vpop.f32.mrb[187].mxu0 }
 0x6df   :  { %5965 = vst [vmem:[%s10376_s6 + $0x38] sm:$0xff] %v5940_v46  ;;  %v5916_v29 = vadd.f32 %v10243_v34, %v5884_v3 }
 0x6e0   :  { %v5797_v51 = vpop.f32.mrb[188].mxu0 }
 0x6e1   :  { %v5941_v26 = vmax.f32 %v5916_v29, 0.0  ;;  %v5885_v24 = vadd.f32 %v5797_v51, %v10196_v49  ;;  %v7644_v25 = vpop.f32.mrb[189].mxu0 }
 0x6e3   :  { %5966 = vst [vmem:[%s10376_s6 + $0x40] sm:$0xff] %v5941_v26  ;;  %v5917_v53 = vadd.f32 %v10243_v34, %v5885_v24 }
 0x6e4   :  { %v5802_v62 = vpop.f32.mrb[190].mxu0 }
 0x6e5   :  { %v5942_v59 = vmax.f32 %v5917_v53, 0.0  ;;  %v5886_v14 = vadd.f32 %v5802_v62, %v10199_v35  ;;  %v7647_v6 = vpop.f32.mrb[191].mxu0 }
 0x6e7   :  { %5967 = vst [vmem:[%s10376_s6 + $0x48] sm:$0xff] %v5942_v59  ;;  %v5918_v54 = vadd.f32 %v10243_v34, %v5886_v14 }
 0x6e8   :  { %v5807_v32 = vpop.f32.mrb[192].mxu0 }
 0x6e9   :  { %v5943_v49 = vmax.f32 %v5918_v54, 0.0  ;;  %v5887_v30 = vadd.f32 %v5807_v32, %v10202_v55  ;;  %v7650_v58 = vpop.f32.mrb[193].mxu0 }
 0x6eb   :  { %5968 = vst [vmem:[%s10376_s6 + $0x50] sm:$0xff] %v5943_v49  ;;  %v5919_v7 = vadd.f32 %v10243_v34, %v5887_v30 }
 0x6ec   :  { %v5812_v33 = vpop.f32.mrb[194].mxu0 }
 0x6ed   :  { %v5944_v35 = vmax.f32 %v5919_v7, 0.0  ;;  %v5888_v18 = vadd.f32 %v5812_v33, %v10205_v2  ;;  %v7653_v16 = vpop.f32.mrb[195].mxu0 }
 0x6ef   :  { %5969 = vst [vmem:[%s10376_s6 + $0x58] sm:$0xff] %v5944_v35  ;;  %v5920_v23 = vadd.f32 %v10243_v34, %v5888_v18 }
 0x6f0   :  { %v5817_v61 = vpop.f32.mrb[196].mxu0 }
 0x6f1   :  { %v5945_v55 = vmax.f32 %v5920_v23, 0.0  ;;  %v5889_v12 = vadd.f32 %v5817_v61, %v10208_v31  ;;  %v7656_v0 = vpop.f32.mrb[197].mxu0 }
 0x6f3   :  { %5970 = vst [vmem:[%s10376_s6 + $0x60] sm:$0xff] %v5945_v55  ;;  %v5921_v4 = vadd.f32 %v10243_v34, %v5889_v12 }
 0x6f4   :  { %v5822_v37 = vpop.f32.mrb[198].mxu0 }
 0x6f5   :  { %v5946_v2 = vmax.f32 %v5921_v4, 0.0  ;;  %v5890_v22 = vadd.f32 %v5822_v37, %v10211_v42  ;;  %v7659_v63 = vpop.f32.mrb[199].mxu0 }
 0x6f7   :  { %5971 = vst [vmem:[%s10376_s6 + $0x68] sm:$0xff] %v5946_v2  ;;  %v5922_v56 = vadd.f32 %v10243_v34, %v5890_v22 }
 0x6f8   :  { %v5827_v41 = vpop.f32.mrb[200].mxu0 }
 0x6f9   :  { %v5947_v31 = vmax.f32 %v5922_v56, 0.0  ;;  %v5891_v1 = vadd.f32 %v5827_v41, %v10214_v15  ;;  %v7662_v43 = vpop.f32.mrb[201].mxu0 }
 0x6fb   :  { %5972 = vst [vmem:[%s10376_s6 + $0x70] sm:$0xff] %v5947_v31  ;;  %v5923_v20 = vadd.f32 %v10243_v34, %v5891_v1 }
 0x6fc   :  { %v5832_v38 = vpop.f32.mrb[202].mxu0 }
 0x6fd   :  { %v5948_v42 = vmax.f32 %v5923_v20, 0.0  ;;  %v5892_v9 = vadd.f32 %v5832_v38, %v10217_v5  ;;  %v7665_v19 = vpop.f32.mrb[203].mxu0 }
 0x6ff   :  { %5973 = vst [vmem:[%s10376_s6 + $0x78] sm:$0xff] %v5948_v42  ;;  %v5924_v28 = vadd.f32 %v10243_v34, %v5892_v9 }
 0x700   :  { %v5837_v13 = vpop.f32.mrb[204].mxu0 }
 0x701   :  { %v5949_v15 = vmax.f32 %v5924_v28, 0.0  ;;  %v5893_v21 = vadd.f32 %v5837_v13, %v10220_v47  ;;  %v7668_v40 = vpop.f32.mrb[205].mxu0 }
 0x703   :  { %5974 = vst [vmem:[%s10376_s6 + $0x80] sm:$0xff] %v5949_v15  ;;  %v5925_v17 = vadd.f32 %v10243_v34, %v5893_v21 }
 0x704   :  { %v5842_v48 = vpop.f32.mrb[206].mxu0 }
 0x705   :  { %v5950_v5 = vmax.f32 %v5925_v17, 0.0  ;;  %v5894_v60 = vadd.f32 %v5842_v48, %v10223_v39  ;;  %v7671_v36 = vpop.f32.mrb[207].mxu0 }
 0x707   :  { %5975 = vst [vmem:[%s10376_s6 + $0x88] sm:$0xff] %v5950_v5  ;;  %v5926_v27 = vadd.f32 %v10243_v34, %v5894_v60 }
 0x708   :  { %v5847_v11 = vpop.f32.mrb[208].mxu0 }
 0x709   :  { %v5951_v47 = vmax.f32 %v5926_v27, 0.0  ;;  %v5895_v46 = vadd.f32 %v5847_v11, %v10226_v57  ;;  %v7674_v3 = vpop.f32.mrb[209].mxu0 }
 0x70b   :  { %5976 = vst [vmem:[%s10376_s6 + $0x90] sm:$0xff] %v5951_v47  ;;  %v5927_v10 = vadd.f32 %v10243_v34, %v5895_v46 }
 0x70c   :  { %v5852_v29 = vpop.f32.mrb[210].mxu0 }
 0x70d   :  { %v5952_v39 = vmax.f32 %v5927_v10, 0.0  ;;  %v5896_v51 = vadd.f32 %v5852_v29, %v10229_v50  ;;  %v7677_v26 = vpop.f32.mrb[211].mxu0 }
 0x70f   :  { %5977 = vst [vmem:[%s10376_s6 + $0x98] sm:$0xff] %v5952_v39  ;;  %v5928_v24 = vadd.f32 %v10243_v34, %v5896_v51 }
 0x710   :  { %v5857_v25 = vpop.f32.mrb[212].mxu0 }
 0x711   :  { %v5953_v57 = vmax.f32 %v5928_v24, 0.0  ;;  %v5897_v53 = vadd.f32 %v5857_v25, %v10232_v52  ;;  %v7680_v62 = vpop.f32.mrb[213].mxu0 }
 0x713   :  { %5978 = vst [vmem:[%s10376_s6 + $0xa0] sm:$0xff] %v5953_v57  ;;  %v5929_v59 = vadd.f32 %v10243_v34, %v5897_v53 }
 0x714   :  { %v5862_v14 = vpop.f32.mrb[214].mxu0 }
 0x715   :  { %v5954_v50 = vmax.f32 %v5929_v59, 0.0  ;;  %v5898_v6 = vadd.f32 %v5862_v14, %v10235_v8  ;;  %v7683_v54 = vpop.f32.mrb[215].mxu0 }
 0x717   :  { %5979 = vst [vmem:[%s10376_s6 + $0xa8] sm:$0xff] %v5954_v50  ;;  %v5930_v32 = vadd.f32 %v10243_v34, %v5898_v6 }
 0x718   :  { %v5867_v49 = vpop.f32.mrb[216].mxu0 }
 0x719   :  { %v5955_v52 = vmax.f32 %v5930_v32, 0.0  ;;  %v5899_v30 = vadd.f32 %v5867_v49, %v10238_v45  ;;  %v7686_v58 = vpop.f32.mrb[217].mxu0 }
 0x71b   :  { %5980 = vst [vmem:[%s10376_s6 + $0xb0] sm:$0xff] %v5955_v52  ;;  %v5931_v7 = vadd.f32 %v10243_v34, %v5899_v30 }
 0x71c   :  { %v5872_v33 = vpop.f32.mrb[218].mxu0 }
 0x71d   :  { %v5956_v8 = vmax.f32 %v5931_v7, 0.0  ;;  %v5900_v35 = vadd.f32 %v5872_v33, %v10241_v44  ;;  %v7689_v18 = vpop.f32.mrb[219].mxu0 }
 0x71f   :  { %5981 = vst [vmem:[%s10376_s6 + $0xb8] sm:$0xff] %v5956_v8  ;;  %v5932_v16 = vadd.f32 %v10243_v34, %v5900_v35 }
 0x721   :  { %v5957_v23 = vmax.f32 %v5932_v16, 0.0 }
 0x723   :  { %5982 = vst [vmem:[%s10376_s6 + $0xc0] sm:$0xff] %v5957_v23 }
 0x724   :  { %5987 = vsyncpa [#allocation3], 1 }
 0x725   :  { %5988 = vsyncpa [#allocation5], 1 }
 0x726   :  { %5989 = vsyncpa [#allocation8], 1 }

// kernel: dqn_forward.3
= control target key start
LH: loop header
LB: loop body
LE: loop exit
PB: predicated region body
PF: predicated region fallthrough
CT: control target
= control target key end

     0   :  { %s10446_s0 = inlined_call_operand.vmem [shape: f32[2,12800], index: 0, kind: input, shape index: {}]   ;;  %s10447_s1 = inlined_call_operand.hbm [shape: bf16[12800,512], index: 1, kind: input, shape index: {}]   ;;  %s10448_s2 = inlined_call_operand.hbm [shape: f32[1,512], index: 2, kind: input, shape index: {}]   ;;  %s10449_s3 = inlined_call_operand.vmem [shape: f32[512,100], index: 3, kind: input, shape index: {}]   ;;  %s10450_s4 = inlined_call_operand.vmem [shape: f32[2,2,100], index: 4, kind: output, shape index: {}]  }
   0x1   :  { %10456 = sst [smem:[#allocation10_spill]] %s10447_s1 }
   0x2   :  { %10457 = sst [smem:[#allocation11_spill]] %s10448_s2 }
   0x3   :  { %10458 = sst [smem:[#allocation12_spill]] %s10450_s4 }
   0x4   :  { %9 = vsyncpa [#allocation4], 0 }
   0x5   :  { %11 = vsyncpa [#allocation4 + $0x1], 0 }
   0x6   :  { %12 = vsyncpa [#allocation6], 0 }
   0x7   :  { %14 = vsyncpa [#allocation6 + $0x1], 0  ;;  %s9112_s15 = smov 0   ;;  %s9114_s16 = smov 0  }
   0x8   :  { %s9116_s17 = smov 0   ;;  %s9118_s18 = smov 0  }
   0x9   :  { %s9120_s19 = smov 0   ;;  %s9122_s20 = smov 0  }
   0xa   :  { %s9124_s21 = smov 0   ;;  %s9126_s22 = smov 0  }
   0xb   :  { %s9128_s23 = smov 0   ;;  %s9130_s24 = smov 0  }
   0xc   :  { %s9132_s25 = smov 0  }
   0xd LB: > { %s29_s26 = sadd.s32 1, %s9070_s23  ;;  %p74_p1 = scmp.ne.s32.totalorder %s9058_s20, %s9054_s19  ;;  %s9078_s25 = sphi %s9132_s25, %s20_s25   ;;  %s9074_s24 = sphi %s9130_s24, %s10489_s24   ;;  %s9070_s23 = sphi %s9128_s23, %s10488_s23   ;;  %s9066_s22 = sphi %s9126_s22, %s10487_s22   ;;  %s9062_s21 = sphi %s9124_s21, %s10486_s21   ;;  %s9058_s20 = sphi %s9122_s20, %s10485_s20   ;;  %s9054_s19 = sphi %s9120_s19, %s10484_s19   ;;  %s9050_s18 = sphi %s9118_s18, %s10483_s18   ;;  %s9046_s17 = sphi %s9116_s17, %s10482_s17   ;;  %s9042_s16 = sphi %s9114_s16, %s10481_s16   ;;  %s9038_s15 = sphi %s9112_s15, %s10480_s15  }
   0xe   : > { %p9169_p0 = scmp.ge.s32.totalorder %s29_s26, 2  ;;  %p10452_p2 = scmp.eq.s32.totalorder %s9078_s25, 0 }
   0xf   : > { %p10451_p4 = scmp.lt.s32.totalorder %s9078_s25, 4  ;;  %s191_s30 = sand.u32 1, %s9058_s20  }
  0x10   : > { %s10491_s26 = smov (%p9169_p0, %s29_s26), 0  ;;  %p76_p3 = por %p10452_p2, %p74_p1 }
  0x11   : > { %s7605_s5 = smul.u32 6400, %s191_s30  ;;  %s5071_s6 = sshll.u32 %s9074_s24, 1 }
  0x12   : > { %s5088_s7 = smul.u32 3200, %s9070_s23  ;;  %p9190_p5 = pnand %p10451_p4, %p76_p3 }
  0x13   : > { %s195_s10 = scalar_lea.vmem [#allocation3], %s7605_s5  ;;  %s10461_s1 = sld [smem:[#allocation10_spill]] }
  0x14   : > { %s202_s9 = sadd.s32 %s5088_s7, %s5071_s6  ;;  %s205_s11 = sshll.u32 %s195_s10, 4  ;;  %s9194_s11 = int_to_ptr.vmem [resolvable:$true] %s205_s11 }
  0x15   : > { %s5073_s12 = sshll.u32 %s202_s9, 6  ;;  %s9202_s29 = scalar_lea.sflag [#allocation4], %s191_s30 }
  0x16   : > { %p8926_p8 = pneg %p9190_p5 }
  0x19   : > { %s9199_s27 = scalar_lea.hbm %s10461_s1, %s5073_s12  ;;  %s8929_s7 = scalar_lea.hbm %s10461_s1, 409600 }
  0x1a   : > { %s8924_s4 = scalar_lea.hbm %s9199_s27, 102400  ;;  %p8930_p11 = scmp.lt.u32.totalorder %s9199_s27, %s10461_s1 }
  0x1b   : > { %p8925_p7 = scmp.ne.s32.totalorder %s9199_s27, %s8924_s4  ;;  %p8931_p12 = scmp.lt.u32.totalorder %s8929_s7, %s8924_s4 }
  0x1c   : > { %p8933_p1 = scmp.lt.u32.totalorder %s8924_s4, %s9199_s27 }
  0x1d   : > { %p8927_p9 = pnand %p8926_p8, %p8925_p7  ;;  %p8932_p13 = por %p8931_p12, %p8930_p11 }
  0x1f   : > { %p8928_p10 = pneg %p8927_p9  ;;  %p8934_p3 = por %p8933_p1, %p8932_p13 }
  0x21   : > { %p8935_p4 = pnand %p8934_p3, %p8928_p10 }
  0x23   : > { %8938 = shalt.err (!%p8935_p4)
}
  0x24   : > { %s8939_s30 = scalar_lea.vmem %s9194_s11, 102400  ;;  %s9080_s12 = smov [#allocation3]  }
  0x25   : > { %p8940_p7 = scmp.ne.s32.totalorder %s9194_s11, %s8939_s30  ;;  %s8944_s13 = sshll.u32 %s9080_s12, 4  ;;  %s8945_s13 = int_to_ptr.vmem [resolvable:$false] %s8944_s13 }
  0x26   : > { %s8946_s14 = scalar_lea.vmem %s8945_s13, 204800  ;;  %p8947_p6 = scmp.lt.s32.totalorder %s9194_s11, %s8945_s13 }
  0x27   : > { %p8942_p9 = pnand %p8940_p7, %p8926_p8  ;;  %p8948_p11 = scmp.lt.s32.totalorder %s8946_s14, %s8939_s30 }
  0x29   : > { %p8943_p2 = pneg %p8942_p9  ;;  %p8949_p12 = por %p8948_p11, %p8947_p6 }
  0x2b   : > { %p8950_p13 = pnand %p8949_p12, %p8943_p2 }
  0x2d   : > { %8953 = shalt.err (!%p8950_p13)
}
  0x2e   : > { %s9081_s4 = smov 256   ;;  %s9082_s5 = smov 128  }
  0x2f   : > { %s9083_s6 = smov 8   ;;  %p241_p2 = scmp.lt.s32.totalorder %s9078_s25, 5 }
  0x30   : > { %7614 = dma.hbm_to_vmem [thread:$0]  (!%p9190_p5), %s9199_s27, 102400, %s9194_s11, %s9202_s29, %s9081_s4, %s9082_s5, %s9083_s6  }
  0x31   : > { %p10462_p4 = scmp.ge.s32.totalorder %s9078_s25, 1  ;;  %s5067_s9 = sadd.s32 4294967295, %s9078_s25  }
  0x32   : > { %s32_s10 = sadd.s32 1, %s9074_s24  ;;  %p80_p8 = scmp.ne.s32.totalorder %s9054_s19, %s9050_s18 }
  0x33   : > { %p9233_p6 = pnand %p10462_p4, %p241_p2  ;;  %s10493_s10 = smov (!%p9169_p0, %s32_s10), %s9074_s24 }
  0x34   : > { %p9244_p10 = scmp.eq.s32.totalorder %s5067_s9, 0  ;;  %p34_p5 = scmp.ge.s32.totalorder %s10493_s10, 2 }
  0x35   : > { %s93_s27 = sadd.s32 1, %s9046_s17  ;;  %p100_p3 = scmp.ne.s32.totalorder %s9046_s17, %s9042_s16 }
  0x36   : > { %p9251_p1 = por %p9244_p10, %p80_p8  ;;  %s10495_s10 = smov (%p34_p5, %s10493_s10), 0 }
  0x37   : > { %10466 = sst [smem:[#allocation9_spill]] %s10495_s10  ;;  %p10467_p0 = scmp.eq.s32.totalorder %s9078_s25, 0 }
  0x38   : > { %s10465_s29 = scalar_select %p9251_p1, 1, 0 }
  0x39   : > { %p9261_p7 = por %p100_p3, %p10467_p0  ;;  %p106_p9 = scmp.ne.s32.totalorder %s9042_s16, %s9038_s15 }
  0x3a   : > { %s63_s28 = ssub.s32 %s9074_s24, %s10495_s10  ;;  %s215_s11 = sand.u32 1, %s9046_s17  }
  0x3b   : > { %s10469_s30 = ssub.s32 %s9070_s23, %s10491_s26  ;;  %p91_p11 = scmp.eq.s32.totalorder %s63_s28, 0 }
  0x3c   : > { %s64_s12 = sor.u32 %s63_s28, %s10469_s30  ;;  %p9275_p13 = por %p106_p9, %p9244_p10 }
  0x3d   : > { %p65_p12 = scmp.eq.s32.totalorder %s64_s12, 0  ;;  %s10471_s4 = sadd.s32 1, %s9058_s20 }
  0x3e   : > { %s10470_s13 = scalar_select %p9275_p13, 1, 0 }
  0x3f   : > { %s9280_s14 = scalar_select %p91_p11, %s9046_s17, %s93_s27  }
  0x40   : > { %s9285_s5 = scalar_select %p65_p12, %s9058_s20, %s10471_s4  }
  0x41   : > { %s5074_s6 = sshll.u32 %s215_s11, 1  ;;  %s5089_s9 = sshll.u32 %s9074_s24, 5 }
  0x42   : > { %s10472_s2 = sld [smem:[#allocation11_spill]]  ;;  %s219_s8 = scalar_lea.vmem [#allocation5], %s5074_s6 }
  0x43   : > { %s227_s28 = sshll.u32 %s219_s8, 4  ;;  %p10473_p2 = scmp.lt.s32.totalorder %s9078_s25, 4  ;;  %s9293_s28 = int_to_ptr.vmem [resolvable:$true] %s227_s28 }
  0x44   : > { %s216_s30 = scalar_lea.sflag [#allocation6], %s215_s11 }
  0x45   : > { %p9299_p4 = pnand %p10473_p2, %p9261_p7 }
  0x47   : > { %p8956_p10 = pneg %p9299_p4 }
  0x48   : > { %s9291_s10 = scalar_lea.hbm %s10472_s2, %s5089_s9  ;;  %s8959_s18 = scalar_lea.hbm %s10472_s2, 64 }
  0x49   : > { %s8954_s1 = scalar_lea.hbm %s9291_s10, 32  ;;  %p8960_p0 = scmp.lt.u32.totalorder %s9291_s10, %s10472_s2 }
  0x4a   : > { %p8955_p8 = scmp.ne.s32.totalorder %s9291_s10, %s8954_s1  ;;  %p8961_p7 = scmp.lt.u32.totalorder %s8959_s18, %s8954_s1 }
  0x4b   : > { %p8963_p11 = scmp.lt.u32.totalorder %s8954_s1, %s9291_s10 }
  0x4c   : > { %p8957_p5 = pnand %p8956_p10, %p8955_p8  ;;  %p8962_p9 = por %p8961_p7, %p8960_p0 }
  0x4e   : > { %p8958_p3 = pneg %p8957_p5  ;;  %p8964_p12 = por %p8963_p11, %p8962_p9 }
  0x50   : > { %p8965_p2 = pnand %p8964_p12, %p8958_p3 }
  0x52   : > { %8968 = shalt.err (!%p8965_p2)
}
  0x53   : > { %s8969_s11 = scalar_lea.vmem %s9293_s28, 32  ;;  %s9084_s15 = smov [#allocation5]  }
  0x54   : > { %p8970_p8 = scmp.ne.s32.totalorder %s9293_s28, %s8969_s11  ;;  %s8974_s8 = sshll.u32 %s9084_s15, 4  ;;  %s8975_s8 = int_to_ptr.vmem [resolvable:$false] %s8974_s8 }
  0x55   : > { %s8976_s12 = scalar_lea.vmem %s8975_s8, 64  ;;  %p8977_p1 = scmp.lt.s32.totalorder %s9293_s28, %s8975_s8 }
  0x56   : > { %p8972_p5 = pnand %p8970_p8, %p8956_p10  ;;  %p8978_p0 = scmp.lt.s32.totalorder %s8976_s12, %s8969_s11 }
  0x58   : > { %p8973_p13 = pneg %p8972_p5  ;;  %p8979_p7 = por %p8978_p0, %p8977_p1 }
  0x5a   : > { %p8980_p9 = pnand %p8979_p7, %p8973_p13 }
  0x5c   : > { %8983 = shalt.err (!%p8980_p9)
}
  0x5d   : > { %7617 = dma.hbm_to_vmem [thread:$0]  (!%p9299_p4), %s9291_s10, 32, %s9293_s28, %s216_s30  }
  0x5e   : > { %245 = sbr.rel (%p9233_p6) target bundleno = 1409 (0x581), region = 36  ;;  %s247_s1 = sand.u32 (!%p9233_p6), 1, %s9054_s19  }
  0x5f   : > { %s7606_s4 = smul.u32 (!%p9233_p6), 6400, %s247_s1  ;;  %s248_s18 = scalar_lea.sflag (!%p9233_p6), [#allocation4], %s247_s1 }
  0x60   : > { %p10475_p10 = scmp.ne.s32.totalorder (!%p9233_p6), %s10465_s29, 0 }
  0x61   : > { %s9331_s6 = scalar_lea.vmem (!%p9233_p6), [#allocation3], %s7606_s4 }
  0x65   : > { %9029 = dma.done.wait (%p10475_p10), %s248_s18, 102400  }
  0x66   : > { %9031 = vsyncadd (%p10475_p10), %s248_s18, 4294864896  ;;  %s256_s27 = sand.u32 1, %s9042_s16   ;;  %p10476_p6 = scmp.ne.s32.totalorder %s10470_s13, 0 }
  0x67   : > { %s9338_s9 = sshll.u32 %s256_s27, 1  ;;  %s257_s7 = scalar_lea.sflag [#allocation6], %s256_s27 }
  0x68   : > { %9033 = dma.done.wait (%p10476_p6), %s257_s7, 32  }
  0x69   : > { %9035 = vsyncadd (%p10476_p6), %s257_s7, 4294967264  ;;  %s299_s28 = smul.u32 50, %s9062_s21  ;;  %s5080_s29 = sshll.u32 %s9066_s22, 5 }
  0x6a   : > { %p309_p1 = scmp.lt.s32.totalorder %s5080_s29, 63  ;;  %p314_p4 = scmp.lt.s32.totalorder %s9066_s22, 1 }
  0x6b   : > { %p300_p13 = scmp.lt.s32.totalorder %s299_s28, 99  ;;  %s10477_s10 = sld [smem:[#allocation12_spill]] }
  0x6c   : > { %s10497_s29 = smov (!%p309_p1, %s5080_s29), 63  ;;  %s10501_s22 = smov (!%p314_p4, %s9066_s22), 1 }
  0x6d   : > { %s10499_s28 = smov (!%p300_p13, %s299_s28), 99  ;;  %s5081_s30 = sshll.u32 %s10497_s29, 3 }
  0x6e   : > { %s5079_s11 = sshll.u32 %s10499_s28, 1  ;;  %s9351_s12 = scalar_lea.vmem %s10449_s3, %s5081_s30 }
  0x6f   : > { %s9356_s4 = scalar_lea.vmem %s10446_s0, %s5079_s11  ;;  %s5082_s18 = sshll.u32 %s10501_s22, 1 }
  0x70   : > { %p5083_p3 = scmp.ne.s32.totalorder %s9062_s21, 0 }
  0x71   : > { %s9362_s2 = scalar_lea.vmem %s10477_s10, %s5082_s18  ;;  %v9085_v0 = vmov (!%p5083_p3), 0.0  }
  0x72   : > { %321 = sbr.rel (%p5083_p3) target bundleno = 121 (0x79), region = 48  ;;  %322 = vst [vmem:[#allocation2] sm:$0xf] (!%p5083_p3), %v9085_v0 }
  0x79 PF: > { %v7712_v1 = vld [vmem:[%s9331_s6 + $0x4] ss:$8 sps:$4 sm:$0xff]   ;;  %v7716_v3 = vld [vmem:[%s9331_s6] ss:$8 sps:$4 sm:$0xff]   ;;  %v7718_v5 = vld [vmem:[%s9331_s6 + $0x14] ss:$8 sps:$4 sm:$0xff]   ;;  %v2754_v39 = vlaneseq }
  0x7a   : > { %v7714_v2 = vld [vmem:[%s9331_s6 + $0xc04] ss:$8 sps:$4 sm:$0xff]   ;;  %5126 = vmatprep.subr.bf16.mxu1 %v7712_v1  ;;  %v7717_v4 = vld [vmem:[%s9331_s6 + $0xc00] ss:$8 sps:$4 sm:$0xff]   ;;  %v7720_v6 = vld [vmem:[%s9331_s6 + $0xc14] ss:$8 sps:$4 sm:$0xff]  }
  0x7b   : > { %5894 = vmatprep.subr.bf16.mxu0 %v7714_v2  ;;  %5128 = vmatpush1.bf16.msra.mxu1 %v7716_v3  ;;  %v7722_v7 = vld [vmem:[%s9331_s6 + $0x10] ss:$8 sps:$4 sm:$0xff]   ;;  %v7724_v9 = vld [vmem:[%s9331_s6 + $0x24] ss:$8 sps:$4 sm:$0xff]   ;;  %v7728_v11 = vld [vmem:[%s9331_s6 + $0x20] ss:$8 sps:$4 sm:$0xff]  }
  0x7c   : > { %5896 = vmatpush1.bf16.msra.mxu0 %v7717_v4  ;;  %5130 = vmatprep.subr.bf16.mxu1 %v7718_v5  ;;  %v7723_v8 = vld [vmem:[%s9331_s6 + $0xc10] ss:$8 sps:$4 sm:$0xff]   ;;  %v7726_v10 = vld [vmem:[%s9331_s6 + $0xc24] ss:$8 sps:$4 sm:$0xff]   ;;  %v7729_v12 = vld [vmem:[%s9331_s6 + $0xc20] ss:$8 sps:$4 sm:$0xff]  }
  0x7d   : > { %5898 = vmatprep.subr.bf16.mxu0 %v7720_v6  ;;  %v7730_v13 = vld [vmem:[%s9331_s6 + $0x34] ss:$8 sps:$4 sm:$0xff]   ;;  %v7734_v15 = vld [vmem:[%s9331_s6 + $0x30] ss:$8 sps:$4 sm:$0xff]   ;;  %v7736_v17 = vld [vmem:[%s9331_s6 + $0x44] ss:$8 sps:$4 sm:$0xff]  }
  0x7e   : > { %v7732_v14 = vld [vmem:[%s9331_s6 + $0xc34] ss:$8 sps:$4 sm:$0xff]   ;;  %v7735_v16 = vld [vmem:[%s9331_s6 + $0xc30] ss:$8 sps:$4 sm:$0xff]   ;;  %v7738_v18 = vld [vmem:[%s9331_s6 + $0xc44] ss:$8 sps:$4 sm:$0xff]  }
  0x7f   : > { %5132 = vmatpush1.bf16.msra.mxu1 %v7722_v7  ;;  %v7740_v19 = vld [vmem:[%s9331_s6 + $0x40] ss:$8 sps:$4 sm:$0xff]   ;;  %v7742_v21 = vld [vmem:[%s9331_s6 + $0x54] ss:$8 sps:$4 sm:$0xff]   ;;  %v7746_v23 = vld [vmem:[%s9331_s6 + $0x50] ss:$8 sps:$4 sm:$0xff]  }
  0x80   : > { %5900 = vmatpush1.bf16.msra.mxu0 %v7723_v8  ;;  %5134 = vmatprep.subr.bf16.mxu1 %v7724_v9  ;;  %v7741_v20 = vld [vmem:[%s9331_s6 + $0xc40] ss:$8 sps:$4 sm:$0xff]   ;;  %v7744_v22 = vld [vmem:[%s9331_s6 + $0xc54] ss:$8 sps:$4 sm:$0xff]   ;;  %v7747_v24 = vld [vmem:[%s9331_s6 + $0xc50] ss:$8 sps:$4 sm:$0xff]  }
  0x81   : > { %5902 = vmatprep.subr.bf16.mxu0 %v7726_v10  ;;  %v7748_v25 = vld [vmem:[%s9331_s6 + $0x64] ss:$8 sps:$4 sm:$0xff]   ;;  %v7752_v27 = vld [vmem:[%s9331_s6 + $0x60] ss:$8 sps:$4 sm:$0xff]   ;;  %v7754_v29 = vld [vmem:[%s9331_s6 + $0x74] ss:$8 sps:$4 sm:$0xff]  }
  0x82   : > { %v7750_v26 = vld [vmem:[%s9331_s6 + $0xc64] ss:$8 sps:$4 sm:$0xff]   ;;  %v7753_v28 = vld [vmem:[%s9331_s6 + $0xc60] ss:$8 sps:$4 sm:$0xff]   ;;  %v7756_v30 = vld [vmem:[%s9331_s6 + $0xc74] ss:$8 sps:$4 sm:$0xff]  }
  0x83   : > { %5136 = vmatpush1.bf16.msra.mxu1 %v7728_v11  ;;  %v7758_v31 = vld [vmem:[%s9331_s6 + $0x70] ss:$8 sps:$4 sm:$0xff]   ;;  %v7760_v33 = vld [vmem:[%s9331_s6 + $0x84] ss:$8 sps:$4 sm:$0xff]   ;;  %v7764_v35 = vld [vmem:[%s9331_s6 + $0x80] ss:$8 sps:$4 sm:$0xff]  }
  0x84   : > { %5904 = vmatpush1.bf16.msra.mxu0 %v7729_v12  ;;  %5138 = vmatprep.subr.bf16.mxu1 %v7730_v13  ;;  %v7759_v32 = vld [vmem:[%s9331_s6 + $0xc70] ss:$8 sps:$4 sm:$0xff]   ;;  %v7762_v34 = vld [vmem:[%s9331_s6 + $0xc84] ss:$8 sps:$4 sm:$0xff]   ;;  %v7765_v36 = vld [vmem:[%s9331_s6 + $0xc80] ss:$8 sps:$4 sm:$0xff]  }
  0x85   : > { %5906 = vmatprep.subr.bf16.mxu0 %v7732_v14  ;;  %v9086_v37 = vmov 1983009808   ;;  %v7766_v40 = vld [vmem:[%s9331_s6 + $0x94] ss:$8 sps:$4 sm:$0xff]   ;;  %v7770_v42 = vld [vmem:[%s9331_s6 + $0x90] ss:$8 sps:$4 sm:$0xff]  }
  0x86   : > { %v2752_v38 = vunpack.c.l.s4 %v9086_v37  ;;  %v7768_v41 = vld [vmem:[%s9331_s6 + $0xc94] ss:$8 sps:$4 sm:$0xff]   ;;  %v9404_v44 = vshrl.u32 %v2754_v39, 7  ;;  %v7771_v45 = vld [vmem:[%s9331_s6 + $0xc90] ss:$8 sps:$4 sm:$0xff]   ;;  %p5085_p11 = scmp.ne.s32.totalorder %s9062_s21, 1 }
  0x87   : > { %5140 = vmatpush1.bf16.msra.mxu1 %v7734_v15  ;;  %v7772_v46 = vld [vmem:[%s9331_s6 + $0xa4] ss:$8 sps:$4 sm:$0xff]   ;;  %v7776_v48 = vld [vmem:[%s9331_s6 + $0xa0] ss:$8 sps:$4 sm:$0xff]   ;;  %v7778_v51 = vld [vmem:[%s9331_s6 + $0xb4] ss:$8 sps:$4 sm:$0xff]  }
  0x88   : > { %5908 = vmatpush1.bf16.msra.mxu0 %v7735_v16  ;;  %5142 = vmatprep.subr.bf16.mxu1 %v7736_v17  ;;  %v2753_v43 = vunpack.c.0.s8 %v2752_v38  ;;  %v7774_v47 = vld [vmem:[%s9331_s6 + $0xca4] ss:$8 sps:$4 sm:$0xff]   ;;  %v7777_v49 = vld [vmem:[%s9331_s6 + $0xca0] ss:$8 sps:$4 sm:$0xff]   ;;  %v7780_v52 = vld [vmem:[%s9331_s6 + $0xcb4] ss:$8 sps:$4 sm:$0xff]  }
  0x89   : > { %5910 = vmatprep.subr.bf16.mxu0 %v7738_v18  ;;  %v324_v53 = vld [vmem:[%s9356_s4] sm:$0xff]  ;;  %v7782_v54 = vld [vmem:[%s9331_s6 + $0xb0] ss:$8 sps:$4 sm:$0xff]   ;;  %v7784_v58 = vld [vmem:[%s9331_s6 + $0xc4] ss:$8 sps:$4 sm:$0xff]   ;;  %s10478_s21 = scalar_lea.vmem (!%p5085_p11), [#allocation5], %s9338_s9 }
  0x8a   : > { %v9412_v50 = vsub.s32 %v2753_v43, %v9404_v44  ;;  %v7783_v56 = vld [vmem:[%s9331_s6 + $0xcb0] ss:$8 sps:$4 sm:$0xff]   ;;  %v7786_v59 = vld [vmem:[%s9331_s6 + $0xcc4] ss:$8 sps:$4 sm:$0xff]   ;;  %v7788_v63 = vld [vmem:[%s9331_s6 + $0xc0] ss:$8 sps:$4 sm:$0xff]   ;;  %v2750_v11 = vcombine.high %v324_v53, %v324_v53 }
  0x8b   : > { %5144 = vmatpush1.bf16.msra.mxu1 %v7740_v19  ;;  %v330_v57 = vld [vmem:[%s9356_s4 + $0x30] sm:$0xff]  ;;  %v7789_v0 = vld [vmem:[%s9331_s6 + $0xcc0] ss:$8 sps:$4 sm:$0xff]   ;;  %v7790_v1 = vld [vmem:[%s9331_s6 + $0xd4] ss:$8 sps:$4 sm:$0xff]   ;;  %vm4939_vm0 = vcmask (!%p5085_p11), 812032  }
  0x8c   : > { %5912 = vmatpush1.bf16.msra.mxu0 %v7741_v20  ;;  %5146 = vmatprep.subr.bf16.mxu1 %v7742_v21  ;;  %v2757_v55 = vrot.slane %v324_v53, %v9412_v50  ;;  %v2859_v61 = vrot.slane %v330_v57, %v9412_v50  ;;  %v7792_v2 = vld [vmem:[%s9331_s6 + $0xcd4] ss:$8 sps:$4 sm:$0xff]   ;;  %v7794_v3 = vld [vmem:[%s9331_s6 + $0xd0] ss:$8 sps:$4 sm:$0xff]   ;;  %v7796_v5 = vld [vmem:[%s9331_s6 + $0xe4] ss:$8 sps:$4 sm:$0xff]   ;;  %v2852_v12 = vcombine.high %v330_v57, %v330_v57 }
  0x8d   : > { %5914 = vmatprep.subr.bf16.mxu0 %v7744_v22  ;;  %v7795_v4 = vld [vmem:[%s9331_s6 + $0xcd0] ss:$8 sps:$4 sm:$0xff]   ;;  %v7798_v6 = vld [vmem:[%s9331_s6 + $0xce4] ss:$8 sps:$4 sm:$0xff]   ;;  %v7800_v7 = vld [vmem:[%s9331_s6 + $0xe0] ss:$8 sps:$4 sm:$0xff]   ;;  %v9441_v17 = vrot.slane %v2750_v11, %v9412_v50 }
  0x8e   : > { %v2765_v60 = vcombine.high %v2757_v55, %v2757_v55  ;;  %v2867_v62 = vcombine.high %v2859_v61, %v2859_v61  ;;  %v7801_v8 = vld [vmem:[%s9331_s6 + $0xce0] ss:$8 sps:$4 sm:$0xff]   ;;  %v7802_v9 = vld [vmem:[%s9331_s6 + $0xf4] ss:$8 sps:$4 sm:$0xff]   ;;  %v7806_v13 = vld [vmem:[%s9331_s6 + $0xf0] ss:$8 sps:$4 sm:$0xff]   ;;  %v9444_v18 = vrot.slane %v2852_v12, %v9412_v50 }
  0x8f   : > { %5148 = vmatpush1.bf16.msra.mxu1 %v7746_v23  ;;  %v7804_v10 = vld [vmem:[%s9331_s6 + $0xcf4] ss:$8 sps:$4 sm:$0xff]   ;;  %v7807_v14 = vld [vmem:[%s9331_s6 + $0xcf0] ss:$8 sps:$4 sm:$0xff]   ;;  %v7809_v15 = vld [vmem:[%s9331_s6 + $0x104] ss:$8 sps:$4 sm:$0xff]   ;;  %v2766_v23 = vcombine.high %v9441_v17, %v9441_v17 }
  0x90   : > { %5916 = vmatpush1.bf16.msra.mxu0 %v7747_v24  ;;  %5150 = vmatprep.subr.bf16.mxu1 %v7748_v25  ;;  %v7813_v16 = vld [vmem:[%s9331_s6 + $0xd04] ss:$8 sps:$4 sm:$0xff]   ;;  %v7811_v19 = vld [vmem:[%s9331_s6 + $0x100] ss:$8 sps:$4 sm:$0xff]   ;;  %v7816_v21 = vld [vmem:[%s9331_s6 + $0x114] ss:$8 sps:$4 sm:$0xff]   ;;  %v2868_v24 = vcombine.high %v9444_v18, %v9444_v18 }
  0x91   : > { %5918 = vmatprep.subr.bf16.mxu0 %v7750_v26  ;;  %3076 = vmatprep.mubr.f32.mxu1 %v2765_v60  ;;  %v7815_v20 = vld [vmem:[%s9331_s6 + $0xd00] ss:$8 sps:$4 sm:$0xff]   ;;  %v7819_v22 = vld [vmem:[%s9331_s6 + $0xd14] ss:$8 sps:$4 sm:$0xff]   ;;  %v7818_v25 = vld [vmem:[%s9331_s6 + $0x110] ss:$8 sps:$4 sm:$0xff]  }
  0x92   : > { %3928 = vmatprep.mubr.f32.mxu0 %v2867_v62  ;;  %v7821_v26 = vld [vmem:[%s9331_s6 + $0xd10] ss:$8 sps:$4 sm:$0xff]   ;;  %v7836_v37 = vld [vmem:[%s9331_s6 + $0x140] ss:$8 sps:$4 sm:$0xff]   ;;  %v7840_v39 = vld [vmem:[%s9331_s6 + $0x154] ss:$8 sps:$4 sm:$0xff]  }
  0x93   : > { %5152 = vmatpush1.bf16.msra.mxu1 %v7752_v27  ;;  %v7822_v27 = vld [vmem:[%s9331_s6 + $0x124] ss:$8 sps:$4 sm:$0xff]   ;;  %v7839_v38 = vld [vmem:[%s9331_s6 + $0xd40] ss:$8 sps:$4 sm:$0xff]   ;;  %v7864_v57 = vld [vmem:[%s9331_s6 + $0x194] ss:$8 sps:$4 sm:$0xff]  }
  0x94   : > { %5920 = vmatpush1.bf16.msra.mxu0 %v7753_v28  ;;  %5154 = vmatprep.subr.bf16.mxu1 %v7754_v29  ;;  %v7825_v28 = vld [vmem:[%s9331_s6 + $0xd24] ss:$8 sps:$4 sm:$0xff]   ;;  %v7824_v29 = vld [vmem:[%s9331_s6 + $0x120] ss:$8 sps:$4 sm:$0xff]   ;;  %v7869_v60 = vld [vmem:[%s9331_s6 + $0xd90] ss:$8 sps:$4 sm:$0xff]  }
  0x95   : > { %5922 = vmatprep.subr.bf16.mxu0 %v7756_v30  ;;  %v7827_v30 = vld [vmem:[%s9331_s6 + $0xd20] ss:$8 sps:$4 sm:$0xff]   ;;  %v7846_v43 = vld [vmem:[%s9331_s6 + $0x164] ss:$8 sps:$4 sm:$0xff]   ;;  %v7890_v11 = vld [vmem:[%s9331_s6 + $0x1d0] ss:$8 sps:$4 sm:$0xff]  }
  0x96   : > { %v7858_v53 = vld [vmem:[%s9331_s6 + $0x184] ss:$8 sps:$4 sm:$0xff]   ;;  %v7893_v12 = vld [vmem:[%s9331_s6 + $0xdd0] ss:$8 sps:$4 sm:$0xff]  }
  0x97   : > { %5156 = vmatpush1.bf16.msra.mxu1 %v7758_v31  ;;  %v7828_v31 = vld [vmem:[%s9331_s6 + $0x134] ss:$8 sps:$4 sm:$0xff]   ;;  %v7873_v62 = vld [vmem:[%s9331_s6 + $0xda4] ss:$8 sps:$4 sm:$0xff]  }
  0x98   : > { %5924 = vmatpush1.bf16.msra.mxu0 %v7759_v32  ;;  %5158 = vmatprep.subr.bf16.mxu1 %v7760_v33  ;;  %v7831_v32 = vld [vmem:[%s9331_s6 + $0xd34] ss:$8 sps:$4 sm:$0xff]   ;;  %v7830_v33 = vld [vmem:[%s9331_s6 + $0x130] ss:$8 sps:$4 sm:$0xff]  }
  0x99   : > { %5926 = vmatprep.subr.bf16.mxu0 %v7762_v34  ;;  %v7833_v34 = vld [vmem:[%s9331_s6 + $0xd30] ss:$8 sps:$4 sm:$0xff]  }
  0x9b   : > { %5160 = vmatpush1.bf16.msra.mxu1 %v7764_v35  ;;  %v7834_v35 = vld [vmem:[%s9331_s6 + $0x144] ss:$8 sps:$4 sm:$0xff]  }
  0x9c   : > { %5928 = vmatpush1.bf16.msra.mxu0 %v7765_v36  ;;  %5162 = vmatprep.subr.bf16.mxu1 %v7766_v40  ;;  %v7837_v36 = vld [vmem:[%s9331_s6 + $0xd44] ss:$8 sps:$4 sm:$0xff]   ;;  %v7843_v40 = vld [vmem:[%s9331_s6 + $0xd54] ss:$8 sps:$4 sm:$0xff]  }
  0x9d   : > { %5930 = vmatprep.subr.bf16.mxu0 %v7768_v41  ;;  %v7842_v41 = vld [vmem:[%s9331_s6 + $0x150] ss:$8 sps:$4 sm:$0xff]  }
  0x9f   : > { %5164 = vmatpush1.bf16.msra.mxu1 %v7770_v42  ;;  %v7845_v42 = vld [vmem:[%s9331_s6 + $0xd50] ss:$8 sps:$4 sm:$0xff]  }
  0xa0   : > { %5932 = vmatpush1.bf16.msra.mxu0 %v7771_v45  ;;  %5166 = vmatprep.subr.bf16.mxu1 %v7772_v46  ;;  %v7849_v45 = vld [vmem:[%s9331_s6 + $0xd64] ss:$8 sps:$4 sm:$0xff]   ;;  %v7848_v46 = vld [vmem:[%s9331_s6 + $0x160] ss:$8 sps:$4 sm:$0xff]  }
  0xa1   : > { %5934 = vmatprep.subr.bf16.mxu0 %v7774_v47  ;;  %v7851_v47 = vld [vmem:[%s9331_s6 + $0xd60] ss:$8 sps:$4 sm:$0xff]  }
  0xa3   : > { %5168 = vmatpush1.bf16.msra.mxu1 %v7776_v48  ;;  %v7852_v48 = vld [vmem:[%s9331_s6 + $0x174] ss:$8 sps:$4 sm:$0xff]  }
  0xa4   : > { %5936 = vmatpush1.bf16.msra.mxu0 %v7777_v49  ;;  %5170 = vmatprep.subr.bf16.mxu1 %v7778_v51  ;;  %v7855_v49 = vld [vmem:[%s9331_s6 + $0xd74] ss:$8 sps:$4 sm:$0xff]   ;;  %v7854_v51 = vld [vmem:[%s9331_s6 + $0x170] ss:$8 sps:$4 sm:$0xff]  }
  0xa5   : > { %5938 = vmatprep.subr.bf16.mxu0 %v7780_v52  ;;  %v7857_v52 = vld [vmem:[%s9331_s6 + $0xd70] ss:$8 sps:$4 sm:$0xff]  }
  0xa7   : > { %5172 = vmatpush1.bf16.msra.mxu1 %v7782_v54  ;;  %v7861_v54 = vld [vmem:[%s9331_s6 + $0xd84] ss:$8 sps:$4 sm:$0xff]  }
  0xa8   : > { %5940 = vmatpush1.bf16.msra.mxu0 %v7783_v56  ;;  %5174 = vmatprep.subr.bf16.mxu1 %v7784_v58  ;;  %v7863_v56 = vld [vmem:[%s9331_s6 + $0xd80] ss:$8 sps:$4 sm:$0xff]   ;;  %v7867_v58 = vld [vmem:[%s9331_s6 + $0xd94] ss:$8 sps:$4 sm:$0xff]  }
  0xa9   : > { %5942 = vmatprep.subr.bf16.mxu0 %v7786_v59  ;;  %v7866_v59 = vld [vmem:[%s9331_s6 + $0x190] ss:$8 sps:$4 sm:$0xff]  }
  0xab   : > { %5176 = vmatpush1.bf16.msra.mxu1 %v7788_v63  ;;  %v7872_v63 = vld [vmem:[%s9331_s6 + $0x1a0] ss:$8 sps:$4 sm:$0xff]  }
  0xac   : > { %5944 = vmatpush1.bf16.msra.mxu0 %v7789_v0  ;;  %5178 = vmatprep.subr.bf16.mxu1 %v7790_v1  ;;  %v7875_v0 = vld [vmem:[%s9331_s6 + $0xda0] ss:$8 sps:$4 sm:$0xff]   ;;  %v7876_v1 = vld [vmem:[%s9331_s6 + $0x1b4] ss:$8 sps:$4 sm:$0xff]  }
  0xad   : > { %5946 = vmatprep.subr.bf16.mxu0 %v7792_v2  ;;  %v7879_v2 = vld [vmem:[%s9331_s6 + $0xdb4] ss:$8 sps:$4 sm:$0xff]  }
  0xaf   : > { %5180 = vmatpush1.bf16.msra.mxu1 %v7794_v3  ;;  %v7878_v3 = vld [vmem:[%s9331_s6 + $0x1b0] ss:$8 sps:$4 sm:$0xff]  }
  0xb0   : > { %5948 = vmatpush1.bf16.msra.mxu0 %v7795_v4  ;;  %5182 = vmatprep.subr.bf16.mxu1 %v7796_v5  ;;  %v7881_v4 = vld [vmem:[%s9331_s6 + $0xdb0] ss:$8 sps:$4 sm:$0xff]   ;;  %v7882_v5 = vld [vmem:[%s9331_s6 + $0x1c4] ss:$8 sps:$4 sm:$0xff]  }
  0xb1   : > { %5950 = vmatprep.subr.bf16.mxu0 %v7798_v6  ;;  %v7885_v6 = vld [vmem:[%s9331_s6 + $0xdc4] ss:$8 sps:$4 sm:$0xff]  }
  0xb3   : > { %5184 = vmatpush1.bf16.msra.mxu1 %v7800_v7  ;;  %v7884_v7 = vld [vmem:[%s9331_s6 + $0x1c0] ss:$8 sps:$4 sm:$0xff]  }
  0xb4   : > { %5952 = vmatpush1.bf16.msra.mxu0 %v7801_v8  ;;  %5186 = vmatprep.subr.bf16.mxu1 %v7802_v9  ;;  %v7887_v8 = vld [vmem:[%s9331_s6 + $0xdc0] ss:$8 sps:$4 sm:$0xff]   ;;  %v7888_v9 = vld [vmem:[%s9331_s6 + $0x1d4] ss:$8 sps:$4 sm:$0xff]  }
  0xb5   : > { %5954 = vmatprep.subr.bf16.mxu0 %v7804_v10  ;;  %v7891_v10 = vld [vmem:[%s9331_s6 + $0xdd4] ss:$8 sps:$4 sm:$0xff]  }
  0xb7   : > { %5188 = vmatpush1.bf16.msra.mxu1 %v7806_v13  ;;  %v7894_v13 = vld [vmem:[%s9331_s6 + $0x1e4] ss:$8 sps:$4 sm:$0xff]  }
  0xb8   : > { %5956 = vmatpush1.bf16.msra.mxu0 %v7807_v14  ;;  %5190 = vmatprep.subr.bf16.mxu1 %v7809_v15  ;;  %v7897_v14 = vld [vmem:[%s9331_s6 + $0xde4] ss:$8 sps:$4 sm:$0xff]   ;;  %v7896_v15 = vld [vmem:[%s9331_s6 + $0x1e0] ss:$8 sps:$4 sm:$0xff]  }
  0xb9   : > { %5958 = vmatprep.subr.bf16.mxu0 %v7813_v16  ;;  %v7899_v16 = vld [vmem:[%s9331_s6 + $0xde0] ss:$8 sps:$4 sm:$0xff]  }
  0xba   : > { %3077 = vmatmul.mubr.f32.vlgmr.msra.gmra.mrb[0].mxu1 %v2757_v55  ;;  %v7860_v55 = vld [vmem:[%s9331_s6 + $0x180] ss:$8 sps:$4 sm:$0xff]  }
  0xbb   : > { %3929 = vmatmul.mubr.f32.vlgmr.msra.gmra.mrb[0].mxu0 %v2859_v61  ;;  %5192 = vmatpush1.bf16.msra.mxu1 %v7811_v19  ;;  %v7870_v61 = vld [vmem:[%s9331_s6 + $0x1a4] ss:$8 sps:$4 sm:$0xff]   ;;  %v7900_v19 = vld [vmem:[%s9331_s6 + $0x1f4] ss:$8 sps:$4 sm:$0xff]  }
  0xbc   : > { %5960 = vmatpush1.bf16.msra.mxu0 %v7815_v20  ;;  %5194 = vmatprep.subr.bf16.mxu1 %v7816_v21  ;;  %v7903_v20 = vld [vmem:[%s9331_s6 + $0xdf4] ss:$8 sps:$4 sm:$0xff]   ;;  %v7902_v21 = vld [vmem:[%s9331_s6 + $0x1f0] ss:$8 sps:$4 sm:$0xff]  }
  0xbd   : > { %5962 = vmatprep.subr.bf16.mxu0 %v7819_v22  ;;  %3147 = vmatprep.mubr.f32.mxu1 %v2766_v23  ;;  %v7905_v22 = vld [vmem:[%s9331_s6 + $0xdf0] ss:$8 sps:$4 sm:$0xff]   ;;  %v7906_v23 = vld [vmem:[%s9331_s6 + $0x204] ss:$8 sps:$4 sm:$0xff]  }
  0xbe   : > { %3999 = vmatprep.mubr.f32.mxu0 %v2868_v24  ;;  %v7909_v24 = vld [vmem:[%s9331_s6 + $0xe04] ss:$8 sps:$4 sm:$0xff]  }
  0xbf   : > { %5196 = vmatpush1.bf16.msra.mxu1 %v7818_v25  ;;  %v7908_v25 = vld [vmem:[%s9331_s6 + $0x200] ss:$8 sps:$4 sm:$0xff]  }
  0xc0   : > { %5964 = vmatpush1.bf16.msra.mxu0 %v7821_v26  ;;  %5198 = vmatprep.subr.bf16.mxu1 %v7822_v27  ;;  %v7911_v26 = vld [vmem:[%s9331_s6 + $0xe00] ss:$8 sps:$4 sm:$0xff]   ;;  %v7912_v27 = vld [vmem:[%s9331_s6 + $0x214] ss:$8 sps:$4 sm:$0xff]  }
  0xc1   : > { %5966 = vmatprep.subr.bf16.mxu0 %v7825_v28  ;;  %v9518_v28 = vld [vmem:[%s9356_s4 + $0x8] sm:$0xff] }
  0xc3   : > { %5200 = vmatpush1.bf16.msra.mxu1 %v7824_v29  ;;  %v7915_v29 = vld [vmem:[%s9331_s6 + $0xe14] ss:$8 sps:$4 sm:$0xff]  }
  0xc4   : > { %5968 = vmatpush1.bf16.msra.mxu0 %v7827_v30  ;;  %5202 = vmatprep.subr.bf16.mxu1 %v7828_v31  ;;  %v9523_v30 = vrot.slane %v9518_v28, %v9412_v50  ;;  %v9526_v31 = vld [vmem:[%s9356_s4 + $0x38] sm:$0xff] }
  0xc5   : > { %5970 = vmatprep.subr.bf16.mxu0 %v7831_v32  ;;  %v7914_v32 = vld [vmem:[%s9331_s6 + $0x210] ss:$8 sps:$4 sm:$0xff]  }
  0xc7   : > { %5204 = vmatpush1.bf16.msra.mxu1 %v7830_v33  ;;  %v7917_v33 = vld [vmem:[%s9331_s6 + $0xe10] ss:$8 sps:$4 sm:$0xff]  }
  0xc8   : > { %5972 = vmatpush1.bf16.msra.mxu0 %v7833_v34  ;;  %5206 = vmatprep.subr.bf16.mxu1 %v7834_v35  ;;  %v2782_v34 = vcombine.high %v9523_v30, %v9523_v30  ;;  %v9536_v35 = vrot.slane %v9526_v31, %v9412_v50 }
  0xc9   : > { %5974 = vmatprep.subr.bf16.mxu0 %v7837_v36  ;;  %v7918_v36 = vld [vmem:[%s9331_s6 + $0x224] ss:$8 sps:$4 sm:$0xff]  }
  0xcb   : > { %5208 = vmatpush1.bf16.msra.mxu1 %v7836_v37  ;;  %v7920_v37 = vld [vmem:[%s9331_s6 + $0x220] ss:$8 sps:$4 sm:$0xff]  }
  0xcc   : > { %5976 = vmatpush1.bf16.msra.mxu0 %v7839_v38  ;;  %5210 = vmatprep.subr.bf16.mxu1 %v7840_v39  ;;  %v7923_v38 = vld [vmem:[%s9331_s6 + $0xe20] ss:$8 sps:$4 sm:$0xff]   ;;  %v7924_v39 = vld [vmem:[%s9331_s6 + $0x234] ss:$8 sps:$4 sm:$0xff]  }
  0xcd   : > { %5978 = vmatprep.subr.bf16.mxu0 %v7843_v40  ;;  %v7927_v40 = vld [vmem:[%s9331_s6 + $0xe34] ss:$8 sps:$4 sm:$0xff]  }
  0xcf   : > { %5212 = vmatpush1.bf16.msra.mxu1 %v7842_v41  ;;  %v7926_v41 = vld [vmem:[%s9331_s6 + $0x230] ss:$8 sps:$4 sm:$0xff]  }
  0xd0   : > { %5980 = vmatpush1.bf16.msra.mxu0 %v7845_v42  ;;  %5214 = vmatprep.subr.bf16.mxu1 %v7846_v43  ;;  %v7929_v42 = vld [vmem:[%s9331_s6 + $0xe30] ss:$8 sps:$4 sm:$0xff]   ;;  %v7930_v43 = vld [vmem:[%s9331_s6 + $0x244] ss:$8 sps:$4 sm:$0xff]  }
  0xd1   : > { %5982 = vmatprep.subr.bf16.mxu0 %v7849_v45  ;;  %v7933_v45 = vld [vmem:[%s9331_s6 + $0xe44] ss:$8 sps:$4 sm:$0xff]  }
  0xd3   : > { %5216 = vmatpush1.bf16.msra.mxu1 %v7848_v46  ;;  %v7932_v46 = vld [vmem:[%s9331_s6 + $0x240] ss:$8 sps:$4 sm:$0xff]  }
  0xd4   : > { %5984 = vmatpush1.bf16.msra.mxu0 %v7851_v47  ;;  %5218 = vmatprep.subr.bf16.mxu1 %v7852_v48  ;;  %v7935_v47 = vld [vmem:[%s9331_s6 + $0xe40] ss:$8 sps:$4 sm:$0xff]   ;;  %v7936_v48 = vld [vmem:[%s9331_s6 + $0x254] ss:$8 sps:$4 sm:$0xff]  }
  0xd5   : > { %5986 = vmatprep.subr.bf16.mxu0 %v7855_v49  ;;  %v7939_v49 = vld [vmem:[%s9331_s6 + $0xe54] ss:$8 sps:$4 sm:$0xff]  }
  0xd7   : > { %5220 = vmatpush1.bf16.msra.mxu1 %v7854_v51  ;;  %v7938_v51 = vld [vmem:[%s9331_s6 + $0x250] ss:$8 sps:$4 sm:$0xff]  }
  0xd8   : > { %5988 = vmatpush1.bf16.msra.mxu0 %v7857_v52  ;;  %5222 = vmatprep.subr.bf16.mxu1 %v7858_v53  ;;  %v7941_v52 = vld [vmem:[%s9331_s6 + $0xe50] ss:$8 sps:$4 sm:$0xff]   ;;  %v7942_v53 = vld [vmem:[%s9331_s6 + $0x264] ss:$8 sps:$4 sm:$0xff]  }
  0xd9   : > { %5990 = vmatprep.subr.bf16.mxu0 %v7861_v54  ;;  %v7945_v54 = vld [vmem:[%s9331_s6 + $0xe64] ss:$8 sps:$4 sm:$0xff]  }
  0xdb   : > { %5224 = vmatpush1.bf16.msra.mxu1 %v7860_v55  ;;  %v7944_v55 = vld [vmem:[%s9331_s6 + $0x260] ss:$8 sps:$4 sm:$0xff]  }
  0xdc   : > { %5992 = vmatpush1.bf16.msra.mxu0 %v7863_v56  ;;  %5226 = vmatprep.subr.bf16.mxu1 %v7864_v57  ;;  %v7947_v56 = vld [vmem:[%s9331_s6 + $0xe60] ss:$8 sps:$4 sm:$0xff]   ;;  %v7948_v57 = vld [vmem:[%s9331_s6 + $0x274] ss:$8 sps:$4 sm:$0xff]  }
  0xdd   : > { %5994 = vmatprep.subr.bf16.mxu0 %v7867_v58  ;;  %v7951_v58 = vld [vmem:[%s9331_s6 + $0xe74] ss:$8 sps:$4 sm:$0xff]  }
  0xdf   : > { %5228 = vmatpush1.bf16.msra.mxu1 %v7866_v59  ;;  %v7950_v59 = vld [vmem:[%s9331_s6 + $0x270] ss:$8 sps:$4 sm:$0xff]  }
  0xe0   : > { %5996 = vmatpush1.bf16.msra.mxu0 %v7869_v60  ;;  %5230 = vmatprep.subr.bf16.mxu1 %v7870_v61  ;;  %v7953_v60 = vld [vmem:[%s9331_s6 + $0xe70] ss:$8 sps:$4 sm:$0xff]   ;;  %v7954_v61 = vld [vmem:[%s9331_s6 + $0x284] ss:$8 sps:$4 sm:$0xff]  }
  0xe1   : > { %5998 = vmatprep.subr.bf16.mxu0 %v7873_v62  ;;  %v7957_v62 = vld [vmem:[%s9331_s6 + $0xe84] ss:$8 sps:$4 sm:$0xff]  }
  0xe3   : > { %5232 = vmatpush1.bf16.msra.mxu1 %v7872_v63  ;;  %v7956_v63 = vld [vmem:[%s9331_s6 + $0x280] ss:$8 sps:$4 sm:$0xff]  }
  0xe4   : > { %6000 = vmatpush1.bf16.msra.mxu0 %v7875_v0  ;;  %5234 = vmatprep.subr.bf16.mxu1 %v7876_v1  ;;  %v7959_v0 = vld [vmem:[%s9331_s6 + $0xe80] ss:$8 sps:$4 sm:$0xff]   ;;  %v7960_v1 = vld [vmem:[%s9331_s6 + $0x294] ss:$8 sps:$4 sm:$0xff]  }
  0xe5   : > { %6002 = vmatprep.subr.bf16.mxu0 %v7879_v2  ;;  %v7963_v2 = vld [vmem:[%s9331_s6 + $0xe94] ss:$8 sps:$4 sm:$0xff]  }
  0xe7   : > { %5236 = vmatpush1.bf16.msra.mxu1 %v7878_v3  ;;  %v7962_v3 = vld [vmem:[%s9331_s6 + $0x290] ss:$8 sps:$4 sm:$0xff]  }
  0xe8   : > { %6004 = vmatpush1.bf16.msra.mxu0 %v7881_v4  ;;  %5238 = vmatprep.subr.bf16.mxu1 %v7882_v5  ;;  %v7965_v4 = vld [vmem:[%s9331_s6 + $0xe90] ss:$8 sps:$4 sm:$0xff]   ;;  %v7966_v5 = vld [vmem:[%s9331_s6 + $0x2a4] ss:$8 sps:$4 sm:$0xff]  }
  0xe9   : > { %6006 = vmatprep.subr.bf16.mxu0 %v7885_v6  ;;  %v7969_v6 = vld [vmem:[%s9331_s6 + $0xea4] ss:$8 sps:$4 sm:$0xff]  }
  0xeb   : > { %5240 = vmatpush1.bf16.msra.mxu1 %v7884_v7  ;;  %v7968_v7 = vld [vmem:[%s9331_s6 + $0x2a0] ss:$8 sps:$4 sm:$0xff]  }
  0xec   : > { %6008 = vmatpush1.bf16.msra.mxu0 %v7887_v8  ;;  %5242 = vmatprep.subr.bf16.mxu1 %v7888_v9  ;;  %v7971_v8 = vld [vmem:[%s9331_s6 + $0xea0] ss:$8 sps:$4 sm:$0xff]   ;;  %v7972_v9 = vld [vmem:[%s9331_s6 + $0x2b4] ss:$8 sps:$4 sm:$0xff]  }
  0xed   : > { %6010 = vmatprep.subr.bf16.mxu0 %v7891_v10  ;;  %v7975_v10 = vld [vmem:[%s9331_s6 + $0xeb4] ss:$8 sps:$4 sm:$0xff]  }
  0xef   : > { %5244 = vmatpush1.bf16.msra.mxu1 %v7890_v11  ;;  %v7974_v11 = vld [vmem:[%s9331_s6 + $0x2b0] ss:$8 sps:$4 sm:$0xff]  }
  0xf0   : > { %6012 = vmatpush1.bf16.msra.mxu0 %v7893_v12  ;;  %5246 = vmatprep.subr.bf16.mxu1 %v7894_v13  ;;  %v7977_v12 = vld [vmem:[%s9331_s6 + $0xeb0] ss:$8 sps:$4 sm:$0xff]   ;;  %v7978_v13 = vld [vmem:[%s9331_s6 + $0x2c4] ss:$8 sps:$4 sm:$0xff]  }
  0xf1   : > { %6014 = vmatprep.subr.bf16.mxu0 %v7897_v14  ;;  %v7981_v14 = vld [vmem:[%s9331_s6 + $0xec4] ss:$8 sps:$4 sm:$0xff]  }
  0xf3   : > { %5248 = vmatpush1.bf16.msra.mxu1 %v7896_v15  ;;  %v7980_v15 = vld [vmem:[%s9331_s6 + $0x2c0] ss:$8 sps:$4 sm:$0xff]  }
  0xf4   : > { %6016 = vmatpush1.bf16.msra.mxu0 %v7899_v16  ;;  %5250 = vmatprep.subr.bf16.mxu1 %v7900_v19  ;;  %v7983_v16 = vld [vmem:[%s9331_s6 + $0xec0] ss:$8 sps:$4 sm:$0xff]   ;;  %v7984_v19 = vld [vmem:[%s9331_s6 + $0x2d4] ss:$8 sps:$4 sm:$0xff]  }
  0xf5   : > { %6018 = vmatprep.subr.bf16.mxu0 %v7903_v20  ;;  %v7987_v20 = vld [vmem:[%s9331_s6 + $0xed4] ss:$8 sps:$4 sm:$0xff]  }
  0xf7   : > { %5252 = vmatpush1.bf16.msra.mxu1 %v7902_v21  ;;  %v7986_v21 = vld [vmem:[%s9331_s6 + $0x2d0] ss:$8 sps:$4 sm:$0xff]  }
  0xf8   : > { %6020 = vmatpush1.bf16.msra.mxu0 %v7905_v22  ;;  %5254 = vmatprep.subr.bf16.mxu1 %v7906_v23  ;;  %v7989_v22 = vld [vmem:[%s9331_s6 + $0xed0] ss:$8 sps:$4 sm:$0xff]   ;;  %v7990_v23 = vld [vmem:[%s9331_s6 + $0x2e4] ss:$8 sps:$4 sm:$0xff]  }
  0xf9   : > { %6022 = vmatprep.subr.bf16.mxu0 %v7909_v24  ;;  %v7993_v24 = vld [vmem:[%s9331_s6 + $0xee4] ss:$8 sps:$4 sm:$0xff]  }
  0xfa   : > { %3148 = vmatmul.mubr.f32.vlgmr.msra.gmra.mrb[0].mxu1 %v9441_v17  ;;  %v7921_v17 = vld [vmem:[%s9331_s6 + $0xe24] ss:$8 sps:$4 sm:$0xff]  }
  0xfb   : > { %4000 = vmatmul.mubr.f32.vlgmr.msra.gmra.mrb[0].mxu0 %v9444_v18  ;;  %5256 = vmatpush1.bf16.msra.mxu1 %v7908_v25  ;;  %v2884_v18 = vcombine.high %v9536_v35, %v9536_v35  ;;  %v7992_v25 = vld [vmem:[%s9331_s6 + $0x2e0] ss:$8 sps:$4 sm:$0xff]  }
  0xfc   : > { %6024 = vmatpush1.bf16.msra.mxu0 %v7911_v26  ;;  %5258 = vmatprep.subr.bf16.mxu1 %v7912_v27  ;;  %v7995_v26 = vld [vmem:[%s9331_s6 + $0xee0] ss:$8 sps:$4 sm:$0xff]   ;;  %v7996_v27 = vld [vmem:[%s9331_s6 + $0x2f4] ss:$8 sps:$4 sm:$0xff]  }
  0xfd   : > { %6026 = vmatprep.subr.bf16.mxu0 %v7915_v29  ;;  %3218 = vmatprep.mubr.f32.mxu1 %v2782_v34  ;;  %v7999_v29 = vld [vmem:[%s9331_s6 + $0xef4] ss:$8 sps:$4 sm:$0xff]   ;;  %v7998_v34 = vld [vmem:[%s9331_s6 + $0x2f0] ss:$8 sps:$4 sm:$0xff]  }
  0xfe   : > { %4070 = vmatprep.mubr.f32.mxu0 %v2884_v18  ;;  %v8005_v18 = vld [vmem:[%s9331_s6 + $0xf04] ss:$8 sps:$4 sm:$0xff]  }
  0xff   : > { %5260 = vmatpush1.bf16.msra.mxu1 %v7914_v32  ;;  %v2767_v32 = vcombine.high %v9518_v28, %v9518_v28 }
 0x100   : > { %6028 = vmatpush1.bf16.msra.mxu0 %v7917_v33  ;;  %5262 = vmatprep.subr.bf16.mxu1 %v7918_v36  ;;  %v2869_v33 = vcombine.high %v9526_v31, %v9526_v31  ;;  %v8001_v36 = vld [vmem:[%s9331_s6 + $0xef0] ss:$8 sps:$4 sm:$0xff]   ;;  %v8007_v31 = vld [vmem:[%s9331_s6 + $0xf00] ss:$8 sps:$4 sm:$0xff]  }
 0x101   : > { %6030 = vmatprep.subr.bf16.mxu0 %v7921_v17  ;;  %v8002_v17 = vld [vmem:[%s9331_s6 + $0x304] ss:$8 sps:$4 sm:$0xff]  }
 0x102   : > { %v9606_v28 = vrot.slane %v2869_v33, %v9412_v50  ;;  %v8085_v33 = vld [vmem:[%s9331_s6 + $0xfd0] ss:$8 sps:$4 sm:$0xff]  }
 0x103   : > { %5264 = vmatpush1.bf16.msra.mxu1 %v7920_v37  ;;  %v9603_v37 = vrot.slane %v2767_v32, %v9412_v50  ;;  %v8082_v32 = vld [vmem:[%s9331_s6 + $0x3d0] ss:$8 sps:$4 sm:$0xff]  }
 0x104   : > { %6032 = vmatpush1.bf16.msra.mxu0 %v7923_v38  ;;  %5266 = vmatprep.subr.bf16.mxu1 %v7924_v39  ;;  %v8004_v38 = vld [vmem:[%s9331_s6 + $0x300] ss:$8 sps:$4 sm:$0xff]   ;;  %v8008_v39 = vld [vmem:[%s9331_s6 + $0x314] ss:$8 sps:$4 sm:$0xff]  }
 0x105   : > { %6034 = vmatprep.subr.bf16.mxu0 %v7927_v40  ;;  %v8011_v40 = vld [vmem:[%s9331_s6 + $0xf14] ss:$8 sps:$4 sm:$0xff]  }
 0x107   : > { %5268 = vmatpush1.bf16.msra.mxu1 %v7926_v41  ;;  %v2783_v41 = vcombine.high %v9603_v37, %v9603_v37 }
 0x108   : > { %6036 = vmatpush1.bf16.msra.mxu0 %v7929_v42  ;;  %5270 = vmatprep.subr.bf16.mxu1 %v7930_v43  ;;  %v2885_v42 = vcombine.high %v9606_v28, %v9606_v28  ;;  %v8010_v43 = vld [vmem:[%s9331_s6 + $0x310] ss:$8 sps:$4 sm:$0xff]  }
 0x109   : > { %6038 = vmatprep.subr.bf16.mxu0 %v7933_v45  ;;  %v8013_v45 = vld [vmem:[%s9331_s6 + $0xf10] ss:$8 sps:$4 sm:$0xff]  }
 0x10b   : > { %5272 = vmatpush1.bf16.msra.mxu1 %v7932_v46  ;;  %v8014_v46 = vld [vmem:[%s9331_s6 + $0x324] ss:$8 sps:$4 sm:$0xff]  }
 0x10c   : > { %6040 = vmatpush1.bf16.msra.mxu0 %v7935_v47  ;;  %5274 = vmatprep.subr.bf16.mxu1 %v7936_v48  ;;  %v8017_v47 = vld [vmem:[%s9331_s6 + $0xf24] ss:$8 sps:$4 sm:$0xff]   ;;  %v8016_v48 = vld [vmem:[%s9331_s6 + $0x320] ss:$8 sps:$4 sm:$0xff]  }
 0x10d   : > { %6042 = vmatprep.subr.bf16.mxu0 %v7939_v49  ;;  %v8023_v49 = vld [vmem:[%s9331_s6 + $0xf34] ss:$8 sps:$4 sm:$0xff]  }
 0x10f   : > { %5276 = vmatpush1.bf16.msra.mxu1 %v7938_v51  ;;  %v8022_v51 = vld [vmem:[%s9331_s6 + $0x330] ss:$8 sps:$4 sm:$0xff]  }
 0x110   : > { %6044 = vmatpush1.bf16.msra.mxu0 %v7941_v52  ;;  %5278 = vmatprep.subr.bf16.mxu1 %v7942_v53  ;;  %v8025_v52 = vld [vmem:[%s9331_s6 + $0xf30] ss:$8 sps:$4 sm:$0xff]   ;;  %v8026_v53 = vld [vmem:[%s9331_s6 + $0x344] ss:$8 sps:$4 sm:$0xff]  }
 0x111   : > { %6046 = vmatprep.subr.bf16.mxu0 %v7945_v54  ;;  %v8029_v54 = vld [vmem:[%s9331_s6 + $0xf44] ss:$8 sps:$4 sm:$0xff]  }
 0x113   : > { %5280 = vmatpush1.bf16.msra.mxu1 %v7944_v55  ;;  %v8028_v55 = vld [vmem:[%s9331_s6 + $0x340] ss:$8 sps:$4 sm:$0xff]  }
 0x114   : > { %6048 = vmatpush1.bf16.msra.mxu0 %v7947_v56  ;;  %5282 = vmatprep.subr.bf16.mxu1 %v7948_v57  ;;  %v8031_v56 = vld [vmem:[%s9331_s6 + $0xf40] ss:$8 sps:$4 sm:$0xff]   ;;  %v8032_v57 = vld [vmem:[%s9331_s6 + $0x354] ss:$8 sps:$4 sm:$0xff]  }
 0x115   : > { %6050 = vmatprep.subr.bf16.mxu0 %v7951_v58  ;;  %v8035_v58 = vld [vmem:[%s9331_s6 + $0xf54] ss:$8 sps:$4 sm:$0xff]  }
 0x117   : > { %5284 = vmatpush1.bf16.msra.mxu1 %v7950_v59  ;;  %v8034_v59 = vld [vmem:[%s9331_s6 + $0x350] ss:$8 sps:$4 sm:$0xff]  }
 0x118   : > { %6052 = vmatpush1.bf16.msra.mxu0 %v7953_v60  ;;  %5286 = vmatprep.subr.bf16.mxu1 %v7954_v61  ;;  %v8037_v60 = vld [vmem:[%s9331_s6 + $0xf50] ss:$8 sps:$4 sm:$0xff]   ;;  %v8038_v61 = vld [vmem:[%s9331_s6 + $0x364] ss:$8 sps:$4 sm:$0xff]  }
 0x119   : > { %6054 = vmatprep.subr.bf16.mxu0 %v7957_v62  ;;  %v8041_v62 = vld [vmem:[%s9331_s6 + $0xf64] ss:$8 sps:$4 sm:$0xff]  }
 0x11b   : > { %5288 = vmatpush1.bf16.msra.mxu1 %v7956_v63  ;;  %v8040_v63 = vld [vmem:[%s9331_s6 + $0x360] ss:$8 sps:$4 sm:$0xff]  }
 0x11c   : > { %6056 = vmatpush1.bf16.msra.mxu0 %v7959_v0  ;;  %5290 = vmatprep.subr.bf16.mxu1 %v7960_v1  ;;  %v8043_v0 = vld [vmem:[%s9331_s6 + $0xf60] ss:$8 sps:$4 sm:$0xff]   ;;  %v8044_v1 = vld [vmem:[%s9331_s6 + $0x374] ss:$8 sps:$4 sm:$0xff]  }
 0x11d   : > { %6058 = vmatprep.subr.bf16.mxu0 %v7963_v2  ;;  %v8047_v2 = vld [vmem:[%s9331_s6 + $0xf74] ss:$8 sps:$4 sm:$0xff]  }
 0x11f   : > { %5292 = vmatpush1.bf16.msra.mxu1 %v7962_v3  ;;  %v8046_v3 = vld [vmem:[%s9331_s6 + $0x370] ss:$8 sps:$4 sm:$0xff]  }
 0x120   : > { %6060 = vmatpush1.bf16.msra.mxu0 %v7965_v4  ;;  %5294 = vmatprep.subr.bf16.mxu1 %v7966_v5  ;;  %v8049_v4 = vld [vmem:[%s9331_s6 + $0xf70] ss:$8 sps:$4 sm:$0xff]   ;;  %v8050_v5 = vld [vmem:[%s9331_s6 + $0x384] ss:$8 sps:$4 sm:$0xff]  }
 0x121   : > { %6062 = vmatprep.subr.bf16.mxu0 %v7969_v6  ;;  %v8053_v6 = vld [vmem:[%s9331_s6 + $0xf84] ss:$8 sps:$4 sm:$0xff]  }
 0x123   : > { %5296 = vmatpush1.bf16.msra.mxu1 %v7968_v7  ;;  %v8052_v7 = vld [vmem:[%s9331_s6 + $0x380] ss:$8 sps:$4 sm:$0xff]  }
 0x124   : > { %6064 = vmatpush1.bf16.msra.mxu0 %v7971_v8  ;;  %5298 = vmatprep.subr.bf16.mxu1 %v7972_v9  ;;  %v8055_v8 = vld [vmem:[%s9331_s6 + $0xf80] ss:$8 sps:$4 sm:$0xff]   ;;  %v8056_v9 = vld [vmem:[%s9331_s6 + $0x394] ss:$8 sps:$4 sm:$0xff]  }
 0x125   : > { %6066 = vmatprep.subr.bf16.mxu0 %v7975_v10  ;;  %v8059_v10 = vld [vmem:[%s9331_s6 + $0xf94] ss:$8 sps:$4 sm:$0xff]  }
 0x127   : > { %5300 = vmatpush1.bf16.msra.mxu1 %v7974_v11  ;;  %v8058_v11 = vld [vmem:[%s9331_s6 + $0x390] ss:$8 sps:$4 sm:$0xff]  }
 0x128   : > { %6068 = vmatpush1.bf16.msra.mxu0 %v7977_v12  ;;  %5302 = vmatprep.subr.bf16.mxu1 %v7978_v13  ;;  %v8061_v12 = vld [vmem:[%s9331_s6 + $0xf90] ss:$8 sps:$4 sm:$0xff]   ;;  %v8062_v13 = vld [vmem:[%s9331_s6 + $0x3a4] ss:$8 sps:$4 sm:$0xff]  }
 0x129   : > { %6070 = vmatprep.subr.bf16.mxu0 %v7981_v14  ;;  %v8065_v14 = vld [vmem:[%s9331_s6 + $0xfa4] ss:$8 sps:$4 sm:$0xff]  }
 0x12b   : > { %5304 = vmatpush1.bf16.msra.mxu1 %v7980_v15  ;;  %v8064_v15 = vld [vmem:[%s9331_s6 + $0x3a0] ss:$8 sps:$4 sm:$0xff]  }
 0x12c   : > { %6072 = vmatpush1.bf16.msra.mxu0 %v7983_v16  ;;  %5306 = vmatprep.subr.bf16.mxu1 %v7984_v19  ;;  %v8067_v16 = vld [vmem:[%s9331_s6 + $0xfa0] ss:$8 sps:$4 sm:$0xff]   ;;  %v8068_v19 = vld [vmem:[%s9331_s6 + $0x3b4] ss:$8 sps:$4 sm:$0xff]  }
 0x12d   : > { %6074 = vmatprep.subr.bf16.mxu0 %v7987_v20  ;;  %v8071_v20 = vld [vmem:[%s9331_s6 + $0xfb4] ss:$8 sps:$4 sm:$0xff]  }
 0x12f   : > { %5308 = vmatpush1.bf16.msra.mxu1 %v7986_v21  ;;  %v8070_v21 = vld [vmem:[%s9331_s6 + $0x3b0] ss:$8 sps:$4 sm:$0xff]  }
 0x130   : > { %6076 = vmatpush1.bf16.msra.mxu0 %v7989_v22  ;;  %5310 = vmatprep.subr.bf16.mxu1 %v7990_v23  ;;  %v8073_v22 = vld [vmem:[%s9331_s6 + $0xfb0] ss:$8 sps:$4 sm:$0xff]   ;;  %v8074_v23 = vld [vmem:[%s9331_s6 + $0x3c4] ss:$8 sps:$4 sm:$0xff]  }
 0x131   : > { %6078 = vmatprep.subr.bf16.mxu0 %v7993_v24  ;;  %v8077_v24 = vld [vmem:[%s9331_s6 + $0xfc4] ss:$8 sps:$4 sm:$0xff]  }
 0x133   : > { %5312 = vmatpush1.bf16.msra.mxu1 %v7992_v25  ;;  %v8076_v25 = vld [vmem:[%s9331_s6 + $0x3c0] ss:$8 sps:$4 sm:$0xff]  }
 0x134   : > { %6080 = vmatpush1.bf16.msra.mxu0 %v7995_v26  ;;  %5314 = vmatprep.subr.bf16.mxu1 %v7996_v27  ;;  %v8079_v26 = vld [vmem:[%s9331_s6 + $0xfc0] ss:$8 sps:$4 sm:$0xff]   ;;  %v8080_v27 = vld [vmem:[%s9331_s6 + $0x3d4] ss:$8 sps:$4 sm:$0xff]  }
 0x135   : > { %6082 = vmatprep.subr.bf16.mxu0 %v7999_v29  ;;  %v8083_v29 = vld [vmem:[%s9331_s6 + $0xfd4] ss:$8 sps:$4 sm:$0xff]  }
 0x137   : > { %5316 = vmatpush1.bf16.msra.mxu1 %v7998_v34  ;;  %v8086_v34 = vld [vmem:[%s9331_s6 + $0x3e4] ss:$8 sps:$4 sm:$0xff]  }
 0x138   : > { %6084 = vmatpush1.bf16.msra.mxu0 %v8001_v36  ;;  %5318 = vmatprep.subr.bf16.mxu1 %v8002_v17  ;;  %v8089_v36 = vld [vmem:[%s9331_s6 + $0xfe4] ss:$8 sps:$4 sm:$0xff]   ;;  %v8088_v17 = vld [vmem:[%s9331_s6 + $0x3e0] ss:$8 sps:$4 sm:$0xff]  }
 0x139   : > { %6086 = vmatprep.subr.bf16.mxu0 %v8005_v18  ;;  %v8091_v18 = vld [vmem:[%s9331_s6 + $0xfe0] ss:$8 sps:$4 sm:$0xff]  }
 0x13a   : > { %3219 = vmatmul.mubr.f32.vlgmr.msra.gmra.mrb[0].mxu1 %v9523_v30  ;;  %v8019_v30 = vld [vmem:[%s9331_s6 + $0xf20] ss:$8 sps:$4 sm:$0xff]  }
 0x13b   : > { %4071 = vmatmul.mubr.f32.vlgmr.msra.gmra.mrb[0].mxu0 %v9536_v35  ;;  %5320 = vmatpush1.bf16.msra.mxu1 %v8004_v38  ;;  %v8020_v35 = vld [vmem:[%s9331_s6 + $0x334] ss:$8 sps:$4 sm:$0xff]  }
 0x13c   : > { %6088 = vmatpush1.bf16.msra.mxu0 %v8007_v31  ;;  %5322 = vmatprep.subr.bf16.mxu1 %v8008_v39  ;;  %v8092_v38 = vld [vmem:[%s9331_s6 + $0x3f4] ss:$8 sps:$4 sm:$0xff]   ;;  %v9675_v39 = vld [vmem:[%s9356_s4 + $0x10] sm:$0xff] }
 0x13d   : > { %6090 = vmatprep.subr.bf16.mxu0 %v8011_v40  ;;  %3289 = vmatprep.mubr.f32.mxu1 %v2783_v41  ;;  %v8095_v31 = vld [vmem:[%s9331_s6 + $0xff4] ss:$8 sps:$4 sm:$0xff]   ;;  %v8094_v41 = vld [vmem:[%s9331_s6 + $0x3f0] ss:$8 sps:$4 sm:$0xff]  }
 0x13e   : > { %4141 = vmatprep.mubr.f32.mxu0 %v2885_v42  ;;  %v9678_v40 = vld [vmem:[%s9356_s4 + $0x40] sm:$0xff]  ;;  %v8097_v42 = vld [vmem:[%s9331_s6 + $0xff0] ss:$8 sps:$4 sm:$0xff]  }
 0x13f   : > { %5324 = vmatpush1.bf16.msra.mxu1 %v8010_v43  ;;  %v8099_v43 = vld [vmem:[%s9331_s6 + $0x404] ss:$8 sps:$4 sm:$0xff]  }
 0x140   : > { %6092 = vmatpush1.bf16.msra.mxu0 %v8013_v45  ;;  %5326 = vmatprep.subr.bf16.mxu1 %v8014_v46  ;;  %v8103_v45 = vld [vmem:[%s9331_s6 + $0x1004] ss:$8 sps:$4 sm:$0xff]   ;;  %v9686_v46 = vrot.slane %v9675_v39, %v9412_v50 }
 0x141   : > { %6094 = vmatprep.subr.bf16.mxu0 %v8017_v47  ;;  %v9690_v47 = vrot.slane %v9678_v40, %v9412_v50 }
 0x143   : > { %5328 = vmatpush1.bf16.msra.mxu1 %v8016_v48  ;;  %v8101_v48 = vld [vmem:[%s9331_s6 + $0x400] ss:$8 sps:$4 sm:$0xff]  }
 0x144   : > { %6096 = vmatpush1.bf16.msra.mxu0 %v8019_v30  ;;  %5330 = vmatprep.subr.bf16.mxu1 %v8020_v35  ;;  %v8105_v30 = vld [vmem:[%s9331_s6 + $0x1000] ss:$8 sps:$4 sm:$0xff]   ;;  %v8106_v35 = vld [vmem:[%s9331_s6 + $0x414] ss:$8 sps:$4 sm:$0xff]  }
 0x145   : > { %6098 = vmatprep.subr.bf16.mxu0 %v8023_v49  ;;  %v8109_v49 = vld [vmem:[%s9331_s6 + $0x1014] ss:$8 sps:$4 sm:$0xff]  }
 0x147   : > { %5332 = vmatpush1.bf16.msra.mxu1 %v8022_v51  ;;  %v2799_v51 = vcombine.high %v9686_v46, %v9686_v46 }
 0x148   : > { %6100 = vmatpush1.bf16.msra.mxu0 %v8025_v52  ;;  %5334 = vmatprep.subr.bf16.mxu1 %v8026_v53  ;;  %v2901_v52 = vcombine.high %v9690_v47, %v9690_v47  ;;  %v8108_v53 = vld [vmem:[%s9331_s6 + $0x410] ss:$8 sps:$4 sm:$0xff]  }
 0x149   : > { %6102 = vmatprep.subr.bf16.mxu0 %v8029_v54  ;;  %v8111_v54 = vld [vmem:[%s9331_s6 + $0x1010] ss:$8 sps:$4 sm:$0xff]  }
 0x14b   : > { %5336 = vmatpush1.bf16.msra.mxu1 %v8028_v55  ;;  %v8112_v55 = vld [vmem:[%s9331_s6 + $0x424] ss:$8 sps:$4 sm:$0xff]  }
 0x14c   : > { %6104 = vmatpush1.bf16.msra.mxu0 %v8031_v56  ;;  %5338 = vmatprep.subr.bf16.mxu1 %v8032_v57  ;;  %v8115_v56 = vld [vmem:[%s9331_s6 + $0x1024] ss:$8 sps:$4 sm:$0xff]   ;;  %v8114_v57 = vld [vmem:[%s9331_s6 + $0x420] ss:$8 sps:$4 sm:$0xff]  }
 0x14d   : > { %6106 = vmatprep.subr.bf16.mxu0 %v8035_v58  ;;  %v8121_v58 = vld [vmem:[%s9331_s6 + $0x1034] ss:$8 sps:$4 sm:$0xff]  }
 0x14f   : > { %5340 = vmatpush1.bf16.msra.mxu1 %v8034_v59  ;;  %v8120_v59 = vld [vmem:[%s9331_s6 + $0x430] ss:$8 sps:$4 sm:$0xff]  }
 0x150   : > { %6108 = vmatpush1.bf16.msra.mxu0 %v8037_v60  ;;  %5342 = vmatprep.subr.bf16.mxu1 %v8038_v61  ;;  %v8123_v60 = vld [vmem:[%s9331_s6 + $0x1030] ss:$8 sps:$4 sm:$0xff]   ;;  %v8124_v61 = vld [vmem:[%s9331_s6 + $0x444] ss:$8 sps:$4 sm:$0xff]  }
 0x151   : > { %6110 = vmatprep.subr.bf16.mxu0 %v8041_v62  ;;  %v8127_v62 = vld [vmem:[%s9331_s6 + $0x1044] ss:$8 sps:$4 sm:$0xff]  }
 0x153   : > { %5344 = vmatpush1.bf16.msra.mxu1 %v8040_v63  ;;  %v8126_v63 = vld [vmem:[%s9331_s6 + $0x440] ss:$8 sps:$4 sm:$0xff]  }
 0x154   : > { %6112 = vmatpush1.bf16.msra.mxu0 %v8043_v0  ;;  %5346 = vmatprep.subr.bf16.mxu1 %v8044_v1  ;;  %v8129_v0 = vld [vmem:[%s9331_s6 + $0x1040] ss:$8 sps:$4 sm:$0xff]   ;;  %v8130_v1 = vld [vmem:[%s9331_s6 + $0x454] ss:$8 sps:$4 sm:$0xff]  }
 0x155   : > { %6114 = vmatprep.subr.bf16.mxu0 %v8047_v2  ;;  %v8133_v2 = vld [vmem:[%s9331_s6 + $0x1054] ss:$8 sps:$4 sm:$0xff]  }
 0x157   : > { %5348 = vmatpush1.bf16.msra.mxu1 %v8046_v3  ;;  %v8132_v3 = vld [vmem:[%s9331_s6 + $0x450] ss:$8 sps:$4 sm:$0xff]  }
 0x158   : > { %6116 = vmatpush1.bf16.msra.mxu0 %v8049_v4  ;;  %5350 = vmatprep.subr.bf16.mxu1 %v8050_v5  ;;  %v8135_v4 = vld [vmem:[%s9331_s6 + $0x1050] ss:$8 sps:$4 sm:$0xff]   ;;  %v8136_v5 = vld [vmem:[%s9331_s6 + $0x464] ss:$8 sps:$4 sm:$0xff]  }
 0x159   : > { %6118 = vmatprep.subr.bf16.mxu0 %v8053_v6  ;;  %v8139_v6 = vld [vmem:[%s9331_s6 + $0x1064] ss:$8 sps:$4 sm:$0xff]  }
 0x15b   : > { %5352 = vmatpush1.bf16.msra.mxu1 %v8052_v7  ;;  %v8138_v7 = vld [vmem:[%s9331_s6 + $0x460] ss:$8 sps:$4 sm:$0xff]  }
 0x15c   : > { %6120 = vmatpush1.bf16.msra.mxu0 %v8055_v8  ;;  %5354 = vmatprep.subr.bf16.mxu1 %v8056_v9  ;;  %v8141_v8 = vld [vmem:[%s9331_s6 + $0x1060] ss:$8 sps:$4 sm:$0xff]   ;;  %v8142_v9 = vld [vmem:[%s9331_s6 + $0x474] ss:$8 sps:$4 sm:$0xff]  }
 0x15d   : > { %6122 = vmatprep.subr.bf16.mxu0 %v8059_v10  ;;  %v8145_v10 = vld [vmem:[%s9331_s6 + $0x1074] ss:$8 sps:$4 sm:$0xff]  }
 0x15f   : > { %5356 = vmatpush1.bf16.msra.mxu1 %v8058_v11  ;;  %v8144_v11 = vld [vmem:[%s9331_s6 + $0x470] ss:$8 sps:$4 sm:$0xff]  }
 0x160   : > { %6124 = vmatpush1.bf16.msra.mxu0 %v8061_v12  ;;  %5358 = vmatprep.subr.bf16.mxu1 %v8062_v13  ;;  %v8147_v12 = vld [vmem:[%s9331_s6 + $0x1070] ss:$8 sps:$4 sm:$0xff]   ;;  %v8148_v13 = vld [vmem:[%s9331_s6 + $0x484] ss:$8 sps:$4 sm:$0xff]  }
 0x161   : > { %6126 = vmatprep.subr.bf16.mxu0 %v8065_v14  ;;  %v8151_v14 = vld [vmem:[%s9331_s6 + $0x1084] ss:$8 sps:$4 sm:$0xff]  }
 0x163   : > { %5360 = vmatpush1.bf16.msra.mxu1 %v8064_v15  ;;  %v8150_v15 = vld [vmem:[%s9331_s6 + $0x480] ss:$8 sps:$4 sm:$0xff]  }
 0x164   : > { %6128 = vmatpush1.bf16.msra.mxu0 %v8067_v16  ;;  %5362 = vmatprep.subr.bf16.mxu1 %v8068_v19  ;;  %v8153_v16 = vld [vmem:[%s9331_s6 + $0x1080] ss:$8 sps:$4 sm:$0xff]   ;;  %v8154_v19 = vld [vmem:[%s9331_s6 + $0x494] ss:$8 sps:$4 sm:$0xff]  }
 0x165   : > { %6130 = vmatprep.subr.bf16.mxu0 %v8071_v20  ;;  %v8157_v20 = vld [vmem:[%s9331_s6 + $0x1094] ss:$8 sps:$4 sm:$0xff]  }
 0x167   : > { %5364 = vmatpush1.bf16.msra.mxu1 %v8070_v21  ;;  %v8156_v21 = vld [vmem:[%s9331_s6 + $0x490] ss:$8 sps:$4 sm:$0xff]  }
 0x168   : > { %6132 = vmatpush1.bf16.msra.mxu0 %v8073_v22  ;;  %5366 = vmatprep.subr.bf16.mxu1 %v8074_v23  ;;  %v8159_v22 = vld [vmem:[%s9331_s6 + $0x1090] ss:$8 sps:$4 sm:$0xff]   ;;  %v8160_v23 = vld [vmem:[%s9331_s6 + $0x4a4] ss:$8 sps:$4 sm:$0xff]  }
 0x169   : > { %6134 = vmatprep.subr.bf16.mxu0 %v8077_v24  ;;  %v8163_v24 = vld [vmem:[%s9331_s6 + $0x10a4] ss:$8 sps:$4 sm:$0xff]  }
 0x16b   : > { %5368 = vmatpush1.bf16.msra.mxu1 %v8076_v25  ;;  %v8162_v25 = vld [vmem:[%s9331_s6 + $0x4a0] ss:$8 sps:$4 sm:$0xff]  }
 0x16c   : > { %6136 = vmatpush1.bf16.msra.mxu0 %v8079_v26  ;;  %5370 = vmatprep.subr.bf16.mxu1 %v8080_v27  ;;  %v8165_v26 = vld [vmem:[%s9331_s6 + $0x10a0] ss:$8 sps:$4 sm:$0xff]   ;;  %v8166_v27 = vld [vmem:[%s9331_s6 + $0x4b4] ss:$8 sps:$4 sm:$0xff]  }
 0x16d   : > { %6138 = vmatprep.subr.bf16.mxu0 %v8083_v29  ;;  %v8169_v29 = vld [vmem:[%s9331_s6 + $0x10b4] ss:$8 sps:$4 sm:$0xff]  }
 0x16f   : > { %5372 = vmatpush1.bf16.msra.mxu1 %v8082_v32  ;;  %v8168_v32 = vld [vmem:[%s9331_s6 + $0x4b0] ss:$8 sps:$4 sm:$0xff]  }
 0x170   : > { %6140 = vmatpush1.bf16.msra.mxu0 %v8085_v33  ;;  %5374 = vmatprep.subr.bf16.mxu1 %v8086_v34  ;;  %v8171_v33 = vld [vmem:[%s9331_s6 + $0x10b0] ss:$8 sps:$4 sm:$0xff]   ;;  %v8172_v34 = vld [vmem:[%s9331_s6 + $0x4c4] ss:$8 sps:$4 sm:$0xff]  }
 0x171   : > { %6142 = vmatprep.subr.bf16.mxu0 %v8089_v36  ;;  %v8175_v36 = vld [vmem:[%s9331_s6 + $0x10c4] ss:$8 sps:$4 sm:$0xff]  }
 0x173   : > { %5376 = vmatpush1.bf16.msra.mxu1 %v8088_v17  ;;  %v8174_v17 = vld [vmem:[%s9331_s6 + $0x4c0] ss:$8 sps:$4 sm:$0xff]  }
 0x174   : > { %6144 = vmatpush1.bf16.msra.mxu0 %v8091_v18  ;;  %5378 = vmatprep.subr.bf16.mxu1 %v8092_v38  ;;  %v8177_v18 = vld [vmem:[%s9331_s6 + $0x10c0] ss:$8 sps:$4 sm:$0xff]   ;;  %v8178_v38 = vld [vmem:[%s9331_s6 + $0x4d4] ss:$8 sps:$4 sm:$0xff]  }
 0x175   : > { %6146 = vmatprep.subr.bf16.mxu0 %v8095_v31  ;;  %v8181_v31 = vld [vmem:[%s9331_s6 + $0x10d4] ss:$8 sps:$4 sm:$0xff]  }
 0x177   : > { %5380 = vmatpush1.bf16.msra.mxu1 %v8094_v41  ;;  %v8180_v41 = vld [vmem:[%s9331_s6 + $0x4d0] ss:$8 sps:$4 sm:$0xff]  }
 0x178   : > { %6148 = vmatpush1.bf16.msra.mxu0 %v8097_v42  ;;  %5382 = vmatprep.subr.bf16.mxu1 %v8099_v43  ;;  %v8183_v42 = vld [vmem:[%s9331_s6 + $0x10d0] ss:$8 sps:$4 sm:$0xff]   ;;  %v8184_v43 = vld [vmem:[%s9331_s6 + $0x4e4] ss:$8 sps:$4 sm:$0xff]  }
 0x179   : > { %6150 = vmatprep.subr.bf16.mxu0 %v8103_v45  ;;  %v8187_v45 = vld [vmem:[%s9331_s6 + $0x10e4] ss:$8 sps:$4 sm:$0xff]  }
 0x17a   : > { %3290 = vmatmul.mubr.f32.vlgmr.msra.gmra.mrb[0].mxu1 %v9603_v37  ;;  %v8117_v37 = vld [vmem:[%s9331_s6 + $0x1020] ss:$8 sps:$4 sm:$0xff]  }
 0x17b   : > { %4142 = vmatmul.mubr.f32.vlgmr.msra.gmra.mrb[0].mxu0 %v9606_v28  ;;  %5384 = vmatpush1.bf16.msra.mxu1 %v8101_v48  ;;  %v8118_v28 = vld [vmem:[%s9331_s6 + $0x434] ss:$8 sps:$4 sm:$0xff]   ;;  %v8186_v48 = vld [vmem:[%s9331_s6 + $0x4e0] ss:$8 sps:$4 sm:$0xff]  }
 0x17c   : > { %6152 = vmatpush1.bf16.msra.mxu0 %v8105_v30  ;;  %5386 = vmatprep.subr.bf16.mxu1 %v8106_v35  ;;  %v8189_v30 = vld [vmem:[%s9331_s6 + $0x10e0] ss:$8 sps:$4 sm:$0xff]   ;;  %v8190_v35 = vld [vmem:[%s9331_s6 + $0x4f4] ss:$8 sps:$4 sm:$0xff]  }
 0x17d   : > { %6154 = vmatprep.subr.bf16.mxu0 %v8109_v49  ;;  %3360 = vmatprep.mubr.f32.mxu1 %v2799_v51  ;;  %v8193_v49 = vld [vmem:[%s9331_s6 + $0x10f4] ss:$8 sps:$4 sm:$0xff]   ;;  %v8192_v51 = vld [vmem:[%s9331_s6 + $0x4f0] ss:$8 sps:$4 sm:$0xff]  }
 0x17e   : > { %4212 = vmatprep.mubr.f32.mxu0 %v2901_v52  ;;  %v2784_v52 = vcombine.high %v9675_v39, %v9675_v39 }
 0x17f   : > { %5388 = vmatpush1.bf16.msra.mxu1 %v8108_v53  ;;  %v2886_v53 = vcombine.high %v9678_v40, %v9678_v40  ;;  %v8201_v40 = vld [vmem:[%s9331_s6 + $0x1100] ss:$8 sps:$4 sm:$0xff]  }
 0x180   : > { %6156 = vmatpush1.bf16.msra.mxu0 %v8111_v54  ;;  %5390 = vmatprep.subr.bf16.mxu1 %v8112_v55  ;;  %v8195_v54 = vld [vmem:[%s9331_s6 + $0x10f0] ss:$8 sps:$4 sm:$0xff]   ;;  %v8196_v55 = vld [vmem:[%s9331_s6 + $0x504] ss:$8 sps:$4 sm:$0xff]  }
 0x181   : > { %6158 = vmatprep.subr.bf16.mxu0 %v8115_v56  ;;  %v8199_v56 = vld [vmem:[%s9331_s6 + $0x1104] ss:$8 sps:$4 sm:$0xff]   ;;  %v9771_v39 = vrot.slane %v2886_v53, %v9412_v50 }
 0x182   : > { %v8280_v53 = vld [vmem:[%s9331_s6 + $0x5e4] ss:$8 sps:$4 sm:$0xff]  }
 0x183   : > { %5392 = vmatpush1.bf16.msra.mxu1 %v8114_v57  ;;  %v8198_v57 = vld [vmem:[%s9331_s6 + $0x500] ss:$8 sps:$4 sm:$0xff]  }
 0x184   : > { %6160 = vmatpush1.bf16.msra.mxu0 %v8117_v37  ;;  %5394 = vmatprep.subr.bf16.mxu1 %v8118_v28  ;;  %v9768_v37 = vrot.slane %v2784_v52, %v9412_v50  ;;  %v8202_v28 = vld [vmem:[%s9331_s6 + $0x514] ss:$8 sps:$4 sm:$0xff]   ;;  %v8279_v52 = vld [vmem:[%s9331_s6 + $0x11d0] ss:$8 sps:$4 sm:$0xff]  }
 0x185   : > { %6162 = vmatprep.subr.bf16.mxu0 %v8121_v58  ;;  %v8205_v58 = vld [vmem:[%s9331_s6 + $0x1114] ss:$8 sps:$4 sm:$0xff]  }
 0x187   : > { %5396 = vmatpush1.bf16.msra.mxu1 %v8120_v59  ;;  %v8204_v59 = vld [vmem:[%s9331_s6 + $0x510] ss:$8 sps:$4 sm:$0xff]  }
 0x188   : > { %6164 = vmatpush1.bf16.msra.mxu0 %v8123_v60  ;;  %5398 = vmatprep.subr.bf16.mxu1 %v8124_v61  ;;  %v2800_v60 = vcombine.high %v9768_v37, %v9768_v37  ;;  %v2902_v61 = vcombine.high %v9771_v39, %v9771_v39 }
 0x189   : > { %6166 = vmatprep.subr.bf16.mxu0 %v8127_v62  ;;  %v8207_v62 = vld [vmem:[%s9331_s6 + $0x1110] ss:$8 sps:$4 sm:$0xff]  }
 0x18b   : > { %5400 = vmatpush1.bf16.msra.mxu1 %v8126_v63  ;;  %v8208_v63 = vld [vmem:[%s9331_s6 + $0x524] ss:$8 sps:$4 sm:$0xff]  }
 0x18c   : > { %6168 = vmatpush1.bf16.msra.mxu0 %v8129_v0  ;;  %5402 = vmatprep.subr.bf16.mxu1 %v8130_v1  ;;  %v8211_v0 = vld [vmem:[%s9331_s6 + $0x1124] ss:$8 sps:$4 sm:$0xff]   ;;  %v8210_v1 = vld [vmem:[%s9331_s6 + $0x520] ss:$8 sps:$4 sm:$0xff]  }
 0x18d   : > { %6170 = vmatprep.subr.bf16.mxu0 %v8133_v2  ;;  %v8217_v2 = vld [vmem:[%s9331_s6 + $0x1134] ss:$8 sps:$4 sm:$0xff]  }
 0x18f   : > { %5404 = vmatpush1.bf16.msra.mxu1 %v8132_v3  ;;  %v8216_v3 = vld [vmem:[%s9331_s6 + $0x530] ss:$8 sps:$4 sm:$0xff]  }
 0x190   : > { %6172 = vmatpush1.bf16.msra.mxu0 %v8135_v4  ;;  %5406 = vmatprep.subr.bf16.mxu1 %v8136_v5  ;;  %v8219_v4 = vld [vmem:[%s9331_s6 + $0x1130] ss:$8 sps:$4 sm:$0xff]   ;;  %v8220_v5 = vld [vmem:[%s9331_s6 + $0x544] ss:$8 sps:$4 sm:$0xff]  }
 0x191   : > { %6174 = vmatprep.subr.bf16.mxu0 %v8139_v6  ;;  %v8223_v6 = vld [vmem:[%s9331_s6 + $0x1144] ss:$8 sps:$4 sm:$0xff]  }
 0x193   : > { %5408 = vmatpush1.bf16.msra.mxu1 %v8138_v7  ;;  %v8222_v7 = vld [vmem:[%s9331_s6 + $0x540] ss:$8 sps:$4 sm:$0xff]  }
 0x194   : > { %6176 = vmatpush1.bf16.msra.mxu0 %v8141_v8  ;;  %5410 = vmatprep.subr.bf16.mxu1 %v8142_v9  ;;  %v8225_v8 = vld [vmem:[%s9331_s6 + $0x1140] ss:$8 sps:$4 sm:$0xff]   ;;  %v8226_v9 = vld [vmem:[%s9331_s6 + $0x554] ss:$8 sps:$4 sm:$0xff]  }
 0x195   : > { %6178 = vmatprep.subr.bf16.mxu0 %v8145_v10  ;;  %v8229_v10 = vld [vmem:[%s9331_s6 + $0x1154] ss:$8 sps:$4 sm:$0xff]  }
 0x197   : > { %5412 = vmatpush1.bf16.msra.mxu1 %v8144_v11  ;;  %v8228_v11 = vld [vmem:[%s9331_s6 + $0x550] ss:$8 sps:$4 sm:$0xff]  }
 0x198   : > { %6180 = vmatpush1.bf16.msra.mxu0 %v8147_v12  ;;  %5414 = vmatprep.subr.bf16.mxu1 %v8148_v13  ;;  %v8231_v12 = vld [vmem:[%s9331_s6 + $0x1150] ss:$8 sps:$4 sm:$0xff]   ;;  %v8232_v13 = vld [vmem:[%s9331_s6 + $0x564] ss:$8 sps:$4 sm:$0xff]  }
 0x199   : > { %6182 = vmatprep.subr.bf16.mxu0 %v8151_v14  ;;  %v8235_v14 = vld [vmem:[%s9331_s6 + $0x1164] ss:$8 sps:$4 sm:$0xff]  }
 0x19b   : > { %5416 = vmatpush1.bf16.msra.mxu1 %v8150_v15  ;;  %v8234_v15 = vld [vmem:[%s9331_s6 + $0x560] ss:$8 sps:$4 sm:$0xff]  }
 0x19c   : > { %6184 = vmatpush1.bf16.msra.mxu0 %v8153_v16  ;;  %5418 = vmatprep.subr.bf16.mxu1 %v8154_v19  ;;  %v8237_v16 = vld [vmem:[%s9331_s6 + $0x1160] ss:$8 sps:$4 sm:$0xff]   ;;  %v8238_v19 = vld [vmem:[%s9331_s6 + $0x574] ss:$8 sps:$4 sm:$0xff]  }
 0x19d   : > { %6186 = vmatprep.subr.bf16.mxu0 %v8157_v20  ;;  %v8241_v20 = vld [vmem:[%s9331_s6 + $0x1174] ss:$8 sps:$4 sm:$0xff]  }
 0x19f   : > { %5420 = vmatpush1.bf16.msra.mxu1 %v8156_v21  ;;  %v8240_v21 = vld [vmem:[%s9331_s6 + $0x570] ss:$8 sps:$4 sm:$0xff]  }
 0x1a0   : > { %6188 = vmatpush1.bf16.msra.mxu0 %v8159_v22  ;;  %5422 = vmatprep.subr.bf16.mxu1 %v8160_v23  ;;  %v8243_v22 = vld [vmem:[%s9331_s6 + $0x1170] ss:$8 sps:$4 sm:$0xff]   ;;  %v8244_v23 = vld [vmem:[%s9331_s6 + $0x584] ss:$8 sps:$4 sm:$0xff]  }
 0x1a1   : > { %6190 = vmatprep.subr.bf16.mxu0 %v8163_v24  ;;  %v8247_v24 = vld [vmem:[%s9331_s6 + $0x1184] ss:$8 sps:$4 sm:$0xff]  }
 0x1a3   : > { %5424 = vmatpush1.bf16.msra.mxu1 %v8162_v25  ;;  %v8246_v25 = vld [vmem:[%s9331_s6 + $0x580] ss:$8 sps:$4 sm:$0xff]  }
 0x1a4   : > { %6192 = vmatpush1.bf16.msra.mxu0 %v8165_v26  ;;  %5426 = vmatprep.subr.bf16.mxu1 %v8166_v27  ;;  %v8249_v26 = vld [vmem:[%s9331_s6 + $0x1180] ss:$8 sps:$4 sm:$0xff]   ;;  %v8250_v27 = vld [vmem:[%s9331_s6 + $0x594] ss:$8 sps:$4 sm:$0xff]  }
 0x1a5   : > { %6194 = vmatprep.subr.bf16.mxu0 %v8169_v29  ;;  %v8253_v29 = vld [vmem:[%s9331_s6 + $0x1194] ss:$8 sps:$4 sm:$0xff]  }
 0x1a7   : > { %5428 = vmatpush1.bf16.msra.mxu1 %v8168_v32  ;;  %v8252_v32 = vld [vmem:[%s9331_s6 + $0x590] ss:$8 sps:$4 sm:$0xff]  }
 0x1a8   : > { %6196 = vmatpush1.bf16.msra.mxu0 %v8171_v33  ;;  %5430 = vmatprep.subr.bf16.mxu1 %v8172_v34  ;;  %v8255_v33 = vld [vmem:[%s9331_s6 + $0x1190] ss:$8 sps:$4 sm:$0xff]   ;;  %v8256_v34 = vld [vmem:[%s9331_s6 + $0x5a4] ss:$8 sps:$4 sm:$0xff]  }
 0x1a9   : > { %6198 = vmatprep.subr.bf16.mxu0 %v8175_v36  ;;  %v8259_v36 = vld [vmem:[%s9331_s6 + $0x11a4] ss:$8 sps:$4 sm:$0xff]  }
 0x1ab   : > { %5432 = vmatpush1.bf16.msra.mxu1 %v8174_v17  ;;  %v8258_v17 = vld [vmem:[%s9331_s6 + $0x5a0] ss:$8 sps:$4 sm:$0xff]  }
 0x1ac   : > { %6200 = vmatpush1.bf16.msra.mxu0 %v8177_v18  ;;  %5434 = vmatprep.subr.bf16.mxu1 %v8178_v38  ;;  %v8261_v18 = vld [vmem:[%s9331_s6 + $0x11a0] ss:$8 sps:$4 sm:$0xff]   ;;  %v8262_v38 = vld [vmem:[%s9331_s6 + $0x5b4] ss:$8 sps:$4 sm:$0xff]  }
 0x1ad   : > { %6202 = vmatprep.subr.bf16.mxu0 %v8181_v31  ;;  %v8265_v31 = vld [vmem:[%s9331_s6 + $0x11b4] ss:$8 sps:$4 sm:$0xff]  }
 0x1af   : > { %5436 = vmatpush1.bf16.msra.mxu1 %v8180_v41  ;;  %v8264_v41 = vld [vmem:[%s9331_s6 + $0x5b0] ss:$8 sps:$4 sm:$0xff]  }
 0x1b0   : > { %6204 = vmatpush1.bf16.msra.mxu0 %v8183_v42  ;;  %5438 = vmatprep.subr.bf16.mxu1 %v8184_v43  ;;  %v8267_v42 = vld [vmem:[%s9331_s6 + $0x11b0] ss:$8 sps:$4 sm:$0xff]   ;;  %v8268_v43 = vld [vmem:[%s9331_s6 + $0x5c4] ss:$8 sps:$4 sm:$0xff]  }
 0x1b1   : > { %6206 = vmatprep.subr.bf16.mxu0 %v8187_v45  ;;  %v8271_v45 = vld [vmem:[%s9331_s6 + $0x11c4] ss:$8 sps:$4 sm:$0xff]  }
 0x1b3   : > { %5440 = vmatpush1.bf16.msra.mxu1 %v8186_v48  ;;  %v8270_v48 = vld [vmem:[%s9331_s6 + $0x5c0] ss:$8 sps:$4 sm:$0xff]  }
 0x1b4   : > { %6208 = vmatpush1.bf16.msra.mxu0 %v8189_v30  ;;  %5442 = vmatprep.subr.bf16.mxu1 %v8190_v35  ;;  %v8273_v30 = vld [vmem:[%s9331_s6 + $0x11c0] ss:$8 sps:$4 sm:$0xff]   ;;  %v8274_v35 = vld [vmem:[%s9331_s6 + $0x5d4] ss:$8 sps:$4 sm:$0xff]  }
 0x1b5   : > { %6210 = vmatprep.subr.bf16.mxu0 %v8193_v49  ;;  %v8277_v49 = vld [vmem:[%s9331_s6 + $0x11d4] ss:$8 sps:$4 sm:$0xff]  }
 0x1b7   : > { %5444 = vmatpush1.bf16.msra.mxu1 %v8192_v51  ;;  %v8276_v51 = vld [vmem:[%s9331_s6 + $0x5d0] ss:$8 sps:$4 sm:$0xff]  }
 0x1b8   : > { %6212 = vmatpush1.bf16.msra.mxu0 %v8195_v54  ;;  %5446 = vmatprep.subr.bf16.mxu1 %v8196_v55  ;;  %v8283_v54 = vld [vmem:[%s9331_s6 + $0x11e4] ss:$8 sps:$4 sm:$0xff]   ;;  %v8282_v55 = vld [vmem:[%s9331_s6 + $0x5e0] ss:$8 sps:$4 sm:$0xff]  }
 0x1b9   : > { %6214 = vmatprep.subr.bf16.mxu0 %v8199_v56  ;;  %v8285_v56 = vld [vmem:[%s9331_s6 + $0x11e0] ss:$8 sps:$4 sm:$0xff]  }
 0x1ba   : > { %3361 = vmatmul.mubr.f32.vlgmr.msra.gmra.mrb[0].mxu1 %v9686_v46  ;;  %v8213_v46 = vld [vmem:[%s9331_s6 + $0x1120] ss:$8 sps:$4 sm:$0xff]  }
 0x1bb   : > { %4213 = vmatmul.mubr.f32.vlgmr.msra.gmra.mrb[0].mxu0 %v9690_v47  ;;  %5448 = vmatpush1.bf16.msra.mxu1 %v8198_v57  ;;  %v8214_v47 = vld [vmem:[%s9331_s6 + $0x534] ss:$8 sps:$4 sm:$0xff]  }
 0x1bc   : > { %6216 = vmatpush1.bf16.msra.mxu0 %v8201_v40  ;;  %5450 = vmatprep.subr.bf16.mxu1 %v8202_v28  ;;  %v8286_v57 = vld [vmem:[%s9331_s6 + $0x5f4] ss:$8 sps:$4 sm:$0xff]  }
 0x1bd   : > { %6218 = vmatprep.subr.bf16.mxu0 %v8205_v58  ;;  %3431 = vmatprep.mubr.f32.mxu1 %v2800_v60  ;;  %v8289_v40 = vld [vmem:[%s9331_s6 + $0x11f4] ss:$8 sps:$4 sm:$0xff]   ;;  %v9842_v58 = vld [vmem:[%s9356_s4 + $0x48] sm:$0xff]  ;;  %v8291_v60 = vld [vmem:[%s9331_s6 + $0x11f0] ss:$8 sps:$4 sm:$0xff]  }
 0x1be   : > { %4283 = vmatprep.mubr.f32.mxu0 %v2902_v61  ;;  %v9839_v28 = vld [vmem:[%s9356_s4 + $0x18] sm:$0xff]  ;;  %v8293_v61 = vld [vmem:[%s9331_s6 + $0x604] ss:$8 sps:$4 sm:$0xff]  }
 0x1bf   : > { %5452 = vmatpush1.bf16.msra.mxu1 %v8204_v59  ;;  %v8288_v59 = vld [vmem:[%s9331_s6 + $0x5f0] ss:$8 sps:$4 sm:$0xff]  }
 0x1c0   : > { %6220 = vmatpush1.bf16.msra.mxu0 %v8207_v62  ;;  %5454 = vmatprep.subr.bf16.mxu1 %v8208_v63  ;;  %v8297_v62 = vld [vmem:[%s9331_s6 + $0x1204] ss:$8 sps:$4 sm:$0xff]   ;;  %v8295_v63 = vld [vmem:[%s9331_s6 + $0x600] ss:$8 sps:$4 sm:$0xff]  }
 0x1c1   : > { %6222 = vmatprep.subr.bf16.mxu0 %v8211_v0  ;;  %v9851_v0 = vrot.slane %v9839_v28, %v9412_v50 }
 0x1c3   : > { %5456 = vmatpush1.bf16.msra.mxu1 %v8210_v1  ;;  %v9855_v1 = vrot.slane %v9842_v58, %v9412_v50 }
 0x1c4   : > { %6224 = vmatpush1.bf16.msra.mxu0 %v8213_v46  ;;  %5458 = vmatprep.subr.bf16.mxu1 %v8214_v47  ;;  %v8299_v46 = vld [vmem:[%s9331_s6 + $0x1200] ss:$8 sps:$4 sm:$0xff]   ;;  %v8300_v47 = vld [vmem:[%s9331_s6 + $0x614] ss:$8 sps:$4 sm:$0xff]  }
 0x1c5   : > { %6226 = vmatprep.subr.bf16.mxu0 %v8217_v2  ;;  %v8303_v2 = vld [vmem:[%s9331_s6 + $0x1214] ss:$8 sps:$4 sm:$0xff]  }
 0x1c7   : > { %5460 = vmatpush1.bf16.msra.mxu1 %v8216_v3  ;;  %v8302_v3 = vld [vmem:[%s9331_s6 + $0x610] ss:$8 sps:$4 sm:$0xff]  }
 0x1c8   : > { %6228 = vmatpush1.bf16.msra.mxu0 %v8219_v4  ;;  %5462 = vmatprep.subr.bf16.mxu1 %v8220_v5  ;;  %v2816_v4 = vcombine.high %v9851_v0, %v9851_v0  ;;  %v2918_v5 = vcombine.high %v9855_v1, %v9855_v1 }
 0x1c9   : > { %6230 = vmatprep.subr.bf16.mxu0 %v8223_v6  ;;  %v8305_v6 = vld [vmem:[%s9331_s6 + $0x1210] ss:$8 sps:$4 sm:$0xff]  }
 0x1cb   : > { %5464 = vmatpush1.bf16.msra.mxu1 %v8222_v7  ;;  %v8306_v7 = vld [vmem:[%s9331_s6 + $0x624] ss:$8 sps:$4 sm:$0xff]  }
 0x1cc   : > { %6232 = vmatpush1.bf16.msra.mxu0 %v8225_v8  ;;  %5466 = vmatprep.subr.bf16.mxu1 %v8226_v9  ;;  %v8309_v8 = vld [vmem:[%s9331_s6 + $0x1224] ss:$8 sps:$4 sm:$0xff]   ;;  %v8308_v9 = vld [vmem:[%s9331_s6 + $0x620] ss:$8 sps:$4 sm:$0xff]  }
 0x1cd   : > { %6234 = vmatprep.subr.bf16.mxu0 %v8229_v10  ;;  %v8315_v10 = vld [vmem:[%s9331_s6 + $0x1234] ss:$8 sps:$4 sm:$0xff]  }
 0x1cf   : > { %5468 = vmatpush1.bf16.msra.mxu1 %v8228_v11  ;;  %v8314_v11 = vld [vmem:[%s9331_s6 + $0x630] ss:$8 sps:$4 sm:$0xff]  }
 0x1d0   : > { %6236 = vmatpush1.bf16.msra.mxu0 %v8231_v12  ;;  %5470 = vmatprep.subr.bf16.mxu1 %v8232_v13  ;;  %v8317_v12 = vld [vmem:[%s9331_s6 + $0x1230] ss:$8 sps:$4 sm:$0xff]   ;;  %v8318_v13 = vld [vmem:[%s9331_s6 + $0x644] ss:$8 sps:$4 sm:$0xff]  }
 0x1d1   : > { %6238 = vmatprep.subr.bf16.mxu0 %v8235_v14  ;;  %v8321_v14 = vld [vmem:[%s9331_s6 + $0x1244] ss:$8 sps:$4 sm:$0xff]  }
 0x1d3   : > { %5472 = vmatpush1.bf16.msra.mxu1 %v8234_v15  ;;  %v8320_v15 = vld [vmem:[%s9331_s6 + $0x640] ss:$8 sps:$4 sm:$0xff]  }
 0x1d4   : > { %6240 = vmatpush1.bf16.msra.mxu0 %v8237_v16  ;;  %5474 = vmatprep.subr.bf16.mxu1 %v8238_v19  ;;  %v8323_v16 = vld [vmem:[%s9331_s6 + $0x1240] ss:$8 sps:$4 sm:$0xff]   ;;  %v8324_v19 = vld [vmem:[%s9331_s6 + $0x654] ss:$8 sps:$4 sm:$0xff]  }
 0x1d5   : > { %6242 = vmatprep.subr.bf16.mxu0 %v8241_v20  ;;  %v8327_v20 = vld [vmem:[%s9331_s6 + $0x1254] ss:$8 sps:$4 sm:$0xff]  }
 0x1d7   : > { %5476 = vmatpush1.bf16.msra.mxu1 %v8240_v21  ;;  %v8326_v21 = vld [vmem:[%s9331_s6 + $0x650] ss:$8 sps:$4 sm:$0xff]  }
 0x1d8   : > { %6244 = vmatpush1.bf16.msra.mxu0 %v8243_v22  ;;  %5478 = vmatprep.subr.bf16.mxu1 %v8244_v23  ;;  %v8329_v22 = vld [vmem:[%s9331_s6 + $0x1250] ss:$8 sps:$4 sm:$0xff]   ;;  %v8330_v23 = vld [vmem:[%s9331_s6 + $0x664] ss:$8 sps:$4 sm:$0xff]  }
 0x1d9   : > { %6246 = vmatprep.subr.bf16.mxu0 %v8247_v24  ;;  %v8333_v24 = vld [vmem:[%s9331_s6 + $0x1264] ss:$8 sps:$4 sm:$0xff]  }
 0x1db   : > { %5480 = vmatpush1.bf16.msra.mxu1 %v8246_v25  ;;  %v8332_v25 = vld [vmem:[%s9331_s6 + $0x660] ss:$8 sps:$4 sm:$0xff]  }
 0x1dc   : > { %6248 = vmatpush1.bf16.msra.mxu0 %v8249_v26  ;;  %5482 = vmatprep.subr.bf16.mxu1 %v8250_v27  ;;  %v8335_v26 = vld [vmem:[%s9331_s6 + $0x1260] ss:$8 sps:$4 sm:$0xff]   ;;  %v8336_v27 = vld [vmem:[%s9331_s6 + $0x674] ss:$8 sps:$4 sm:$0xff]  }
 0x1dd   : > { %6250 = vmatprep.subr.bf16.mxu0 %v8253_v29  ;;  %v8339_v29 = vld [vmem:[%s9331_s6 + $0x1274] ss:$8 sps:$4 sm:$0xff]  }
 0x1df   : > { %5484 = vmatpush1.bf16.msra.mxu1 %v8252_v32  ;;  %v8338_v32 = vld [vmem:[%s9331_s6 + $0x670] ss:$8 sps:$4 sm:$0xff]  }
 0x1e0   : > { %6252 = vmatpush1.bf16.msra.mxu0 %v8255_v33  ;;  %5486 = vmatprep.subr.bf16.mxu1 %v8256_v34  ;;  %v8341_v33 = vld [vmem:[%s9331_s6 + $0x1270] ss:$8 sps:$4 sm:$0xff]   ;;  %v8342_v34 = vld [vmem:[%s9331_s6 + $0x684] ss:$8 sps:$4 sm:$0xff]  }
 0x1e1   : > { %6254 = vmatprep.subr.bf16.mxu0 %v8259_v36  ;;  %v8345_v36 = vld [vmem:[%s9331_s6 + $0x1284] ss:$8 sps:$4 sm:$0xff]  }
 0x1e3   : > { %5488 = vmatpush1.bf16.msra.mxu1 %v8258_v17  ;;  %v8344_v17 = vld [vmem:[%s9331_s6 + $0x680] ss:$8 sps:$4 sm:$0xff]  }
 0x1e4   : > { %6256 = vmatpush1.bf16.msra.mxu0 %v8261_v18  ;;  %5490 = vmatprep.subr.bf16.mxu1 %v8262_v38  ;;  %v8347_v18 = vld [vmem:[%s9331_s6 + $0x1280] ss:$8 sps:$4 sm:$0xff]   ;;  %v8348_v38 = vld [vmem:[%s9331_s6 + $0x694] ss:$8 sps:$4 sm:$0xff]  }
 0x1e5   : > { %6258 = vmatprep.subr.bf16.mxu0 %v8265_v31  ;;  %v8351_v31 = vld [vmem:[%s9331_s6 + $0x1294] ss:$8 sps:$4 sm:$0xff]  }
 0x1e7   : > { %5492 = vmatpush1.bf16.msra.mxu1 %v8264_v41  ;;  %v8350_v41 = vld [vmem:[%s9331_s6 + $0x690] ss:$8 sps:$4 sm:$0xff]  }
 0x1e8   : > { %6260 = vmatpush1.bf16.msra.mxu0 %v8267_v42  ;;  %5494 = vmatprep.subr.bf16.mxu1 %v8268_v43  ;;  %v8353_v42 = vld [vmem:[%s9331_s6 + $0x1290] ss:$8 sps:$4 sm:$0xff]   ;;  %v8354_v43 = vld [vmem:[%s9331_s6 + $0x6a4] ss:$8 sps:$4 sm:$0xff]  }
 0x1e9   : > { %6262 = vmatprep.subr.bf16.mxu0 %v8271_v45  ;;  %v8357_v45 = vld [vmem:[%s9331_s6 + $0x12a4] ss:$8 sps:$4 sm:$0xff]  }
 0x1eb   : > { %5496 = vmatpush1.bf16.msra.mxu1 %v8270_v48  ;;  %v8356_v48 = vld [vmem:[%s9331_s6 + $0x6a0] ss:$8 sps:$4 sm:$0xff]  }
 0x1ec   : > { %6264 = vmatpush1.bf16.msra.mxu0 %v8273_v30  ;;  %5498 = vmatprep.subr.bf16.mxu1 %v8274_v35  ;;  %v8359_v30 = vld [vmem:[%s9331_s6 + $0x12a0] ss:$8 sps:$4 sm:$0xff]   ;;  %v8360_v35 = vld [vmem:[%s9331_s6 + $0x6b4] ss:$8 sps:$4 sm:$0xff]  }
 0x1ed   : > { %6266 = vmatprep.subr.bf16.mxu0 %v8277_v49  ;;  %v8363_v49 = vld [vmem:[%s9331_s6 + $0x12b4] ss:$8 sps:$4 sm:$0xff]  }
 0x1ef   : > { %5500 = vmatpush1.bf16.msra.mxu1 %v8276_v51  ;;  %v8362_v51 = vld [vmem:[%s9331_s6 + $0x6b0] ss:$8 sps:$4 sm:$0xff]  }
 0x1f0   : > { %6268 = vmatpush1.bf16.msra.mxu0 %v8279_v52  ;;  %5502 = vmatprep.subr.bf16.mxu1 %v8280_v53  ;;  %v8365_v52 = vld [vmem:[%s9331_s6 + $0x12b0] ss:$8 sps:$4 sm:$0xff]   ;;  %v8366_v53 = vld [vmem:[%s9331_s6 + $0x6c4] ss:$8 sps:$4 sm:$0xff]  }
 0x1f1   : > { %6270 = vmatprep.subr.bf16.mxu0 %v8283_v54  ;;  %v8369_v54 = vld [vmem:[%s9331_s6 + $0x12c4] ss:$8 sps:$4 sm:$0xff]  }
 0x1f3   : > { %5504 = vmatpush1.bf16.msra.mxu1 %v8282_v55  ;;  %v8368_v55 = vld [vmem:[%s9331_s6 + $0x6c0] ss:$8 sps:$4 sm:$0xff]  }
 0x1f4   : > { %6272 = vmatpush1.bf16.msra.mxu0 %v8285_v56  ;;  %5506 = vmatprep.subr.bf16.mxu1 %v8286_v57  ;;  %v8371_v56 = vld [vmem:[%s9331_s6 + $0x12c0] ss:$8 sps:$4 sm:$0xff]   ;;  %v8372_v57 = vld [vmem:[%s9331_s6 + $0x6d4] ss:$8 sps:$4 sm:$0xff]  }
 0x1f5   : > { %6274 = vmatprep.subr.bf16.mxu0 %v8289_v40  ;;  %v8375_v40 = vld [vmem:[%s9331_s6 + $0x12d4] ss:$8 sps:$4 sm:$0xff]  }
 0x1f7   : > { %5508 = vmatpush1.bf16.msra.mxu1 %v8288_v59  ;;  %v8374_v59 = vld [vmem:[%s9331_s6 + $0x6d0] ss:$8 sps:$4 sm:$0xff]  }
 0x1f8   : > { %6276 = vmatpush1.bf16.msra.mxu0 %v8291_v60  ;;  %5510 = vmatprep.subr.bf16.mxu1 %v8293_v61  ;;  %v8377_v60 = vld [vmem:[%s9331_s6 + $0x12d0] ss:$8 sps:$4 sm:$0xff]   ;;  %v8378_v61 = vld [vmem:[%s9331_s6 + $0x6e4] ss:$8 sps:$4 sm:$0xff]  }
 0x1f9   : > { %6278 = vmatprep.subr.bf16.mxu0 %v8297_v62  ;;  %v8381_v62 = vld [vmem:[%s9331_s6 + $0x12e4] ss:$8 sps:$4 sm:$0xff]  }
 0x1fa   : > { %3432 = vmatmul.mubr.f32.vlgmr.msra.gmra.mrb[0].mxu1 %v9768_v37  ;;  %v8311_v37 = vld [vmem:[%s9331_s6 + $0x1220] ss:$8 sps:$4 sm:$0xff]  }
 0x1fb   : > { %4284 = vmatmul.mubr.f32.vlgmr.msra.gmra.mrb[0].mxu0 %v9771_v39  ;;  %5512 = vmatpush1.bf16.msra.mxu1 %v8295_v63  ;;  %v8312_v39 = vld [vmem:[%s9331_s6 + $0x634] ss:$8 sps:$4 sm:$0xff]   ;;  %v8380_v63 = vld [vmem:[%s9331_s6 + $0x6e0] ss:$8 sps:$4 sm:$0xff]  }
 0x1fc   : > { %6280 = vmatpush1.bf16.msra.mxu0 %v8299_v46  ;;  %5514 = vmatprep.subr.bf16.mxu1 %v8300_v47  ;;  %v8383_v46 = vld [vmem:[%s9331_s6 + $0x12e0] ss:$8 sps:$4 sm:$0xff]   ;;  %v8384_v47 = vld [vmem:[%s9331_s6 + $0x6f4] ss:$8 sps:$4 sm:$0xff]  }
 0x1fd   : > { %6282 = vmatprep.subr.bf16.mxu0 %v8303_v2  ;;  %3502 = vmatprep.mubr.f32.mxu1 %v2816_v4  ;;  %v8387_v2 = vld [vmem:[%s9331_s6 + $0x12f4] ss:$8 sps:$4 sm:$0xff]   ;;  %v2801_v4 = vcombine.high %v9839_v28, %v9839_v28 }
 0x1fe   : > { %4354 = vmatprep.mubr.f32.mxu0 %v2918_v5  ;;  %v2903_v5 = vcombine.high %v9842_v58, %v9842_v58  ;;  %v8395_v58 = vld [vmem:[%s9331_s6 + $0x1300] ss:$8 sps:$4 sm:$0xff]  }
 0x1ff   : > { %5516 = vmatpush1.bf16.msra.mxu1 %v8302_v3  ;;  %v8386_v3 = vld [vmem:[%s9331_s6 + $0x6f0] ss:$8 sps:$4 sm:$0xff]  }
 0x200   : > { %6284 = vmatpush1.bf16.msra.mxu0 %v8305_v6  ;;  %5518 = vmatprep.subr.bf16.mxu1 %v8306_v7  ;;  %v8389_v6 = vld [vmem:[%s9331_s6 + $0x12f0] ss:$8 sps:$4 sm:$0xff]   ;;  %v8390_v7 = vld [vmem:[%s9331_s6 + $0x704] ss:$8 sps:$4 sm:$0xff]   ;;  %v9935_v28 = vrot.slane %v2903_v5, %v9412_v50 }
 0x201   : > { %6286 = vmatprep.subr.bf16.mxu0 %v8309_v8  ;;  %v8393_v8 = vld [vmem:[%s9331_s6 + $0x1304] ss:$8 sps:$4 sm:$0xff]  }
 0x202   : > { %v8474_v5 = vld [vmem:[%s9331_s6 + $0x7e4] ss:$8 sps:$4 sm:$0xff]  }
 0x203   : > { %5520 = vmatpush1.bf16.msra.mxu1 %v8308_v9  ;;  %v8392_v9 = vld [vmem:[%s9331_s6 + $0x700] ss:$8 sps:$4 sm:$0xff]  }
 0x204   : > { %6288 = vmatpush1.bf16.msra.mxu0 %v8311_v37  ;;  %5522 = vmatprep.subr.bf16.mxu1 %v8312_v39  ;;  %v9932_v37 = vrot.slane %v2801_v4, %v9412_v50  ;;  %v8396_v39 = vld [vmem:[%s9331_s6 + $0x714] ss:$8 sps:$4 sm:$0xff]   ;;  %v8473_v4 = vld [vmem:[%s9331_s6 + $0x13d0] ss:$8 sps:$4 sm:$0xff]  }
 0x205   : > { %6290 = vmatprep.subr.bf16.mxu0 %v8315_v10  ;;  %v8399_v10 = vld [vmem:[%s9331_s6 + $0x1314] ss:$8 sps:$4 sm:$0xff]  }
 0x207   : > { %5524 = vmatpush1.bf16.msra.mxu1 %v8314_v11  ;;  %v8398_v11 = vld [vmem:[%s9331_s6 + $0x710] ss:$8 sps:$4 sm:$0xff]  }
 0x208   : > { %6292 = vmatpush1.bf16.msra.mxu0 %v8317_v12  ;;  %5526 = vmatprep.subr.bf16.mxu1 %v8318_v13  ;;  %v2817_v12 = vcombine.high %v9932_v37, %v9932_v37  ;;  %v2919_v13 = vcombine.high %v9935_v28, %v9935_v28 }
 0x209   : > { %6294 = vmatprep.subr.bf16.mxu0 %v8321_v14  ;;  %v8401_v14 = vld [vmem:[%s9331_s6 + $0x1310] ss:$8 sps:$4 sm:$0xff]  }
 0x20b   : > { %5528 = vmatpush1.bf16.msra.mxu1 %v8320_v15  ;;  %v8402_v15 = vld [vmem:[%s9331_s6 + $0x724] ss:$8 sps:$4 sm:$0xff]  }
 0x20c   : > { %6296 = vmatpush1.bf16.msra.mxu0 %v8323_v16  ;;  %5530 = vmatprep.subr.bf16.mxu1 %v8324_v19  ;;  %v8405_v16 = vld [vmem:[%s9331_s6 + $0x1324] ss:$8 sps:$4 sm:$0xff]   ;;  %v8404_v19 = vld [vmem:[%s9331_s6 + $0x720] ss:$8 sps:$4 sm:$0xff]  }
 0x20d   : > { %6298 = vmatprep.subr.bf16.mxu0 %v8327_v20  ;;  %v8411_v20 = vld [vmem:[%s9331_s6 + $0x1334] ss:$8 sps:$4 sm:$0xff]  }
 0x20f   : > { %5532 = vmatpush1.bf16.msra.mxu1 %v8326_v21  ;;  %v8410_v21 = vld [vmem:[%s9331_s6 + $0x730] ss:$8 sps:$4 sm:$0xff]  }
 0x210   : > { %6300 = vmatpush1.bf16.msra.mxu0 %v8329_v22  ;;  %5534 = vmatprep.subr.bf16.mxu1 %v8330_v23  ;;  %v8413_v22 = vld [vmem:[%s9331_s6 + $0x1330] ss:$8 sps:$4 sm:$0xff]   ;;  %v8414_v23 = vld [vmem:[%s9331_s6 + $0x744] ss:$8 sps:$4 sm:$0xff]  }
 0x211   : > { %6302 = vmatprep.subr.bf16.mxu0 %v8333_v24  ;;  %v8417_v24 = vld [vmem:[%s9331_s6 + $0x1344] ss:$8 sps:$4 sm:$0xff]  }
 0x213   : > { %5536 = vmatpush1.bf16.msra.mxu1 %v8332_v25  ;;  %v8416_v25 = vld [vmem:[%s9331_s6 + $0x740] ss:$8 sps:$4 sm:$0xff]  }
 0x214   : > { %6304 = vmatpush1.bf16.msra.mxu0 %v8335_v26  ;;  %5538 = vmatprep.subr.bf16.mxu1 %v8336_v27  ;;  %v8419_v26 = vld [vmem:[%s9331_s6 + $0x1340] ss:$8 sps:$4 sm:$0xff]   ;;  %v8420_v27 = vld [vmem:[%s9331_s6 + $0x754] ss:$8 sps:$4 sm:$0xff]  }
 0x215   : > { %6306 = vmatprep.subr.bf16.mxu0 %v8339_v29  ;;  %v8423_v29 = vld [vmem:[%s9331_s6 + $0x1354] ss:$8 sps:$4 sm:$0xff]  }
 0x217   : > { %5540 = vmatpush1.bf16.msra.mxu1 %v8338_v32  ;;  %v8422_v32 = vld [vmem:[%s9331_s6 + $0x750] ss:$8 sps:$4 sm:$0xff]  }
 0x218   : > { %6308 = vmatpush1.bf16.msra.mxu0 %v8341_v33  ;;  %5542 = vmatprep.subr.bf16.mxu1 %v8342_v34  ;;  %v8425_v33 = vld [vmem:[%s9331_s6 + $0x1350] ss:$8 sps:$4 sm:$0xff]   ;;  %v8426_v34 = vld [vmem:[%s9331_s6 + $0x764] ss:$8 sps:$4 sm:$0xff]  }
 0x219   : > { %6310 = vmatprep.subr.bf16.mxu0 %v8345_v36  ;;  %v8429_v36 = vld [vmem:[%s9331_s6 + $0x1364] ss:$8 sps:$4 sm:$0xff]  }
 0x21b   : > { %5544 = vmatpush1.bf16.msra.mxu1 %v8344_v17  ;;  %v8428_v17 = vld [vmem:[%s9331_s6 + $0x760] ss:$8 sps:$4 sm:$0xff]  }
 0x21c   : > { %6312 = vmatpush1.bf16.msra.mxu0 %v8347_v18  ;;  %5546 = vmatprep.subr.bf16.mxu1 %v8348_v38  ;;  %v8431_v18 = vld [vmem:[%s9331_s6 + $0x1360] ss:$8 sps:$4 sm:$0xff]   ;;  %v8432_v38 = vld [vmem:[%s9331_s6 + $0x774] ss:$8 sps:$4 sm:$0xff]  }
 0x21d   : > { %6314 = vmatprep.subr.bf16.mxu0 %v8351_v31  ;;  %v8435_v31 = vld [vmem:[%s9331_s6 + $0x1374] ss:$8 sps:$4 sm:$0xff]  }
 0x21f   : > { %5548 = vmatpush1.bf16.msra.mxu1 %v8350_v41  ;;  %v8434_v41 = vld [vmem:[%s9331_s6 + $0x770] ss:$8 sps:$4 sm:$0xff]  }
 0x220   : > { %6316 = vmatpush1.bf16.msra.mxu0 %v8353_v42  ;;  %5550 = vmatprep.subr.bf16.mxu1 %v8354_v43  ;;  %v8437_v42 = vld [vmem:[%s9331_s6 + $0x1370] ss:$8 sps:$4 sm:$0xff]   ;;  %v8438_v43 = vld [vmem:[%s9331_s6 + $0x784] ss:$8 sps:$4 sm:$0xff]  }
 0x221   : > { %6318 = vmatprep.subr.bf16.mxu0 %v8357_v45  ;;  %v8441_v45 = vld [vmem:[%s9331_s6 + $0x1384] ss:$8 sps:$4 sm:$0xff]  }
 0x223   : > { %5552 = vmatpush1.bf16.msra.mxu1 %v8356_v48  ;;  %v8440_v48 = vld [vmem:[%s9331_s6 + $0x780] ss:$8 sps:$4 sm:$0xff]  }
 0x224   : > { %6320 = vmatpush1.bf16.msra.mxu0 %v8359_v30  ;;  %5554 = vmatprep.subr.bf16.mxu1 %v8360_v35  ;;  %v8443_v30 = vld [vmem:[%s9331_s6 + $0x1380] ss:$8 sps:$4 sm:$0xff]   ;;  %v8444_v35 = vld [vmem:[%s9331_s6 + $0x794] ss:$8 sps:$4 sm:$0xff]  }
 0x225   : > { %6322 = vmatprep.subr.bf16.mxu0 %v8363_v49  ;;  %v8447_v49 = vld [vmem:[%s9331_s6 + $0x1394] ss:$8 sps:$4 sm:$0xff]  }
 0x227   : > { %5556 = vmatpush1.bf16.msra.mxu1 %v8362_v51  ;;  %v8446_v51 = vld [vmem:[%s9331_s6 + $0x790] ss:$8 sps:$4 sm:$0xff]  }
 0x228   : > { %6324 = vmatpush1.bf16.msra.mxu0 %v8365_v52  ;;  %5558 = vmatprep.subr.bf16.mxu1 %v8366_v53  ;;  %v8449_v52 = vld [vmem:[%s9331_s6 + $0x1390] ss:$8 sps:$4 sm:$0xff]   ;;  %v8450_v53 = vld [vmem:[%s9331_s6 + $0x7a4] ss:$8 sps:$4 sm:$0xff]  }
 0x229   : > { %6326 = vmatprep.subr.bf16.mxu0 %v8369_v54  ;;  %v8453_v54 = vld [vmem:[%s9331_s6 + $0x13a4] ss:$8 sps:$4 sm:$0xff]  }
 0x22b   : > { %5560 = vmatpush1.bf16.msra.mxu1 %v8368_v55  ;;  %v8452_v55 = vld [vmem:[%s9331_s6 + $0x7a0] ss:$8 sps:$4 sm:$0xff]  }
 0x22c   : > { %6328 = vmatpush1.bf16.msra.mxu0 %v8371_v56  ;;  %5562 = vmatprep.subr.bf16.mxu1 %v8372_v57  ;;  %v8455_v56 = vld [vmem:[%s9331_s6 + $0x13a0] ss:$8 sps:$4 sm:$0xff]   ;;  %v8456_v57 = vld [vmem:[%s9331_s6 + $0x7b4] ss:$8 sps:$4 sm:$0xff]  }
 0x22d   : > { %6330 = vmatprep.subr.bf16.mxu0 %v8375_v40  ;;  %v8459_v40 = vld [vmem:[%s9331_s6 + $0x13b4] ss:$8 sps:$4 sm:$0xff]  }
 0x22f   : > { %5564 = vmatpush1.bf16.msra.mxu1 %v8374_v59  ;;  %v8458_v59 = vld [vmem:[%s9331_s6 + $0x7b0] ss:$8 sps:$4 sm:$0xff]  }
 0x230   : > { %6332 = vmatpush1.bf16.msra.mxu0 %v8377_v60  ;;  %5566 = vmatprep.subr.bf16.mxu1 %v8378_v61  ;;  %v8461_v60 = vld [vmem:[%s9331_s6 + $0x13b0] ss:$8 sps:$4 sm:$0xff]   ;;  %v8462_v61 = vld [vmem:[%s9331_s6 + $0x7c4] ss:$8 sps:$4 sm:$0xff]  }
 0x231   : > { %6334 = vmatprep.subr.bf16.mxu0 %v8381_v62  ;;  %v8465_v62 = vld [vmem:[%s9331_s6 + $0x13c4] ss:$8 sps:$4 sm:$0xff]  }
 0x233   : > { %5568 = vmatpush1.bf16.msra.mxu1 %v8380_v63  ;;  %v8464_v63 = vld [vmem:[%s9331_s6 + $0x7c0] ss:$8 sps:$4 sm:$0xff]  }
 0x234   : > { %6336 = vmatpush1.bf16.msra.mxu0 %v8383_v46  ;;  %5570 = vmatprep.subr.bf16.mxu1 %v8384_v47  ;;  %v8467_v46 = vld [vmem:[%s9331_s6 + $0x13c0] ss:$8 sps:$4 sm:$0xff]   ;;  %v8468_v47 = vld [vmem:[%s9331_s6 + $0x7d4] ss:$8 sps:$4 sm:$0xff]  }
 0x235   : > { %6338 = vmatprep.subr.bf16.mxu0 %v8387_v2  ;;  %v8471_v2 = vld [vmem:[%s9331_s6 + $0x13d4] ss:$8 sps:$4 sm:$0xff]  }
 0x237   : > { %5572 = vmatpush1.bf16.msra.mxu1 %v8386_v3  ;;  %v8470_v3 = vld [vmem:[%s9331_s6 + $0x7d0] ss:$8 sps:$4 sm:$0xff]  }
 0x238   : > { %6340 = vmatpush1.bf16.msra.mxu0 %v8389_v6  ;;  %5574 = vmatprep.subr.bf16.mxu1 %v8390_v7  ;;  %v8477_v6 = vld [vmem:[%s9331_s6 + $0x13e4] ss:$8 sps:$4 sm:$0xff]   ;;  %v8476_v7 = vld [vmem:[%s9331_s6 + $0x7e0] ss:$8 sps:$4 sm:$0xff]  }
 0x239   : > { %6342 = vmatprep.subr.bf16.mxu0 %v8393_v8  ;;  %v8479_v8 = vld [vmem:[%s9331_s6 + $0x13e0] ss:$8 sps:$4 sm:$0xff]  }
 0x23a   : > { %3503 = vmatmul.mubr.f32.vlgmr.msra.gmra.mrb[0].mxu1 %v9851_v0  ;;  %v8407_v0 = vld [vmem:[%s9331_s6 + $0x1320] ss:$8 sps:$4 sm:$0xff]  }
 0x23b   : > { %4355 = vmatmul.mubr.f32.vlgmr.msra.gmra.mrb[0].mxu0 %v9855_v1  ;;  %5576 = vmatpush1.bf16.msra.mxu1 %v8392_v9  ;;  %v8408_v1 = vld [vmem:[%s9331_s6 + $0x734] ss:$8 sps:$4 sm:$0xff]  }
 0x23c   : > { %6344 = vmatpush1.bf16.msra.mxu0 %v8395_v58  ;;  %5578 = vmatprep.subr.bf16.mxu1 %v8396_v39  ;;  %v8480_v9 = vld [vmem:[%s9331_s6 + $0x7f4] ss:$8 sps:$4 sm:$0xff]  }
 0x23d   : > { %6346 = vmatprep.subr.bf16.mxu0 %v8399_v10  ;;  %3573 = vmatprep.mubr.f32.mxu1 %v2817_v12  ;;  %v8483_v58 = vld [vmem:[%s9331_s6 + $0x13f4] ss:$8 sps:$4 sm:$0xff]   ;;  %v10006_v10 = vld [vmem:[%s9356_s4 + $0x50] sm:$0xff] }
 0x23e   : > { %4425 = vmatprep.mubr.f32.mxu0 %v2919_v13  ;;  %v10003_v39 = vld [vmem:[%s9356_s4 + $0x20] sm:$0xff]  ;;  %v8485_v12 = vld [vmem:[%s9331_s6 + $0x13f0] ss:$8 sps:$4 sm:$0xff]   ;;  %v8487_v13 = vld [vmem:[%s9331_s6 + $0x804] ss:$8 sps:$4 sm:$0xff]  }
 0x23f   : > { %5580 = vmatpush1.bf16.msra.mxu1 %v8398_v11  ;;  %v8482_v11 = vld [vmem:[%s9331_s6 + $0x7f0] ss:$8 sps:$4 sm:$0xff]  }
 0x240   : > { %6348 = vmatpush1.bf16.msra.mxu0 %v8401_v14  ;;  %5582 = vmatprep.subr.bf16.mxu1 %v8402_v15  ;;  %v8491_v14 = vld [vmem:[%s9331_s6 + $0x1404] ss:$8 sps:$4 sm:$0xff]   ;;  %v10014_v15 = vrot.slane %v10003_v39, %v9412_v50 }
 0x241   : > { %6350 = vmatprep.subr.bf16.mxu0 %v8405_v16  ;;  %v10018_v16 = vrot.slane %v10006_v10, %v9412_v50 }
 0x243   : > { %5584 = vmatpush1.bf16.msra.mxu1 %v8404_v19  ;;  %v8489_v19 = vld [vmem:[%s9331_s6 + $0x800] ss:$8 sps:$4 sm:$0xff]  }
 0x244   : > { %6352 = vmatpush1.bf16.msra.mxu0 %v8407_v0  ;;  %5586 = vmatprep.subr.bf16.mxu1 %v8408_v1  ;;  %v8493_v0 = vld [vmem:[%s9331_s6 + $0x1400] ss:$8 sps:$4 sm:$0xff]   ;;  %v8494_v1 = vld [vmem:[%s9331_s6 + $0x814] ss:$8 sps:$4 sm:$0xff]  }
 0x245   : > { %6354 = vmatprep.subr.bf16.mxu0 %v8411_v20  ;;  %v8497_v20 = vld [vmem:[%s9331_s6 + $0x1414] ss:$8 sps:$4 sm:$0xff]  }
 0x247   : > { %5588 = vmatpush1.bf16.msra.mxu1 %v8410_v21  ;;  %v2833_v21 = vcombine.high %v10014_v15, %v10014_v15 }
 0x248   : > { %6356 = vmatpush1.bf16.msra.mxu0 %v8413_v22  ;;  %5590 = vmatprep.subr.bf16.mxu1 %v8414_v23  ;;  %v2935_v22 = vcombine.high %v10018_v16, %v10018_v16  ;;  %v8496_v23 = vld [vmem:[%s9331_s6 + $0x810] ss:$8 sps:$4 sm:$0xff]  }
 0x249   : > { %6358 = vmatprep.subr.bf16.mxu0 %v8417_v24  ;;  %v8499_v24 = vld [vmem:[%s9331_s6 + $0x1410] ss:$8 sps:$4 sm:$0xff]  }
 0x24b   : > { %5592 = vmatpush1.bf16.msra.mxu1 %v8416_v25  ;;  %v8500_v25 = vld [vmem:[%s9331_s6 + $0x824] ss:$8 sps:$4 sm:$0xff]  }
 0x24c   : > { %6360 = vmatpush1.bf16.msra.mxu0 %v8419_v26  ;;  %5594 = vmatprep.subr.bf16.mxu1 %v8420_v27  ;;  %v8503_v26 = vld [vmem:[%s9331_s6 + $0x1424] ss:$8 sps:$4 sm:$0xff]   ;;  %v8506_v27 = vld [vmem:[%s9331_s6 + $0x834] ss:$8 sps:$4 sm:$0xff]  }
 0x24d   : > { %6362 = vmatprep.subr.bf16.mxu0 %v8423_v29  ;;  %v8509_v29 = vld [vmem:[%s9331_s6 + $0x1434] ss:$8 sps:$4 sm:$0xff]  }
 0x24f   : > { %5596 = vmatpush1.bf16.msra.mxu1 %v8422_v32  ;;  %v8508_v32 = vld [vmem:[%s9331_s6 + $0x830] ss:$8 sps:$4 sm:$0xff]  }
 0x250   : > { %6364 = vmatpush1.bf16.msra.mxu0 %v8425_v33  ;;  %5598 = vmatprep.subr.bf16.mxu1 %v8426_v34  ;;  %v8511_v33 = vld [vmem:[%s9331_s6 + $0x1430] ss:$8 sps:$4 sm:$0xff]   ;;  %v8512_v34 = vld [vmem:[%s9331_s6 + $0x844] ss:$8 sps:$4 sm:$0xff]  }
 0x251   : > { %6366 = vmatprep.subr.bf16.mxu0 %v8429_v36  ;;  %v8515_v36 = vld [vmem:[%s9331_s6 + $0x1444] ss:$8 sps:$4 sm:$0xff]  }
 0x253   : > { %5600 = vmatpush1.bf16.msra.mxu1 %v8428_v17  ;;  %v8514_v17 = vld [vmem:[%s9331_s6 + $0x840] ss:$8 sps:$4 sm:$0xff]  }
 0x254   : > { %6368 = vmatpush1.bf16.msra.mxu0 %v8431_v18  ;;  %5602 = vmatprep.subr.bf16.mxu1 %v8432_v38  ;;  %v8517_v18 = vld [vmem:[%s9331_s6 + $0x1440] ss:$8 sps:$4 sm:$0xff]   ;;  %v8518_v38 = vld [vmem:[%s9331_s6 + $0x854] ss:$8 sps:$4 sm:$0xff]  }
 0x255   : > { %6370 = vmatprep.subr.bf16.mxu0 %v8435_v31  ;;  %v8521_v31 = vld [vmem:[%s9331_s6 + $0x1454] ss:$8 sps:$4 sm:$0xff]  }
 0x257   : > { %5604 = vmatpush1.bf16.msra.mxu1 %v8434_v41  ;;  %v8520_v41 = vld [vmem:[%s9331_s6 + $0x850] ss:$8 sps:$4 sm:$0xff]  }
 0x258   : > { %6372 = vmatpush1.bf16.msra.mxu0 %v8437_v42  ;;  %5606 = vmatprep.subr.bf16.mxu1 %v8438_v43  ;;  %v8523_v42 = vld [vmem:[%s9331_s6 + $0x1450] ss:$8 sps:$4 sm:$0xff]   ;;  %v8524_v43 = vld [vmem:[%s9331_s6 + $0x864] ss:$8 sps:$4 sm:$0xff]  }
 0x259   : > { %6374 = vmatprep.subr.bf16.mxu0 %v8441_v45  ;;  %v8527_v45 = vld [vmem:[%s9331_s6 + $0x1464] ss:$8 sps:$4 sm:$0xff]  }
 0x25b   : > { %5608 = vmatpush1.bf16.msra.mxu1 %v8440_v48  ;;  %v8526_v48 = vld [vmem:[%s9331_s6 + $0x860] ss:$8 sps:$4 sm:$0xff]  }
 0x25c   : > { %6376 = vmatpush1.bf16.msra.mxu0 %v8443_v30  ;;  %5610 = vmatprep.subr.bf16.mxu1 %v8444_v35  ;;  %v8529_v30 = vld [vmem:[%s9331_s6 + $0x1460] ss:$8 sps:$4 sm:$0xff]   ;;  %v8530_v35 = vld [vmem:[%s9331_s6 + $0x874] ss:$8 sps:$4 sm:$0xff]  }
 0x25d   : > { %6378 = vmatprep.subr.bf16.mxu0 %v8447_v49  ;;  %v8533_v49 = vld [vmem:[%s9331_s6 + $0x1474] ss:$8 sps:$4 sm:$0xff]  }
 0x25f   : > { %5612 = vmatpush1.bf16.msra.mxu1 %v8446_v51  ;;  %v8532_v51 = vld [vmem:[%s9331_s6 + $0x870] ss:$8 sps:$4 sm:$0xff]  }
 0x260   : > { %6380 = vmatpush1.bf16.msra.mxu0 %v8449_v52  ;;  %5614 = vmatprep.subr.bf16.mxu1 %v8450_v53  ;;  %v8535_v52 = vld [vmem:[%s9331_s6 + $0x1470] ss:$8 sps:$4 sm:$0xff]   ;;  %v8536_v53 = vld [vmem:[%s9331_s6 + $0x884] ss:$8 sps:$4 sm:$0xff]  }
 0x261   : > { %6382 = vmatprep.subr.bf16.mxu0 %v8453_v54  ;;  %v8539_v54 = vld [vmem:[%s9331_s6 + $0x1484] ss:$8 sps:$4 sm:$0xff]  }
 0x263   : > { %5616 = vmatpush1.bf16.msra.mxu1 %v8452_v55  ;;  %v8538_v55 = vld [vmem:[%s9331_s6 + $0x880] ss:$8 sps:$4 sm:$0xff]  }
 0x264   : > { %6384 = vmatpush1.bf16.msra.mxu0 %v8455_v56  ;;  %5618 = vmatprep.subr.bf16.mxu1 %v8456_v57  ;;  %v8541_v56 = vld [vmem:[%s9331_s6 + $0x1480] ss:$8 sps:$4 sm:$0xff]   ;;  %v8542_v57 = vld [vmem:[%s9331_s6 + $0x894] ss:$8 sps:$4 sm:$0xff]  }
 0x265   : > { %6386 = vmatprep.subr.bf16.mxu0 %v8459_v40  ;;  %v8545_v40 = vld [vmem:[%s9331_s6 + $0x1494] ss:$8 sps:$4 sm:$0xff]  }
 0x267   : > { %5620 = vmatpush1.bf16.msra.mxu1 %v8458_v59  ;;  %v8544_v59 = vld [vmem:[%s9331_s6 + $0x890] ss:$8 sps:$4 sm:$0xff]  }
 0x268   : > { %6388 = vmatpush1.bf16.msra.mxu0 %v8461_v60  ;;  %5622 = vmatprep.subr.bf16.mxu1 %v8462_v61  ;;  %v8547_v60 = vld [vmem:[%s9331_s6 + $0x1490] ss:$8 sps:$4 sm:$0xff]   ;;  %v8548_v61 = vld [vmem:[%s9331_s6 + $0x8a4] ss:$8 sps:$4 sm:$0xff]  }
 0x269   : > { %6390 = vmatprep.subr.bf16.mxu0 %v8465_v62  ;;  %v8551_v62 = vld [vmem:[%s9331_s6 + $0x14a4] ss:$8 sps:$4 sm:$0xff]  }
 0x26b   : > { %5624 = vmatpush1.bf16.msra.mxu1 %v8464_v63  ;;  %v8550_v63 = vld [vmem:[%s9331_s6 + $0x8a0] ss:$8 sps:$4 sm:$0xff]  }
 0x26c   : > { %6392 = vmatpush1.bf16.msra.mxu0 %v8467_v46  ;;  %5626 = vmatprep.subr.bf16.mxu1 %v8468_v47  ;;  %v8553_v46 = vld [vmem:[%s9331_s6 + $0x14a0] ss:$8 sps:$4 sm:$0xff]   ;;  %v8554_v47 = vld [vmem:[%s9331_s6 + $0x8b4] ss:$8 sps:$4 sm:$0xff]  }
 0x26d   : > { %6394 = vmatprep.subr.bf16.mxu0 %v8471_v2  ;;  %v8557_v2 = vld [vmem:[%s9331_s6 + $0x14b4] ss:$8 sps:$4 sm:$0xff]  }
 0x26f   : > { %5628 = vmatpush1.bf16.msra.mxu1 %v8470_v3  ;;  %v8556_v3 = vld [vmem:[%s9331_s6 + $0x8b0] ss:$8 sps:$4 sm:$0xff]  }
 0x270   : > { %6396 = vmatpush1.bf16.msra.mxu0 %v8473_v4  ;;  %5630 = vmatprep.subr.bf16.mxu1 %v8474_v5  ;;  %v8559_v4 = vld [vmem:[%s9331_s6 + $0x14b0] ss:$8 sps:$4 sm:$0xff]   ;;  %v8560_v5 = vld [vmem:[%s9331_s6 + $0x8c4] ss:$8 sps:$4 sm:$0xff]  }
 0x271   : > { %6398 = vmatprep.subr.bf16.mxu0 %v8477_v6  ;;  %v8563_v6 = vld [vmem:[%s9331_s6 + $0x14c4] ss:$8 sps:$4 sm:$0xff]  }
 0x273   : > { %5632 = vmatpush1.bf16.msra.mxu1 %v8476_v7  ;;  %v8562_v7 = vld [vmem:[%s9331_s6 + $0x8c0] ss:$8 sps:$4 sm:$0xff]  }
 0x274   : > { %6400 = vmatpush1.bf16.msra.mxu0 %v8479_v8  ;;  %5634 = vmatprep.subr.bf16.mxu1 %v8480_v9  ;;  %v8565_v8 = vld [vmem:[%s9331_s6 + $0x14c0] ss:$8 sps:$4 sm:$0xff]   ;;  %v8566_v9 = vld [vmem:[%s9331_s6 + $0x8d4] ss:$8 sps:$4 sm:$0xff]  }
 0x275   : > { %6402 = vmatprep.subr.bf16.mxu0 %v8483_v58  ;;  %v8569_v58 = vld [vmem:[%s9331_s6 + $0x14d4] ss:$8 sps:$4 sm:$0xff]  }
 0x277   : > { %5636 = vmatpush1.bf16.msra.mxu1 %v8482_v11  ;;  %v8568_v11 = vld [vmem:[%s9331_s6 + $0x8d0] ss:$8 sps:$4 sm:$0xff]  }
 0x278   : > { %6404 = vmatpush1.bf16.msra.mxu0 %v8485_v12  ;;  %5638 = vmatprep.subr.bf16.mxu1 %v8487_v13  ;;  %v8571_v12 = vld [vmem:[%s9331_s6 + $0x14d0] ss:$8 sps:$4 sm:$0xff]   ;;  %v8572_v13 = vld [vmem:[%s9331_s6 + $0x8e4] ss:$8 sps:$4 sm:$0xff]  }
 0x279   : > { %6406 = vmatprep.subr.bf16.mxu0 %v8491_v14  ;;  %v8575_v14 = vld [vmem:[%s9331_s6 + $0x14e4] ss:$8 sps:$4 sm:$0xff]  }
 0x27a   : > { %3574 = vmatmul.mubr.f32.vlgmr.msra.gmra.mrb[0].mxu1 %v9932_v37  ;;  %v8502_v37 = vld [vmem:[%s9331_s6 + $0x820] ss:$8 sps:$4 sm:$0xff]  }
 0x27b   : > { %4426 = vmatmul.mubr.f32.vlgmr.msra.gmra.mrb[0].mxu0 %v9935_v28  ;;  %5640 = vmatpush1.bf16.msra.mxu1 %v8489_v19  ;;  %v8505_v28 = vld [vmem:[%s9331_s6 + $0x1420] ss:$8 sps:$4 sm:$0xff]  }
 0x27c   : > { %6408 = vmatpush1.bf16.msra.mxu0 %v8493_v0  ;;  %5642 = vmatprep.subr.bf16.mxu1 %v8494_v1  ;;  %v8574_v19 = vld [vmem:[%s9331_s6 + $0x8e0] ss:$8 sps:$4 sm:$0xff]   ;;  %v8578_v1 = vld [vmem:[%s9331_s6 + $0x8f4] ss:$8 sps:$4 sm:$0xff]  }
 0x27d   : > { %6410 = vmatprep.subr.bf16.mxu0 %v8497_v20  ;;  %3644 = vmatprep.mubr.f32.mxu1 %v2833_v21  ;;  %v8577_v0 = vld [vmem:[%s9331_s6 + $0x14e0] ss:$8 sps:$4 sm:$0xff]   ;;  %v8581_v20 = vld [vmem:[%s9331_s6 + $0x14f4] ss:$8 sps:$4 sm:$0xff]   ;;  %v2818_v21 = vcombine.high %v10003_v39, %v10003_v39 }
 0x27e   : > { %4496 = vmatprep.mubr.f32.mxu0 %v2935_v22  ;;  %v2920_v22 = vcombine.high %v10006_v10, %v10006_v10  ;;  %v8586_v39 = vld [vmem:[%s9331_s6 + $0x900] ss:$8 sps:$4 sm:$0xff]  }
 0x27f   : > { %5644 = vmatpush1.bf16.msra.mxu1 %v8496_v23  ;;  %v8580_v23 = vld [vmem:[%s9331_s6 + $0x8f0] ss:$8 sps:$4 sm:$0xff]   ;;  %v8589_v10 = vld [vmem:[%s9331_s6 + $0x1500] ss:$8 sps:$4 sm:$0xff]  }
 0x280   : > { %6412 = vmatpush1.bf16.msra.mxu0 %v8499_v24  ;;  %5646 = vmatprep.subr.bf16.mxu1 %v8500_v25  ;;  %v8583_v24 = vld [vmem:[%s9331_s6 + $0x14f0] ss:$8 sps:$4 sm:$0xff]   ;;  %v8584_v25 = vld [vmem:[%s9331_s6 + $0x904] ss:$8 sps:$4 sm:$0xff]  }
 0x281   : > { %6414 = vmatprep.subr.bf16.mxu0 %v8503_v26  ;;  %v8587_v26 = vld [vmem:[%s9331_s6 + $0x1504] ss:$8 sps:$4 sm:$0xff]  }
 0x283   : > { %5648 = vmatpush1.bf16.msra.mxu1 %v8502_v37  ;;  %v10095_v37 = vrot.slane %v2818_v21, %v9412_v50  ;;  %v8664_v21 = vld [vmem:[%s9331_s6 + $0x9d0] ss:$8 sps:$4 sm:$0xff]  }
 0x284   : > { %6416 = vmatpush1.bf16.msra.mxu0 %v8505_v28  ;;  %5650 = vmatprep.subr.bf16.mxu1 %v8506_v27  ;;  %v10098_v28 = vrot.slane %v2920_v22, %v9412_v50  ;;  %v8590_v27 = vld [vmem:[%s9331_s6 + $0x914] ss:$8 sps:$4 sm:$0xff]   ;;  %v8667_v22 = vld [vmem:[%s9331_s6 + $0x15d0] ss:$8 sps:$4 sm:$0xff]  }
 0x285   : > { %6418 = vmatprep.subr.bf16.mxu0 %v8509_v29  ;;  %v8593_v29 = vld [vmem:[%s9331_s6 + $0x1514] ss:$8 sps:$4 sm:$0xff]  }
 0x287   : > { %5652 = vmatpush1.bf16.msra.mxu1 %v8508_v32  ;;  %v2834_v32 = vcombine.high %v10095_v37, %v10095_v37 }
 0x288   : > { %6420 = vmatpush1.bf16.msra.mxu0 %v8511_v33  ;;  %5654 = vmatprep.subr.bf16.mxu1 %v8512_v34  ;;  %v2936_v33 = vcombine.high %v10098_v28, %v10098_v28  ;;  %v8592_v34 = vld [vmem:[%s9331_s6 + $0x910] ss:$8 sps:$4 sm:$0xff]  }
 0x289   : > { %6422 = vmatprep.subr.bf16.mxu0 %v8515_v36  ;;  %v8595_v36 = vld [vmem:[%s9331_s6 + $0x1510] ss:$8 sps:$4 sm:$0xff]  }
 0x28b   : > { %5656 = vmatpush1.bf16.msra.mxu1 %v8514_v17  ;;  %v8596_v17 = vld [vmem:[%s9331_s6 + $0x924] ss:$8 sps:$4 sm:$0xff]  }
 0x28c   : > { %6424 = vmatpush1.bf16.msra.mxu0 %v8517_v18  ;;  %5658 = vmatprep.subr.bf16.mxu1 %v8518_v38  ;;  %v8599_v18 = vld [vmem:[%s9331_s6 + $0x1524] ss:$8 sps:$4 sm:$0xff]   ;;  %v8602_v38 = vld [vmem:[%s9331_s6 + $0x934] ss:$8 sps:$4 sm:$0xff]  }
 0x28d   : > { %6426 = vmatprep.subr.bf16.mxu0 %v8521_v31  ;;  %v8605_v31 = vld [vmem:[%s9331_s6 + $0x1534] ss:$8 sps:$4 sm:$0xff]  }
 0x28f   : > { %5660 = vmatpush1.bf16.msra.mxu1 %v8520_v41  ;;  %v8604_v41 = vld [vmem:[%s9331_s6 + $0x930] ss:$8 sps:$4 sm:$0xff]  }
 0x290   : > { %6428 = vmatpush1.bf16.msra.mxu0 %v8523_v42  ;;  %5662 = vmatprep.subr.bf16.mxu1 %v8524_v43  ;;  %v8607_v42 = vld [vmem:[%s9331_s6 + $0x1530] ss:$8 sps:$4 sm:$0xff]   ;;  %v8608_v43 = vld [vmem:[%s9331_s6 + $0x944] ss:$8 sps:$4 sm:$0xff]  }
 0x291   : > { %6430 = vmatprep.subr.bf16.mxu0 %v8527_v45  ;;  %v8611_v45 = vld [vmem:[%s9331_s6 + $0x1544] ss:$8 sps:$4 sm:$0xff]  }
 0x293   : > { %5664 = vmatpush1.bf16.msra.mxu1 %v8526_v48  ;;  %v8610_v48 = vld [vmem:[%s9331_s6 + $0x940] ss:$8 sps:$4 sm:$0xff]  }
 0x294   : > { %6432 = vmatpush1.bf16.msra.mxu0 %v8529_v30  ;;  %5666 = vmatprep.subr.bf16.mxu1 %v8530_v35  ;;  %v8613_v30 = vld [vmem:[%s9331_s6 + $0x1540] ss:$8 sps:$4 sm:$0xff]   ;;  %v8614_v35 = vld [vmem:[%s9331_s6 + $0x954] ss:$8 sps:$4 sm:$0xff]  }
 0x295   : > { %6434 = vmatprep.subr.bf16.mxu0 %v8533_v49  ;;  %v8617_v49 = vld [vmem:[%s9331_s6 + $0x1554] ss:$8 sps:$4 sm:$0xff]  }
 0x297   : > { %5668 = vmatpush1.bf16.msra.mxu1 %v8532_v51  ;;  %v8616_v51 = vld [vmem:[%s9331_s6 + $0x950] ss:$8 sps:$4 sm:$0xff]  }
 0x298   : > { %6436 = vmatpush1.bf16.msra.mxu0 %v8535_v52  ;;  %5670 = vmatprep.subr.bf16.mxu1 %v8536_v53  ;;  %v8619_v52 = vld [vmem:[%s9331_s6 + $0x1550] ss:$8 sps:$4 sm:$0xff]   ;;  %v8620_v53 = vld [vmem:[%s9331_s6 + $0x964] ss:$8 sps:$4 sm:$0xff]  }
 0x299   : > { %6438 = vmatprep.subr.bf16.mxu0 %v8539_v54  ;;  %v8623_v54 = vld [vmem:[%s9331_s6 + $0x1564] ss:$8 sps:$4 sm:$0xff]  }
 0x29b   : > { %5672 = vmatpush1.bf16.msra.mxu1 %v8538_v55  ;;  %v8622_v55 = vld [vmem:[%s9331_s6 + $0x960] ss:$8 sps:$4 sm:$0xff]  }
 0x29c   : > { %6440 = vmatpush1.bf16.msra.mxu0 %v8541_v56  ;;  %5674 = vmatprep.subr.bf16.mxu1 %v8542_v57  ;;  %v8625_v56 = vld [vmem:[%s9331_s6 + $0x1560] ss:$8 sps:$4 sm:$0xff]   ;;  %v8626_v57 = vld [vmem:[%s9331_s6 + $0x974] ss:$8 sps:$4 sm:$0xff]  }
 0x29d   : > { %6442 = vmatprep.subr.bf16.mxu0 %v8545_v40  ;;  %v8629_v40 = vld [vmem:[%s9331_s6 + $0x1574] ss:$8 sps:$4 sm:$0xff]  }
 0x29f   : > { %5676 = vmatpush1.bf16.msra.mxu1 %v8544_v59  ;;  %v8628_v59 = vld [vmem:[%s9331_s6 + $0x970] ss:$8 sps:$4 sm:$0xff]  }
 0x2a0   : > { %6444 = vmatpush1.bf16.msra.mxu0 %v8547_v60  ;;  %5678 = vmatprep.subr.bf16.mxu1 %v8548_v61  ;;  %v8631_v60 = vld [vmem:[%s9331_s6 + $0x1570] ss:$8 sps:$4 sm:$0xff]   ;;  %v8632_v61 = vld [vmem:[%s9331_s6 + $0x984] ss:$8 sps:$4 sm:$0xff]  }
 0x2a1   : > { %6446 = vmatprep.subr.bf16.mxu0 %v8551_v62  ;;  %v8635_v62 = vld [vmem:[%s9331_s6 + $0x1584] ss:$8 sps:$4 sm:$0xff]  }
 0x2a3   : > { %5680 = vmatpush1.bf16.msra.mxu1 %v8550_v63  ;;  %v8634_v63 = vld [vmem:[%s9331_s6 + $0x980] ss:$8 sps:$4 sm:$0xff]  }
 0x2a4   : > { %6448 = vmatpush1.bf16.msra.mxu0 %v8553_v46  ;;  %5682 = vmatprep.subr.bf16.mxu1 %v8554_v47  ;;  %v8637_v46 = vld [vmem:[%s9331_s6 + $0x1580] ss:$8 sps:$4 sm:$0xff]   ;;  %v8638_v47 = vld [vmem:[%s9331_s6 + $0x994] ss:$8 sps:$4 sm:$0xff]  }
 0x2a5   : > { %6450 = vmatprep.subr.bf16.mxu0 %v8557_v2  ;;  %v8641_v2 = vld [vmem:[%s9331_s6 + $0x1594] ss:$8 sps:$4 sm:$0xff]  }
 0x2a7   : > { %5684 = vmatpush1.bf16.msra.mxu1 %v8556_v3  ;;  %v8640_v3 = vld [vmem:[%s9331_s6 + $0x990] ss:$8 sps:$4 sm:$0xff]  }
 0x2a8   : > { %6452 = vmatpush1.bf16.msra.mxu0 %v8559_v4  ;;  %5686 = vmatprep.subr.bf16.mxu1 %v8560_v5  ;;  %v8643_v4 = vld [vmem:[%s9331_s6 + $0x1590] ss:$8 sps:$4 sm:$0xff]   ;;  %v8644_v5 = vld [vmem:[%s9331_s6 + $0x9a4] ss:$8 sps:$4 sm:$0xff]  }
 0x2a9   : > { %6454 = vmatprep.subr.bf16.mxu0 %v8563_v6  ;;  %v8647_v6 = vld [vmem:[%s9331_s6 + $0x15a4] ss:$8 sps:$4 sm:$0xff]  }
 0x2ab   : > { %5688 = vmatpush1.bf16.msra.mxu1 %v8562_v7  ;;  %v8646_v7 = vld [vmem:[%s9331_s6 + $0x9a0] ss:$8 sps:$4 sm:$0xff]  }
 0x2ac   : > { %6456 = vmatpush1.bf16.msra.mxu0 %v8565_v8  ;;  %5690 = vmatprep.subr.bf16.mxu1 %v8566_v9  ;;  %v8649_v8 = vld [vmem:[%s9331_s6 + $0x15a0] ss:$8 sps:$4 sm:$0xff]   ;;  %v8650_v9 = vld [vmem:[%s9331_s6 + $0x9b4] ss:$8 sps:$4 sm:$0xff]  }
 0x2ad   : > { %6458 = vmatprep.subr.bf16.mxu0 %v8569_v58  ;;  %v8653_v58 = vld [vmem:[%s9331_s6 + $0x15b4] ss:$8 sps:$4 sm:$0xff]  }
 0x2af   : > { %5692 = vmatpush1.bf16.msra.mxu1 %v8568_v11  ;;  %v8652_v11 = vld [vmem:[%s9331_s6 + $0x9b0] ss:$8 sps:$4 sm:$0xff]  }
 0x2b0   : > { %6460 = vmatpush1.bf16.msra.mxu0 %v8571_v12  ;;  %5694 = vmatprep.subr.bf16.mxu1 %v8572_v13  ;;  %v8655_v12 = vld [vmem:[%s9331_s6 + $0x15b0] ss:$8 sps:$4 sm:$0xff]   ;;  %v8656_v13 = vld [vmem:[%s9331_s6 + $0x9c4] ss:$8 sps:$4 sm:$0xff]  }
 0x2b1   : > { %6462 = vmatprep.subr.bf16.mxu0 %v8575_v14  ;;  %v8659_v14 = vld [vmem:[%s9331_s6 + $0x15c4] ss:$8 sps:$4 sm:$0xff]  }
 0x2b3   : > { %5696 = vmatpush1.bf16.msra.mxu1 %v8574_v19  ;;  %v8658_v19 = vld [vmem:[%s9331_s6 + $0x9c0] ss:$8 sps:$4 sm:$0xff]  }
 0x2b4   : > { %6464 = vmatpush1.bf16.msra.mxu0 %v8577_v0  ;;  %5698 = vmatprep.subr.bf16.mxu1 %v8578_v1  ;;  %v8661_v0 = vld [vmem:[%s9331_s6 + $0x15c0] ss:$8 sps:$4 sm:$0xff]   ;;  %v8662_v1 = vld [vmem:[%s9331_s6 + $0x9d4] ss:$8 sps:$4 sm:$0xff]  }
 0x2b5   : > { %6466 = vmatprep.subr.bf16.mxu0 %v8581_v20  ;;  %v8665_v20 = vld [vmem:[%s9331_s6 + $0x15d4] ss:$8 sps:$4 sm:$0xff]  }
 0x2b7   : > { %5700 = vmatpush1.bf16.msra.mxu1 %v8580_v23  ;;  %v8668_v23 = vld [vmem:[%s9331_s6 + $0x9e4] ss:$8 sps:$4 sm:$0xff]  }
 0x2b8   : > { %6468 = vmatpush1.bf16.msra.mxu0 %v8583_v24  ;;  %5702 = vmatprep.subr.bf16.mxu1 %v8584_v25  ;;  %v8671_v24 = vld [vmem:[%s9331_s6 + $0x15e4] ss:$8 sps:$4 sm:$0xff]   ;;  %v8670_v25 = vld [vmem:[%s9331_s6 + $0x9e0] ss:$8 sps:$4 sm:$0xff]  }
 0x2b9   : > { %6470 = vmatprep.subr.bf16.mxu0 %v8587_v26  ;;  %v8673_v26 = vld [vmem:[%s9331_s6 + $0x15e0] ss:$8 sps:$4 sm:$0xff]  }
 0x2ba   : > { %3645 = vmatmul.mubr.f32.vlgmr.msra.gmra.mrb[0].mxu1 %v10014_v15  ;;  %v8598_v15 = vld [vmem:[%s9331_s6 + $0x920] ss:$8 sps:$4 sm:$0xff]  }
 0x2bb   : > { %4497 = vmatmul.mubr.f32.vlgmr.msra.gmra.mrb[0].mxu0 %v10018_v16  ;;  %5704 = vmatpush1.bf16.msra.mxu1 %v8586_v39  ;;  %v8601_v16 = vld [vmem:[%s9331_s6 + $0x1520] ss:$8 sps:$4 sm:$0xff]   ;;  %v8674_v39 = vld [vmem:[%s9331_s6 + $0x9f4] ss:$8 sps:$4 sm:$0xff]  }
 0x2bc   : > { %6472 = vmatpush1.bf16.msra.mxu0 %v8589_v10  ;;  %5706 = vmatprep.subr.bf16.mxu1 %v8590_v27  ;;  %v8677_v10 = vld [vmem:[%s9331_s6 + $0x15f4] ss:$8 sps:$4 sm:$0xff]   ;;  %v10167_v27 = vld [vmem:[%s9356_s4 + $0x28] sm:$0xff] }
 0x2bd   : > { %6474 = vmatprep.subr.bf16.mxu0 %v8593_v29  ;;  %3715 = vmatprep.mubr.f32.mxu1 %v2834_v32  ;;  %v10170_v29 = vld [vmem:[%s9356_s4 + $0x58] sm:$0xff] }
 0x2be   : > { %4567 = vmatprep.mubr.f32.mxu0 %v2936_v33  ;;  %v8676_v32 = vld [vmem:[%s9331_s6 + $0x9f0] ss:$8 sps:$4 sm:$0xff]  }
 0x2bf   : > { %5708 = vmatpush1.bf16.msra.mxu1 %v8592_v34  ;;  %v8679_v33 = vld [vmem:[%s9331_s6 + $0x15f0] ss:$8 sps:$4 sm:$0xff]   ;;  %v8681_v34 = vld [vmem:[%s9331_s6 + $0xa04] ss:$8 sps:$4 sm:$0xff]  }
 0x2c0   : > { %6476 = vmatpush1.bf16.msra.mxu0 %v8595_v36  ;;  %5710 = vmatprep.subr.bf16.mxu1 %v8596_v17  ;;  %v8685_v36 = vld [vmem:[%s9331_s6 + $0x1604] ss:$8 sps:$4 sm:$0xff]   ;;  %v10178_v17 = vrot.slane %v10167_v27, %v9412_v50 }
 0x2c1   : > { %6478 = vmatprep.subr.bf16.mxu0 %v8599_v18  ;;  %v10182_v18 = vrot.slane %v10170_v29, %v9412_v50 }
 0x2c3   : > { %5712 = vmatpush1.bf16.msra.mxu1 %v8598_v15  ;;  %v8683_v15 = vld [vmem:[%s9331_s6 + $0xa00] ss:$8 sps:$4 sm:$0xff]  }
 0x2c4   : > { %6480 = vmatpush1.bf16.msra.mxu0 %v8601_v16  ;;  %5714 = vmatprep.subr.bf16.mxu1 %v8602_v38  ;;  %v8687_v16 = vld [vmem:[%s9331_s6 + $0x1600] ss:$8 sps:$4 sm:$0xff]   ;;  %v8688_v38 = vld [vmem:[%s9331_s6 + $0xa14] ss:$8 sps:$4 sm:$0xff]  }
 0x2c5   : > { %6482 = vmatprep.subr.bf16.mxu0 %v8605_v31  ;;  %v8691_v31 = vld [vmem:[%s9331_s6 + $0x1614] ss:$8 sps:$4 sm:$0xff]  }
 0x2c7   : > { %5716 = vmatpush1.bf16.msra.mxu1 %v8604_v41  ;;  %v2850_v41 = vcombine.high %v10178_v17, %v10178_v17 }
 0x2c8   : > { %6484 = vmatpush1.bf16.msra.mxu0 %v8607_v42  ;;  %5718 = vmatprep.subr.bf16.mxu1 %v8608_v43  ;;  %v2952_v42 = vcombine.high %v10182_v18, %v10182_v18  ;;  %v8690_v43 = vld [vmem:[%s9331_s6 + $0xa10] ss:$8 sps:$4 sm:$0xff]  }
 0x2c9   : > { %6486 = vmatprep.subr.bf16.mxu0 %v8611_v45  ;;  %v8693_v45 = vld [vmem:[%s9331_s6 + $0x1610] ss:$8 sps:$4 sm:$0xff]  }
 0x2cb   : > { %5720 = vmatpush1.bf16.msra.mxu1 %v8610_v48  ;;  %v8694_v48 = vld [vmem:[%s9331_s6 + $0xa24] ss:$8 sps:$4 sm:$0xff]  }
 0x2cc   : > { %6488 = vmatpush1.bf16.msra.mxu0 %v8613_v30  ;;  %5722 = vmatprep.subr.bf16.mxu1 %v8614_v35  ;;  %v8697_v30 = vld [vmem:[%s9331_s6 + $0x1624] ss:$8 sps:$4 sm:$0xff]   ;;  %v8700_v35 = vld [vmem:[%s9331_s6 + $0xa34] ss:$8 sps:$4 sm:$0xff]  }
 0x2cd   : > { %6490 = vmatprep.subr.bf16.mxu0 %v8617_v49  ;;  %v8703_v49 = vld [vmem:[%s9331_s6 + $0x1634] ss:$8 sps:$4 sm:$0xff]  }
 0x2cf   : > { %5724 = vmatpush1.bf16.msra.mxu1 %v8616_v51  ;;  %v8702_v51 = vld [vmem:[%s9331_s6 + $0xa30] ss:$8 sps:$4 sm:$0xff]  }
 0x2d0   : > { %6492 = vmatpush1.bf16.msra.mxu0 %v8619_v52  ;;  %5726 = vmatprep.subr.bf16.mxu1 %v8620_v53  ;;  %v8705_v52 = vld [vmem:[%s9331_s6 + $0x1630] ss:$8 sps:$4 sm:$0xff]   ;;  %v8706_v53 = vld [vmem:[%s9331_s6 + $0xa44] ss:$8 sps:$4 sm:$0xff]  }
 0x2d1   : > { %6494 = vmatprep.subr.bf16.mxu0 %v8623_v54  ;;  %v8709_v54 = vld [vmem:[%s9331_s6 + $0x1644] ss:$8 sps:$4 sm:$0xff]  }
 0x2d3   : > { %5728 = vmatpush1.bf16.msra.mxu1 %v8622_v55  ;;  %v8708_v55 = vld [vmem:[%s9331_s6 + $0xa40] ss:$8 sps:$4 sm:$0xff]  }
 0x2d4   : > { %6496 = vmatpush1.bf16.msra.mxu0 %v8625_v56  ;;  %5730 = vmatprep.subr.bf16.mxu1 %v8626_v57  ;;  %v8711_v56 = vld [vmem:[%s9331_s6 + $0x1640] ss:$8 sps:$4 sm:$0xff]   ;;  %v8712_v57 = vld [vmem:[%s9331_s6 + $0xa54] ss:$8 sps:$4 sm:$0xff]  }
 0x2d5   : > { %6498 = vmatprep.subr.bf16.mxu0 %v8629_v40  ;;  %v8715_v40 = vld [vmem:[%s9331_s6 + $0x1654] ss:$8 sps:$4 sm:$0xff]  }
 0x2d7   : > { %5732 = vmatpush1.bf16.msra.mxu1 %v8628_v59  ;;  %v8714_v59 = vld [vmem:[%s9331_s6 + $0xa50] ss:$8 sps:$4 sm:$0xff]  }
 0x2d8   : > { %6500 = vmatpush1.bf16.msra.mxu0 %v8631_v60  ;;  %5734 = vmatprep.subr.bf16.mxu1 %v8632_v61  ;;  %v8717_v60 = vld [vmem:[%s9331_s6 + $0x1650] ss:$8 sps:$4 sm:$0xff]   ;;  %v8718_v61 = vld [vmem:[%s9331_s6 + $0xa64] ss:$8 sps:$4 sm:$0xff]  }
 0x2d9   : > { %6502 = vmatprep.subr.bf16.mxu0 %v8635_v62  ;;  %v8721_v62 = vld [vmem:[%s9331_s6 + $0x1664] ss:$8 sps:$4 sm:$0xff]  }
 0x2db   : > { %5736 = vmatpush1.bf16.msra.mxu1 %v8634_v63  ;;  %v8720_v63 = vld [vmem:[%s9331_s6 + $0xa60] ss:$8 sps:$4 sm:$0xff]  }
 0x2dc   : > { %6504 = vmatpush1.bf16.msra.mxu0 %v8637_v46  ;;  %5738 = vmatprep.subr.bf16.mxu1 %v8638_v47  ;;  %v8723_v46 = vld [vmem:[%s9331_s6 + $0x1660] ss:$8 sps:$4 sm:$0xff]   ;;  %v8724_v47 = vld [vmem:[%s9331_s6 + $0xa74] ss:$8 sps:$4 sm:$0xff]  }
 0x2dd   : > { %6506 = vmatprep.subr.bf16.mxu0 %v8641_v2  ;;  %v8727_v2 = vld [vmem:[%s9331_s6 + $0x1674] ss:$8 sps:$4 sm:$0xff]  }
 0x2df   : > { %5740 = vmatpush1.bf16.msra.mxu1 %v8640_v3  ;;  %v8726_v3 = vld [vmem:[%s9331_s6 + $0xa70] ss:$8 sps:$4 sm:$0xff]  }
 0x2e0   : > { %6508 = vmatpush1.bf16.msra.mxu0 %v8643_v4  ;;  %5742 = vmatprep.subr.bf16.mxu1 %v8644_v5  ;;  %v8729_v4 = vld [vmem:[%s9331_s6 + $0x1670] ss:$8 sps:$4 sm:$0xff]   ;;  %v8730_v5 = vld [vmem:[%s9331_s6 + $0xa84] ss:$8 sps:$4 sm:$0xff]  }
 0x2e1   : > { %6510 = vmatprep.subr.bf16.mxu0 %v8647_v6  ;;  %v8733_v6 = vld [vmem:[%s9331_s6 + $0x1684] ss:$8 sps:$4 sm:$0xff]  }
 0x2e3   : > { %5744 = vmatpush1.bf16.msra.mxu1 %v8646_v7  ;;  %v8732_v7 = vld [vmem:[%s9331_s6 + $0xa80] ss:$8 sps:$4 sm:$0xff]  }
 0x2e4   : > { %6512 = vmatpush1.bf16.msra.mxu0 %v8649_v8  ;;  %5746 = vmatprep.subr.bf16.mxu1 %v8650_v9  ;;  %v8735_v8 = vld [vmem:[%s9331_s6 + $0x1680] ss:$8 sps:$4 sm:$0xff]   ;;  %v8736_v9 = vld [vmem:[%s9331_s6 + $0xa94] ss:$8 sps:$4 sm:$0xff]  }
 0x2e5   : > { %6514 = vmatprep.subr.bf16.mxu0 %v8653_v58  ;;  %v8739_v58 = vld [vmem:[%s9331_s6 + $0x1694] ss:$8 sps:$4 sm:$0xff]  }
 0x2e7   : > { %5748 = vmatpush1.bf16.msra.mxu1 %v8652_v11  ;;  %v8738_v11 = vld [vmem:[%s9331_s6 + $0xa90] ss:$8 sps:$4 sm:$0xff]  }
 0x2e8   : > { %6516 = vmatpush1.bf16.msra.mxu0 %v8655_v12  ;;  %5750 = vmatprep.subr.bf16.mxu1 %v8656_v13  ;;  %v8741_v12 = vld [vmem:[%s9331_s6 + $0x1690] ss:$8 sps:$4 sm:$0xff]   ;;  %v8742_v13 = vld [vmem:[%s9331_s6 + $0xaa4] ss:$8 sps:$4 sm:$0xff]  }
 0x2e9   : > { %6518 = vmatprep.subr.bf16.mxu0 %v8659_v14  ;;  %v8745_v14 = vld [vmem:[%s9331_s6 + $0x16a4] ss:$8 sps:$4 sm:$0xff]  }
 0x2eb   : > { %5752 = vmatpush1.bf16.msra.mxu1 %v8658_v19  ;;  %v8744_v19 = vld [vmem:[%s9331_s6 + $0xaa0] ss:$8 sps:$4 sm:$0xff]  }
 0x2ec   : > { %6520 = vmatpush1.bf16.msra.mxu0 %v8661_v0  ;;  %5754 = vmatprep.subr.bf16.mxu1 %v8662_v1  ;;  %v8747_v0 = vld [vmem:[%s9331_s6 + $0x16a0] ss:$8 sps:$4 sm:$0xff]   ;;  %v8748_v1 = vld [vmem:[%s9331_s6 + $0xab4] ss:$8 sps:$4 sm:$0xff]  }
 0x2ed   : > { %6522 = vmatprep.subr.bf16.mxu0 %v8665_v20  ;;  %v8751_v20 = vld [vmem:[%s9331_s6 + $0x16b4] ss:$8 sps:$4 sm:$0xff]  }
 0x2ef   : > { %5756 = vmatpush1.bf16.msra.mxu1 %v8664_v21  ;;  %v8750_v21 = vld [vmem:[%s9331_s6 + $0xab0] ss:$8 sps:$4 sm:$0xff]  }
 0x2f0   : > { %6524 = vmatpush1.bf16.msra.mxu0 %v8667_v22  ;;  %5758 = vmatprep.subr.bf16.mxu1 %v8668_v23  ;;  %v8753_v22 = vld [vmem:[%s9331_s6 + $0x16b0] ss:$8 sps:$4 sm:$0xff]   ;;  %v8754_v23 = vld [vmem:[%s9331_s6 + $0xac4] ss:$8 sps:$4 sm:$0xff]  }
 0x2f1   : > { %6526 = vmatprep.subr.bf16.mxu0 %v8671_v24  ;;  %v8757_v24 = vld [vmem:[%s9331_s6 + $0x16c4] ss:$8 sps:$4 sm:$0xff]  }
 0x2f3   : > { %5760 = vmatpush1.bf16.msra.mxu1 %v8670_v25  ;;  %v8756_v25 = vld [vmem:[%s9331_s6 + $0xac0] ss:$8 sps:$4 sm:$0xff]  }
 0x2f4   : > { %6528 = vmatpush1.bf16.msra.mxu0 %v8673_v26  ;;  %5762 = vmatprep.subr.bf16.mxu1 %v8674_v39  ;;  %v8759_v26 = vld [vmem:[%s9331_s6 + $0x16c0] ss:$8 sps:$4 sm:$0xff]   ;;  %v8760_v39 = vld [vmem:[%s9331_s6 + $0xad4] ss:$8 sps:$4 sm:$0xff]  }
 0x2f5   : > { %6530 = vmatprep.subr.bf16.mxu0 %v8677_v10  ;;  %v8763_v10 = vld [vmem:[%s9331_s6 + $0x16d4] ss:$8 sps:$4 sm:$0xff]  }
 0x2f7   : > { %5764 = vmatpush1.bf16.msra.mxu1 %v8676_v32  ;;  %v8762_v32 = vld [vmem:[%s9331_s6 + $0xad0] ss:$8 sps:$4 sm:$0xff]  }
 0x2f8   : > { %6532 = vmatpush1.bf16.msra.mxu0 %v8679_v33  ;;  %5766 = vmatprep.subr.bf16.mxu1 %v8681_v34  ;;  %v8765_v33 = vld [vmem:[%s9331_s6 + $0x16d0] ss:$8 sps:$4 sm:$0xff]   ;;  %v8766_v34 = vld [vmem:[%s9331_s6 + $0xae4] ss:$8 sps:$4 sm:$0xff]  }
 0x2f9   : > { %6534 = vmatprep.subr.bf16.mxu0 %v8685_v36  ;;  %v8769_v36 = vld [vmem:[%s9331_s6 + $0x16e4] ss:$8 sps:$4 sm:$0xff]  }
 0x2fa   : > { %3716 = vmatmul.mubr.f32.vlgmr.msra.gmra.mrb[0].mxu1 %v10095_v37  ;;  %v8696_v37 = vld [vmem:[%s9331_s6 + $0xa20] ss:$8 sps:$4 sm:$0xff]  }
 0x2fb   : > { %4568 = vmatmul.mubr.f32.vlgmr.msra.gmra.mrb[0].mxu0 %v10098_v28  ;;  %5768 = vmatpush1.bf16.msra.mxu1 %v8683_v15  ;;  %v8699_v28 = vld [vmem:[%s9331_s6 + $0x1620] ss:$8 sps:$4 sm:$0xff]  }
 0x2fc   : > { %6536 = vmatpush1.bf16.msra.mxu0 %v8687_v16  ;;  %5770 = vmatprep.subr.bf16.mxu1 %v8688_v38  ;;  %v8768_v15 = vld [vmem:[%s9331_s6 + $0xae0] ss:$8 sps:$4 sm:$0xff]   ;;  %v8772_v38 = vld [vmem:[%s9331_s6 + $0xaf4] ss:$8 sps:$4 sm:$0xff]  }
 0x2fd   : > { %6538 = vmatprep.subr.bf16.mxu0 %v8691_v31  ;;  %3786 = vmatprep.mubr.f32.mxu1 %v2850_v41  ;;  %v8771_v16 = vld [vmem:[%s9331_s6 + $0x16e0] ss:$8 sps:$4 sm:$0xff]   ;;  %v8775_v31 = vld [vmem:[%s9331_s6 + $0x16f4] ss:$8 sps:$4 sm:$0xff]   ;;  %v2835_v41 = vcombine.high %v10167_v27, %v10167_v27 }
 0x2fe   : > { %4638 = vmatprep.mubr.f32.mxu0 %v2952_v42  ;;  %v2937_v42 = vcombine.high %v10170_v29, %v10170_v29  ;;  %v8780_v27 = vld [vmem:[%s9331_s6 + $0xb00] ss:$8 sps:$4 sm:$0xff]  }
 0x2ff   : > { %5772 = vmatpush1.bf16.msra.mxu1 %v8690_v43  ;;  %v8774_v43 = vld [vmem:[%s9331_s6 + $0xaf0] ss:$8 sps:$4 sm:$0xff]   ;;  %v8783_v29 = vld [vmem:[%s9331_s6 + $0x1700] ss:$8 sps:$4 sm:$0xff]  }
 0x300   : > { %6540 = vmatpush1.bf16.msra.mxu0 %v8693_v45  ;;  %5774 = vmatprep.subr.bf16.mxu1 %v8694_v48  ;;  %v8777_v45 = vld [vmem:[%s9331_s6 + $0x16f0] ss:$8 sps:$4 sm:$0xff]   ;;  %v8778_v48 = vld [vmem:[%s9331_s6 + $0xb04] ss:$8 sps:$4 sm:$0xff]  }
 0x301   : > { %6542 = vmatprep.subr.bf16.mxu0 %v8697_v30  ;;  %v8781_v30 = vld [vmem:[%s9331_s6 + $0x1704] ss:$8 sps:$4 sm:$0xff]  }
 0x303   : > { %5776 = vmatpush1.bf16.msra.mxu1 %v8696_v37  ;;  %v10259_v37 = vrot.slane %v2835_v41, %v9412_v50  ;;  %v8858_v41 = vld [vmem:[%s9331_s6 + $0xbd0] ss:$8 sps:$4 sm:$0xff]  }
 0x304   : > { %6544 = vmatpush1.bf16.msra.mxu0 %v8699_v28  ;;  %5778 = vmatprep.subr.bf16.mxu1 %v8700_v35  ;;  %v10262_v28 = vrot.slane %v2937_v42, %v9412_v50  ;;  %v8784_v35 = vld [vmem:[%s9331_s6 + $0xb14] ss:$8 sps:$4 sm:$0xff]   ;;  %v8861_v42 = vld [vmem:[%s9331_s6 + $0x17d0] ss:$8 sps:$4 sm:$0xff]  }
 0x305   : > { %6546 = vmatprep.subr.bf16.mxu0 %v8703_v49  ;;  %v8787_v49 = vld [vmem:[%s9331_s6 + $0x1714] ss:$8 sps:$4 sm:$0xff]  }
 0x307   : > { %5780 = vmatpush1.bf16.msra.mxu1 %v8702_v51  ;;  %v2851_v51 = vcombine.high %v10259_v37, %v10259_v37 }
 0x308   : > { %6548 = vmatpush1.bf16.msra.mxu0 %v8705_v52  ;;  %5782 = vmatprep.subr.bf16.mxu1 %v8706_v53  ;;  %v2953_v52 = vcombine.high %v10262_v28, %v10262_v28  ;;  %v8786_v53 = vld [vmem:[%s9331_s6 + $0xb10] ss:$8 sps:$4 sm:$0xff]  }
 0x309   : > { %6550 = vmatprep.subr.bf16.mxu0 %v8709_v54  ;;  %v8789_v54 = vld [vmem:[%s9331_s6 + $0x1710] ss:$8 sps:$4 sm:$0xff]  }
 0x30b   : > { %5784 = vmatpush1.bf16.msra.mxu1 %v8708_v55  ;;  %v8790_v55 = vld [vmem:[%s9331_s6 + $0xb24] ss:$8 sps:$4 sm:$0xff]  }
 0x30c   : > { %6552 = vmatpush1.bf16.msra.mxu0 %v8711_v56  ;;  %5786 = vmatprep.subr.bf16.mxu1 %v8712_v57  ;;  %v8793_v56 = vld [vmem:[%s9331_s6 + $0x1724] ss:$8 sps:$4 sm:$0xff]   ;;  %v8796_v57 = vld [vmem:[%s9331_s6 + $0xb34] ss:$8 sps:$4 sm:$0xff]  }
 0x30d   : > { %6554 = vmatprep.subr.bf16.mxu0 %v8715_v40  ;;  %v8799_v40 = vld [vmem:[%s9331_s6 + $0x1734] ss:$8 sps:$4 sm:$0xff]  }
 0x30f   : > { %5788 = vmatpush1.bf16.msra.mxu1 %v8714_v59  ;;  %v8798_v59 = vld [vmem:[%s9331_s6 + $0xb30] ss:$8 sps:$4 sm:$0xff]  }
 0x310   : > { %6556 = vmatpush1.bf16.msra.mxu0 %v8717_v60  ;;  %5790 = vmatprep.subr.bf16.mxu1 %v8718_v61  ;;  %v8801_v60 = vld [vmem:[%s9331_s6 + $0x1730] ss:$8 sps:$4 sm:$0xff]   ;;  %v8802_v61 = vld [vmem:[%s9331_s6 + $0xb44] ss:$8 sps:$4 sm:$0xff]  }
 0x311   : > { %6558 = vmatprep.subr.bf16.mxu0 %v8721_v62  ;;  %v8805_v62 = vld [vmem:[%s9331_s6 + $0x1744] ss:$8 sps:$4 sm:$0xff]  }
 0x313   : > { %5792 = vmatpush1.bf16.msra.mxu1 %v8720_v63  ;;  %v8804_v63 = vld [vmem:[%s9331_s6 + $0xb40] ss:$8 sps:$4 sm:$0xff]  }
 0x314   : > { %6560 = vmatpush1.bf16.msra.mxu0 %v8723_v46  ;;  %5794 = vmatprep.subr.bf16.mxu1 %v8724_v47  ;;  %v8807_v46 = vld [vmem:[%s9331_s6 + $0x1740] ss:$8 sps:$4 sm:$0xff]   ;;  %v8808_v47 = vld [vmem:[%s9331_s6 + $0xb54] ss:$8 sps:$4 sm:$0xff]  }
 0x315   : > { %6562 = vmatprep.subr.bf16.mxu0 %v8727_v2  ;;  %v8811_v2 = vld [vmem:[%s9331_s6 + $0x1754] ss:$8 sps:$4 sm:$0xff]  }
 0x317   : > { %5796 = vmatpush1.bf16.msra.mxu1 %v8726_v3  ;;  %v8810_v3 = vld [vmem:[%s9331_s6 + $0xb50] ss:$8 sps:$4 sm:$0xff]  }
 0x318   : > { %6564 = vmatpush1.bf16.msra.mxu0 %v8729_v4  ;;  %5798 = vmatprep.subr.bf16.mxu1 %v8730_v5  ;;  %v8813_v4 = vld [vmem:[%s9331_s6 + $0x1750] ss:$8 sps:$4 sm:$0xff]   ;;  %v8814_v5 = vld [vmem:[%s9331_s6 + $0xb64] ss:$8 sps:$4 sm:$0xff]  }
 0x319   : > { %6566 = vmatprep.subr.bf16.mxu0 %v8733_v6  ;;  %v8817_v6 = vld [vmem:[%s9331_s6 + $0x1764] ss:$8 sps:$4 sm:$0xff]  }
 0x31b   : > { %5800 = vmatpush1.bf16.msra.mxu1 %v8732_v7  ;;  %v8816_v7 = vld [vmem:[%s9331_s6 + $0xb60] ss:$8 sps:$4 sm:$0xff]  }
 0x31c   : > { %6568 = vmatpush1.bf16.msra.mxu0 %v8735_v8  ;;  %5802 = vmatprep.subr.bf16.mxu1 %v8736_v9  ;;  %v8819_v8 = vld [vmem:[%s9331_s6 + $0x1760] ss:$8 sps:$4 sm:$0xff]   ;;  %v8820_v9 = vld [vmem:[%s9331_s6 + $0xb74] ss:$8 sps:$4 sm:$0xff]  }
 0x31d   : > { %6570 = vmatprep.subr.bf16.mxu0 %v8739_v58  ;;  %v8823_v58 = vld [vmem:[%s9331_s6 + $0x1774] ss:$8 sps:$4 sm:$0xff]  }
 0x31f   : > { %5804 = vmatpush1.bf16.msra.mxu1 %v8738_v11  ;;  %v8822_v11 = vld [vmem:[%s9331_s6 + $0xb70] ss:$8 sps:$4 sm:$0xff]  }
 0x320   : > { %6572 = vmatpush1.bf16.msra.mxu0 %v8741_v12  ;;  %5806 = vmatprep.subr.bf16.mxu1 %v8742_v13  ;;  %v8825_v12 = vld [vmem:[%s9331_s6 + $0x1770] ss:$8 sps:$4 sm:$0xff]   ;;  %v8826_v13 = vld [vmem:[%s9331_s6 + $0xb84] ss:$8 sps:$4 sm:$0xff]  }
 0x321   : > { %6574 = vmatprep.subr.bf16.mxu0 %v8745_v14  ;;  %v8829_v14 = vld [vmem:[%s9331_s6 + $0x1784] ss:$8 sps:$4 sm:$0xff]  }
 0x323   : > { %5808 = vmatpush1.bf16.msra.mxu1 %v8744_v19  ;;  %v8828_v19 = vld [vmem:[%s9331_s6 + $0xb80] ss:$8 sps:$4 sm:$0xff]  }
 0x324   : > { %6576 = vmatpush1.bf16.msra.mxu0 %v8747_v0  ;;  %5810 = vmatprep.subr.bf16.mxu1 %v8748_v1  ;;  %v8831_v0 = vld [vmem:[%s9331_s6 + $0x1780] ss:$8 sps:$4 sm:$0xff]   ;;  %v8832_v1 = vld [vmem:[%s9331_s6 + $0xb94] ss:$8 sps:$4 sm:$0xff]  }
 0x325   : > { %6578 = vmatprep.subr.bf16.mxu0 %v8751_v20  ;;  %v8835_v20 = vld [vmem:[%s9331_s6 + $0x1794] ss:$8 sps:$4 sm:$0xff]  }
 0x327   : > { %5812 = vmatpush1.bf16.msra.mxu1 %v8750_v21  ;;  %v8834_v21 = vld [vmem:[%s9331_s6 + $0xb90] ss:$8 sps:$4 sm:$0xff]  }
 0x328   : > { %6580 = vmatpush1.bf16.msra.mxu0 %v8753_v22  ;;  %5814 = vmatprep.subr.bf16.mxu1 %v8754_v23  ;;  %v8837_v22 = vld [vmem:[%s9331_s6 + $0x1790] ss:$8 sps:$4 sm:$0xff]   ;;  %v8838_v23 = vld [vmem:[%s9331_s6 + $0xba4] ss:$8 sps:$4 sm:$0xff]  }
 0x329   : > { %6582 = vmatprep.subr.bf16.mxu0 %v8757_v24  ;;  %v8841_v24 = vld [vmem:[%s9331_s6 + $0x17a4] ss:$8 sps:$4 sm:$0xff]  }
 0x32b   : > { %5816 = vmatpush1.bf16.msra.mxu1 %v8756_v25  ;;  %v8840_v25 = vld [vmem:[%s9331_s6 + $0xba0] ss:$8 sps:$4 sm:$0xff]  }
 0x32c   : > { %6584 = vmatpush1.bf16.msra.mxu0 %v8759_v26  ;;  %5818 = vmatprep.subr.bf16.mxu1 %v8760_v39  ;;  %v8843_v26 = vld [vmem:[%s9331_s6 + $0x17a0] ss:$8 sps:$4 sm:$0xff]   ;;  %v8844_v39 = vld [vmem:[%s9331_s6 + $0xbb4] ss:$8 sps:$4 sm:$0xff]  }
 0x32d   : > { %6586 = vmatprep.subr.bf16.mxu0 %v8763_v10  ;;  %v8847_v10 = vld [vmem:[%s9331_s6 + $0x17b4] ss:$8 sps:$4 sm:$0xff]  }
 0x32f   : > { %5820 = vmatpush1.bf16.msra.mxu1 %v8762_v32  ;;  %v8846_v32 = vld [vmem:[%s9331_s6 + $0xbb0] ss:$8 sps:$4 sm:$0xff]  }
 0x330   : > { %6588 = vmatpush1.bf16.msra.mxu0 %v8765_v33  ;;  %5822 = vmatprep.subr.bf16.mxu1 %v8766_v34  ;;  %v8849_v33 = vld [vmem:[%s9331_s6 + $0x17b0] ss:$8 sps:$4 sm:$0xff]   ;;  %v8850_v34 = vld [vmem:[%s9331_s6 + $0xbc4] ss:$8 sps:$4 sm:$0xff]  }
 0x331   : > { %6590 = vmatprep.subr.bf16.mxu0 %v8769_v36  ;;  %v8853_v36 = vld [vmem:[%s9331_s6 + $0x17c4] ss:$8 sps:$4 sm:$0xff]  }
 0x333   : > { %5824 = vmatpush1.bf16.msra.mxu1 %v8768_v15  ;;  %v8852_v15 = vld [vmem:[%s9331_s6 + $0xbc0] ss:$8 sps:$4 sm:$0xff]  }
 0x334   : > { %6592 = vmatpush1.bf16.msra.mxu0 %v8771_v16  ;;  %5826 = vmatprep.subr.bf16.mxu1 %v8772_v38  ;;  %v8855_v16 = vld [vmem:[%s9331_s6 + $0x17c0] ss:$8 sps:$4 sm:$0xff]   ;;  %v8856_v38 = vld [vmem:[%s9331_s6 + $0xbd4] ss:$8 sps:$4 sm:$0xff]  }
 0x335   : > { %6594 = vmatprep.subr.bf16.mxu0 %v8775_v31  ;;  %v8859_v31 = vld [vmem:[%s9331_s6 + $0x17d4] ss:$8 sps:$4 sm:$0xff]  }
 0x337   : > { %5828 = vmatpush1.bf16.msra.mxu1 %v8774_v43  ;;  %v8862_v43 = vld [vmem:[%s9331_s6 + $0xbe4] ss:$8 sps:$4 sm:$0xff]  }
 0x338   : > { %6596 = vmatpush1.bf16.msra.mxu0 %v8777_v45  ;;  %5830 = vmatprep.subr.bf16.mxu1 %v8778_v48  ;;  %v8865_v45 = vld [vmem:[%s9331_s6 + $0x17e4] ss:$8 sps:$4 sm:$0xff]   ;;  %v8864_v48 = vld [vmem:[%s9331_s6 + $0xbe0] ss:$8 sps:$4 sm:$0xff]  }
 0x339   : > { %6598 = vmatprep.subr.bf16.mxu0 %v8781_v30  ;;  %v8867_v30 = vld [vmem:[%s9331_s6 + $0x17e0] ss:$8 sps:$4 sm:$0xff]  }
 0x33a   : > { %3787 = vmatmul.mubr.f32.vlgmr.msra.gmra.mrb[0].mxu1 %v10178_v17  ;;  %v8792_v17 = vld [vmem:[%s9331_s6 + $0xb20] ss:$8 sps:$4 sm:$0xff]  }
 0x33b   : > { %4639 = vmatmul.mubr.f32.vlgmr.msra.gmra.mrb[0].mxu0 %v10182_v18  ;;  %5832 = vmatpush1.bf16.msra.mxu1 %v8780_v27  ;;  %v8795_v18 = vld [vmem:[%s9331_s6 + $0x1720] ss:$8 sps:$4 sm:$0xff]   ;;  %v8868_v27 = vld [vmem:[%s9331_s6 + $0xbf4] ss:$8 sps:$4 sm:$0xff]  }
 0x33c   : > { %6600 = vmatpush1.bf16.msra.mxu0 %v8783_v29  ;;  %5834 = vmatprep.subr.bf16.mxu1 %v8784_v35  ;;  %v8871_v29 = vld [vmem:[%s9331_s6 + $0x17f4] ss:$8 sps:$4 sm:$0xff]   ;;  %v8870_v35 = vld [vmem:[%s9331_s6 + $0xbf0] ss:$8 sps:$4 sm:$0xff]  }
 0x33d   : > { %6602 = vmatprep.subr.bf16.mxu0 %v8787_v49  ;;  %3857 = vmatprep.mubr.f32.mxu1 %v2851_v51  ;;  %v8873_v49 = vld [vmem:[%s9331_s6 + $0x17f0] ss:$8 sps:$4 sm:$0xff]   ;;  %v8876_v51 = vld [vmem:[%s9331_s6 + $0x1804] ss:$8 sps:$4 sm:$0xff]  }
 0x33e   : > { %4709 = vmatprep.mubr.f32.mxu0 %v2953_v52  ;;  %v10334_v52 = vld.sshfl [vmem:[%s9356_s4 + $0x60] sm:$0x33 pattern:$0x76325410] }
 0x33f   : > { %5836 = vmatpush1.bf16.msra.mxu1 %v8786_v53  ;;  %v8878_v53 = vld [vmem:[%s9331_s6 + $0x1800] ss:$8 sps:$4 sm:$0xff]  }
 0x340   : > { %6604 = vmatpush1.bf16.msra.mxu0 %v8789_v54  ;;  %5838 = vmatprep.subr.bf16.mxu1 %v8790_v55  ;;  %v2961_v54 = vcombine.high %v10334_v52, %v10334_v52  ;;  %v8879_v55 = vld [vmem:[%s9331_s6 + $0x1814] ss:$8 sps:$4 sm:$0xff]  }
 0x341   : > { %6606 = vmatprep.subr.bf16.mxu0 %v8793_v56  ;;  %v8881_v56 = vld [vmem:[%s9331_s6 + $0x1810] ss:$8 sps:$4 sm:$0xff]  }
 0x343   : > { %5840 = vmatpush1.bf16.msra.mxu1 %v8792_v17  ;;  %v8882_v17 = vld [vmem:[%s9331_s6 + $0x1824] ss:$8 sps:$4 sm:$0xff]  }
 0x344   : > { %6608 = vmatpush1.bf16.msra.mxu0 %v8795_v18  ;;  %5842 = vmatprep.subr.bf16.mxu1 %v8796_v57  ;;  %v8884_v18 = vld [vmem:[%s9331_s6 + $0x1820] ss:$8 sps:$4 sm:$0xff]   ;;  %v8885_v57 = vld [vmem:[%s9331_s6 + $0x1834] ss:$8 sps:$4 sm:$0xff]  }
 0x345   : > { %6610 = vmatprep.subr.bf16.mxu0 %v8799_v40  ;;  %v8887_v40 = vld [vmem:[%s9331_s6 + $0x1830] ss:$8 sps:$4 sm:$0xff]  }
 0x347   : > { %5844 = vmatpush1.bf16.msra.mxu1 %v8798_v59  ;;  %v8891_v59 = vld [vmem:[%s9331_s6 + $0x1854] ss:$8 sps:$4 sm:$0xff]  }
 0x348   : > { %6612 = vmatpush1.bf16.msra.mxu0 %v8801_v60  ;;  %5846 = vmatprep.subr.bf16.mxu1 %v8802_v61  ;;  %v8893_v60 = vld [vmem:[%s9331_s6 + $0x1850] ss:$8 sps:$4 sm:$0xff]   ;;  %v8894_v61 = vld [vmem:[%s9331_s6 + $0x1864] ss:$8 sps:$4 sm:$0xff]  }
 0x349   : > { %6614 = vmatprep.subr.bf16.mxu0 %v8805_v62  ;;  %v8896_v62 = vld [vmem:[%s9331_s6 + $0x1860] ss:$8 sps:$4 sm:$0xff]  }
 0x34b   : > { %5848 = vmatpush1.bf16.msra.mxu1 %v8804_v63  ;;  %v8897_v63 = vld [vmem:[%s9331_s6 + $0x1874] ss:$8 sps:$4 sm:$0xff]  }
 0x34c   : > { %6616 = vmatpush1.bf16.msra.mxu0 %v8807_v46  ;;  %5850 = vmatprep.subr.bf16.mxu1 %v8808_v47  ;;  %v8899_v46 = vld [vmem:[%s9331_s6 + $0x1870] ss:$8 sps:$4 sm:$0xff]   ;;  %v8900_v47 = vld [vmem:[%s9331_s6 + $0x1884] ss:$8 sps:$4 sm:$0xff]  }
 0x34d   : > { %6618 = vmatprep.subr.bf16.mxu0 %v8811_v2  ;;  %v8902_v2 = vld [vmem:[%s9331_s6 + $0x1880] ss:$8 sps:$4 sm:$0xff]  }
 0x34f   : > { %5852 = vmatpush1.bf16.msra.mxu1 %v8810_v3  ;;  %v8903_v3 = vld [vmem:[%s9331_s6 + $0x1894] ss:$8 sps:$4 sm:$0xff]  }
 0x350   : > { %6620 = vmatpush1.bf16.msra.mxu0 %v8813_v4  ;;  %5854 = vmatprep.subr.bf16.mxu1 %v8814_v5  ;;  %v8905_v4 = vld [vmem:[%s9331_s6 + $0x1890] ss:$8 sps:$4 sm:$0xff]   ;;  %v8906_v5 = vld [vmem:[%s9331_s6 + $0x18a4] ss:$8 sps:$4 sm:$0xff]  }
 0x351   : > { %6622 = vmatprep.subr.bf16.mxu0 %v8817_v6  ;;  %v8908_v6 = vld [vmem:[%s9331_s6 + $0x18a0] ss:$8 sps:$4 sm:$0xff]  }
 0x353   : > { %5856 = vmatpush1.bf16.msra.mxu1 %v8816_v7  ;;  %v8909_v7 = vld [vmem:[%s9331_s6 + $0x18b4] ss:$8 sps:$4 sm:$0xff]  }
 0x354   : > { %6624 = vmatpush1.bf16.msra.mxu0 %v8819_v8  ;;  %5858 = vmatprep.subr.bf16.mxu1 %v8820_v9  ;;  %v8911_v8 = vld [vmem:[%s9331_s6 + $0x18b0] ss:$8 sps:$4 sm:$0xff]   ;;  %v8912_v9 = vld [vmem:[%s9331_s6 + $0x18c4] ss:$8 sps:$4 sm:$0xff]  }
 0x355   : > { %6626 = vmatprep.subr.bf16.mxu0 %v8823_v58  ;;  %v8914_v58 = vld [vmem:[%s9331_s6 + $0x18c0] ss:$8 sps:$4 sm:$0xff]  }
 0x357   : > { %5860 = vmatpush1.bf16.msra.mxu1 %v8822_v11  ;;  %v8915_v11 = vld [vmem:[%s9331_s6 + $0x18d4] ss:$8 sps:$4 sm:$0xff]  }
 0x358   : > { %6628 = vmatpush1.bf16.msra.mxu0 %v8825_v12  ;;  %5862 = vmatprep.subr.bf16.mxu1 %v8826_v13  ;;  %v8917_v12 = vld [vmem:[%s9331_s6 + $0x18d0] ss:$8 sps:$4 sm:$0xff]   ;;  %v8918_v13 = vld [vmem:[%s9331_s6 + $0x18e4] ss:$8 sps:$4 sm:$0xff]  }
 0x359   : > { %6630 = vmatprep.subr.bf16.mxu0 %v8829_v14  ;;  %v8920_v14 = vld [vmem:[%s9331_s6 + $0x18e0] ss:$8 sps:$4 sm:$0xff]  }
 0x35b   : > { %5864 = vmatpush1.bf16.msra.mxu1 %v8828_v19  ;;  %v8921_v19 = vld [vmem:[%s9331_s6 + $0x18f4] ss:$8 sps:$4 sm:$0xff]  }
 0x35c   : > { %6632 = vmatpush1.bf16.msra.mxu0 %v8831_v0  ;;  %5866 = vmatprep.subr.bf16.mxu1 %v8832_v1  ;;  %v8923_v0 = vld [vmem:[%s9331_s6 + $0x18f0] ss:$8 sps:$4 sm:$0xff]  }
 0x35d   : > { %6634 = vmatprep.subr.bf16.mxu0 %v8835_v20 }
 0x35f   : > { %5868 = vmatpush1.bf16.msra.mxu1 %v8834_v21 }
 0x360   : > { %6636 = vmatpush1.bf16.msra.mxu0 %v8837_v22  ;;  %5870 = vmatprep.subr.bf16.mxu1 %v8838_v23 }
 0x361   : > { %6638 = vmatprep.subr.bf16.mxu0 %v8841_v24 }
 0x363   : > { %5872 = vmatpush1.bf16.msra.mxu1 %v8840_v25 }
 0x364   : > { %6640 = vmatpush1.bf16.msra.mxu0 %v8843_v26  ;;  %5874 = vmatprep.subr.bf16.mxu1 %v8844_v39  ;;  %v323_v26 = vld [vmem:[#allocation2] sm:$0xf] }
 0x365   : > { %6642 = vmatprep.subr.bf16.mxu0 %v8847_v10 }
 0x367   : > { %5876 = vmatpush1.bf16.msra.mxu1 %v8846_v32  ;;  %v4842_v32 = vld [vmem:[%s9351_s12 + $0x80] sm:$0xff] (!%p5085_p11) }
 0x368   : > { %6644 = vmatpush1.bf16.msra.mxu0 %v8849_v33  ;;  %5878 = vmatprep.subr.bf16.mxu1 %v8850_v34  ;;  %v4843_v33 = vld [vmem:[%s9351_s12 + $0x88] sm:$0xff] (!%p5085_p11)  ;;  %v4826_v34 = vld [vmem:[%s9351_s12] sm:$0xff] (!%p5085_p11) }
 0x369   : > { %6646 = vmatprep.subr.bf16.mxu0 %v8853_v36  ;;  %v6725_v36 = vpack.c.bf16 (!%p5085_p11), %v4843_v33, %v4842_v32 }
 0x36b   : > { %5880 = vmatpush1.bf16.msra.mxu1 %v8852_v15  ;;  %v4827_v15 = vld [vmem:[%s9351_s12 + $0x8] sm:$0xff] (!%p5085_p11) }
 0x36c   : > { %6648 = vmatpush1.bf16.msra.mxu0 %v8855_v16  ;;  %5882 = vmatprep.subr.bf16.mxu1 %v8856_v38  ;;  %v4844_v16 = vld [vmem:[%s9351_s12 + $0x90] sm:$0xff] (!%p5085_p11)  ;;  %v4845_v38 = vld [vmem:[%s9351_s12 + $0x98] sm:$0xff] (!%p5085_p11) }
 0x36d   : > { %6650 = vmatprep.subr.bf16.mxu0 %v8859_v31  ;;  %v6727_v31 = vpack.c.bf16 (!%p5085_p11), %v4827_v15, %v4826_v34 }
 0x36f   : > { %5884 = vmatpush1.bf16.msra.mxu1 %v8858_v41  ;;  %v6729_v41 = vpack.c.bf16 (!%p5085_p11), %v4845_v38, %v4844_v16 }
 0x370   : > { %6652 = vmatpush1.bf16.msra.mxu0 %v8861_v42  ;;  %5886 = vmatprep.subr.bf16.mxu1 %v8862_v43  ;;  %v4828_v42 = vld [vmem:[%s9351_s12 + $0x10] sm:$0xff] (!%p5085_p11)  ;;  %v4829_v43 = vld [vmem:[%s9351_s12 + $0x18] sm:$0xff] (!%p5085_p11) }
 0x371   : > { %6654 = vmatprep.subr.bf16.mxu0 %v8865_v45  ;;  %v4846_v45 = vld [vmem:[%s9351_s12 + $0xa0] sm:$0xff] (!%p5085_p11) }
 0x373   : > { %5888 = vmatpush1.bf16.msra.mxu1 %v8864_v48  ;;  %v4847_v48 = vld [vmem:[%s9351_s12 + $0xa8] sm:$0xff] (!%p5085_p11) }
 0x374   : > { %6656 = vmatpush1.bf16.msra.mxu0 %v8867_v30  ;;  %5890 = vmatprep.subr.bf16.mxu1 %v8868_v27  ;;  %v6731_v30 = vpack.c.bf16 (!%p5085_p11), %v4829_v43, %v4828_v42  ;;  %v6733_v27 = vpack.c.bf16 (!%p5085_p11), %v4847_v48, %v4846_v45 }
 0x375   : > { %6658 = vmatprep.subr.bf16.mxu0 %v8871_v29  ;;  %v4830_v29 = vld [vmem:[%s9351_s12 + $0x20] sm:$0xff] (!%p5085_p11) }
 0x377   : > { %5892 = vmatpush1.bf16.msra.mxu1 %v8870_v35  ;;  %v4831_v35 = vld [vmem:[%s9351_s12 + $0x28] sm:$0xff] (!%p5085_p11) }
 0x378   : > { %6660 = vmatpush1.bf16.msra.mxu0 %v8873_v49  ;;  %v4848_v49 = vld [vmem:[%s9351_s12 + $0xb0] sm:$0xff] (!%p5085_p11) }
 0x379   : > { %6662 = vmatprep.subr.bf16.mxu0 %v8876_v51  ;;  %v4849_v51 = vld [vmem:[%s9351_s12 + $0xb8] sm:$0xff] (!%p5085_p11) }
 0x37a   : > { %3858 = vmatmul.mubr.f32.vlgmr.msra.gmra.mrb[0].mxu1 %v10259_v37  ;;  %v8888_v37 = vld [vmem:[%s9331_s6 + $0x1844] ss:$8 sps:$4 sm:$0xff]  }
 0x37b   : > { %4710 = vmatmul.mubr.f32.vlgmr.msra.gmra.mrb[0].mxu0 %v10262_v28  ;;  %v8890_v28 = vld [vmem:[%s9331_s6 + $0x1840] ss:$8 sps:$4 sm:$0xff]  }
 0x37c   : > { %6664 = vmatpush1.bf16.msra.mxu0 %v8878_v53  ;;  %4780 = vmatprep.mubr.f32.mxu0 %v2961_v54  ;;  %v4809_v53 = vsub.s32 (!%p5085_p11), 0, %v9404_v44  ;;  %v4813_v54 = vsub.s32 (!%p5085_p11), 1, %v9404_v44 }
 0x37d   : > { %6666 = vmatprep.subr.bf16.mxu0 %v8879_v55  ;;  %v6737_v55 = vpack.c.bf16 (!%p5085_p11), %v4849_v51, %v4848_v49 }
 0x380   : > { %6668 = vmatpush1.bf16.msra.mxu0 %v8881_v56  ;;  %v4832_v56 = vld [vmem:[%s9351_s12 + $0x30] sm:$0xff] (!%p5085_p11) }
 0x381   : > { %6670 = vmatprep.subr.bf16.mxu0 %v8882_v17  ;;  %v4833_v17 = vld [vmem:[%s9351_s12 + $0x38] sm:$0xff] (!%p5085_p11) }
 0x384   : > { %6672 = vmatpush1.bf16.msra.mxu0 %v8884_v18  ;;  %v4850_v18 = vld [vmem:[%s9351_s12 + $0xc0] sm:$0xff] (!%p5085_p11) }
 0x385   : > { %6674 = vmatprep.subr.bf16.mxu0 %v8885_v57  ;;  %v4851_v57 = vld [vmem:[%s9351_s12 + $0xc8] sm:$0xff] (!%p5085_p11) }
 0x386   : > { %v6741_v44 = vpack.c.bf16 (!%p5085_p11), %v4851_v57, %v4850_v18 }
 0x388   : > { %6676 = vmatpush1.bf16.msra.mxu0 %v8887_v40  ;;  %v4805_v40 = vld [vmem:[%s10478_s21] sm:$0x3] (!%p5085_p11) }
 0x389   : > { %6678 = vmatprep.subr.bf16.mxu0 %v8888_v37  ;;  %v6739_v37 = vpack.c.bf16 (!%p5085_p11), %v4833_v17, %v4832_v56 }
 0x38c   : > { %6680 = vmatpush1.bf16.msra.mxu0 %v8890_v28  ;;  %v4810_v28 = vrot.slane (!%p5085_p11), %v4805_v40, %v4809_v53 }
 0x38d   : > { %6682 = vmatprep.subr.bf16.mxu0 %v8891_v59  ;;  %v4814_v59 = vrot.slane (!%p5085_p11), %v4805_v40, %v4813_v54 }
 0x390   : > { %6684 = vmatpush1.bf16.msra.mxu0 %v8893_v60  ;;  %v4834_v60 = vld [vmem:[%s9351_s12 + $0x40] sm:$0xff] (!%p5085_p11) }
 0x391   : > { %6686 = vmatprep.subr.bf16.mxu0 %v8894_v61  ;;  %v4835_v61 = vld [vmem:[%s9351_s12 + $0x48] sm:$0xff] (!%p5085_p11) }
 0x394   : > { %6688 = vmatpush1.bf16.msra.mxu0 %v8896_v62  ;;  %v4852_v62 = vld [vmem:[%s9351_s12 + $0xd0] sm:$0xff] (!%p5085_p11) }
 0x395   : > { %6690 = vmatprep.subr.bf16.mxu0 %v8897_v63  ;;  %v4853_v63 = vld [vmem:[%s9351_s12 + $0xd8] sm:$0xff] (!%p5085_p11) }
 0x398   : > { %6692 = vmatpush1.bf16.msra.mxu0 %v8899_v46  ;;  %v4815_v46 = vcombine.low (!%p5085_p11), %v4810_v28, %v4814_v59 }
 0x399   : > { %6694 = vmatprep.subr.bf16.mxu0 %v8900_v47 }
 0x39c   : > { %6696 = vmatpush1.bf16.msra.mxu0 %v8902_v2  ;;  %v6743_v2 = vpack.c.bf16 (!%p5085_p11), %v4835_v61, %v4834_v60 }
 0x39d   : > { %6698 = vmatprep.subr.bf16.mxu0 %v8903_v3  ;;  %v4822_v3 = vrot.slane (!%p5085_p11), %v4815_v46, %v9412_v50 }
 0x3a0   : > { %6700 = vmatpush1.bf16.msra.mxu0 %v8905_v4  ;;  %v6745_v4 = vpack.c.bf16 (!%p5085_p11), %v4853_v63, %v4852_v62 }
 0x3a1   : > { %6702 = vmatprep.subr.bf16.mxu0 %v8906_v5  ;;  %v4836_v5 = vld [vmem:[%s9351_s12 + $0x50] sm:$0xff] (!%p5085_p11) }
 0x3a4   : > { %6704 = vmatpush1.bf16.msra.mxu0 %v8908_v6  ;;  %v4837_v6 = vld [vmem:[%s9351_s12 + $0x58] sm:$0xff] (!%p5085_p11) }
 0x3a5   : > { %6706 = vmatprep.subr.bf16.mxu0 %v8909_v7  ;;  %v4854_v7 = vld [vmem:[%s9351_s12 + $0xe0] sm:$0xff] (!%p5085_p11) }
 0x3a8   : > { %6708 = vmatpush1.bf16.msra.mxu0 %v8911_v8  ;;  %v4855_v8 = vld [vmem:[%s9351_s12 + $0xe8] sm:$0xff] (!%p5085_p11) }
 0x3a9   : > { %6710 = vmatprep.subr.bf16.mxu0 %v8912_v9 }
 0x3ac   : > { %6712 = vmatpush1.bf16.msra.mxu0 %v8914_v58  ;;  %v6747_v58 = vpack.c.bf16 (!%p5085_p11), %v4837_v6, %v4836_v5 }
 0x3ad   : > { %6714 = vmatprep.subr.bf16.mxu0 %v8915_v11 }
 0x3b0   : > { %6716 = vmatpush1.bf16.msra.mxu0 %v8917_v12  ;;  %v6749_v12 = vpack.c.bf16 (!%p5085_p11), %v4855_v8, %v4854_v7 }
 0x3b1   : > { %6718 = vmatprep.subr.bf16.mxu0 %v8918_v13  ;;  %v4838_v13 = vld [vmem:[%s9351_s12 + $0x60] sm:$0xff] (!%p5085_p11) }
 0x3b4   : > { %6720 = vmatpush1.bf16.msra.mxu0 %v8920_v14  ;;  %v4839_v14 = vld [vmem:[%s9351_s12 + $0x68] sm:$0xff] (!%p5085_p11) }
 0x3b5   : > { %6722 = vmatprep.subr.bf16.mxu0 %v8921_v19  ;;  %v4856_v19 = vld [vmem:[%s9351_s12 + $0xf0] sm:$0xff] (!%p5085_p11) }
 0x3b8   : > { %6724 = vmatpush1.bf16.msra.mxu0 %v8923_v0  ;;  %v4857_v0 = vld [vmem:[%s9351_s12 + $0xf8] sm:$0xff] (!%p5085_p11) }
 0x3b9   : > { %6726 = vmatprep.subr.bf16.mxu0 (!%p5085_p11), %v6725_v36 }
 0x3bb   : > { %4781 = vmatmul.mubr.f32.vlgmr.msra.gmra.mrb[0].mxu0 %v10334_v52  ;;  %v6735_v52 = vpack.c.bf16 (!%p5085_p11), %v4831_v35, %v4830_v29 }
 0x3bc   : > { %6728 = vmatpush3.bf16.msra.mxu0 (!%p5085_p11), %v6727_v31 }
 0x3bd   : > { %6730 = vmatprep.subr.bf16.mxu0 (!%p5085_p11), %v6729_v41 }
 0x3c0   : > { %6732 = vmatpush3.bf16.msra.mxu0 (!%p5085_p11), %v6731_v30 }
 0x3c1   : > { %6734 = vmatprep.subr.bf16.mxu0 (!%p5085_p11), %v6733_v27 }
 0x3c4   : > { %6736 = vmatpush3.bf16.msra.mxu0 (!%p5085_p11), %v6735_v52 }
 0x3c5   : > { %6738 = vmatprep.subr.bf16.mxu0 (!%p5085_p11), %v6737_v55 }
 0x3c8   : > { %6740 = vmatpush3.bf16.msra.mxu0 (!%p5085_p11), %v6739_v37 }
 0x3c9   : > { %6742 = vmatprep.subr.bf16.mxu0 (!%p5085_p11), %v6741_v44 }
 0x3cc   : > { %6744 = vmatpush3.bf16.msra.mxu0 (!%p5085_p11), %v6743_v2 }
 0x3cd   : > { %6746 = vmatprep.subr.bf16.mxu0 (!%p5085_p11), %v6745_v4 }
 0x3d0   : > { %6748 = vmatpush3.bf16.msra.mxu0 (!%p5085_p11), %v6747_v58 }
 0x3d1   : > { %6750 = vmatprep.subr.bf16.mxu0 (!%p5085_p11), %v6749_v12 }
 0x44d   : > { %v3859_v1 = vpop.f32.mrb[0].mxu1 }
 0x44e   : > { %v3861_v20 = vpop.f32.mrb[1].mxu1 }
 0x48e   : > { %v4782_v21 = vpop.f32.mrb[0].mxu0 }
 0x48f   : > { %v6757_v22 = vadd.f32 %v4782_v21, %v3859_v1  ;;  %v4784_v23 = vpop.f32.mrb[1].mxu0 }
 0x490   : > { %v6758_v24 = vadd.f32 %v4784_v23, %v3861_v20  ;;  %v6751_v20 = vpack.c.bf16 (!%p5085_p11), %v4839_v14, %v4838_v13  ;;  %v4840_v23 = vld [vmem:[%s9351_s12 + $0x70] sm:$0xff] (!%p5085_p11) }
 0x492   : > { %v4789_v25 = vcombine.low %v6757_v22, %v6758_v24  ;;  %4803 = sbr.rel (%p5085_p11) target bundleno = 1409 (0x581), region = 52  ;;  %v6753_v22 = vpack.c.bf16 (!%p5085_p11), %v4857_v0, %v4856_v19  ;;  %v4841_v24 = vld [vmem:[%s9351_s12 + $0x78] sm:$0xff] (!%p5085_p11)  ;;  %6752 = vmatpush3.bf16.msra.mxu0 (!%p5085_p11), %v6751_v20 }
 0x494   : > { %v4796_v39 = vrot.slane %v4789_v25, %v9412_v50  ;;  %v6755_v25 = vpack.c.bf16 (!%p5085_p11), %v4841_v24, %v4840_v23  ;;  %6754 = vmatprep.subr.bf16.mxu0 (!%p5085_p11), %v6753_v22 }
 0x496   : > { %v4798_v10 = vadd.f32 %v4796_v39, %v323_v26  ;;  %6756 = vmatpush3.bf16.msra.mxu0 (!%p5085_p11), %v6755_v25 }
 0x498   : > { %4799 = vst [vmem:[#allocation2] sm:$0xf] %v4798_v10 }
 0x49f   : > { %v4804_v47 = vld [vmem:[#allocation2] sm:$0xf] }
 0x4a0   : > { %v4824_v9 = vadd.f32 %v4822_v3, %v4804_v47 }
 0x4a2   : > { %v4825_v11 = vmax.f32 %v4824_v9, 0.0 }
 0x4a4   : > { %v4865_v1 = vrot.slane %v4825_v11, %v9412_v50 }
 0x4a6   : > { %v4866_v21 = vcombine.high %v4865_v1, %v4865_v1 }
 0x4a8   : > { %4933 = vmatprep.mubr.f32.mxu0 %v4866_v21 }
 0x4a9   : > { %4934 = vmatmul.mubr.f32.vlgmr.msra.gmra.mrb[0].mxu0 %v4865_v1 }
 0x57c   : > { %v5122_v26 = vpop.f32.mrb[0].mxu0 }
 0x57d   : > { %v5123_v39 = vpop.f32.mrb[1].mxu0 }
 0x57e   : > { %v5124_v10 = vadd.f32 %v5123_v39, %v5122_v26 }
 0x580   : > { %4940 = vst.msk [vmem:[%s9362_s2] sm:$0x3] %vm4939_vm0, %v5124_v10 }
 0x581 PF: > { %s20_s25 = sadd.s32 1, %s9078_s25   ;;  %s10479_s6 = sld [smem:[#allocation9_spill]] }
 0x582   : > { %p17_p12 = scmp.ge.s32.totalorder %s20_s25, 6   ;;  %s10480_s15 = smov %s9042_s16 }
 0x583   : > { %s10481_s16 = smov %s9046_s17  ;;  %s10482_s17 = smov %s9280_s14 }
 0x584   : > { %s10483_s18 = smov %s9054_s19  ;;  %s10484_s19 = smov %s9058_s20 }
 0x585   : > { %s10485_s20 = smov %s9285_s5  ;;  %s10486_s21 = smov %s9070_s23 }
 0x586   : > { %s10487_s22 = smov %s9074_s24  ;;  %s10488_s23 = smov %s10491_s26 }
 0x587   : > { %s10489_s24 = smov %s10479_s6  ;;  %19 = sbr.rel (!%p17_p12) target bundleno = 13 (0xd), region = 103 }
 0x58e   :  { %4960 = vsyncpa [#allocation4], 1 }
 0x58f   :  { %4962 = vsyncpa [#allocation4 + $0x1], 1 }
 0x590   :  { %4963 = vsyncpa [#allocation6], 1 }
 0x591   :  { %4965 = vsyncpa [#allocation6 + $0x1], 1 }

</bundles_post_ra>
